<compile_context>
chip_gen: v7x
topology: tpu7x:2x2x1
jax: 0.10.0
libtpu: 0.0.40
codegen_flags: <defaults>
</compile_context>

<pallas_src>
import functools

import jax
import jax.numpy as jnp
from jax.experimental import pallas as pl
from jax.experimental.pallas import tpu as pltpu


def _lpg_kernel(pe_ref, out_ref, *, th_in, W, r):
    """One grid step: one batch element x one tile of input rows.

    pe_ref : [1, 4, th_in, W]        (VMEM)
    out_ref: [1, th_in*r, W*r]       (VMEM)
    """
    TH, Wr = th_in * r, W * r
    off = (r - 1) * 0.5
    inv_r = 1.0 / float(r)

    def expand_rows(n):
        # repeat_interleave by r along rows only: (th_in, W) -> (TH, W).
        # Sublane repeat; the (th_in, r, W) intermediate keeps W on the lane
        # axis, so it is lane-dense even if materialized.
        return jnp.broadcast_to(n[:, None, :], (th_in, r, W)).reshape(TH, W)

    # v depends only on the output-row phase (y % r): keep it as a (TH, 1)
    # sublane vector and let broadcasting do the rest.  (Tile row offsets are
    # multiples of TH = th_in*r, so the local phase equals the global phase.)
    v_col = ((jax.lax.broadcasted_iota(jnp.int32, (TH, 1), 0) % r)
             .astype(jnp.float32) - off) * inv_r

    # Row-expanded operands — at most three (TH, W) arrays stay live:
    #   a1 = n1,  t = n2*v + n3,  n4e = n4.
    a1 = expand_rows(pe_ref[0, 0])
    t = expand_rows(pe_ref[0, 1]) * v_col + expand_rows(pe_ref[0, 2])
    n4e = expand_rows(pe_ref[0, 3])

    # One lane-dense (TH, W) ratio per column phase k; u_k is a scalar, so the
    # denominator is a single FMA per phase.
    phases = []
    for k in range(r):
        u_k = (float(k) - off) * inv_r
        denom = a1 * u_k + t
        # EUP approximate reciprocal + one Newton step (error ~eps^2, well
        # inside f32 / 1e-5 tolerance) instead of a multi-op VPU divide.
        # (Behavioral note: at denom == 0 this yields NaN where the PyTorch
        # reference gives +/-inf; upstream n3 is bounded away from 0.)
        rcp = pl.reciprocal(denom, approx=True)
        rcp = rcp * (2.0 - denom * rcp)
        phases.append(n4e * rcp)

    # Single output-sized lane interleave:
    #   out[y, w*r + k] = phases[k][y, w]   ->  (TH, W, r) -> (TH, Wr).
    out = jnp.stack(phases, axis=-1).reshape(TH, Wr)
    out_ref[0] = out.astype(out_ref.dtype)  # lane-dense (full Wr) store


def _hw_budgets():
    """(max_out_tile_bytes, vmem_limit_bytes) tuned per TPU generation."""
    vmem = None
    try:
        info = pltpu.get_tpu_info()
        for name in ("vmem_capacity_bytes", "vmem_bytes", "vmem_size_bytes"):
            v = getattr(info, name, None)
            if v:
                vmem = int(v)
                break
    except Exception:
        pass
    if vmem is None:
        # Unknown hardware: modest tiles, leave the default scoped-VMEM limit.
        return (4 << 20), None
    if vmem >= (100 << 20):
        # v5e / v6e: 128 MiB VMEM -> larger tiles amortize per-step overhead.
        return (8 << 20), (96 << 20)
    # v7x: 64 MiB VMEM -> smaller tiles, explicit headroom under the limit.
    return (2 << 20), (48 << 20)


def _choose_rows_per_tile(H, W, r, batch, max_out_tile_bytes, out_itemsize):
    """Pick input rows per tile (th_in).

    Legal candidates: divisors of H that are multiples of 8, plus the full
    extent H (the (8,128) BlockSpec rule needs 8-aligned-or-full for both the
    input row dim th_in and the output row dim TH = th_in*r).  Among legal
    candidates we prefer the largest whose output tile fits the byte budget,
    and steer toward an even total parallel step count (B * n_row_tiles >= 2)
    so both v7x TensorCores get work even for B == 1.
    """
    cands = sorted({d for d in range(8, H + 1, 8) if H % d == 0} | {H})

    def out_bytes(d):
        return d * r * W * r * out_itemsize

    fitting = [d for d in cands if out_bytes(d) <= max_out_tile_bytes]
    pool = fitting if fitting else [min(cands)]  # smallest *legal* tile

    def total_steps(d):
        return batch * (H // d)

    even_pool = [d for d in pool if total_steps(d) >= 2 and total_steps(d) % 2 == 0]
    return max(even_pool if even_pool else pool)


def local_planar_guidance(plane_eq, focal, upratio, *, rows_per_tile=None,
                          out_dtype=None):
    """plane_eq: [B, 4, H, W] float32 ; focal: unused (kept for API parity).

    out_dtype: pass jnp.bfloat16 to halve HBM store traffic (~2x end-to-end on
    this store-bound kernel) when downstream consumers accept it; defaults to
    the input dtype to match the PyTorch reference exactly.
    """
    del focal  # unused in the reference forward pass
    B, C, H, W = plane_eq.shape
    assert C == 4, "plane_eq must have 4 channels (n1..n4)"
    r = int(upratio)
    Hr, Wr = H * r, W * r
    out_dtype = jnp.dtype(plane_eq.dtype if out_dtype is None else out_dtype)

    max_tile_bytes, vmem_limit = _hw_budgets()
    if rows_per_tile is None:
        th_in = _choose_rows_per_tile(H, W, r, B, max_tile_bytes,
                                      out_dtype.itemsize)
    else:
        th_in = int(rows_per_tile)
    assert H % th_in == 0 and (th_in == H or th_in % 8 == 0), \
        "rows_per_tile must divide H and be 8-aligned (or equal H)"
    TH = th_in * r
    n_row_tiles = H // th_in

    kernel = functools.partial(_lpg_kernel, th_in=th_in, W=W, r=r)

    cp_kwargs = dict(
        # Both axes independent -> megacore sharding (important on v7x with
        # 2 TCs/chip; the row-tile axis supplies parallelism even when B == 1).
        dimension_semantics=("parallel", "parallel"),
    )
    if vmem_limit is not None:
        cp_kwargs["vmem_limit_bytes"] = vmem_limit

    return pl.pallas_call(
        kernel,
        out_shape=jax.ShapeDtypeStruct((B, Hr, Wr), out_dtype),
        grid_spec=pltpu.PrefetchScalarGridSpec(
            num_scalar_prefetch=0,
            grid=(B, n_row_tiles),
            in_specs=[
                # (1, 4, th_in, W): last two dims are (8-aligned-or-full, full)
                pl.BlockSpec((1, 4, th_in, W), lambda b, t: (b, 0, t, 0)),
            ],
            # Lane-dense output tile: last dim is the full Wr -> unmasked vst.
            out_specs=pl.BlockSpec((1, TH, Wr), lambda b, t: (b, t, 0)),
        ),
        compiler_params=pltpu.CompilerParams(**cp_kwargs),
    )(plane_eq)


def _reference(plane_eq, upratio):
    """Pure-JAX reference mirroring the PyTorch forward exactly."""
    r = int(upratio)
    pe = jnp.repeat(plane_eq, r, axis=2)
    pe = jnp.repeat(pe, r, axis=3)
    n1, n2, n3, n4 = pe[:, 0], pe[:, 1], pe[:, 2], pe[:, 3]
    B, _, H, W = plane_eq.shape
    u = jnp.tile(jnp.arange(r, dtype=jnp.float32).reshape(1, 1, r), (B, H * r, W))
    u = (u - (r - 1) * 0.5) / r
    v = jnp.tile(jnp.arange(r, dtype=jnp.float32).reshape(1, r, 1), (B, H, W * r))
    v = (v - (r - 1) * 0.5) / r
    return n4 / (n1 * u + n2 * v + n3)


if __name__ == "__main__":
    key = jax.random.PRNGKey(0)
    B, H, W = 2, 16, 16
    upratio = 4

    k1, k2, k3 = jax.random.split(key, 3)
    # n1, n2, n4 arbitrary; keep n3 bounded away from zero so the division is
    # well-conditioned (typical upstream modules produce n3 = cos(theta) > 0).
    pe = jax.random.normal(k1, (B, 4, H, W), dtype=jnp.float32)
    n3 = jnp.abs(jax.random.normal(k2, (B, H, W), dtype=jnp.float32)) + 2.0
    plane_eq = pe.at[:, 2].set(n3)
    focal = jax.random.uniform(k3, (B,), dtype=jnp.float32) * 500.0 + 200.0  # unused

    ref = _reference(plane_eq, upratio)

    # Default tiling (auto-chosen; at this small size it is one or two tiles).
    out = jax.block_until_ready(local_planar_guidance(plane_eq, focal, upratio))
    assert out.shape == (B, H * upratio, W * upratio)
    assert jnp.allclose(out, ref, rtol=1e-5, atol=1e-5), "mismatch vs reference"

    # Explicitly exercise the multi-tile spatial grid path (grid = (2, 2)).
    out_tiled = jax.block_until_ready(
        local_planar_guidance(plane_eq, focal, upratio, rows_per_tile=8))
    assert jnp.allclose(out_tiled, ref, rtol=1e-5, atol=1e-5), \
        "mismatch vs reference (tiled path)"

    # Opt-in bf16 output path (halves HBM store traffic); looser tolerance.
    out_bf16 = jax.block_until_ready(
        local_planar_guidance(plane_eq, focal, upratio, out_dtype=jnp.bfloat16))
    assert out_bf16.dtype == jnp.bfloat16
    assert jnp.allclose(out_bf16.astype(jnp.float32), ref, rtol=2e-2, atol=2e-2), \
        "mismatch vs reference (bf16 path)"

    print("KERNEL_OK")
</pallas_src>

<mosaic_0001>
module attributes {stable_mosaic.version = 11 : i64} {
  func.func @_lpg_kernel(%arg0: i32, %arg1: i32, %arg2: memref<1x4x16x16xf32, #tpu.memory_space<vmem>>, %arg3: memref<1x64x64xf32, #tpu.memory_space<vmem>>) attributes {dimension_semantics = [#tpu.dimension_semantics<parallel>, #tpu.dimension_semantics<parallel>], iteration_bounds = array<i64: 2, 1>, scalar_prefetch = 0 : i64, scratch_operands = 0 : i64, tpu.core_type = #tpu.core_type<tc>, window_params = [{transform_indices = @transform_0, window_bounds = array<i64: 1, 4, 16, 16>}, {transform_indices = @transform_1, window_bounds = array<i64: 1, 64, 64>}]} {
    %0 = tpu.iota {dimensions = array<i32: 0>} : vector<64x1xi32>
    %c4_i32 = arith.constant 4 : i32
    %c0_i32 = arith.constant 0 : i32
    %1 = arith.cmpi eq, %c4_i32, %c0_i32 : i32
    %c1_i32 = arith.constant 1 : i32
    %2 = arith.select %1, %c1_i32, %c4_i32 : i32
    %3 = vector.broadcast %2 : i32 to vector<64x1xi32>
    %4 = arith.remsi %0, %3 : vector<64x1xi32>
    %c0_i32_0 = arith.constant 0 : i32
    %5 = vector.broadcast %c0_i32_0 : i32 to vector<64x1xi32>
    %6 = arith.cmpi ne, %4, %5 : vector<64x1xi32>
    %c0_i32_1 = arith.constant 0 : i32
    %7 = vector.broadcast %c0_i32_1 : i32 to vector<64x1xi32>
    %8 = arith.cmpi slt, %4, %7 : vector<64x1xi32>
    %c0_i32_2 = arith.constant 0 : i32
    %9 = arith.cmpi slt, %2, %c0_i32_2 : i32
    %10 = vector.broadcast %9 : i1 to vector<64x1xi1>
    %11 = vector.broadcast %10 : vector<64x1xi1> to vector<64x1xi1>
    %12 = arith.xori %8, %11 : vector<64x1xi1>
    %13 = arith.andi %12, %6 : vector<64x1xi1>
    %14 = vector.broadcast %2 : i32 to vector<64x1xi32>
    %15 = arith.addi %4, %14 : vector<64x1xi32>
    %16 = arith.select %13, %15, %4 : vector<64x1xi1>, vector<64x1xi32>
    %17 = arith.sitofp %16 : vector<64x1xi32> to vector<64x1xf32>
    %cst = arith.constant 1.500000e+00 : f32
    %18 = vector.broadcast %cst : f32 to vector<64x1xf32>
    %19 = arith.subf %17, %18 : vector<64x1xf32>
    %cst_3 = arith.constant 2.500000e-01 : f32
    %20 = vector.broadcast %cst_3 : f32 to vector<64x1xf32>
    %21 = arith.mulf %19, %20 : vector<64x1xf32>
    %c0 = arith.constant 0 : index
    %c0_4 = arith.constant 0 : index
    %c0_5 = arith.constant 0 : index
    %c0_6 = arith.constant 0 : index
    %22 = vector.load %arg2[%c0, %c0_4, %c0_5, %c0_6] : memref<1x4x16x16xf32, #tpu.memory_space<vmem>>, vector<1x1x16x16xf32>
    %23 = vector.shape_cast %22 : vector<1x1x16x16xf32> to vector<16x16xf32>
    %24 = vector.shape_cast %23 : vector<16x16xf32> to vector<16x1x16xf32>
    %25 = vector.shape_cast %24 : vector<16x1x16xf32> to vector<16x1x16xf32>
    %26 = vector.broadcast %25 : vector<16x1x16xf32> to vector<16x4x16xf32>
    %27 = vector.shape_cast %26 : vector<16x4x16xf32> to vector<64x16xf32>
    %c0_7 = arith.constant 0 : index
    %c1 = arith.constant 1 : index
    %c0_8 = arith.constant 0 : index
    %c0_9 = arith.constant 0 : index
    %28 = vector.load %arg2[%c0_7, %c1, %c0_8, %c0_9] : memref<1x4x16x16xf32, #tpu.memory_space<vmem>>, vector<1x1x16x16xf32>
    %29 = vector.shape_cast %28 : vector<1x1x16x16xf32> to vector<16x16xf32>
    %30 = vector.shape_cast %29 : vector<16x16xf32> to vector<16x1x16xf32>
    %31 = vector.shape_cast %30 : vector<16x1x16xf32> to vector<16x1x16xf32>
    %32 = vector.broadcast %31 : vector<16x1x16xf32> to vector<16x4x16xf32>
    %33 = vector.shape_cast %32 : vector<16x4x16xf32> to vector<64x16xf32>
    %34 = vector.broadcast %21 : vector<64x1xf32> to vector<64x16xf32>
    %35 = arith.mulf %33, %34 : vector<64x16xf32>
    %c0_10 = arith.constant 0 : index
    %c2 = arith.constant 2 : index
    %c0_11 = arith.constant 0 : index
    %c0_12 = arith.constant 0 : index
    %36 = vector.load %arg2[%c0_10, %c2, %c0_11, %c0_12] : memref<1x4x16x16xf32, #tpu.memory_space<vmem>>, vector<1x1x16x16xf32>
    %37 = vector.shape_cast %36 : vector<1x1x16x16xf32> to vector<16x16xf32>
    %38 = vector.shape_cast %37 : vector<16x16xf32> to vector<16x1x16xf32>
    %39 = vector.shape_cast %38 : vector<16x1x16xf32> to vector<16x1x16xf32>
    %40 = vector.broadcast %39 : vector<16x1x16xf32> to vector<16x4x16xf32>
    %41 = vector.shape_cast %40 : vector<16x4x16xf32> to vector<64x16xf32>
    %42 = arith.addf %35, %41 : vector<64x16xf32>
    %c0_13 = arith.constant 0 : index
    %c3 = arith.constant 3 : index
    %c0_14 = arith.constant 0 : index
    %c0_15 = arith.constant 0 : index
    %43 = vector.load %arg2[%c0_13, %c3, %c0_14, %c0_15] : memref<1x4x16x16xf32, #tpu.memory_space<vmem>>, vector<1x1x16x16xf32>
    %44 = vector.shape_cast %43 : vector<1x1x16x16xf32> to vector<16x16xf32>
    %45 = vector.shape_cast %44 : vector<16x16xf32> to vector<16x1x16xf32>
    %46 = vector.shape_cast %45 : vector<16x1x16xf32> to vector<16x1x16xf32>
    %47 = vector.broadcast %46 : vector<16x1x16xf32> to vector<16x4x16xf32>
    %48 = vector.shape_cast %47 : vector<16x4x16xf32> to vector<64x16xf32>
    %cst_16 = arith.constant -3.750000e-01 : f32
    %49 = vector.broadcast %cst_16 : f32 to vector<64x16xf32>
    %50 = arith.mulf %27, %49 : vector<64x16xf32>
    %51 = arith.addf %50, %42 : vector<64x16xf32>
    %52 = tpu.reciprocal %51 {approx = true} : vector<64x16xf32> -> vector<64x16xf32>
    %53 = arith.mulf %51, %52 : vector<64x16xf32>
    %cst_17 = arith.constant 2.000000e+00 : f32
    %54 = vector.broadcast %cst_17 : f32 to vector<64x16xf32>
    %55 = arith.subf %54, %53 : vector<64x16xf32>
    %56 = arith.mulf %52, %55 : vector<64x16xf32>
    %57 = arith.mulf %48, %56 : vector<64x16xf32>
    %cst_18 = arith.constant -1.250000e-01 : f32
    %58 = vector.broadcast %cst_18 : f32 to vector<64x16xf32>
    %59 = arith.mulf %27, %58 : vector<64x16xf32>
    %60 = arith.addf %59, %42 : vector<64x16xf32>
    %61 = tpu.reciprocal %60 {approx = true} : vector<64x16xf32> -> vector<64x16xf32>
    %62 = arith.mulf %60, %61 : vector<64x16xf32>
    %cst_19 = arith.constant 2.000000e+00 : f32
    %63 = vector.broadcast %cst_19 : f32 to vector<64x16xf32>
    %64 = arith.subf %63, %62 : vector<64x16xf32>
    %65 = arith.mulf %61, %64 : vector<64x16xf32>
    %66 = arith.mulf %48, %65 : vector<64x16xf32>
    %cst_20 = arith.constant 1.250000e-01 : f32
    %67 = vector.broadcast %cst_20 : f32 to vector<64x16xf32>
    %68 = arith.mulf %27, %67 : vector<64x16xf32>
    %69 = arith.addf %68, %42 : vector<64x16xf32>
    %70 = tpu.reciprocal %69 {approx = true} : vector<64x16xf32> -> vector<64x16xf32>
    %71 = arith.mulf %69, %70 : vector<64x16xf32>
    %cst_21 = arith.constant 2.000000e+00 : f32
    %72 = vector.broadcast %cst_21 : f32 to vector<64x16xf32>
    %73 = arith.subf %72, %71 : vector<64x16xf32>
    %74 = arith.mulf %70, %73 : vector<64x16xf32>
    %75 = arith.mulf %48, %74 : vector<64x16xf32>
    %cst_22 = arith.constant 3.750000e-01 : f32
    %76 = vector.broadcast %cst_22 : f32 to vector<64x16xf32>
    %77 = arith.mulf %27, %76 : vector<64x16xf32>
    %78 = arith.addf %77, %42 : vector<64x16xf32>
    %79 = tpu.reciprocal %78 {approx = true} : vector<64x16xf32> -> vector<64x16xf32>
    %80 = arith.mulf %78, %79 : vector<64x16xf32>
    %cst_23 = arith.constant 2.000000e+00 : f32
    %81 = vector.broadcast %cst_23 : f32 to vector<64x16xf32>
    %82 = arith.subf %81, %80 : vector<64x16xf32>
    %83 = arith.mulf %79, %82 : vector<64x16xf32>
    %84 = arith.mulf %48, %83 : vector<64x16xf32>
    %85 = vector.shape_cast %57 : vector<64x16xf32> to vector<64x16x1xf32>
    %86 = vector.shape_cast %66 : vector<64x16xf32> to vector<64x16x1xf32>
    %87 = vector.shape_cast %75 : vector<64x16xf32> to vector<64x16x1xf32>
    %88 = vector.shape_cast %84 : vector<64x16xf32> to vector<64x16x1xf32>
    %89 = tpu.concatenate %85, %86, %87, %88 in 2 : vector<64x16x1xf32>, vector<64x16x1xf32>, vector<64x16x1xf32>, vector<64x16x1xf32> -> vector<64x16x4xf32>
    %90 = vector.shape_cast %89 : vector<64x16x4xf32> to vector<64x64xf32>
    %c0_24 = arith.constant 0 : index
    %c0_25 = arith.constant 0 : index
    %c0_26 = arith.constant 0 : index
    %91 = vector.load %arg3[%c0_24, %c0_25, %c0_26] : memref<1x64x64xf32, #tpu.memory_space<vmem>>, vector<1x64x64xf32>
    %92 = vector.shape_cast %91 : vector<1x64x64xf32> to vector<64x64xf32>
    %93 = vector.shape_cast %90 : vector<64x64xf32> to vector<1x64x64xf32>
    tpu.vector_store %arg3[%c0_24, %c0_25, %c0_26], %93 {strides = array<i32>} : memref<1x64x64xf32, #tpu.memory_space<vmem>>, vector<1x64x64xf32>,
    return
  }
  func.func @transform_0(%arg0: i32, %arg1: i32) -> (i32, i32, i32, i32) {
    %c0_i32 = arith.constant 0 : i32
    %c0_i32_0 = arith.constant 0 : i32
    %c0_i32_1 = arith.constant 0 : i32
    return %arg0, %c0_i32, %arg1, %c0_i32_0 : i32, i32, i32, i32
  }
  func.func @transform_1(%arg0: i32, %arg1: i32) -> (i32, i32, i32) {
    %c0_i32 = arith.constant 0 : i32
    %c0_i32_0 = arith.constant 0 : i32
    return %arg0, %arg1, %c0_i32 : i32, i32, i32
  }
}

</mosaic_0001>

<bundles_post_ra>
// kernel: tpu_custom_call.1
= control target key start
LH: loop header
LB: loop body
LE: loop exit
PB: predicated region body
PF: predicated region fallthrough
CT: control target
= control target key end

     0   :  { %6 = vsyncpa [#allocation3], 0  ;;  %s13078_s0 = inlined_call_operand.hbm [shape: f32[2,4,16,16], index: 0, kind: input, shape index: {}]   ;;  %s13079_s1 = inlined_call_operand.hbm [shape: f32[2,64,64], index: 1, kind: output, shape index: {}]  }
   0x1   :  { %8 = vsyncpa [#allocation3 + $0x1], 0 }
   0x2   :  { %9 = vsyncpa [#allocation4], 0 }
   0x3   :  { %11 = vsyncpa [#allocation4 + $0x1], 0  ;;  %s8266_s6 = smov 0   ;;  %s8268_s7 = smov 0  }
   0x4   :  { %s8270_s8 = smov 0   ;;  %s8272_s9 = smov 0  }
   0x5   :  { %s8274_s10 = smov 0   ;;  %s8276_s11 = smov 0  }
   0x6 LB: > { %s7865_s12 = sadd.s32 4294967295, %s8229_s11   ;;  %s7866_s13 = sadd.s32 4294967294, %s8229_s11   ;;  %s8229_s11 = sphi %s8276_s11, %s17_s11   ;;  %s8225_s10 = sphi %s8274_s10, %s14481_s10   ;;  %s8221_s9 = sphi %s8272_s9, %s14480_s9   ;;  %s8217_s8 = sphi %s8270_s8, %s14479_s8   ;;  %s8213_s7 = sphi %s8268_s7, %s14478_s7   ;;  %s8209_s6 = sphi %s8266_s6, %s14477_s6  }
   0x7   : > { %s29_s14 = sadd.s32 1, %s8225_s10  ;;  %s38_s15 = sadd.s32 1, %s8217_s8 }
   0x8   : > { %p31_p0 = scmp.ge.s32.totalorder %s29_s14, 2  ;;  %p45_p1 = scmp.ne.s32.totalorder %s8217_s8, %s8213_s7 }
   0x9   : > { %p46_p2 = scmp.eq.s32.totalorder %s8229_s11, 0  ;;  %p51_p3 = scmp.ne.s32.totalorder %s8213_s7, %s8209_s6 }
   0xa   : > { %s14483_s14 = smov (%p31_p0, %s29_s14), 0  ;;  %p52_p5 = scmp.eq.s32.totalorder %s7865_s12, 0 }
   0xb   : > { %p8307_p4 = por %p46_p2, %p45_p1  ;;  %s33_s17 = ssub.s32 %s8225_s10, %s14483_s14 }
   0xc   : > { %p77_p6 = scmp.eq.s32.totalorder %s7865_s12, 1  ;;  %p36_p7 = scmp.eq.s32.totalorder %s33_s17, 0 }
   0xd   : > { %p8313_p8 = por %p52_p5, %p51_p3  ;;  %p83_p10 = scmp.eq.s32.totalorder %s7866_s13, 1 }
   0xe   : > { %p8317_p9 = por %p77_p6, %p45_p1  ;;  %p7908_p13 = scmp.lt.s32.totalorder %s8229_s11, 2 }
   0xf   : > { %s8322_s20 = scalar_select %p36_p7, %s8217_s8, %s38_s15  }
  0x10   : > { %s13290_s19 = scalar_select %p8317_p9, 1, 0 }
  0x11   : > { %p8324_p11 = por %p83_p10, %p51_p3  ;;  %s103_s22 = sand.u32 1, %s8217_s8  }
  0x12   : > { %s7869_s23 = sshll.u32 %s103_s22, 6  ;;  %s7894_s24 = sshll.u32 %s8225_s10, 10 }
  0x13   : > { %s13291_s21 = scalar_select %p8324_p11, 1, 0 }
  0x14   : > { %s8335_s27 = scalar_lea.hbm %s13078_s0, %s7894_s24  ;;  %s107_s28 = scalar_lea.vmem [#allocation2], %s7869_s23 }
  0x15   : > { %s116_s29 = sshll.u32 %s107_s28, 4  ;;  %p8341_p0 = pnand %p7908_p13, %p8307_p4  ;;  %s8337_s29 = int_to_ptr.vmem [resolvable:$true] %s116_s29 }
  0x16   : > { %s8346_s2 = scalar_lea.sflag [#allocation3], %s103_s22  ;;  %s8117_s3 = scalar_lea.hbm %s8335_s27, 1024 }
  0x17   : > { %p8118_p2 = scmp.ne.s32.totalorder %s8335_s27, %s8117_s3  ;;  %p8119_p3 = pneg %p8341_p0 }
  0x18   : > { %s8122_s12 = scalar_lea.hbm %s13078_s0, 2048  ;;  %p8123_p4 = scmp.lt.u32.totalorder %s8335_s27, %s13078_s0 }
  0x19   : > { %p8120_p5 = pnand %p8119_p3, %p8118_p2  ;;  %p8124_p7 = scmp.lt.u32.totalorder %s8122_s12, %s8117_s3 }
  0x1a   : > { %p8126_p13 = scmp.lt.u32.totalorder %s8117_s3, %s8335_s27 }
  0x1b   : > { %p8121_p6 = pneg %p8120_p5  ;;  %p8125_p10 = por %p8124_p7, %p8123_p4 }
  0x1d   : > { %p8127_p12 = por %p8126_p13, %p8125_p10 }
  0x1f   : > { %p8128_p1 = pnand %p8127_p12, %p8121_p6 }
  0x21   : > { %8131 = shalt.err (!%p8128_p1)
}
  0x22   : > { %s8132_s16 = scalar_lea.vmem %s8337_s29, 1024  ;;  %s8231_s17 = smov [#allocation2]  }
  0x23   : > { %p8133_p2 = scmp.ne.s32.totalorder %s8337_s29, %s8132_s16  ;;  %s8137_s22 = sshll.u32 %s8231_s17, 4  ;;  %s8138_s22 = int_to_ptr.vmem [resolvable:$false] %s8137_s22 }
  0x24   : > { %s8139_s23 = scalar_lea.vmem %s8138_s22, 2048  ;;  %p8140_p9 = scmp.lt.s32.totalorder %s8337_s29, %s8138_s22 }
  0x25   : > { %p8135_p5 = pnand %p8133_p2, %p8119_p3  ;;  %p8141_p4 = scmp.lt.s32.totalorder %s8139_s23, %s8132_s16 }
  0x27   : > { %p8136_p11 = pneg %p8135_p5  ;;  %p8142_p7 = por %p8141_p4, %p8140_p9 }
  0x29   : > { %p8143_p10 = pnand %p8142_p7, %p8136_p11 }
  0x2b   : > { %8146 = shalt.err (!%p8143_p10)
}
  0x2c   : > { %s8232_s24 = smov 128   ;;  %s8233_s25 = smov 8  }
  0x2d   : > { %7903 = dma.hbm_to_vmem [thread:$0]  (!%p8341_p0), %s8335_s27, 1024, %s8337_s29, %s8346_s2, %s8232_s24, %s8232_s24, %s8233_s25  }
  0x2e   : > { %p124_p12 = scmp.lt.s32.totalorder %s8229_s11, 3  ;;  %p13293_p1 = scmp.ge.s32.totalorder %s8229_s11, 1 }
  0x30   : > { %p125_p3 = pnand %p13293_p1, %p124_p12 }
  0x32   : > { %128 = sbr.rel (%p125_p3) target bundleno = 1607 (0x647), region = 24 }
  0x39   : > { %s8378_s26 = sand.u32 1, %s8213_s7  }
  0x3a   : > { %s7873_s28 = sshll.u32 %s8378_s26, 6  ;;  %s131_s3 = scalar_lea.sflag [#allocation3], %s8378_s26 }
  0x3b   : > { %s8384_s4 = scalar_lea.vmem [#allocation2], %s7873_s28 }
  0x3c   : > { %8200 = dma.done.wait (%p8313_p8), %s131_s3, 1024  }
  0x3d   : > { %8202 = vsyncadd (%p8313_p8), %s131_s3, 4294966272  ;;  %v155_v0 = vlaneseq  ;;  %v8234_v1 = vmov 1966171168   ;;  %v8235_v3 = vmov 839922192   ;;  %v8397_v14 = vld [vmem:[%s8384_s4] sm:$0xff] }
  0x3e   : > { %v290_v2 = vunpack.c.l.s4 %v8234_v1  ;;  %v658_v4 = vunpack.c.l.s4 %v8235_v3  ;;  %v8236_v6 = vmov 1985246804   ;;  %v8400_v15 = vld [vmem:[%s8384_s4 + $0x10] sm:$0xff]  ;;  %v8406_v17 = vld [vmem:[%s8384_s4 + $0x20] sm:$0xff]  ;;  %vm4575_vm0 = vcmask 7168   ;;  %s8239_s18 = smov 4  }
  0x3f   : > { %v8390_v5 = vshrl.u32 %v155_v0, 7  ;;  %v665_v7 = vunpack.c.l.s4 %v8236_v6  ;;  %v8446_v51 = vld [vmem:[%s8384_s4 + $0x30] sm:$0xff]  ;;  %vm4704_vm1 = vcmask 15360   ;;  %vm4833_vm2 = vcmask 23552   ;;  %s8240_s27 = smov 8   ;;  %s8241_s29 = smov 12  }
  0x40   : > { %v291_v8 = vunpack.c.0.s8 %v290_v2  ;;  %v659_v9 = vunpack.c.0.s8 %v658_v4  ;;  %s8242_s30 = smov 16   ;;  %s8243_s2 = smov 20   ;;  %vm7618_vm3 = vcmask 31744   ;;  %vm7627_vm4 = vcmask 64512  }
  0x41   : > { %13294 = vst [vmem:[#allocation8_spill] sm:$0xff] %v8390_v5  ;;  %v168_v10 = vand.u32 3, %v8390_v5  ;;  %v666_v12 = vunpack.c.0.s8 %v665_v7  ;;  %v8415_v22 = vsub.s32 0, %v8390_v5  ;;  %v157_v31 = vadd.s32 8, %v8390_v5  ;;  %s8244_s5 = smov 24   ;;  %s8245_s12 = smov 28  }
  0x42   : > { %v8394_v11 = vsub.s32 %v291_v8, %v8390_v5  ;;  %v8403_v16 = vsub.s32 %v659_v9, %v8390_v5  ;;  %s8246_s13 = smov 32   ;;  %s8247_s15 = smov 36   ;;  %vm7636_vm5 = vcmask 97280   ;;  %vm7645_vm6 = vcmask 130048  }
  0x43   : > { %v260_v13 = vcvt.s32.f32 %v168_v10  ;;  %v8418_v23 = vsub.s32 %v666_v12, %v8390_v5  ;;  %v175_v45 = vand.u32 3, %v157_v31  ;;  %s8248_s16 = smov 40   ;;  %s8249_s17 = smov 44   ;;  %vm7654_vm7 = vcmask 162816  }
  0x44   : > { %v295_v19 = vrot.slane %v8397_v14, %v8394_v11  ;;  %v478_v20 = vrot.slane %v8400_v15, %v8394_v11  ;;  %v813_v21 = vrot.slane %v8406_v17, %v8394_v11  ;;  %v1012_v58 = vrot.slane %v8446_v51, %v8394_v11  ;;  %s8250_s22 = smov 48   ;;  %s8251_s23 = smov 52  }
  0x45   : > { %v7875_v18 = vadd.f32 -1.5, %v260_v13  ;;  %v261_v49 = vcvt.s32.f32 %v175_v45  ;;  %vm7663_vm8 = vcmask 195584   ;;  %s8252_s24 = smov 56   ;;  %vm7672_vm9 = vcmask 228352   ;;  %s8253_s25 = smov 60  }
  0x46   : > { %v303_v25 = vcombine.high %v295_v19, %v295_v19  ;;  %v311_v26 = vrot.slane %v295_v19, %v8394_v11  ;;  %v486_v27 = vcombine.high %v478_v20, %v478_v20  ;;  %v494_v28 = vrot.slane %v478_v20, %v8394_v11  ;;  %s12960_s3 = scalar_lea.vmem [#allocation5], %s7873_s28  ;;  %p14474_p9 = scmp.ne.s32.totalorder %s13290_s19, 0 }
  0x47   : > { %v276_v24 = vmul.f32 0.25, %v7875_v18  ;;  %v821_v29 = vcombine.high %v813_v21, %v813_v21  ;;  %v829_v30 = vrot.slane %v813_v21, %v8394_v11  ;;  %v7876_v53 = vadd.f32 -1.5, %v261_v49  ;;  %s7778_s28 = sshll.u32 %s12960_s3, 4  ;;  %s13018_s28 = int_to_ptr.vmem [resolvable:$true] %s7778_s28 }
  0x48   : > { %v325_v32 = vrot.slane %v303_v25, %v8394_v11  ;;  %v8426_v33 = vrot.slane %v311_v26, %v8415_v22  ;;  %v508_v34 = vrot.slane %v486_v27, %v8394_v11  ;;  %v572_v36 = vrot.slane %v494_v28, %v8415_v22 }
  0x49   : > { %v663_v35 = vrot.slane %v276_v24, %v8403_v16  ;;  %v670_v37 = vrot.slane %v276_v24, %v8418_v23  ;;  %v843_v38 = vrot.slane %v821_v29, %v8394_v11  ;;  %v907_v39 = vrot.slane %v829_v30, %v8415_v22 }
  0x4a   : > { %v8435_v40 = vrot.slane %v325_v32, %v8415_v22  ;;  %v576_v41 = vrot.slane %v508_v34, %v8415_v22  ;;  %v1183_v44 = vmul.f32 -0.375, %v8426_v33  ;;  %v516_v54 = vcombine.high %v494_v28, %v494_v28 }
  0x4b   : > { %v785_v42 = vmul.f32 %v663_v35, %v572_v36  ;;  %v911_v43 = vrot.slane %v843_v38, %v8415_v22  ;;  %v518_v56 = vcombine.high %v508_v34, %v508_v34  ;;  %v277_v57 = vmul.f32 0.25, %v7876_v53 }
  0x4c   : > { %v786_v46 = vmul.f32 %v670_v37, %v576_v41  ;;  %v1184_v47 = vmul.f32 -0.375, %v8435_v40  ;;  %v333_v59 = vcombine.high %v311_v26, %v311_v26  ;;  %v580_v60 = vrot.slane %v516_v54, %v8415_v22 }
  0x4d   : > { %v8441_v48 = vadd.f32 %v907_v39, %v785_v42  ;;  %v677_v61 = vrot.slane %v277_v57, %v8403_v16  ;;  %v851_v62 = vcombine.high %v829_v30, %v829_v30  ;;  %v335_v63 = vcombine.high %v325_v32, %v325_v32 }
  0x4e   : > { %v8443_v50 = vadd.f32 %v911_v43, %v786_v46  ;;  %v584_v0 = vrot.slane %v518_v56, %v8415_v22  ;;  %v684_v1 = vrot.slane %v277_v57, %v8418_v23  ;;  %v853_v2 = vcombine.high %v843_v38, %v843_v38 }
  0x4f   : > { %v1199_v52 = vadd.f32 %v1183_v44, %v8441_v48  ;;  %v1020_v3 = vcombine.high %v1012_v58, %v1012_v58  ;;  %v8457_v4 = vrot.slane %v333_v59, %v8415_v22  ;;  %v787_v6 = vmul.f32 %v677_v61, %v580_v60 }
  0x50   : > { %v1200_v55 = vadd.f32 %v1184_v47, %v8443_v50  ;;  %v915_v7 = vrot.slane %v851_v62, %v8415_v22  ;;  %v8461_v8 = vrot.slane %v335_v63, %v8415_v22  ;;  %v788_v9 = vmul.f32 %v684_v1, %v584_v0 }
  0x51   : > { %7989 = vrcp.f32 %v1199_v52  ;;  %v919_v10 = vrot.slane %v853_v2, %v8415_v22  ;;  %v8465_v12 = vrot.slane %v1012_v58, %v8394_v11  ;;  %v8468_v18 = vrot.slane %v1020_v3, %v8394_v11 }
  0x52   : > { %7991 = vrcp.f32 %v1200_v55  ;;  %v8470_v19 = vadd.f32 %v915_v7, %v787_v6  ;;  %v1185_v20 = vmul.f32 -0.375, %v8457_v4  ;;  %v1186_v26 = vmul.f32 -0.375, %v8461_v8 }
  0x53   : > { %v8473_v25 = vadd.f32 %v919_v10, %v788_v9  ;;  %v8478_v28 = vrot.slane %v8465_v12, %v8415_v22  ;;  %v8482_v30 = vrot.slane %v8468_v18, %v8415_v22  ;;  %v158_v34 = vadd.s32 16, %v8390_v5 }
  0x54   : > { %v1201_v32 = vadd.f32 %v1185_v20, %v8470_v19  ;;  %v8490_v41 = vsub.s32 1, %v8390_v5  ;;  %v471_v43 = vcombine.high %v8400_v15, %v8400_v15  ;;  %v288_v49 = vcombine.high %v8397_v14, %v8397_v14 }
  0x55   : > { %v1202_v36 = vadd.f32 %v1186_v26, %v8473_v25  ;;  %v182_v42 = vand.u32 3, %v158_v34  ;;  %v806_v53 = vcombine.high %v8406_v17, %v8406_v17  ;;  %v8506_v54 = vsub.s32 2, %v8390_v5 }
  0x56   : > { %7993 = vrcp.f32 %v1201_v32  ;;  %v8511_v59 = vsub.s32 3, %v8390_v5  ;;  %v8522_v1 = vsub.s32 4, %v8390_v5  ;;  %v1050_v7 = vcombine.high %v8465_v12, %v8465_v12 }
  0x57   : > { %7995 = vrcp.f32 %v1202_v36  ;;  %v262_v47 = vcvt.s32.f32 %v182_v42  ;;  %v820_v57 = vrot.slane %v806_v53, %v8394_v11  ;;  %v1052_v9 = vcombine.high %v8468_v18, %v8468_v18 }
  0x58   : > { %v8554_v34 = vrot.slane %v1050_v7, %v8415_v22  ;;  %v1005_v7 = vcombine.high %v8446_v51, %v8446_v51  ;;  %vm7681_vm10 = vcmask 261120   ;;  %vm7690_vm11 = vcmask 293888  }
  0x59   : > { %v7877_v15 = vadd.f32 -1.5, %v262_v47  ;;  %v822_v0 = vcombine.high %v820_v57, %v820_v57  ;;  %vm7699_vm12 = vcmask 326656   ;;  %vm7708_vm13 = vcmask 359424  }
  0x5a   : > { %vm7717_vm14 = vcmask 392192   ;;  %vm7726_vm15 = vcmask 424960  }
  0x5b   : > { %v7990_v13 = vpop.eup %7989  ;;  %v278_v60 = vmul.f32 0.25, %v7877_v15  ;;  %v8546_v18 = vrot.slane %v822_v0, %v8394_v11 }
  0x5c   : > { %v7992_v21 = vpop.eup %7991  ;;  %v1231_v24 = vmul.f32 %v7990_v13, %v1199_v52  ;;  %v485_v52 = vrot.slane %v471_v43, %v8394_v11 }
  0x5d   : > { %v1232_v27 = vmul.f32 %v7992_v21, %v1200_v55  ;;  %v302_v55 = vrot.slane %v288_v49, %v8394_v11  ;;  %v691_v20 = vrot.slane %v278_v60, %v8403_v16  ;;  %v698_v26 = vrot.slane %v278_v60, %v8418_v23 }
  0x5e   : > { %v1247_v29 = vsub.f32 2.0, %v1231_v24  ;;  %v487_v56 = vcombine.high %v485_v52, %v485_v52  ;;  %v8516_v61 = vrot.slane %v485_v52, %v8394_v11  ;;  %v927_v43 = vrot.slane %v8546_v18, %v8415_v22 }
  0x5f   : > { %v1248_v31 = vsub.f32 2.0, %v1232_v27  ;;  %v304_v62 = vcombine.high %v302_v55, %v302_v55  ;;  %v8531_v10 = vrot.slane %v302_v55, %v8394_v11  ;;  %v8549_v27 = vsub.s32 5, %v8390_v5 }
  0x60   : > { %v1263_v35 = vmul.f32 %v7990_v13, %v1247_v29  ;;  %v7994_v58 = vpop.eup %7993  ;;  %v8519_v63 = vrot.slane %v487_v56, %v8394_v11  ;;  %v588_v13 = vrot.slane %v8516_v61, %v8415_v22  ;;  %v8583_v56 = vsub.s32 7, %v8390_v5 }
  0x61   : > { %v1264_v37 = vmul.f32 %v7992_v21, %v1248_v31  ;;  %v7996_v17 = vpop.eup %7995  ;;  %v1233_v3 = vmul.f32 %v7994_v58, %v1201_v32  ;;  %v8537_v21 = vrot.slane %v820_v57, %v8394_v11  ;;  %v8540_v24 = vrot.slane %v304_v62, %v8394_v11 }
  0x62   : > { %v1279_v38 = vmul.f32 %v1263_v35, %v8478_v28  ;;  %v1234_v6 = vmul.f32 %v7996_v17, %v1202_v36  ;;  %v592_v12 = vrot.slane %v8519_v63, %v8415_v22  ;;  %v8558_v35 = vrot.slane %v8531_v10, %v8415_v22 }
  0x63   : > { %v1280_v39 = vmul.f32 %v1264_v37, %v8482_v30  ;;  %v1249_v31 = vsub.f32 2.0, %v1233_v3  ;;  %v789_v36 = vmul.f32 %v691_v20, %v588_v13  ;;  %v923_v37 = vrot.slane %v8537_v21, %v8415_v22 }
  0x64   : > { %v1250_v32 = vsub.f32 2.0, %v1234_v6  ;;  %v790_v42 = vmul.f32 %v698_v26, %v592_v12  ;;  %v1187_v53 = vmul.f32 -0.375, %v8558_v35  ;;  %v159_v60 = vadd.s32 24, %v8390_v5 }
  0x65   : > { %v8494_v44 = vcombine.low %v1279_v38, %v1280_v39  ;;  %v8563_v38 = vrot.slane %v1052_v9, %v8415_v22  ;;  %v8567_v39 = vrot.slane %v8540_v24, %v8415_v22  ;;  %v1265_v47 = vmul.f32 %v7994_v58, %v1249_v31 }
  0x66   : > { %v1266_v49 = vmul.f32 %v7996_v17, %v1250_v32  ;;  %v8576_v52 = vadd.f32 %v923_v37, %v789_v36  ;;  %v8579_v15 = vadd.f32 %v927_v43, %v790_v42  ;;  %v189_v3 = vand.u32 3, %v159_v60 }
  0x67   : > { %v1677_v45 = vrot.slane %v8494_v44, %v8490_v41  ;;  %v1666_v46 = vrot.slane %v8494_v44, %v8415_v22  ;;  %v1688_v14 = vrot.slane %v8494_v44, %v8506_v54  ;;  %v1699_v2 = vrot.slane %v8494_v44, %v8511_v59 }
  0x68   : > { %v1710_v29 = vrot.slane %v8494_v44, %v8522_v1  ;;  %v1188_v55 = vmul.f32 -0.375, %v8567_v39  ;;  %v1282_v58 = vmul.f32 %v1266_v49, %v8563_v38  ;;  %v1203_v17 = vadd.f32 %v1187_v53, %v8576_v52 }
  0x69   : > { %1679 = vbcast.lane.b32.xlu1 %v1677_v45, 256  ;;  %1668 = vbcast.lane.b32.xlu0 %v1666_v46, 256  ;;  %v1743_v0 = vrot.slane %v8494_v44, %v8583_v56  ;;  %v263_v9 = vcvt.s32.f32 %v189_v3  ;;  %v517_v51 = vcombine.high %v8516_v61, %v8516_v61  ;;  %v519_v36 = vcombine.high %v8519_v63, %v8519_v63 }
  0x6a   : > { %v1204_v62 = vadd.f32 %v1188_v55, %v8579_v15  ;;  %7997 = vrcp.f32 %v1203_v17  ;;  %v334_v49 = vcombine.high %v8531_v10, %v8531_v10  ;;  %v852_v53 = vcombine.high %v8537_v21, %v8537_v21 }
  0x6b   : > { %v7878_v20 = vadd.f32 -1.5, %v263_v9  ;;  %v596_v61 = vrot.slane %v517_v51, %v8415_v22  ;;  %v336_v55 = vcombine.high %v8540_v24, %v8540_v24 }
  0x6c   : > { %7999 = vrcp.f32 %v1204_v62  ;;  %v8636_v24 = vrot.slane %v334_v49, %v8415_v22 }
  0x6d   : > { %1683 = vbcast.lane.b32.xlu1 %v1677_v45, 264  ;;  %1672 = vbcast.lane.b32.xlu0 %v1666_v46, 264  ;;  %v8572_v45 = vsub.s32 6, %v8390_v5  ;;  %v1721_v46 = vrot.slane %v8494_v44, %v8549_v27  ;;  %v279_v32 = vmul.f32 0.25, %v7878_v20  ;;  %v8644_v3 = vrot.slane %v336_v55, %v8415_v22 }
  0x6f   : > { %v1732_v57 = vrot.slane %v8494_v44, %v8572_v45  ;;  %v1019_v44 = vrot.slane %v1005_v7, %v8394_v11  ;;  %v705_v63 = vrot.slane %v279_v32, %v8403_v16 }
  0x71   : > { %1694 = vbcast.lane.b32.xlu1 %v1688_v14, 264  ;;  %1690 = vbcast.lane.b32.xlu0 %v1688_v14, 256  ;;  %v1281_v14 = vmul.f32 %v1265_v47, %v8554_v34  ;;  %v1021_v31 = vcombine.high %v1019_v44, %v1019_v44 }
  0x73   : > { %v8615_v47 = vrot.slane %v1021_v31, %v8394_v11 }
  0x74   : > { %v7998_v12 = vpop.eup %7997 }
  0x75   : > { %1705 = vbcast.lane.b32.xlu1 %v1699_v2, 264  ;;  %1701 = vbcast.lane.b32.xlu0 %v1699_v2, 256  ;;  %v8594_v2 = vcombine.low %v1281_v14, %v1282_v58  ;;  %v1235_v42 = vmul.f32 %v7998_v12, %v1203_v17  ;;  %v712_v14 = vrot.slane %v279_v32, %v8418_v23  ;;  %v1190_v32 = vmul.f32 -0.375, %v8644_v3 }
  0x76   : > { %v854_v58 = vcombine.high %v8546_v18, %v8546_v18  ;;  %v8641_v18 = vrot.slane %v8615_v47, %v8415_v22 }
  0x77   : > { %v1754_v6 = vrot.slane %v8594_v2, %v8415_v22  ;;  %v1765_v13 = vrot.slane %v8594_v2, %v8490_v41  ;;  %v1776_v26 = vrot.slane %v8594_v2, %v8506_v54  ;;  %v1787_v37 = vrot.slane %v8594_v2, %v8511_v59 }
  0x78   : > { %v1798_v10 = vrot.slane %v8594_v2, %v8522_v1  ;;  %v1251_v17 = vsub.f32 2.0, %v1235_v42  ;;  %13295 = vst [vmem:[#allocation9_spill] sm:$0xff] %v8641_v18  ;;  %v935_v7 = vrot.slane %v854_v58, %v8415_v22  ;;  %v1809_v9 = vrot.slane %v8594_v2, %v8549_v27  ;;  %v8679_v58 = vld [vmem:[%s8384_s4 + $0x28] sm:$0xff] }
  0x79   : > { %1716 = vbcast.lane.b32.xlu1 %v1710_v29, 264  ;;  %1712 = vbcast.lane.b32.xlu0 %v1710_v29, 256  ;;  %v8000_v29 = vpop.eup %7999  ;;  %v1820_v51 = vrot.slane %v8594_v2, %v8572_v45 }
  0x7a   : > { %v1236_v43 = vmul.f32 %v8000_v29, %v1204_v62  ;;  %v791_v62 = vmul.f32 %v705_v63, %v596_v61 }
  0x7c   : > { %v1252_v60 = vsub.f32 2.0, %v1236_v43  ;;  %v1831_v43 = vrot.slane %v8594_v2, %v8583_v56 }
  0x7d   : > { %1727 = vbcast.lane.b32.xlu1 %v1721_v46, 264  ;;  %1723 = vbcast.lane.b32.xlu0 %v1721_v46, 256  ;;  %v8612_v46 = vrot.slane %v1019_v44, %v8394_v11 }
  0x7e   : > { %v1268_v44 = vmul.f32 %v8000_v29, %v1252_v60  ;;  %v160_v29 = vadd.s32 32, %v8390_v5 }
  0x7f   : > { %v8633_v21 = vrot.slane %v8612_v46, %v8415_v22 }
  0x80   : > { %v196_v61 = vand.u32 3, %v160_v29  ;;  %v1051_v29 = vcombine.high %v8612_v46, %v8612_v46 }
  0x81   : > { %1738 = vbcast.lane.b32.xlu1 %v1732_v57, 264  ;;  %1734 = vbcast.lane.b32.xlu0 %v1732_v57, 256  ;;  %v600_v57 = vrot.slane %v519_v36, %v8415_v22 }
  0x82   : > { %v264_v55 = vcvt.s32.f32 %v196_v61 }
  0x85   : > { %1749 = vbcast.lane.b32.xlu1 %v1743_v0, 264  ;;  %1745 = vbcast.lane.b32.xlu0 %v1743_v0, 256  ;;  %v931_v0 = vrot.slane %v852_v53, %v8415_v22  ;;  %v8669_v53 = vld [vmem:[%s8384_s4 + $0x18] sm:$0xff] }
  0x87   : > { %v8649_v20 = vadd.f32 %v931_v0, %v791_v62  ;;  %v862_v62 = vrot.slane %v8679_v58, %v8394_v11 }
  0x89   : > { %1760 = vbcast.lane.b32.xlu1 %v1754_v6, 264  ;;  %1756 = vbcast.lane.b32.xlu0 %v1754_v6, 256  ;;  %v792_v6 = vmul.f32 %v712_v14, %v600_v57  ;;  %13296 = vst [vmem:[#allocation10_spill] sm:$0xff] %v8649_v20  ;;  %v527_v57 = vrot.slane %v8669_v53, %v8394_v11  ;;  %v8676_v14 = vld [vmem:[%s8384_s4 + $0x8] sm:$0xff] }
  0x8b   : > { %v8652_v31 = vadd.f32 %v935_v7, %v792_v6  ;;  %v535_v60 = vcombine.high %v527_v57, %v527_v57 }
  0x8d   : > { %1771 = vbcast.lane.b32.xlu1 %v1765_v13, 264  ;;  %1767 = vbcast.lane.b32.xlu0 %v1765_v13, 256  ;;  %v1267_v13 = vmul.f32 %v7998_v12, %v1251_v17  ;;  %13297 = vst [vmem:[#allocation11_spill] sm:$0xff] %v8652_v31  ;;  %v1206_v42 = vadd.f32 %v1190_v32, %v8652_v31 }
  0x8e   : > { %v344_v17 = vrot.slane %v8676_v14, %v8394_v11  ;;  %v870_v32 = vcombine.high %v862_v62, %v862_v62 }
  0x8f   : > { %v1283_v36 = vmul.f32 %v1267_v13, %v8633_v21  ;;  %v8688_v13 = vrot.slane %v527_v57, %v8394_v11  ;;  %v8706_v57 = vrot.slane %v862_v62, %v8394_v11 }
  0x90   : > { %v8700_v61 = vrot.slane %v344_v17, %v8394_v11 }
  0x91   : > { %1782 = vbcast.lane.b32.xlu1 %v1776_v26, 264  ;;  %1778 = vbcast.lane.b32.xlu0 %v1776_v26, 256  ;;  %v1189_v26 = vmul.f32 -0.375, %v8636_v24 }
  0x92   : > { %v8724_v62 = vrot.slane %v8700_v61, %v8415_v22 }
  0x93   : > { %v1205_v12 = vadd.f32 %v1189_v26, %v8649_v20  ;;  %v8691_v26 = vrot.slane %v535_v60, %v8394_v11  ;;  %v8720_v60 = vrot.slane %v1051_v29, %v8415_v22 }
  0x94   : > { %13299 = vst [vmem:[#allocation13_spill] sm:$0xff] %v8724_v62 }
  0x95   : > { %1793 = vbcast.lane.b32.xlu1 %v1787_v37, 264  ;;  %1789 = vbcast.lane.b32.xlu0 %v1787_v37, 256  ;;  %v1284_v37 = vmul.f32 %v1268_v44, %v8641_v18  ;;  %8001 = vrcp.f32 %v1205_v12  ;;  %v352_v44 = vcombine.high %v344_v17, %v344_v17  ;;  %v608_v46 = vrot.slane %v8691_v26, %v8415_v22 }
  0x96   : > { %8003 = vrcp.f32 %v1206_v42  ;;  %13298 = vst [vmem:[#allocation12_spill] sm:$0xff] %v8720_v60 }
  0x97   : > { %v8664_v49 = vcombine.low %v1283_v36, %v1284_v37 }
  0x99   : > { %1804 = vbcast.lane.b32.xlu1 %v1798_v10, 264  ;;  %1800 = vbcast.lane.b32.xlu0 %v1798_v10, 256  ;;  %v1842_v63 = vrot.slane %v8664_v49, %v8415_v22  ;;  %v1853_v2 = vrot.slane %v8664_v49, %v8490_v41  ;;  %v7879_v10 = vadd.f32 -1.5, %v264_v55  ;;  %v1864_v6 = vrot.slane %v8664_v49, %v8506_v54 }
  0x9d   : > { %1815 = vbcast.lane.b32.xlu1 %v1809_v9, 264  ;;  %1811 = vbcast.lane.b32.xlu0 %v1809_v9, 256  ;;  %v280_v9 = vmul.f32 0.25, %v7879_v10 }
  0x9f   : > { %v8002_v0 = vpop.eup %8001  ;;  %v719_v55 = vrot.slane %v280_v9, %v8403_v16 }
  0xa0   : > { %v8004_v7 = vpop.eup %8003  ;;  %v1237_v36 = vmul.f32 %v8002_v0, %v1205_v12  ;;  %v8709_v12 = vrot.slane %v352_v44, %v8394_v11 }
  0xa1   : > { %1826 = vbcast.lane.b32.xlu1 %v1820_v51, 264  ;;  %1822 = vbcast.lane.b32.xlu0 %v1820_v51, 256  ;;  %v1875_v51 = vrot.slane %v8664_v49, %v8511_v59  ;;  %v1238_v37 = vmul.f32 %v8004_v7, %v1206_v42  ;;  %v726_v42 = vrot.slane %v280_v9, %v8418_v23 }
  0xa2   : > { %v1253_v10 = vsub.f32 2.0, %v1237_v36  ;;  %v939_v9 = vrot.slane %v8706_v57, %v8415_v22 }
  0xa3   : > { %v1254_v17 = vsub.f32 2.0, %v1238_v37  ;;  %v1897_v37 = vrot.slane %v8664_v49, %v8549_v27 }
  0xa4   : > { %v1269_v29 = vmul.f32 %v8002_v0, %v1253_v10 }
  0xa5   : > { %1837 = vbcast.lane.b32.xlu1 %v1831_v43, 264  ;;  %1833 = vbcast.lane.b32.xlu0 %v1831_v43, 256  ;;  %v1053_v43 = vcombine.high %v8615_v47, %v8615_v47  ;;  %v8715_v47 = vrot.slane %v870_v32, %v8394_v11  ;;  %v8733_v32 = vrot.slane %v8709_v12, %v8415_v22 }
  0xa7   : > { %v8729_v44 = vrot.slane %v1053_v43, %v8415_v22  ;;  %13301 = vst [vmem:[#allocation15_spill] sm:$0xff] %v8733_v32  ;;  %v943_v36 = vrot.slane %v8715_v47, %v8415_v22  ;;  %v1191_v43 = vmul.f32 -0.375, %v8724_v62  ;;  %v1192_v20 = vmul.f32 -0.375, %v8733_v32 }
  0xa9   : > { %1848 = vbcast.lane.b32.xlu1 %v1842_v63, 264  ;;  %1844 = vbcast.lane.b32.xlu0 %v1842_v63, 256  ;;  %v604_v63 = vrot.slane %v8688_v13, %v8415_v22  ;;  %13300 = vst [vmem:[#allocation14_spill] sm:$0xff] %v8729_v44 }
  0xad   : > { %1859 = vbcast.lane.b32.xlu1 %v1853_v2, 264  ;;  %1855 = vbcast.lane.b32.xlu0 %v1853_v2, 256  ;;  %v1886_v2 = vrot.slane %v8664_v49, %v8522_v1 }
  0xb1   : > { %1870 = vbcast.lane.b32.xlu1 %v1864_v6, 264  ;;  %1866 = vbcast.lane.b32.xlu0 %v1864_v6, 256  ;;  %v793_v6 = vmul.f32 %v719_v55, %v604_v63  ;;  %v1270_v63 = vmul.f32 %v8004_v7, %v1254_v17  ;;  %v161_v7 = vadd.s32 40, %v8390_v5  ;;  %v1919_v17 = vrot.slane %v8664_v49, %v8583_v56 }
  0xb3   : > { %v8739_v55 = vadd.f32 %v939_v9, %v793_v6  ;;  %v203_v9 = vand.u32 3, %v161_v7  ;;  %v565_v7 = vcombine.high %v8688_v13, %v8688_v13 }
  0xb5   : > { %1881 = vbcast.lane.b32.xlu1 %v1875_v51, 264  ;;  %1877 = vbcast.lane.b32.xlu0 %v1875_v51, 256  ;;  %v794_v51 = vmul.f32 %v726_v42, %v608_v46  ;;  %13302 = vst [vmem:[#allocation16_spill] sm:$0xff] %v8739_v55  ;;  %v1908_v46 = vrot.slane %v8664_v49, %v8572_v45 }
  0xb6   : > { %v1285_v42 = vmul.f32 %v1269_v29, %v8720_v60  ;;  %v1207_v0 = vadd.f32 %v1191_v43, %v8739_v55  ;;  %v612_v13 = vrot.slane %v565_v7, %v8415_v22 }
  0xb7   : > { %v8742_v31 = vadd.f32 %v943_v36, %v794_v51  ;;  %v8759_v36 = vld [vmem:[%s8384_s4 + $0x38] sm:$0xff]  ;;  %s7895_s4 = sshll.u32 %s8221_s9, 10  ;;  %s7763_s9 = scalar_lea.sflag [#allocation4], %s8378_s26 }
  0xb8   : > { %8005 = vrcp.f32 %v1207_v0  ;;  %v1061_v49 = vrot.slane %v8759_v36, %v8394_v11 }
  0xb9   : > { %1892 = vbcast.lane.b32.xlu1 %v1886_v2, 264  ;;  %1888 = vbcast.lane.b32.xlu0 %v1886_v2, 256  ;;  %13303 = vst [vmem:[#allocation17_spill] sm:$0xff] %v8742_v31  ;;  %v1286_v2 = vmul.f32 %v1270_v63, %v8729_v44  ;;  %v1208_v10 = vadd.f32 %v1192_v20, %v8742_v31 }
  0xbb   : > { %v8754_v6 = vcombine.low %v1285_v42, %v1286_v2  ;;  %8007 = vrcp.f32 %v1208_v10  ;;  %v1069_v42 = vcombine.high %v1061_v49, %v1061_v49 }
  0xbd   : > { %1903 = vbcast.lane.b32.xlu1 %v1897_v37, 264  ;;  %1899 = vbcast.lane.b32.xlu0 %v1897_v37, 256  ;;  %v1930_v51 = vrot.slane %v8754_v6, %v8415_v22  ;;  %v265_v37 = vcvt.s32.f32 %v203_v9  ;;  %v1941_v20 = vrot.slane %v8754_v6, %v8490_v41  ;;  %v1952_v43 = vrot.slane %v8754_v6, %v8506_v54 }
  0xbe   : > { %v1963_v9 = vrot.slane %v8754_v6, %v8511_v59  ;;  %v8777_v31 = vrot.slane %v1069_v42, %v8394_v11  ;;  %v902_v42 = vcombine.high %v8715_v47, %v8715_v47 }
  0xbf   : > { %v7880_v29 = vadd.f32 -1.5, %v265_v37 }
  0xc0   : > { %v8803_v47 = vrot.slane %v8777_v31, %v8415_v22 }
  0xc1   : > { %1914 = vbcast.lane.b32.xlu1 %v1908_v46, 264  ;;  %1910 = vbcast.lane.b32.xlu0 %v1908_v46, 256  ;;  %v281_v2 = vmul.f32 0.25, %v7880_v29  ;;  %v382_v29 = vcombine.high %v8700_v61, %v8700_v61  ;;  %v1974_v61 = vrot.slane %v8754_v6, %v8522_v1 }
  0xc2   : > { %v8006_v63 = vpop.eup %8005  ;;  %13306 = vst [vmem:[#allocation20_spill] sm:$0xff] %v8803_v47 }
  0xc5   : > { %1925 = vbcast.lane.b32.xlu1 %v1919_v17, 264  ;;  %1921 = vbcast.lane.b32.xlu0 %v1919_v17, 256  ;;  %v8008_v46 = vpop.eup %8007  ;;  %v567_v17 = vcombine.high %v8691_v26, %v8691_v26  ;;  %v733_v26 = vrot.slane %v281_v2, %v8403_v16 }
  0xc6   : > { %v1240_v37 = vmul.f32 %v8008_v46, %v1208_v10 }
  0xc7   : > { %v616_v10 = vrot.slane %v567_v17, %v8415_v22  ;;  %v795_v17 = vmul.f32 %v733_v26, %v612_v13 }
  0xc8   : > { %v1256_v55 = vsub.f32 2.0, %v1240_v37  ;;  %v1985_v37 = vrot.slane %v8754_v6, %v8549_v27 }
  0xc9   : > { %1936 = vbcast.lane.b32.xlu1 %v1930_v51, 264  ;;  %1932 = vbcast.lane.b32.xlu0 %v1930_v51, 256  ;;  %v1239_v51 = vmul.f32 %v8006_v63, %v1207_v0  ;;  %v384_v0 = vcombine.high %v8709_v12, %v8709_v12  ;;  %v8798_v12 = vrot.slane %v382_v29, %v8415_v22 }
  0xca   : > { %v1272_v60 = vmul.f32 %v8008_v46, %v1256_v55 }
  0xcb   : > { %v1255_v7 = vsub.f32 2.0, %v1239_v51  ;;  %13305 = vst [vmem:[#allocation19_spill] sm:$0xff] %v8798_v12  ;;  %v951_v51 = vrot.slane %v902_v42, %v8415_v22  ;;  %v1193_v32 = vmul.f32 -0.375, %v8798_v12 }
  0xcc   : > { %v1288_v55 = vmul.f32 %v1272_v60, %v8803_v47 }
  0xcd   : > { %1947 = vbcast.lane.b32.xlu1 %v1941_v20, 264  ;;  %1943 = vbcast.lane.b32.xlu0 %v1941_v20, 256  ;;  %v8774_v20 = vrot.slane %v1061_v49, %v8394_v11  ;;  %v740_v49 = vrot.slane %v281_v2, %v8418_v23  ;;  %v1271_v29 = vmul.f32 %v8006_v63, %v1255_v7 }
  0xcf   : > { %v796_v44 = vmul.f32 %v740_v49, %v616_v10  ;;  %v1996_v49 = vrot.slane %v8754_v6, %v8572_v45 }
  0xd1   : > { %1958 = vbcast.lane.b32.xlu1 %v1952_v43, 264  ;;  %1954 = vbcast.lane.b32.xlu0 %v1952_v43, 256  ;;  %v900_v43 = vcombine.high %v8706_v57, %v8706_v57  ;;  %v8795_v57 = vrot.slane %v8774_v20, %v8415_v22 }
  0xd3   : > { %13304 = vst [vmem:[#allocation18_spill] sm:$0xff] %v8795_v57  ;;  %v947_v2 = vrot.slane %v900_v43, %v8415_v22  ;;  %v1287_v63 = vmul.f32 %v1271_v29, %v8795_v57 }
  0xd5   : > { %1969 = vbcast.lane.b32.xlu1 %v1963_v9, 264  ;;  %1965 = vbcast.lane.b32.xlu0 %v1963_v9, 256  ;;  %v8806_v9 = vrot.slane %v384_v0, %v8415_v22  ;;  %v8815_v43 = vadd.f32 %v947_v2, %v795_v17  ;;  %v8818_v0 = vadd.f32 %v951_v51, %v796_v44  ;;  %v162_v44 = vadd.s32 48, %v8390_v5 }
  0xd6   : > { %v2007_v17 = vrot.slane %v8754_v6, %v8583_v56  ;;  %v8834_v2 = vcombine.low %v1287_v63, %v1288_v55  ;;  %v337_v63 = vcombine.high %v8676_v14, %v8676_v14 }
  0xd7   : > { %13307 = vst [vmem:[#allocation21_spill] sm:$0xff] %v8806_v9  ;;  %13310 = vst [vmem:[#allocation24_spill] sm:$0xff] %v8815_v43  ;;  %v1194_v10 = vmul.f32 -0.375, %v8806_v9 }
  0xd8   : > { %13311 = vst [vmem:[#allocation25_spill] sm:$0xff] %v8818_v0  ;;  %v2018_v29 = vrot.slane %v8834_v2, %v8415_v22 }
  0xd9   : > { %1980 = vbcast.lane.b32.xlu1 %v1974_v61, 264  ;;  %1976 = vbcast.lane.b32.xlu0 %v1974_v61, 256  ;;  %v1209_v61 = vadd.f32 %v1193_v32, %v8815_v43  ;;  %v1210_v7 = vadd.f32 %v1194_v10, %v8818_v0  ;;  %v520_v32 = vcombine.high %v8669_v53, %v8669_v53 }
  0xda   : > { %v2029_v53 = vrot.slane %v8834_v2, %v8490_v41 }
  0xdb   : > { %v8811_v13 = vpop.permute.xlu1 %1679  ;;  %v8813_v26 = vpop.permute.xlu0 %1668  ;;  %8009 = vrcp.f32 %v1209_v61  ;;  %v534_v55 = vrot.slane %v520_v32, %v8394_v11 }
  0xdc   : > { %13308 = vst [vmem:[#allocation22_spill] sm:$0xff] %v8811_v13  ;;  %13309 = vst [vmem:[#allocation23_spill] sm:$0xff] %v8813_v26  ;;  %8011 = vrcp.f32 %v1210_v7 }
  0xdd   : > { %1991 = vbcast.lane.b32.xlu1 %v1985_v37, 264  ;;  %1987 = vbcast.lane.b32.xlu0 %v1985_v37, 256  ;;  %v210_v37 = vand.u32 3, %v162_v44  ;;  %v855_v44 = vcombine.high %v8679_v58, %v8679_v58  ;;  %v2040_v58 = vrot.slane %v8834_v2, %v8506_v54 }
  0xdf   : > { %v8825_v46 = vpop.permute.xlu1 %1683  ;;  %v8827_v42 = vpop.permute.xlu0 %1672  ;;  %v869_v14 = vrot.slane %v855_v44, %v8394_v11 }
  0xe0   : > { %13312 = vst [vmem:[#allocation26_spill] sm:$0xff] %v8825_v46  ;;  %13313 = vst [vmem:[#allocation27_spill] sm:$0xff] %v8827_v42 }
  0xe1   : > { %2002 = vbcast.lane.b32.xlu1 %v1996_v49, 264  ;;  %1998 = vbcast.lane.b32.xlu0 %v1996_v49, 256  ;;  %v266_v49 = vcvt.s32.f32 %v210_v37  ;;  %v351_v37 = vrot.slane %v337_v63, %v8394_v11  ;;  %v871_v44 = vcombine.high %v869_v14, %v869_v14 }
  0xe3   : > { %v8836_v51 = vpop.permute.xlu1 %1694  ;;  %v8838_v60 = vpop.permute.xlu0 %1690 }
  0xe4   : > { %13314 = vst [vmem:[#allocation28_spill] sm:$0xff] %v8836_v51  ;;  %13315 = vst [vmem:[#allocation29_spill] sm:$0xff] %v8838_v60 }
  0xe5   : > { %2013 = vbcast.lane.b32.xlu1 %v2007_v17, 264  ;;  %2009 = vbcast.lane.b32.xlu0 %v2007_v17, 256  ;;  %v8010_v51 = vpop.eup %8009 }
  0xe6   : > { %v8012_v32 = vpop.eup %8011  ;;  %v1241_v46 = vmul.f32 %v8010_v51, %v1209_v61  ;;  %v8890_v61 = vrot.slane %v869_v14, %v8394_v11 }
  0xe7   : > { %v8844_v10 = vpop.permute.xlu1 %1705  ;;  %v8846_v6 = vpop.permute.xlu0 %1701  ;;  %v1242_v26 = vmul.f32 %v8012_v32, %v1210_v7 }
  0xe8   : > { %13316 = vst [vmem:[#allocation30_spill] sm:$0xff] %v8844_v10  ;;  %13317 = vst [vmem:[#allocation31_spill] sm:$0xff] %v8846_v6  ;;  %v7881_v10 = vadd.f32 -1.5, %v266_v49  ;;  %v536_v6 = vcombine.high %v534_v55, %v534_v55  ;;  %v353_v49 = vcombine.high %v351_v37, %v351_v37 }
  0xe9   : > { %2024 = vbcast.lane.b32.xlu1 %v2018_v29, 264  ;;  %2020 = vbcast.lane.b32.xlu0 %v2018_v29, 256  ;;  %v1258_v0 = vsub.f32 2.0, %v1242_v26 }
  0xea   : > { %v8871_v63 = vrot.slane %v536_v6, %v8394_v11  ;;  %v8884_v6 = vrot.slane %v351_v37, %v8394_v11  ;;  %v2062_v37 = vrot.slane %v8834_v2, %v8522_v1 }
  0xeb   : > { %v8855_v17 = vpop.permute.xlu1 %1716  ;;  %v8857_v60 = vpop.permute.xlu0 %1712 }
  0xec   : > { %13318 = vst [vmem:[#allocation32_spill] sm:$0xff] %v8855_v17  ;;  %13319 = vst [vmem:[#allocation33_spill] sm:$0xff] %v8857_v60  ;;  %v282_v17 = vmul.f32 0.25, %v7881_v10  ;;  %v8868_v60 = vrot.slane %v534_v55, %v8394_v11  ;;  %v1101_v10 = vcombine.high %v8777_v31, %v8777_v31  ;;  %v624_v31 = vrot.slane %v8871_v63, %v8415_v22 }
  0xed   : > { %2035 = vbcast.lane.b32.xlu1 %v2029_v53, 264  ;;  %2031 = vbcast.lane.b32.xlu0 %v2029_v53, 256  ;;  %v2051_v53 = vrot.slane %v8834_v2, %v8511_v59 }
  0xee   : > { %v747_v42 = vrot.slane %v282_v17, %v8403_v16  ;;  %v754_v7 = vrot.slane %v282_v17, %v8418_v23  ;;  %v8912_v17 = vrot.slane %v8884_v6, %v8415_v22  ;;  %v8917_v47 = vrot.slane %v1101_v10, %v8415_v22 }
  0xef   : > { %v8863_v29 = vpop.permute.xlu1 %1727  ;;  %v8865_v13 = vpop.permute.xlu0 %1723 }
  0xf0   : > { %13320 = vst [vmem:[#allocation34_spill] sm:$0xff] %v8863_v29  ;;  %13321 = vst [vmem:[#allocation35_spill] sm:$0xff] %v8865_v13  ;;  %v1099_v29 = vcombine.high %v8774_v20, %v8774_v20  ;;  %v8893_v20 = vrot.slane %v353_v49, %v8394_v11  ;;  %v1195_v9 = vmul.f32 -0.375, %v8912_v17 }
  0xf1   : > { %2046 = vbcast.lane.b32.xlu1 %v2040_v58, 264  ;;  %2042 = vbcast.lane.b32.xlu0 %v2040_v58, 256  ;;  %v620_v58 = vrot.slane %v8868_v60, %v8415_v22  ;;  %13327 = vst [vmem:[#allocation41_spill] sm:$0xff] %v8917_v47 }
  0xf2   : > { %v8908_v49 = vrot.slane %v1099_v29, %v8415_v22  ;;  %v8921_v26 = vrot.slane %v8893_v20, %v8415_v22 }
  0xf3   : > { %v8879_v55 = vpop.permute.xlu1 %1738  ;;  %v8881_v13 = vpop.permute.xlu0 %1734 }
  0xf4   : > { %13322 = vst [vmem:[#allocation36_spill] sm:$0xff] %v8879_v55  ;;  %13323 = vst [vmem:[#allocation37_spill] sm:$0xff] %v8881_v13  ;;  %v8899_v13 = vrot.slane %v871_v44, %v8394_v11  ;;  %v1257_v55 = vsub.f32 2.0, %v1241_v46  ;;  %v797_v44 = vmul.f32 %v747_v42, %v620_v58  ;;  %v798_v46 = vmul.f32 %v754_v7, %v624_v31 }
  0xf5   : > { %2057 = vbcast.lane.b32.xlu1 %v2051_v53, 264  ;;  %2053 = vbcast.lane.b32.xlu0 %v2051_v53, 256  ;;  %13326 = vst [vmem:[#allocation40_spill] sm:$0xff] %v8908_v49  ;;  %v955_v53 = vrot.slane %v8890_v61, %v8415_v22  ;;  %v1274_v58 = vmul.f32 %v8012_v32, %v1258_v0  ;;  %v1196_v31 = vmul.f32 -0.375, %v8921_v26 }
  0xf6   : > { %v959_v29 = vrot.slane %v8899_v13, %v8415_v22  ;;  %v1273_v42 = vmul.f32 %v8010_v51, %v1257_v55  ;;  %v2084_v7 = vrot.slane %v8834_v2, %v8572_v45 }
  0xf7   : > { %v8903_v14 = vpop.permute.xlu1 %1749  ;;  %v8905_v43 = vpop.permute.xlu0 %1745  ;;  %v8931_v10 = vadd.f32 %v955_v53, %v797_v44  ;;  %v1290_v0 = vmul.f32 %v1274_v58, %v8917_v47  ;;  %v163_v44 = vadd.s32 56, %v8390_v5 }
  0xf8   : > { %13324 = vst [vmem:[#allocation38_spill] sm:$0xff] %v8903_v14  ;;  %13325 = vst [vmem:[#allocation39_spill] sm:$0xff] %v8905_v43  ;;  %v2073_v43 = vrot.slane %v8834_v2, %v8549_v27  ;;  %v8934_v12 = vadd.f32 %v959_v29, %v798_v46  ;;  %v1289_v51 = vmul.f32 %v1273_v42, %v8908_v49 }
  0xf9   : > { %2068 = vbcast.lane.b32.xlu1 %v2062_v37, 264  ;;  %2064 = vbcast.lane.b32.xlu0 %v2062_v37, 256  ;;  %v1211_v37 = vadd.f32 %v1195_v9, %v8931_v10  ;;  %v217_v58 = vand.u32 3, %v163_v44 }
  0xfa   : > { %v1212_v53 = vadd.f32 %v1196_v31, %v8934_v12  ;;  %v8950_v46 = vcombine.low %v1289_v51, %v1290_v0  ;;  %v1054_v31 = vcombine.high %v8759_v36, %v8759_v36 }
  0xfb   : > { %v8927_v14 = vpop.permute.xlu1 %1760  ;;  %v8929_v57 = vpop.permute.xlu0 %1756  ;;  %8013 = vrcp.f32 %v1211_v37  ;;  %v267_v51 = vcvt.s32.f32 %v217_v58 }
  0xfc   : > { %13328 = vst [vmem:[#allocation42_spill] sm:$0xff] %v8927_v14  ;;  %13329 = vst [vmem:[#allocation43_spill] sm:$0xff] %v8929_v57  ;;  %8015 = vrcp.f32 %v1212_v53  ;;  %v2106_v9 = vrot.slane %v8950_v46, %v8415_v22  ;;  %v2117_v0 = vrot.slane %v8950_v46, %v8490_v41  ;;  %v1068_v44 = vrot.slane %v1054_v31, %v8394_v11 }
  0xfd   : > { %2079 = vbcast.lane.b32.xlu1 %v2073_v43, 264  ;;  %2075 = vbcast.lane.b32.xlu0 %v2073_v43, 256  ;;  %v2095_v43 = vrot.slane %v8834_v2, %v8583_v56  ;;  %v2128_v36 = vrot.slane %v8950_v46, %v8506_v54  ;;  %v566_v31 = vcombine.high %v8868_v60, %v8868_v60 }
  0xfe   : > { %v1070_v58 = vcombine.high %v1068_v44, %v1068_v44  ;;  %v8984_v57 = vrot.slane %v1068_v44, %v8394_v11 }
  0xff   : > { %v8941_v32 = vpop.permute.xlu1 %1771  ;;  %v8943_v55 = vpop.permute.xlu0 %1767 }
 0x100   : > { %13330 = vst [vmem:[#allocation44_spill] sm:$0xff] %v8941_v32  ;;  %13331 = vst [vmem:[#allocation45_spill] sm:$0xff] %v8943_v55 }
 0x101   : > { %2090 = vbcast.lane.b32.xlu1 %v2084_v7, 264  ;;  %2086 = vbcast.lane.b32.xlu0 %v2084_v7, 256 }
 0x103   : > { %v8952_v29 = vpop.permute.xlu1 %1782  ;;  %v8954_v42 = vpop.permute.xlu0 %1778 }
 0x104   : > { %13332 = vst [vmem:[#allocation46_spill] sm:$0xff] %v8952_v29  ;;  %13333 = vst [vmem:[#allocation47_spill] sm:$0xff] %v8954_v42  ;;  %v7882_v29 = vadd.f32 -1.5, %v267_v51  ;;  %v2139_v51 = vrot.slane %v8950_v46, %v8511_v59 }
 0x105   : > { %2101 = vbcast.lane.b32.xlu1 %v2095_v43, 264  ;;  %2097 = vbcast.lane.b32.xlu0 %v2095_v43, 256  ;;  %v8014_v55 = vpop.eup %8013 }
 0x106   : > { %v283_v32 = vmul.f32 0.25, %v7882_v29  ;;  %v901_v29 = vcombine.high %v8890_v61, %v8890_v61 }
 0x107   : > { %v8960_v7 = vpop.permute.xlu1 %1793  ;;  %v8962_v2 = vpop.permute.xlu0 %1789 }
 0x108   : > { %13334 = vst [vmem:[#allocation48_spill] sm:$0xff] %v8960_v7  ;;  %13335 = vst [vmem:[#allocation49_spill] sm:$0xff] %v8962_v2  ;;  %v8016_v2 = vpop.eup %8015 }
 0x109   : > { %2112 = vbcast.lane.b32.xlu1 %v2106_v9, 264  ;;  %2108 = vbcast.lane.b32.xlu0 %v2106_v9, 256 }
 0x10b   : > { %v8967_v42 = vpop.permute.xlu1 %1804  ;;  %v8969_v43 = vpop.permute.xlu0 %1800 }
 0x10c   : > { %13336 = vst [vmem:[#allocation50_spill] sm:$0xff] %v8967_v42  ;;  %13337 = vst [vmem:[#allocation51_spill] sm:$0xff] %v8969_v43  ;;  %v568_v43 = vcombine.high %v8871_v63, %v8871_v63  ;;  %v1244_v42 = vmul.f32 %v8016_v2, %v1212_v53  ;;  %v383_v63 = vcombine.high %v8884_v6, %v8884_v6 }
 0x10d   : > { %2123 = vbcast.lane.b32.xlu1 %v2117_v0, 264  ;;  %2119 = vbcast.lane.b32.xlu0 %v2117_v0, 256  ;;  %v1243_v0 = vmul.f32 %v8014_v55, %v1211_v37  ;;  %v761_v37 = vrot.slane %v283_v32, %v8403_v16  ;;  %v385_v53 = vcombine.high %v8893_v20, %v8893_v20 }
 0x10e   : > { %v632_v44 = vrot.slane %v568_v43, %v8415_v22  ;;  %v2150_v6 = vrot.slane %v8950_v46, %v8522_v1  ;;  %v9013_v20 = vrot.slane %v8984_v57, %v8415_v22 }
 0x10f   : > { %v8973_v7 = vpop.permute.xlu1 %1815  ;;  %v8975_v9 = vpop.permute.xlu0 %1811  ;;  %v1259_v61 = vsub.f32 2.0, %v1243_v0 }
 0x110   : > { %13338 = vst [vmem:[#allocation52_spill] sm:$0xff] %v8973_v7  ;;  %13339 = vst [vmem:[#allocation53_spill] sm:$0xff] %v8975_v9  ;;  %v8987_v7 = vrot.slane %v1070_v58, %v8394_v11  ;;  %v903_v11 = vcombine.high %v8899_v13, %v8899_v13  ;;  %v768_v58 = vrot.slane %v283_v32, %v8418_v23 }
 0x111   : > { %2134 = vbcast.lane.b32.xlu1 %v2128_v36, 264  ;;  %2130 = vbcast.lane.b32.xlu0 %v2128_v36, 256  ;;  %v628_v36 = vrot.slane %v566_v31, %v8415_v22  ;;  %13344 = vst [vmem:[#allocation58_spill] sm:$0xff] %v9013_v20  ;;  %v9016_v13 = vrot.slane %v383_v63, %v8415_v22 }
 0x112   : > { %v963_v23 = vrot.slane %v901_v29, %v8415_v22  ;;  %v9021_v32 = vrot.slane %v8987_v7, %v8415_v22  ;;  %v967_v0 = vrot.slane %v903_v11, %v8415_v22  ;;  %v1275_v63 = vmul.f32 %v8014_v55, %v1259_v61 }
 0x113   : > { %v8989_v9 = vpop.permute.xlu1 %1826  ;;  %v8991_v60 = vpop.permute.xlu0 %1822  ;;  %13345 = vst [vmem:[#allocation59_spill] sm:$0xff] %v9016_v13  ;;  %v799_v43 = vmul.f32 %v761_v37, %v628_v36  ;;  %v2172_v11 = vrot.slane %v8950_v46, %v8572_v45 }
 0x114   : > { %13340 = vst [vmem:[#allocation54_spill] sm:$0xff] %v8989_v9  ;;  %13341 = vst [vmem:[#allocation55_spill] sm:$0xff] %v8991_v60  ;;  %v1260_v60 = vsub.f32 2.0, %v1244_v42  ;;  %v9024_v42 = vrot.slane %v385_v53, %v8415_v22  ;;  %v1197_v9 = vmul.f32 -0.375, %v9016_v13  ;;  %v1291_v55 = vmul.f32 %v1275_v63, %v9013_v20 }
 0x115   : > { %2145 = vbcast.lane.b32.xlu1 %v2139_v51, 264  ;;  %2141 = vbcast.lane.b32.xlu0 %v2139_v51, 256  ;;  %13346 = vst [vmem:[#allocation60_spill] sm:$0xff] %v9021_v32  ;;  %v800_v51 = vmul.f32 %v768_v58, %v632_v44  ;;  %v9033_v37 = vadd.f32 %v963_v23, %v799_v43 }
 0x116   : > { %13347 = vst [vmem:[#allocation61_spill] sm:$0xff] %v9024_v42  ;;  %v1198_v44 = vmul.f32 -0.375, %v9024_v42 }
 0x117   : > { %v9007_v31 = vpop.permute.xlu1 %1837  ;;  %v9009_v16 = vpop.permute.xlu0 %1833  ;;  %13350 = vst [vmem:[#allocation64_spill] sm:$0xff] %v9033_v37  ;;  %v9036_v53 = vadd.f32 %v967_v0, %v800_v51 }
 0x118   : > { %13342 = vst [vmem:[#allocation56_spill] sm:$0xff] %v9007_v31  ;;  %13343 = vst [vmem:[#allocation57_spill] sm:$0xff] %v9009_v16  ;;  %v2161_v16 = vrot.slane %v8950_v46, %v8549_v27  ;;  %v1276_v31 = vmul.f32 %v8016_v2, %v1260_v60 }
 0x119   : > { %2156 = vbcast.lane.b32.xlu1 %v2150_v6, 264  ;;  %2152 = vbcast.lane.b32.xlu0 %v2150_v6, 256  ;;  %13351 = vst [vmem:[#allocation65_spill] sm:$0xff] %v9036_v53  ;;  %v1213_v6 = vadd.f32 %v1197_v9, %v9033_v37  ;;  %v1214_v61 = vadd.f32 %v1198_v44, %v9036_v53 }
 0x11a   : > { %v1292_v2 = vmul.f32 %v1276_v31, %v9021_v32 }
 0x11b   : > { %v9029_v36 = vpop.permute.xlu1 %1848  ;;  %v9031_v29 = vpop.permute.xlu0 %1844  ;;  %8017 = vrcp.f32 %v1213_v6 }
 0x11c   : > { %13348 = vst [vmem:[#allocation62_spill] sm:$0xff] %v9029_v36  ;;  %13349 = vst [vmem:[#allocation63_spill] sm:$0xff] %v9031_v29  ;;  %v1653_v43 = vcombine.low %v1291_v55, %v1292_v2  ;;  %8019 = vrcp.f32 %v1214_v61 }
 0x11d   : > { %2167 = vbcast.lane.b32.xlu1 %v2161_v16, 264  ;;  %2163 = vbcast.lane.b32.xlu0 %v2161_v16, 256  ;;  %v2183_v16 = vrot.slane %v8950_v46, %v8583_v56 }
 0x11e   : > { %v2194_v31 = vrot.slane %v1653_v43, %v8415_v22  ;;  %v2205_v63 = vrot.slane %v1653_v43, %v8490_v41  ;;  %v2216_v55 = vrot.slane %v1653_v43, %v8506_v54 }
 0x11f   : > { %v9043_v60 = vpop.permute.xlu1 %1859  ;;  %v9045_v58 = vpop.permute.xlu0 %1855 }
 0x120   : > { %13352 = vst [vmem:[#allocation66_spill] sm:$0xff] %v9043_v60  ;;  %13353 = vst [vmem:[#allocation67_spill] sm:$0xff] %v9045_v58 }
 0x121   : > { %2178 = vbcast.lane.b32.xlu1 %v2172_v11, 264  ;;  %2174 = vbcast.lane.b32.xlu0 %v2172_v11, 256 }
 0x123   : > { %v9051_v23 = vpop.permute.xlu1 %1870  ;;  %v9053_v51 = vpop.permute.xlu0 %1866 }
 0x124   : > { %13354 = vst [vmem:[#allocation68_spill] sm:$0xff] %v9051_v23  ;;  %13355 = vst [vmem:[#allocation69_spill] sm:$0xff] %v9053_v51 }
 0x125   : > { %2189 = vbcast.lane.b32.xlu1 %v2183_v16, 264  ;;  %2185 = vbcast.lane.b32.xlu0 %v2183_v16, 256  ;;  %v8018_v11 = vpop.eup %8017 }
 0x126   : > { %v8020_v2 = vpop.eup %8019 }
 0x127   : > { %v9056_v0 = vpop.permute.xlu1 %1881  ;;  %v9058_v9 = vpop.permute.xlu0 %1877 }
 0x128   : > { %13356 = vst [vmem:[#allocation70_spill] sm:$0xff] %v9056_v0  ;;  %13357 = vst [vmem:[#allocation71_spill] sm:$0xff] %v9058_v9  ;;  %v1245_v9 = vmul.f32 %v8018_v11, %v1213_v6  ;;  %v1246_v0 = vmul.f32 %v8020_v2, %v1214_v61  ;;  %v2249_v61 = vrot.slane %v1653_v43, %v8549_v27 }
 0x129   : > { %2200 = vbcast.lane.b32.xlu1 %v2194_v31, 264  ;;  %2196 = vbcast.lane.b32.xlu0 %v2194_v31, 256  ;;  %v2227_v31 = vrot.slane %v1653_v43, %v8511_v59 }
 0x12b   : > { %v9061_v46 = vpop.permute.xlu1 %1892  ;;  %v9063_v44 = vpop.permute.xlu0 %1888 }
 0x12c   : > { %13358 = vst [vmem:[#allocation72_spill] sm:$0xff] %v9061_v46  ;;  %13359 = vst [vmem:[#allocation73_spill] sm:$0xff] %v9063_v44  ;;  %v1102_v44 = vcombine.high %v8987_v7, %v8987_v7 }
 0x12d   : > { %2211 = vbcast.lane.b32.xlu1 %v2205_v63, 264  ;;  %2207 = vbcast.lane.b32.xlu0 %v2205_v63, 256  ;;  %v1100_v63 = vcombine.high %v8984_v57, %v8984_v57 }
 0x12e   : > { %v9089_v57 = vrot.slane %v1102_v44, %v8415_v22 }
 0x12f   : > { %v9066_v16 = vpop.permute.xlu1 %1903  ;;  %v9068_v51 = vpop.permute.xlu0 %1899 }
 0x130   : > { %13360 = vst [vmem:[#allocation74_spill] sm:$0xff] %v9066_v16  ;;  %13361 = vst [vmem:[#allocation75_spill] sm:$0xff] %v9068_v51  ;;  %v2238_v51 = vrot.slane %v1653_v43, %v8522_v1  ;;  %v1261_v16 = vsub.f32 2.0, %v1245_v9 }
 0x131   : > { %2222 = vbcast.lane.b32.xlu1 %v2216_v55, 264  ;;  %2218 = vbcast.lane.b32.xlu0 %v2216_v55, 256  ;;  %v1262_v55 = vsub.f32 2.0, %v1246_v0  ;;  %13367 = vst [vmem:[#allocation81_spill] sm:$0xff] %v9089_v57  ;;  %v1295_v0 = vmul.f32 -0.125, %v8426_v33 }
 0x132   : > { %v1277_v7 = vmul.f32 %v8018_v11, %v1261_v16 }
 0x133   : > { %v9071_v23 = vpop.permute.xlu1 %1914  ;;  %v9073_v46 = vpop.permute.xlu0 %1910 }
 0x134   : > { %13362 = vst [vmem:[#allocation76_spill] sm:$0xff] %v9071_v23  ;;  %13363 = vst [vmem:[#allocation77_spill] sm:$0xff] %v9073_v46  ;;  %v9086_v46 = vrot.slane %v1100_v63, %v8415_v22  ;;  %v2260_v63 = vrot.slane %v1653_v43, %v8572_v45 }
 0x135   : > { %2233 = vbcast.lane.b32.xlu1 %v2227_v31, 264  ;;  %2229 = vbcast.lane.b32.xlu0 %v2227_v31, 256  ;;  %v1278_v31 = vmul.f32 %v8020_v2, %v1262_v55  ;;  %v1311_v2 = vadd.f32 %v1295_v0, %v8441_v48  ;;  %v2271_v55 = vrot.slane %v1653_v43, %v8583_v56 }
 0x136   : > { %13366 = vst [vmem:[#allocation80_spill] sm:$0xff] %v9086_v46 }
 0x137   : > { %v9080_v58 = vpop.permute.xlu1 %1925  ;;  %v9082_v6 = vpop.permute.xlu0 %1921  ;;  %8021 = vrcp.f32 %v1311_v2 }
 0x138   : > { %13364 = vst [vmem:[#allocation78_spill] sm:$0xff] %v9080_v58  ;;  %13365 = vst [vmem:[#allocation79_spill] sm:$0xff] %v9082_v6  ;;  %v1296_v6 = vmul.f32 -0.125, %v8435_v40  ;;  %v1293_v58 = vmul.f32 %v1277_v7, %v9086_v46 }
 0x139   : > { %2244 = vbcast.lane.b32.xlu1 %v2238_v51, 264  ;;  %2240 = vbcast.lane.b32.xlu0 %v2238_v51, 256  ;;  %v1294_v51 = vmul.f32 %v1278_v31, %v9089_v57 }
 0x13a   : > { %v1312_v16 = vadd.f32 %v1296_v6, %v8443_v50 }
 0x13b   : > { %v9091_v23 = vpop.permute.xlu1 %1936  ;;  %v9093_v9 = vpop.permute.xlu0 %1932 }
 0x13c   : > { %13368 = vst [vmem:[#allocation82_spill] sm:$0xff] %v9091_v23  ;;  %13369 = vst [vmem:[#allocation83_spill] sm:$0xff] %v9093_v9  ;;  %v1654_v9 = vcombine.low %v1293_v58, %v1294_v51  ;;  %8023 = vrcp.f32 %v1312_v16 }
 0x13d   : > { %2255 = vbcast.lane.b32.xlu1 %v2249_v61, 264  ;;  %2251 = vbcast.lane.b32.xlu0 %v2249_v61, 256 }
 0x13e   : > { %v2282_v7 = vrot.slane %v1654_v9, %v8415_v22  ;;  %v2293_v6 = vrot.slane %v1654_v9, %v8490_v41  ;;  %v2304_v51 = vrot.slane %v1654_v9, %v8506_v54 }
 0x13f   : > { %v9100_v44 = vpop.permute.xlu1 %1947  ;;  %v9102_v11 = vpop.permute.xlu0 %1943 }
 0x140   : > { %13370 = vst [vmem:[#allocation84_spill] sm:$0xff] %v9100_v44  ;;  %13371 = vst [vmem:[#allocation85_spill] sm:$0xff] %v9102_v11 }
 0x141   : > { %2266 = vbcast.lane.b32.xlu1 %v2260_v63, 264  ;;  %2262 = vbcast.lane.b32.xlu0 %v2260_v63, 256  ;;  %v8022_v63 = vpop.eup %8021 }
 0x143   : > { %v9107_v61 = vpop.permute.xlu1 %1958  ;;  %v9109_v23 = vpop.permute.xlu0 %1954 }
 0x144   : > { %13372 = vst [vmem:[#allocation86_spill] sm:$0xff] %v9107_v61  ;;  %13373 = vst [vmem:[#allocation87_spill] sm:$0xff] %v9109_v23 }
 0x145   : > { %2277 = vbcast.lane.b32.xlu1 %v2271_v55, 264  ;;  %2273 = vbcast.lane.b32.xlu0 %v2271_v55, 256 }
 0x146   : > { %v8024_v55 = vpop.eup %8023 }
 0x147   : > { %v9112_v31 = vpop.permute.xlu1 %1969  ;;  %v9114_v0 = vpop.permute.xlu0 %1965 }
 0x148   : > { %13374 = vst [vmem:[#allocation88_spill] sm:$0xff] %v9112_v31  ;;  %13375 = vst [vmem:[#allocation89_spill] sm:$0xff] %v9114_v0  ;;  %v1343_v0 = vmul.f32 %v8022_v63, %v1311_v2  ;;  %v1344_v31 = vmul.f32 %v8024_v55, %v1312_v16 }
 0x149   : > { %2288 = vbcast.lane.b32.xlu1 %v2282_v7, 264  ;;  %2284 = vbcast.lane.b32.xlu0 %v2282_v7, 256  ;;  %v2315_v7 = vrot.slane %v1654_v9, %v8511_v59 }
 0x14a   : > { %v1360_v44 = vsub.f32 2.0, %v1344_v31  ;;  %v2348_v31 = vrot.slane %v1654_v9, %v8572_v45 }
 0x14b   : > { %v9117_v43 = vpop.permute.xlu1 %1980  ;;  %v9119_v58 = vpop.permute.xlu0 %1976 }
 0x14c   : > { %13376 = vst [vmem:[#allocation90_spill] sm:$0xff] %v9117_v43  ;;  %13377 = vst [vmem:[#allocation91_spill] sm:$0xff] %v9119_v58  ;;  %v1359_v58 = vsub.f32 2.0, %v1343_v0  ;;  %v1376_v16 = vmul.f32 %v8024_v55, %v1360_v44  ;;  %v2359_v55 = vrot.slane %v1654_v9, %v8583_v56 }
 0x14d   : > { %2299 = vbcast.lane.b32.xlu1 %v2293_v6, 264  ;;  %2295 = vbcast.lane.b32.xlu0 %v2293_v6, 256  ;;  %v2326_v6 = vrot.slane %v1654_v9, %v8522_v1 }
 0x14e   : > { %v1375_v2 = vmul.f32 %v8022_v63, %v1359_v58 }
 0x14f   : > { %v9122_v23 = vpop.permute.xlu1 %1991  ;;  %v9124_v61 = vpop.permute.xlu0 %1987 }
 0x150   : > { %13378 = vst [vmem:[#allocation92_spill] sm:$0xff] %v9122_v23  ;;  %13379 = vst [vmem:[#allocation93_spill] sm:$0xff] %v9124_v61  ;;  %v1391_v0 = vmul.f32 %v1375_v2, %v8478_v28 }
 0x151   : > { %2310 = vbcast.lane.b32.xlu1 %v2304_v51, 264  ;;  %2306 = vbcast.lane.b32.xlu0 %v2304_v51, 256  ;;  %v2337_v51 = vrot.slane %v1654_v9, %v8549_v27 }
 0x153   : > { %v9127_v11 = vpop.permute.xlu1 %2002  ;;  %v9129_v43 = vpop.permute.xlu0 %1998 }
 0x154   : > { %13380 = vst [vmem:[#allocation94_spill] sm:$0xff] %v9127_v11  ;;  %13381 = vst [vmem:[#allocation95_spill] sm:$0xff] %v9129_v43  ;;  %v1298_v43 = vmul.f32 -0.125, %v8461_v8 }
 0x155   : > { %2321 = vbcast.lane.b32.xlu1 %v2315_v7, 264  ;;  %2317 = vbcast.lane.b32.xlu0 %v2315_v7, 256  ;;  %v1297_v7 = vmul.f32 -0.125, %v8457_v4 }
 0x156   : > { %v1314_v63 = vadd.f32 %v1298_v43, %v8473_v25 }
 0x157   : > { %v9132_v60 = vpop.permute.xlu1 %2013  ;;  %v9134_v23 = vpop.permute.xlu0 %2009  ;;  %v1313_v44 = vadd.f32 %v1297_v7, %v8470_v19 }
 0x158   : > { %13382 = vst [vmem:[#allocation96_spill] sm:$0xff] %v9132_v60  ;;  %13383 = vst [vmem:[#allocation97_spill] sm:$0xff] %v9134_v23 }
 0x159   : > { %2332 = vbcast.lane.b32.xlu1 %v2326_v6, 264  ;;  %2328 = vbcast.lane.b32.xlu0 %v2326_v6, 256  ;;  %v1392_v6 = vmul.f32 %v1376_v16, %v8482_v30  ;;  %8025 = vrcp.f32 %v1313_v44 }
 0x15a   : > { %8027 = vrcp.f32 %v1314_v63 }
 0x15b   : > { %v9137_v61 = vpop.permute.xlu1 %2024  ;;  %v9139_v11 = vpop.permute.xlu0 %2020 }
 0x15c   : > { %13384 = vst [vmem:[#allocation98_spill] sm:$0xff] %v9137_v61  ;;  %13385 = vst [vmem:[#allocation99_spill] sm:$0xff] %v9139_v11  ;;  %v2383_v11 = vcombine.low %v1391_v0, %v1392_v6 }
 0x15d   : > { %2343 = vbcast.lane.b32.xlu1 %v2337_v51, 264  ;;  %2339 = vbcast.lane.b32.xlu0 %v2337_v51, 256 }
 0x15e   : > { %v2402_v2 = vrot.slane %v2383_v11, %v8415_v22  ;;  %v2413_v43 = vrot.slane %v2383_v11, %v8490_v41  ;;  %v2424_v6 = vrot.slane %v2383_v11, %v8506_v54 }
 0x15f   : > { %v9146_v23 = vpop.permute.xlu1 %2035  ;;  %v9148_v58 = vpop.permute.xlu0 %2031 }
 0x160   : > { %13386 = vst [vmem:[#allocation100_spill] sm:$0xff] %v9146_v23  ;;  %13387 = vst [vmem:[#allocation101_spill] sm:$0xff] %v9148_v58 }
 0x161   : > { %2354 = vbcast.lane.b32.xlu1 %v2348_v31, 264  ;;  %2350 = vbcast.lane.b32.xlu0 %v2348_v31, 256 }
 0x163   : > { %v9153_v51 = vpop.permute.xlu1 %2046  ;;  %v9155_v61 = vpop.permute.xlu0 %2042 }
 0x164   : > { %13388 = vst [vmem:[#allocation102_spill] sm:$0xff] %v9153_v51  ;;  %13389 = vst [vmem:[#allocation103_spill] sm:$0xff] %v9155_v61  ;;  %v8026_v0 = vpop.eup %8025 }
 0x165   : > { %2365 = vbcast.lane.b32.xlu1 %v2359_v55, 264  ;;  %2361 = vbcast.lane.b32.xlu0 %v2359_v55, 256  ;;  %v8028_v55 = vpop.eup %8027 }
 0x167   : > { %v9158_v16 = vpop.permute.xlu1 %2057  ;;  %v9160_v7 = vpop.permute.xlu0 %2053 }
 0x168   : > { %13390 = vst [vmem:[#allocation104_spill] sm:$0xff] %v9158_v16  ;;  %13391 = vst [vmem:[#allocation105_spill] sm:$0xff] %v9160_v7  ;;  %v1345_v7 = vmul.f32 %v8026_v0, %v1313_v44  ;;  %v1346_v16 = vmul.f32 %v8028_v55, %v1314_v63 }
 0x169   : > { %2408 = vbcast.lane.b32.xlu1 %v2402_v2, 264  ;;  %2404 = vbcast.lane.b32.xlu0 %v2402_v2, 256  ;;  %v2435_v2 = vrot.slane %v2383_v11, %v8511_v59 }
 0x16a   : > { %v1362_v23 = vsub.f32 2.0, %v1346_v16  ;;  %v2468_v16 = vrot.slane %v2383_v11, %v8572_v45 }
 0x16b   : > { %v9163_v9 = vpop.permute.xlu1 %2068  ;;  %v9165_v31 = vpop.permute.xlu0 %2064 }
 0x16c   : > { %13392 = vst [vmem:[#allocation106_spill] sm:$0xff] %v9163_v9  ;;  %13393 = vst [vmem:[#allocation107_spill] sm:$0xff] %v9165_v31  ;;  %v1361_v31 = vsub.f32 2.0, %v1345_v7  ;;  %v1378_v63 = vmul.f32 %v8028_v55, %v1362_v23  ;;  %v2479_v55 = vrot.slane %v2383_v11, %v8583_v56 }
 0x16d   : > { %2419 = vbcast.lane.b32.xlu1 %v2413_v43, 264  ;;  %2415 = vbcast.lane.b32.xlu0 %v2413_v43, 256  ;;  %v2446_v43 = vrot.slane %v2383_v11, %v8522_v1 }
 0x16e   : > { %v1377_v44 = vmul.f32 %v8026_v0, %v1361_v31 }
 0x16f   : > { %v9168_v61 = vpop.permute.xlu1 %2079  ;;  %v9170_v51 = vpop.permute.xlu0 %2075 }
 0x170   : > { %13394 = vst [vmem:[#allocation108_spill] sm:$0xff] %v9168_v61  ;;  %13395 = vst [vmem:[#allocation109_spill] sm:$0xff] %v9170_v51  ;;  %v1393_v7 = vmul.f32 %v1377_v44, %v8554_v34 }
 0x171   : > { %2430 = vbcast.lane.b32.xlu1 %v2424_v6, 264  ;;  %2426 = vbcast.lane.b32.xlu0 %v2424_v6, 256  ;;  %v2457_v6 = vrot.slane %v2383_v11, %v8549_v27 }
 0x173   : > { %v9173_v58 = vpop.permute.xlu1 %2090  ;;  %v9175_v9 = vpop.permute.xlu0 %2086 }
 0x174   : > { %13396 = vst [vmem:[#allocation110_spill] sm:$0xff] %v9173_v58  ;;  %13397 = vst [vmem:[#allocation111_spill] sm:$0xff] %v9175_v9  ;;  %v1300_v9 = vmul.f32 -0.125, %v8567_v39 }
 0x175   : > { %2441 = vbcast.lane.b32.xlu1 %v2435_v2, 264  ;;  %2437 = vbcast.lane.b32.xlu0 %v2435_v2, 256  ;;  %v1299_v2 = vmul.f32 -0.125, %v8558_v35 }
 0x176   : > { %v1316_v0 = vadd.f32 %v1300_v9, %v8579_v15 }
 0x177   : > { %v9178_v60 = vpop.permute.xlu1 %2101  ;;  %v9180_v61 = vpop.permute.xlu0 %2097  ;;  %v1315_v23 = vadd.f32 %v1299_v2, %v8576_v52 }
 0x178   : > { %13398 = vst [vmem:[#allocation112_spill] sm:$0xff] %v9178_v60  ;;  %13399 = vst [vmem:[#allocation113_spill] sm:$0xff] %v9180_v61 }
 0x179   : > { %2452 = vbcast.lane.b32.xlu1 %v2446_v43, 264  ;;  %2448 = vbcast.lane.b32.xlu0 %v2446_v43, 256  ;;  %v1394_v43 = vmul.f32 %v1378_v63, %v8563_v38  ;;  %8029 = vrcp.f32 %v1315_v23 }
 0x17a   : > { %8031 = vrcp.f32 %v1316_v0 }
 0x17b   : > { %v9183_v51 = vpop.permute.xlu1 %2112  ;;  %v9185_v58 = vpop.permute.xlu0 %2108 }
 0x17c   : > { %13400 = vst [vmem:[#allocation114_spill] sm:$0xff] %v9183_v51  ;;  %13401 = vst [vmem:[#allocation115_spill] sm:$0xff] %v9185_v58  ;;  %v2384_v58 = vcombine.low %v1393_v7, %v1394_v43 }
 0x17d   : > { %2463 = vbcast.lane.b32.xlu1 %v2457_v6, 264  ;;  %2459 = vbcast.lane.b32.xlu0 %v2457_v6, 256 }
 0x17e   : > { %v2490_v44 = vrot.slane %v2384_v58, %v8415_v22  ;;  %v2501_v9 = vrot.slane %v2384_v58, %v8490_v41  ;;  %v2512_v43 = vrot.slane %v2384_v58, %v8506_v54 }
 0x17f   : > { %v9192_v61 = vpop.permute.xlu1 %2123  ;;  %v9194_v31 = vpop.permute.xlu0 %2119 }
 0x180   : > { %13402 = vst [vmem:[#allocation116_spill] sm:$0xff] %v9192_v61  ;;  %13403 = vst [vmem:[#allocation117_spill] sm:$0xff] %v9194_v31 }
 0x181   : > { %2474 = vbcast.lane.b32.xlu1 %v2468_v16, 264  ;;  %2470 = vbcast.lane.b32.xlu0 %v2468_v16, 256 }
 0x183   : > { %v9199_v6 = vpop.permute.xlu1 %2134  ;;  %v9201_v51 = vpop.permute.xlu0 %2130 }
 0x184   : > { %13404 = vst [vmem:[#allocation118_spill] sm:$0xff] %v9199_v6  ;;  %13405 = vst [vmem:[#allocation119_spill] sm:$0xff] %v9201_v51  ;;  %v8030_v7 = vpop.eup %8029 }
 0x185   : > { %2485 = vbcast.lane.b32.xlu1 %v2479_v55, 264  ;;  %2481 = vbcast.lane.b32.xlu0 %v2479_v55, 256  ;;  %v8032_v55 = vpop.eup %8031 }
 0x187   : > { %v9204_v63 = vpop.permute.xlu1 %2145  ;;  %v9206_v2 = vpop.permute.xlu0 %2141 }
 0x188   : > { %13406 = vst [vmem:[#allocation120_spill] sm:$0xff] %v9204_v63  ;;  %13407 = vst [vmem:[#allocation121_spill] sm:$0xff] %v9206_v2  ;;  %v1347_v2 = vmul.f32 %v8030_v7, %v1315_v23  ;;  %v1348_v63 = vmul.f32 %v8032_v55, %v1316_v0 }
 0x189   : > { %2496 = vbcast.lane.b32.xlu1 %v2490_v44, 264  ;;  %2492 = vbcast.lane.b32.xlu0 %v2490_v44, 256  ;;  %v2523_v44 = vrot.slane %v2384_v58, %v8511_v59 }
 0x18a   : > { %v1364_v61 = vsub.f32 2.0, %v1348_v63  ;;  %v2556_v63 = vrot.slane %v2384_v58, %v8572_v45 }
 0x18b   : > { %v9209_v11 = vpop.permute.xlu1 %2156  ;;  %v9211_v16 = vpop.permute.xlu0 %2152 }
 0x18c   : > { %13408 = vst [vmem:[#allocation122_spill] sm:$0xff] %v9209_v11  ;;  %13409 = vst [vmem:[#allocation123_spill] sm:$0xff] %v9211_v16  ;;  %v1363_v16 = vsub.f32 2.0, %v1347_v2  ;;  %v1380_v0 = vmul.f32 %v8032_v55, %v1364_v61  ;;  %v13420_v61 = vld [vmem:[#allocation10_spill] sm:$0xff]  ;;  %v13421_v55 = vld [vmem:[#allocation11_spill] sm:$0xff] }
 0x18d   : > { %2507 = vbcast.lane.b32.xlu1 %v2501_v9, 264  ;;  %2503 = vbcast.lane.b32.xlu0 %v2501_v9, 256  ;;  %v2534_v9 = vrot.slane %v2384_v58, %v8522_v1 }
 0x18e   : > { %v1379_v23 = vmul.f32 %v8030_v7, %v1363_v16 }
 0x18f   : > { %v9214_v51 = vpop.permute.xlu1 %2167  ;;  %v9216_v6 = vpop.permute.xlu0 %2163 }
 0x190   : > { %13410 = vst [vmem:[#allocation124_spill] sm:$0xff] %v9214_v51  ;;  %13411 = vst [vmem:[#allocation125_spill] sm:$0xff] %v9216_v6  ;;  %v1395_v2 = vmul.f32 %v1379_v23, %v8633_v21 }
 0x191   : > { %2518 = vbcast.lane.b32.xlu1 %v2512_v43, 264  ;;  %2514 = vbcast.lane.b32.xlu0 %v2512_v43, 256  ;;  %v2545_v43 = vrot.slane %v2384_v58, %v8549_v27 }
 0x193   : > { %v9219_v31 = vpop.permute.xlu1 %2178  ;;  %v9221_v11 = vpop.permute.xlu0 %2174 }
 0x194   : > { %13412 = vst [vmem:[#allocation126_spill] sm:$0xff] %v9219_v31  ;;  %13413 = vst [vmem:[#allocation127_spill] sm:$0xff] %v9221_v11  ;;  %v1302_v11 = vmul.f32 -0.125, %v8644_v3 }
 0x195   : > { %2529 = vbcast.lane.b32.xlu1 %v2523_v44, 264  ;;  %2525 = vbcast.lane.b32.xlu0 %v2523_v44, 256  ;;  %v1301_v44 = vmul.f32 -0.125, %v8636_v24 }
 0x197   : > { %v9224_v60 = vpop.permute.xlu1 %2189  ;;  %v9226_v51 = vpop.permute.xlu0 %2185  ;;  %v1317_v7 = vadd.f32 %v1301_v44, %v13420_v61 }
 0x198   : > { %13414 = vst [vmem:[#allocation128_spill] sm:$0xff] %v9224_v60  ;;  %13415 = vst [vmem:[#allocation129_spill] sm:$0xff] %v9226_v51 }
 0x199   : > { %2540 = vbcast.lane.b32.xlu1 %v2534_v9, 264  ;;  %2536 = vbcast.lane.b32.xlu0 %v2534_v9, 256  ;;  %v1396_v9 = vmul.f32 %v1380_v0, %v8641_v18  ;;  %8033 = vrcp.f32 %v1317_v7 }
 0x19b   : > { %v9229_v6 = vpop.permute.xlu1 %2200  ;;  %v9231_v31 = vpop.permute.xlu0 %2196  ;;  %v2385_v60 = vcombine.low %v1395_v2, %v1396_v9 }
 0x19c   : > { %13416 = vst [vmem:[#allocation130_spill] sm:$0xff] %v9229_v6  ;;  %13417 = vst [vmem:[#allocation131_spill] sm:$0xff] %v9231_v31  ;;  %v1318_v31 = vadd.f32 %v1302_v11, %v13421_v55  ;;  %v2567_v6 = vrot.slane %v2384_v58, %v8583_v56 }
 0x19d   : > { %2551 = vbcast.lane.b32.xlu1 %v2545_v43, 264  ;;  %2547 = vbcast.lane.b32.xlu0 %v2545_v43, 256  ;;  %v2578_v23 = vrot.slane %v2385_v60, %v8415_v22  ;;  %v2589_v11 = vrot.slane %v2385_v60, %v8490_v41  ;;  %v2600_v9 = vrot.slane %v2385_v60, %v8506_v54 }
 0x19e   : > { %8035 = vrcp.f32 %v1318_v31 }
 0x19f   : > { %v9238_v51 = vpop.permute.xlu1 %2211  ;;  %v9240_v16 = vpop.permute.xlu0 %2207 }
 0x1a0   : > { %13418 = vst [vmem:[#allocation132_spill] sm:$0xff] %v9238_v51  ;;  %13419 = vst [vmem:[#allocation133_spill] sm:$0xff] %v9240_v16 }
 0x1a1   : > { %2562 = vbcast.lane.b32.xlu1 %v2556_v63, 264  ;;  %2558 = vbcast.lane.b32.xlu0 %v2556_v63, 256 }
 0x1a3   : > { %v9245_v43 = vpop.permute.xlu1 %2222  ;;  %v9247_v29 = vpop.permute.xlu0 %2218 }
 0x1a4   : > { %13422 = vst [vmem:[#allocation134_spill] sm:$0xff] %v9245_v43  ;;  %13423 = vst [vmem:[#allocation135_spill] sm:$0xff] %v9247_v29  ;;  %v8034_v2 = vpop.eup %8033 }
 0x1a5   : > { %2573 = vbcast.lane.b32.xlu1 %v2567_v6, 264  ;;  %2569 = vbcast.lane.b32.xlu0 %v2567_v6, 256 }
 0x1a7   : > { %v9250_v0 = vpop.permute.xlu1 %2233  ;;  %v9252_v44 = vpop.permute.xlu0 %2229 }
 0x1a8   : > { %13424 = vst [vmem:[#allocation136_spill] sm:$0xff] %v9250_v0  ;;  %13425 = vst [vmem:[#allocation137_spill] sm:$0xff] %v9252_v44  ;;  %v8036_v6 = vpop.eup %8035  ;;  %v1349_v44 = vmul.f32 %v8034_v2, %v1317_v7 }
 0x1a9   : > { %2584 = vbcast.lane.b32.xlu1 %v2578_v23, 264  ;;  %2580 = vbcast.lane.b32.xlu0 %v2578_v23, 256  ;;  %v2611_v23 = vrot.slane %v2385_v60, %v8511_v59  ;;  %v1350_v0 = vmul.f32 %v8036_v6, %v1318_v31 }
 0x1ab   : > { %v9255_v58 = vpop.permute.xlu1 %2244  ;;  %v9257_v63 = vpop.permute.xlu0 %2240  ;;  %v1366_v43 = vsub.f32 2.0, %v1350_v0  ;;  %v2644_v0 = vrot.slane %v2385_v60, %v8572_v45 }
 0x1ac   : > { %13426 = vst [vmem:[#allocation138_spill] sm:$0xff] %v9255_v58  ;;  %13427 = vst [vmem:[#allocation139_spill] sm:$0xff] %v9257_v63  ;;  %v1365_v63 = vsub.f32 2.0, %v1349_v44  ;;  %v13437_v44 = vld [vmem:[#allocation12_spill] sm:$0xff] }
 0x1ad   : > { %2595 = vbcast.lane.b32.xlu1 %v2589_v11, 264  ;;  %2591 = vbcast.lane.b32.xlu0 %v2589_v11, 256  ;;  %v2622_v11 = vrot.slane %v2385_v60, %v8522_v1  ;;  %v1382_v31 = vmul.f32 %v8036_v6, %v1366_v43  ;;  %v13441_v43 = vld [vmem:[#allocation16_spill] sm:$0xff]  ;;  %v13442_v6 = vld [vmem:[#allocation17_spill] sm:$0xff] }
 0x1ae   : > { %v1381_v7 = vmul.f32 %v8034_v2, %v1365_v63 }
 0x1af   : > { %v9260_v29 = vpop.permute.xlu1 %2255  ;;  %v9262_v16 = vpop.permute.xlu0 %2251 }
 0x1b0   : > { %13428 = vst [vmem:[#allocation140_spill] sm:$0xff] %v9260_v29  ;;  %13429 = vst [vmem:[#allocation141_spill] sm:$0xff] %v9262_v16 }
 0x1b1   : > { %2606 = vbcast.lane.b32.xlu1 %v2600_v9, 264  ;;  %2602 = vbcast.lane.b32.xlu0 %v2600_v9, 256  ;;  %v2633_v9 = vrot.slane %v2385_v60, %v8549_v27 }
 0x1b3   : > { %v9265_v51 = vpop.permute.xlu1 %2266  ;;  %v9267_v58 = vpop.permute.xlu0 %2262 }
 0x1b4   : > { %13430 = vst [vmem:[#allocation142_spill] sm:$0xff] %v9265_v51  ;;  %13431 = vst [vmem:[#allocation143_spill] sm:$0xff] %v9267_v58  ;;  %v13436_v58 = vld [vmem:[#allocation15_spill] sm:$0xff] }
 0x1b5   : > { %2617 = vbcast.lane.b32.xlu1 %v2611_v23, 264  ;;  %2613 = vbcast.lane.b32.xlu0 %v2611_v23, 256  ;;  %v1303_v23 = vmul.f32 -0.125, %v8724_v62  ;;  %v1304_v14 = vmul.f32 -0.125, %v13436_v58 }
 0x1b7   : > { %v9270_v36 = vpop.permute.xlu1 %2277  ;;  %v9272_v29 = vpop.permute.xlu0 %2273  ;;  %v1319_v2 = vadd.f32 %v1303_v23, %v13441_v43  ;;  %v13458_v43 = vld [vmem:[#allocation21_spill] sm:$0xff] }
 0x1b8   : > { %13432 = vst [vmem:[#allocation144_spill] sm:$0xff] %v9270_v36  ;;  %13433 = vst [vmem:[#allocation145_spill] sm:$0xff] %v9272_v29  ;;  %v1397_v29 = vmul.f32 %v1381_v7, %v13437_v44  ;;  %v13438_v36 = vld [vmem:[#allocation14_spill] sm:$0xff] }
 0x1b9   : > { %2628 = vbcast.lane.b32.xlu1 %v2622_v11, 264  ;;  %2624 = vbcast.lane.b32.xlu0 %v2622_v11, 256  ;;  %v1398_v11 = vmul.f32 %v1382_v31, %v13438_v36  ;;  %8037 = vrcp.f32 %v1319_v2  ;;  %v1306_v36 = vmul.f32 -0.125, %v13458_v43 }
 0x1bb   : > { %v9275_v16 = vpop.permute.xlu1 %2288  ;;  %v9277_v51 = vpop.permute.xlu0 %2284  ;;  %v2386_v58 = vcombine.low %v1397_v29, %v1398_v11 }
 0x1bc   : > { %13434 = vst [vmem:[#allocation146_spill] sm:$0xff] %v9275_v16  ;;  %13435 = vst [vmem:[#allocation147_spill] sm:$0xff] %v9277_v51  ;;  %v1320_v51 = vadd.f32 %v1304_v14, %v13442_v6  ;;  %v2655_v16 = vrot.slane %v2385_v60, %v8583_v56 }
 0x1bd   : > { %2639 = vbcast.lane.b32.xlu1 %v2633_v9, 264  ;;  %2635 = vbcast.lane.b32.xlu0 %v2633_v9, 256  ;;  %v2666_v7 = vrot.slane %v2386_v58, %v8415_v22  ;;  %v2677_v14 = vrot.slane %v2386_v58, %v8490_v41  ;;  %v2688_v11 = vrot.slane %v2386_v58, %v8506_v54 }
 0x1be   : > { %8039 = vrcp.f32 %v1320_v51 }
 0x1bf   : > { %v9284_v5 = vpop.permute.xlu1 %2299  ;;  %v9286_v63 = vpop.permute.xlu0 %2295 }
 0x1c0   : > { %13439 = vst [vmem:[#allocation148_spill] sm:$0xff] %v9284_v5  ;;  %13440 = vst [vmem:[#allocation149_spill] sm:$0xff] %v9286_v63 }
 0x1c1   : > { %2650 = vbcast.lane.b32.xlu1 %v2644_v0, 264  ;;  %2646 = vbcast.lane.b32.xlu0 %v2644_v0, 256 }
 0x1c3   : > { %v9291_v9 = vpop.permute.xlu1 %2310  ;;  %v9293_v62 = vpop.permute.xlu0 %2306 }
 0x1c4   : > { %13443 = vst [vmem:[#allocation150_spill] sm:$0xff] %v9291_v9  ;;  %13444 = vst [vmem:[#allocation151_spill] sm:$0xff] %v9293_v62  ;;  %v8038_v0 = vpop.eup %8037 }
 0x1c5   : > { %2661 = vbcast.lane.b32.xlu1 %v2655_v16, 264  ;;  %2657 = vbcast.lane.b32.xlu0 %v2655_v16, 256 }
 0x1c7   : > { %v9296_v31 = vpop.permute.xlu1 %2321  ;;  %v9298_v23 = vpop.permute.xlu0 %2317 }
 0x1c8   : > { %13445 = vst [vmem:[#allocation152_spill] sm:$0xff] %v9296_v31  ;;  %13446 = vst [vmem:[#allocation153_spill] sm:$0xff] %v9298_v23  ;;  %v8040_v16 = vpop.eup %8039  ;;  %v1351_v23 = vmul.f32 %v8038_v0, %v1319_v2 }
 0x1c9   : > { %2672 = vbcast.lane.b32.xlu1 %v2666_v7, 264  ;;  %2668 = vbcast.lane.b32.xlu0 %v2666_v7, 256  ;;  %v2699_v7 = vrot.slane %v2386_v58, %v8511_v59  ;;  %v1352_v31 = vmul.f32 %v8040_v16, %v1320_v51 }
 0x1cb   : > { %v9301_v60 = vpop.permute.xlu1 %2332  ;;  %v9303_v29 = vpop.permute.xlu0 %2328  ;;  %v1368_v9 = vsub.f32 2.0, %v1352_v31  ;;  %v2732_v31 = vrot.slane %v2386_v58, %v8572_v45 }
 0x1cc   : > { %13447 = vst [vmem:[#allocation154_spill] sm:$0xff] %v9301_v60  ;;  %13448 = vst [vmem:[#allocation155_spill] sm:$0xff] %v9303_v29  ;;  %v1367_v29 = vsub.f32 2.0, %v1351_v23  ;;  %v13459_v23 = vld [vmem:[#allocation18_spill] sm:$0xff] }
 0x1cd   : > { %2683 = vbcast.lane.b32.xlu1 %v2677_v14, 264  ;;  %2679 = vbcast.lane.b32.xlu0 %v2677_v14, 256  ;;  %v2710_v14 = vrot.slane %v2386_v58, %v8522_v1  ;;  %v1384_v51 = vmul.f32 %v8040_v16, %v1368_v9  ;;  %v13463_v9 = vld [vmem:[#allocation24_spill] sm:$0xff]  ;;  %v13464_v16 = vld [vmem:[#allocation25_spill] sm:$0xff] }
 0x1ce   : > { %v1383_v2 = vmul.f32 %v8038_v0, %v1367_v29 }
 0x1cf   : > { %v9306_v62 = vpop.permute.xlu1 %2343  ;;  %v9308_v63 = vpop.permute.xlu0 %2339 }
 0x1d0   : > { %13449 = vst [vmem:[#allocation156_spill] sm:$0xff] %v9306_v62  ;;  %13450 = vst [vmem:[#allocation157_spill] sm:$0xff] %v9308_v63 }
 0x1d1   : > { %2694 = vbcast.lane.b32.xlu1 %v2688_v11, 264  ;;  %2690 = vbcast.lane.b32.xlu0 %v2688_v11, 256  ;;  %v2721_v11 = vrot.slane %v2386_v58, %v8549_v27 }
 0x1d3   : > { %v9311_v5 = vpop.permute.xlu1 %2354  ;;  %v9313_v60 = vpop.permute.xlu0 %2350 }
 0x1d4   : > { %13451 = vst [vmem:[#allocation158_spill] sm:$0xff] %v9311_v5  ;;  %13452 = vst [vmem:[#allocation159_spill] sm:$0xff] %v9313_v60  ;;  %v13457_v60 = vld [vmem:[#allocation19_spill] sm:$0xff] }
 0x1d5   : > { %2705 = vbcast.lane.b32.xlu1 %v2699_v7, 264  ;;  %2701 = vbcast.lane.b32.xlu0 %v2699_v7, 256  ;;  %v1305_v7 = vmul.f32 -0.125, %v13457_v60 }
 0x1d7   : > { %v9316_v6 = vpop.permute.xlu1 %2365  ;;  %v9318_v62 = vpop.permute.xlu0 %2361  ;;  %v1321_v0 = vadd.f32 %v1305_v7, %v13463_v9 }
 0x1d8   : > { %13453 = vst [vmem:[#allocation160_spill] sm:$0xff] %v9316_v6  ;;  %13454 = vst [vmem:[#allocation161_spill] sm:$0xff] %v9318_v62  ;;  %v1399_v62 = vmul.f32 %v1383_v2, %v13459_v23  ;;  %v13460_v6 = vld [vmem:[#allocation20_spill] sm:$0xff] }
 0x1d9   : > { %2716 = vbcast.lane.b32.xlu1 %v2710_v14, 264  ;;  %2712 = vbcast.lane.b32.xlu0 %v2710_v14, 256  ;;  %v1400_v14 = vmul.f32 %v1384_v51, %v13460_v6  ;;  %8041 = vrcp.f32 %v1321_v0 }
 0x1db   : > { %v9321_v63 = vpop.permute.xlu1 %2408  ;;  %v9323_v5 = vpop.permute.xlu0 %2404  ;;  %v2387_v43 = vcombine.low %v1399_v62, %v1400_v14 }
 0x1dc   : > { %13455 = vst [vmem:[#allocation162_spill] sm:$0xff] %v9321_v63  ;;  %13456 = vst [vmem:[#allocation163_spill] sm:$0xff] %v9323_v5  ;;  %v1322_v5 = vadd.f32 %v1306_v36, %v13464_v16  ;;  %v2743_v63 = vrot.slane %v2386_v58, %v8583_v56 }
 0x1dd   : > { %2727 = vbcast.lane.b32.xlu1 %v2721_v11, 264  ;;  %2723 = vbcast.lane.b32.xlu0 %v2721_v11, 256  ;;  %v2754_v2 = vrot.slane %v2387_v43, %v8415_v22  ;;  %v2765_v36 = vrot.slane %v2387_v43, %v8490_v41  ;;  %v2776_v14 = vrot.slane %v2387_v43, %v8506_v54 }
 0x1de   : > { %8043 = vrcp.f32 %v1322_v5 }
 0x1df   : > { %v9330_v44 = vpop.permute.xlu1 %2419  ;;  %v9332_v29 = vpop.permute.xlu0 %2415 }
 0x1e0   : > { %13461 = vst [vmem:[#allocation18_spill] sm:$0xff] %v9330_v44  ;;  %13462 = vst [vmem:[#allocation20_spill] sm:$0xff] %v9332_v29 }
 0x1e1   : > { %2738 = vbcast.lane.b32.xlu1 %v2732_v31, 264  ;;  %2734 = vbcast.lane.b32.xlu0 %v2732_v31, 256 }
 0x1e3   : > { %v9337_v11 = vpop.permute.xlu1 %2430  ;;  %v9339_v60 = vpop.permute.xlu0 %2426 }
 0x1e4   : > { %13465 = vst [vmem:[#allocation24_spill] sm:$0xff] %v9337_v11  ;;  %13466 = vst [vmem:[#allocation164_spill] sm:$0xff] %v9339_v60  ;;  %v8042_v31 = vpop.eup %8041 }
 0x1e5   : > { %2749 = vbcast.lane.b32.xlu1 %v2743_v63, 264  ;;  %2745 = vbcast.lane.b32.xlu0 %v2743_v63, 256 }
 0x1e7   : > { %v9342_v51 = vpop.permute.xlu1 %2441  ;;  %v9344_v7 = vpop.permute.xlu0 %2437 }
 0x1e8   : > { %13467 = vst [vmem:[#allocation165_spill] sm:$0xff] %v9342_v51  ;;  %13468 = vst [vmem:[#allocation166_spill] sm:$0xff] %v9344_v7  ;;  %v8044_v63 = vpop.eup %8043  ;;  %v1353_v7 = vmul.f32 %v8042_v31, %v1321_v0 }
 0x1e9   : > { %2760 = vbcast.lane.b32.xlu1 %v2754_v2, 264  ;;  %2756 = vbcast.lane.b32.xlu0 %v2754_v2, 256  ;;  %v2787_v2 = vrot.slane %v2387_v43, %v8511_v59  ;;  %v1354_v51 = vmul.f32 %v8044_v63, %v1322_v5 }
 0x1eb   : > { %v9347_v58 = vpop.permute.xlu1 %2452  ;;  %v9349_v62 = vpop.permute.xlu0 %2448  ;;  %v1370_v44 = vsub.f32 2.0, %v1354_v51  ;;  %v2820_v51 = vrot.slane %v2387_v43, %v8572_v45 }
 0x1ec   : > { %13469 = vst [vmem:[#allocation167_spill] sm:$0xff] %v9347_v58  ;;  %13470 = vst [vmem:[#allocation168_spill] sm:$0xff] %v9349_v62  ;;  %v1369_v62 = vsub.f32 2.0, %v1353_v7 }
 0x1ed   : > { %2771 = vbcast.lane.b32.xlu1 %v2765_v36, 264  ;;  %2767 = vbcast.lane.b32.xlu0 %v2765_v36, 256  ;;  %v2798_v36 = vrot.slane %v2387_v43, %v8522_v1  ;;  %v1386_v5 = vmul.f32 %v8044_v63, %v1370_v44  ;;  %v2831_v63 = vrot.slane %v2387_v43, %v8583_v56 }
 0x1ee   : > { %v1385_v0 = vmul.f32 %v8042_v31, %v1369_v62 }
 0x1ef   : > { %v9352_v60 = vpop.permute.xlu1 %2463  ;;  %v9354_v11 = vpop.permute.xlu0 %2459 }
 0x1f0   : > { %13471 = vst [vmem:[#allocation169_spill] sm:$0xff] %v9352_v60  ;;  %13472 = vst [vmem:[#allocation170_spill] sm:$0xff] %v9354_v11  ;;  %v1401_v7 = vmul.f32 %v1385_v0, %v8908_v49 }
 0x1f1   : > { %2782 = vbcast.lane.b32.xlu1 %v2776_v14, 264  ;;  %2778 = vbcast.lane.b32.xlu0 %v2776_v14, 256  ;;  %v2809_v14 = vrot.slane %v2387_v43, %v8549_v27 }
 0x1f3   : > { %v9357_v29 = vpop.permute.xlu1 %2474  ;;  %v9359_v58 = vpop.permute.xlu0 %2470 }
 0x1f4   : > { %13473 = vst [vmem:[#allocation171_spill] sm:$0xff] %v9357_v29  ;;  %13474 = vst [vmem:[#allocation172_spill] sm:$0xff] %v9359_v58  ;;  %v1308_v58 = vmul.f32 -0.125, %v8921_v26 }
 0x1f5   : > { %2793 = vbcast.lane.b32.xlu1 %v2787_v2, 264  ;;  %2789 = vbcast.lane.b32.xlu0 %v2787_v2, 256  ;;  %v1307_v2 = vmul.f32 -0.125, %v8912_v17 }
 0x1f6   : > { %v1324_v31 = vadd.f32 %v1308_v58, %v8934_v12 }
 0x1f7   : > { %v9362_v16 = vpop.permute.xlu1 %2485  ;;  %v9364_v60 = vpop.permute.xlu0 %2481  ;;  %v1323_v44 = vadd.f32 %v1307_v2, %v8931_v10 }
 0x1f8   : > { %13475 = vst [vmem:[#allocation173_spill] sm:$0xff] %v9362_v16  ;;  %13476 = vst [vmem:[#allocation174_spill] sm:$0xff] %v9364_v60 }
 0x1f9   : > { %2804 = vbcast.lane.b32.xlu1 %v2798_v36, 264  ;;  %2800 = vbcast.lane.b32.xlu0 %v2798_v36, 256  ;;  %v1402_v36 = vmul.f32 %v1386_v5, %v8917_v47  ;;  %8045 = vrcp.f32 %v1323_v44 }
 0x1fa   : > { %8047 = vrcp.f32 %v1324_v31 }
 0x1fb   : > { %v9367_v11 = vpop.permute.xlu1 %2496  ;;  %v9369_v29 = vpop.permute.xlu0 %2492 }
 0x1fc   : > { %13477 = vst [vmem:[#allocation175_spill] sm:$0xff] %v9367_v11  ;;  %13478 = vst [vmem:[#allocation176_spill] sm:$0xff] %v9369_v29  ;;  %v2388_v29 = vcombine.low %v1401_v7, %v1402_v36 }
 0x1fd   : > { %2815 = vbcast.lane.b32.xlu1 %v2809_v14, 264  ;;  %2811 = vbcast.lane.b32.xlu0 %v2809_v14, 256 }
 0x1fe   : > { %v2842_v0 = vrot.slane %v2388_v29, %v8415_v22  ;;  %v2853_v58 = vrot.slane %v2388_v29, %v8490_v41  ;;  %v2864_v36 = vrot.slane %v2388_v29, %v8506_v54 }
 0x1ff   : > { %v9376_v60 = vpop.permute.xlu1 %2507  ;;  %v9378_v62 = vpop.permute.xlu0 %2503 }
 0x200   : > { %13479 = vst [vmem:[#allocation177_spill] sm:$0xff] %v9376_v60  ;;  %13480 = vst [vmem:[#allocation178_spill] sm:$0xff] %v9378_v62 }
 0x201   : > { %2826 = vbcast.lane.b32.xlu1 %v2820_v51, 264  ;;  %2822 = vbcast.lane.b32.xlu0 %v2820_v51, 256 }
 0x203   : > { %v9383_v14 = vpop.permute.xlu1 %2518  ;;  %v9385_v11 = vpop.permute.xlu0 %2514 }
 0x204   : > { %13481 = vst [vmem:[#allocation179_spill] sm:$0xff] %v9383_v14  ;;  %13482 = vst [vmem:[#allocation180_spill] sm:$0xff] %v9385_v11  ;;  %v8046_v7 = vpop.eup %8045 }
 0x205   : > { %2837 = vbcast.lane.b32.xlu1 %v2831_v63, 264  ;;  %2833 = vbcast.lane.b32.xlu0 %v2831_v63, 256  ;;  %v8048_v63 = vpop.eup %8047 }
 0x207   : > { %v9388_v5 = vpop.permute.xlu1 %2529  ;;  %v9390_v2 = vpop.permute.xlu0 %2525 }
 0x208   : > { %13483 = vst [vmem:[#allocation181_spill] sm:$0xff] %v9388_v5  ;;  %13484 = vst [vmem:[#allocation182_spill] sm:$0xff] %v9390_v2  ;;  %v1355_v2 = vmul.f32 %v8046_v7, %v1323_v44  ;;  %v1356_v5 = vmul.f32 %v8048_v63, %v1324_v31 }
 0x209   : > { %2848 = vbcast.lane.b32.xlu1 %v2842_v0, 264  ;;  %2844 = vbcast.lane.b32.xlu0 %v2842_v0, 256  ;;  %v2875_v0 = vrot.slane %v2388_v29, %v8511_v59 }
 0x20a   : > { %v1372_v60 = vsub.f32 2.0, %v1356_v5  ;;  %v2908_v5 = vrot.slane %v2388_v29, %v8572_v45 }
 0x20b   : > { %v9393_v43 = vpop.permute.xlu1 %2540  ;;  %v9395_v51 = vpop.permute.xlu0 %2536 }
 0x20c   : > { %13485 = vst [vmem:[#allocation183_spill] sm:$0xff] %v9393_v43  ;;  %13486 = vst [vmem:[#allocation184_spill] sm:$0xff] %v9395_v51  ;;  %v1371_v51 = vsub.f32 2.0, %v1355_v2  ;;  %v1388_v31 = vmul.f32 %v8048_v63, %v1372_v60  ;;  %v2919_v63 = vrot.slane %v2388_v29, %v8583_v56 }
 0x20d   : > { %2859 = vbcast.lane.b32.xlu1 %v2853_v58, 264  ;;  %2855 = vbcast.lane.b32.xlu0 %v2853_v58, 256  ;;  %v2886_v58 = vrot.slane %v2388_v29, %v8522_v1 }
 0x20e   : > { %v1387_v44 = vmul.f32 %v8046_v7, %v1371_v51 }
 0x20f   : > { %v9398_v11 = vpop.permute.xlu1 %2551  ;;  %v9400_v14 = vpop.permute.xlu0 %2547 }
 0x210   : > { %13487 = vst [vmem:[#allocation185_spill] sm:$0xff] %v9398_v11  ;;  %13488 = vst [vmem:[#allocation186_spill] sm:$0xff] %v9400_v14  ;;  %v1403_v2 = vmul.f32 %v1387_v44, %v9013_v20 }
 0x211   : > { %2870 = vbcast.lane.b32.xlu1 %v2864_v36, 264  ;;  %2866 = vbcast.lane.b32.xlu0 %v2864_v36, 256  ;;  %v2897_v36 = vrot.slane %v2388_v29, %v8549_v27 }
 0x213   : > { %v9403_v62 = vpop.permute.xlu1 %2562  ;;  %v9405_v43 = vpop.permute.xlu0 %2558 }
 0x214   : > { %13489 = vst [vmem:[#allocation187_spill] sm:$0xff] %v9403_v62  ;;  %13490 = vst [vmem:[#allocation188_spill] sm:$0xff] %v9405_v43  ;;  %v1310_v43 = vmul.f32 -0.125, %v9024_v42 }
 0x215   : > { %2881 = vbcast.lane.b32.xlu1 %v2875_v0, 264  ;;  %2877 = vbcast.lane.b32.xlu0 %v2875_v0, 256  ;;  %v1309_v0 = vmul.f32 -0.125, %v9016_v13 }
 0x216   : > { %v1326_v7 = vadd.f32 %v1310_v43, %v9036_v53 }
 0x217   : > { %v9408_v16 = vpop.permute.xlu1 %2573  ;;  %v9410_v11 = vpop.permute.xlu0 %2569  ;;  %v1325_v60 = vadd.f32 %v1309_v0, %v9033_v37 }
 0x218   : > { %13491 = vst [vmem:[#allocation189_spill] sm:$0xff] %v9408_v16  ;;  %13492 = vst [vmem:[#allocation190_spill] sm:$0xff] %v9410_v11 }
 0x219   : > { %2892 = vbcast.lane.b32.xlu1 %v2886_v58, 264  ;;  %2888 = vbcast.lane.b32.xlu0 %v2886_v58, 256  ;;  %v1404_v58 = vmul.f32 %v1388_v31, %v9021_v32  ;;  %8049 = vrcp.f32 %v1325_v60 }
 0x21a   : > { %8051 = vrcp.f32 %v1326_v7 }
 0x21b   : > { %v9413_v14 = vpop.permute.xlu1 %2584  ;;  %v9415_v62 = vpop.permute.xlu0 %2580 }
 0x21c   : > { %13493 = vst [vmem:[#allocation191_spill] sm:$0xff] %v9413_v14  ;;  %13494 = vst [vmem:[#allocation192_spill] sm:$0xff] %v9415_v62  ;;  %v2389_v62 = vcombine.low %v1403_v2, %v1404_v58 }
 0x21d   : > { %2903 = vbcast.lane.b32.xlu1 %v2897_v36, 264  ;;  %2899 = vbcast.lane.b32.xlu0 %v2897_v36, 256 }
 0x21e   : > { %v2930_v44 = vrot.slane %v2389_v62, %v8415_v22  ;;  %v2941_v43 = vrot.slane %v2389_v62, %v8490_v41  ;;  %v2952_v58 = vrot.slane %v2389_v62, %v8506_v54 }
 0x21f   : > { %v9422_v11 = vpop.permute.xlu1 %2595  ;;  %v9424_v51 = vpop.permute.xlu0 %2591 }
 0x220   : > { %13495 = vst [vmem:[#allocation193_spill] sm:$0xff] %v9422_v11  ;;  %13496 = vst [vmem:[#allocation194_spill] sm:$0xff] %v9424_v51 }
 0x221   : > { %2914 = vbcast.lane.b32.xlu1 %v2908_v5, 264  ;;  %2910 = vbcast.lane.b32.xlu0 %v2908_v5, 256 }
 0x223   : > { %v9429_v36 = vpop.permute.xlu1 %2606  ;;  %v9431_v14 = vpop.permute.xlu0 %2602 }
 0x224   : > { %13497 = vst [vmem:[#allocation195_spill] sm:$0xff] %v9429_v36  ;;  %13498 = vst [vmem:[#allocation196_spill] sm:$0xff] %v9431_v14  ;;  %v8050_v2 = vpop.eup %8049 }
 0x225   : > { %2925 = vbcast.lane.b32.xlu1 %v2919_v63, 264  ;;  %2921 = vbcast.lane.b32.xlu0 %v2919_v63, 256  ;;  %v8052_v63 = vpop.eup %8051 }
 0x227   : > { %v9434_v31 = vpop.permute.xlu1 %2617  ;;  %v9436_v0 = vpop.permute.xlu0 %2613 }
 0x228   : > { %13499 = vst [vmem:[#allocation197_spill] sm:$0xff] %v9434_v31  ;;  %13500 = vst [vmem:[#allocation198_spill] sm:$0xff] %v9436_v0  ;;  %v1357_v0 = vmul.f32 %v8050_v2, %v1325_v60  ;;  %v1358_v31 = vmul.f32 %v8052_v63, %v1326_v7 }
 0x229   : > { %2936 = vbcast.lane.b32.xlu1 %v2930_v44, 264  ;;  %2932 = vbcast.lane.b32.xlu0 %v2930_v44, 256  ;;  %v2963_v44 = vrot.slane %v2389_v62, %v8511_v59 }
 0x22a   : > { %v1374_v11 = vsub.f32 2.0, %v1358_v31  ;;  %v2996_v31 = vrot.slane %v2389_v62, %v8572_v45 }
 0x22b   : > { %v9439_v29 = vpop.permute.xlu1 %2628  ;;  %v9441_v5 = vpop.permute.xlu0 %2624 }
 0x22c   : > { %13501 = vst [vmem:[#allocation199_spill] sm:$0xff] %v9439_v29  ;;  %13502 = vst [vmem:[#allocation200_spill] sm:$0xff] %v9441_v5  ;;  %v1373_v5 = vsub.f32 2.0, %v1357_v0  ;;  %v1390_v7 = vmul.f32 %v8052_v63, %v1374_v11  ;;  %v3007_v63 = vrot.slane %v2389_v62, %v8583_v56 }
 0x22d   : > { %2947 = vbcast.lane.b32.xlu1 %v2941_v43, 264  ;;  %2943 = vbcast.lane.b32.xlu0 %v2941_v43, 256  ;;  %v2974_v43 = vrot.slane %v2389_v62, %v8522_v1 }
 0x22e   : > { %v1389_v60 = vmul.f32 %v8050_v2, %v1373_v5 }
 0x22f   : > { %v9444_v14 = vpop.permute.xlu1 %2639  ;;  %v9446_v36 = vpop.permute.xlu0 %2635 }
 0x230   : > { %13503 = vst [vmem:[#allocation201_spill] sm:$0xff] %v9444_v14  ;;  %13504 = vst [vmem:[#allocation202_spill] sm:$0xff] %v9446_v36  ;;  %v1405_v0 = vmul.f32 %v1389_v60, %v9086_v46 }
 0x231   : > { %2958 = vbcast.lane.b32.xlu1 %v2952_v58, 264  ;;  %2954 = vbcast.lane.b32.xlu0 %v2952_v58, 256  ;;  %v2985_v58 = vrot.slane %v2389_v62, %v8549_v27 }
 0x233   : > { %v9449_v51 = vpop.permute.xlu1 %2650  ;;  %v9451_v29 = vpop.permute.xlu0 %2646 }
 0x234   : > { %13505 = vst [vmem:[#allocation203_spill] sm:$0xff] %v9449_v51  ;;  %13506 = vst [vmem:[#allocation204_spill] sm:$0xff] %v9451_v29  ;;  %v1408_v29 = vmul.f32 0.125, %v8435_v40 }
 0x235   : > { %2969 = vbcast.lane.b32.xlu1 %v2963_v44, 264  ;;  %2965 = vbcast.lane.b32.xlu0 %v2963_v44, 256  ;;  %v1407_v44 = vmul.f32 0.125, %v8426_v33 }
 0x236   : > { %v1424_v2 = vadd.f32 %v1408_v29, %v8443_v50 }
 0x237   : > { %v9454_v16 = vpop.permute.xlu1 %2661  ;;  %v9456_v14 = vpop.permute.xlu0 %2657  ;;  %v1423_v11 = vadd.f32 %v1407_v44, %v8441_v48 }
 0x238   : > { %13507 = vst [vmem:[#allocation205_spill] sm:$0xff] %v9454_v16  ;;  %13508 = vst [vmem:[#allocation206_spill] sm:$0xff] %v9456_v14 }
 0x239   : > { %2980 = vbcast.lane.b32.xlu1 %v2974_v43, 264  ;;  %2976 = vbcast.lane.b32.xlu0 %v2974_v43, 256  ;;  %v1406_v43 = vmul.f32 %v1390_v7, %v9089_v57  ;;  %8053 = vrcp.f32 %v1423_v11 }
 0x23a   : > { %8055 = vrcp.f32 %v1424_v2 }
 0x23b   : > { %v9459_v36 = vpop.permute.xlu1 %2672  ;;  %v9461_v51 = vpop.permute.xlu0 %2668 }
 0x23c   : > { %13509 = vst [vmem:[#allocation207_spill] sm:$0xff] %v9459_v36  ;;  %13510 = vst [vmem:[#allocation208_spill] sm:$0xff] %v9461_v51  ;;  %v2390_v51 = vcombine.low %v1405_v0, %v1406_v43 }
 0x23d   : > { %2991 = vbcast.lane.b32.xlu1 %v2985_v58, 264  ;;  %2987 = vbcast.lane.b32.xlu0 %v2985_v58, 256 }
 0x23e   : > { %v3018_v60 = vrot.slane %v2390_v51, %v8415_v22  ;;  %v3029_v29 = vrot.slane %v2390_v51, %v8490_v41  ;;  %v3040_v43 = vrot.slane %v2390_v51, %v8506_v54 }
 0x23f   : > { %v9468_v14 = vpop.permute.xlu1 %2683  ;;  %v9470_v5 = vpop.permute.xlu0 %2679 }
 0x240   : > { %13511 = vst [vmem:[#allocation209_spill] sm:$0xff] %v9468_v14  ;;  %13512 = vst [vmem:[#allocation210_spill] sm:$0xff] %v9470_v5 }
 0x241   : > { %3002 = vbcast.lane.b32.xlu1 %v2996_v31, 264  ;;  %2998 = vbcast.lane.b32.xlu0 %v2996_v31, 256 }
 0x243   : > { %v9475_v58 = vpop.permute.xlu1 %2694  ;;  %v9477_v36 = vpop.permute.xlu0 %2690 }
 0x244   : > { %13513 = vst [vmem:[#allocation211_spill] sm:$0xff] %v9475_v58  ;;  %13514 = vst [vmem:[#allocation212_spill] sm:$0xff] %v9477_v36  ;;  %v8054_v0 = vpop.eup %8053 }
 0x245   : > { %3013 = vbcast.lane.b32.xlu1 %v3007_v63, 264  ;;  %3009 = vbcast.lane.b32.xlu0 %v3007_v63, 256  ;;  %v8056_v63 = vpop.eup %8055 }
 0x247   : > { %v9480_v7 = vpop.permute.xlu1 %2705  ;;  %v9482_v44 = vpop.permute.xlu0 %2701 }
 0x248   : > { %13515 = vst [vmem:[#allocation213_spill] sm:$0xff] %v9480_v7  ;;  %13516 = vst [vmem:[#allocation214_spill] sm:$0xff] %v9482_v44  ;;  %v1455_v44 = vmul.f32 %v8054_v0, %v1423_v11  ;;  %v1456_v7 = vmul.f32 %v8056_v63, %v1424_v2 }
 0x249   : > { %3024 = vbcast.lane.b32.xlu1 %v3018_v60, 264  ;;  %3020 = vbcast.lane.b32.xlu0 %v3018_v60, 256  ;;  %v3051_v60 = vrot.slane %v2390_v51, %v8511_v59 }
 0x24a   : > { %v1472_v14 = vsub.f32 2.0, %v1456_v7  ;;  %v3084_v7 = vrot.slane %v2390_v51, %v8572_v45 }
 0x24b   : > { %v9485_v62 = vpop.permute.xlu1 %2716  ;;  %v9487_v31 = vpop.permute.xlu0 %2712 }
 0x24c   : > { %13517 = vst [vmem:[#allocation215_spill] sm:$0xff] %v9485_v62  ;;  %13518 = vst [vmem:[#allocation216_spill] sm:$0xff] %v9487_v31  ;;  %v1471_v31 = vsub.f32 2.0, %v1455_v44  ;;  %v1488_v2 = vmul.f32 %v8056_v63, %v1472_v14  ;;  %v3095_v63 = vrot.slane %v2390_v51, %v8583_v56 }
 0x24d   : > { %3035 = vbcast.lane.b32.xlu1 %v3029_v29, 264  ;;  %3031 = vbcast.lane.b32.xlu0 %v3029_v29, 256  ;;  %v3062_v29 = vrot.slane %v2390_v51, %v8522_v1 }
 0x24e   : > { %v1487_v11 = vmul.f32 %v8054_v0, %v1471_v31 }
 0x24f   : > { %v9490_v36 = vpop.permute.xlu1 %2727  ;;  %v9492_v58 = vpop.permute.xlu0 %2723 }
 0x250   : > { %13519 = vst [vmem:[#allocation217_spill] sm:$0xff] %v9490_v36  ;;  %13520 = vst [vmem:[#allocation218_spill] sm:$0xff] %v9492_v58  ;;  %v1503_v44 = vmul.f32 %v1487_v11, %v8478_v28 }
 0x251   : > { %3046 = vbcast.lane.b32.xlu1 %v3040_v43, 264  ;;  %3042 = vbcast.lane.b32.xlu0 %v3040_v43, 256  ;;  %v3073_v43 = vrot.slane %v2390_v51, %v8549_v27 }
 0x253   : > { %v9495_v5 = vpop.permute.xlu1 %2738  ;;  %v9497_v62 = vpop.permute.xlu0 %2734 }
 0x254   : > { %13521 = vst [vmem:[#allocation219_spill] sm:$0xff] %v9495_v5  ;;  %13522 = vst [vmem:[#allocation220_spill] sm:$0xff] %v9497_v62  ;;  %v1410_v62 = vmul.f32 0.125, %v8461_v8 }
 0x255   : > { %3057 = vbcast.lane.b32.xlu1 %v3051_v60, 264  ;;  %3053 = vbcast.lane.b32.xlu0 %v3051_v60, 256  ;;  %v1409_v60 = vmul.f32 0.125, %v8457_v4 }
 0x256   : > { %v1426_v0 = vadd.f32 %v1410_v62, %v8473_v25 }
 0x257   : > { %v9500_v16 = vpop.permute.xlu1 %2749  ;;  %v9502_v36 = vpop.permute.xlu0 %2745  ;;  %v1425_v14 = vadd.f32 %v1409_v60, %v8470_v19 }
 0x258   : > { %13523 = vst [vmem:[#allocation221_spill] sm:$0xff] %v9500_v16  ;;  %13524 = vst [vmem:[#allocation222_spill] sm:$0xff] %v9502_v36 }
 0x259   : > { %3068 = vbcast.lane.b32.xlu1 %v3062_v29, 264  ;;  %3064 = vbcast.lane.b32.xlu0 %v3062_v29, 256  ;;  %v1504_v29 = vmul.f32 %v1488_v2, %v8482_v30  ;;  %8057 = vrcp.f32 %v1425_v14 }
 0x25a   : > { %8059 = vrcp.f32 %v1426_v0 }
 0x25b   : > { %v9505_v58 = vpop.permute.xlu1 %2760  ;;  %v9507_v5 = vpop.permute.xlu0 %2756 }
 0x25c   : > { %13525 = vst [vmem:[#allocation223_spill] sm:$0xff] %v9505_v58  ;;  %13526 = vst [vmem:[#allocation224_spill] sm:$0xff] %v9507_v5  ;;  %v3119_v5 = vcombine.low %v1503_v44, %v1504_v29 }
 0x25d   : > { %3079 = vbcast.lane.b32.xlu1 %v3073_v43, 264  ;;  %3075 = vbcast.lane.b32.xlu0 %v3073_v43, 256 }
 0x25e   : > { %v3138_v11 = vrot.slane %v3119_v5, %v8415_v22  ;;  %v3149_v62 = vrot.slane %v3119_v5, %v8490_v41  ;;  %v3160_v29 = vrot.slane %v3119_v5, %v8506_v54 }
 0x25f   : > { %v9514_v36 = vpop.permute.xlu1 %2771  ;;  %v9516_v31 = vpop.permute.xlu0 %2767 }
 0x260   : > { %13527 = vst [vmem:[#allocation225_spill] sm:$0xff] %v9514_v36  ;;  %13528 = vst [vmem:[#allocation226_spill] sm:$0xff] %v9516_v31 }
 0x261   : > { %3090 = vbcast.lane.b32.xlu1 %v3084_v7, 264  ;;  %3086 = vbcast.lane.b32.xlu0 %v3084_v7, 256 }
 0x263   : > { %v9521_v43 = vpop.permute.xlu1 %2782  ;;  %v9523_v58 = vpop.permute.xlu0 %2778 }
 0x264   : > { %13529 = vst [vmem:[#allocation227_spill] sm:$0xff] %v9521_v43  ;;  %13530 = vst [vmem:[#allocation228_spill] sm:$0xff] %v9523_v58  ;;  %v8058_v44 = vpop.eup %8057 }
 0x265   : > { %3101 = vbcast.lane.b32.xlu1 %v3095_v63, 264  ;;  %3097 = vbcast.lane.b32.xlu0 %v3095_v63, 256  ;;  %v8060_v63 = vpop.eup %8059 }
 0x267   : > { %v9526_v2 = vpop.permute.xlu1 %2793  ;;  %v9528_v60 = vpop.permute.xlu0 %2789 }
 0x268   : > { %13531 = vst [vmem:[#allocation229_spill] sm:$0xff] %v9526_v2  ;;  %13532 = vst [vmem:[#allocation230_spill] sm:$0xff] %v9528_v60  ;;  %v1457_v60 = vmul.f32 %v8058_v44, %v1425_v14  ;;  %v1458_v2 = vmul.f32 %v8060_v63, %v1426_v0 }
 0x269   : > { %3144 = vbcast.lane.b32.xlu1 %v3138_v11, 264  ;;  %3140 = vbcast.lane.b32.xlu0 %v3138_v11, 256  ;;  %v3171_v11 = vrot.slane %v3119_v5, %v8511_v59 }
 0x26a   : > { %v1474_v36 = vsub.f32 2.0, %v1458_v2  ;;  %v3204_v2 = vrot.slane %v3119_v5, %v8572_v45 }
 0x26b   : > { %v9531_v51 = vpop.permute.xlu1 %2804  ;;  %v9533_v7 = vpop.permute.xlu0 %2800 }
 0x26c   : > { %13533 = vst [vmem:[#allocation231_spill] sm:$0xff] %v9531_v51  ;;  %13534 = vst [vmem:[#allocation232_spill] sm:$0xff] %v9533_v7  ;;  %v1473_v7 = vsub.f32 2.0, %v1457_v60  ;;  %v1490_v0 = vmul.f32 %v8060_v63, %v1474_v36  ;;  %v3215_v63 = vrot.slane %v3119_v5, %v8583_v56 }
 0x26d   : > { %3155 = vbcast.lane.b32.xlu1 %v3149_v62, 264  ;;  %3151 = vbcast.lane.b32.xlu0 %v3149_v62, 256  ;;  %v3182_v62 = vrot.slane %v3119_v5, %v8522_v1 }
 0x26e   : > { %v1489_v14 = vmul.f32 %v8058_v44, %v1473_v7 }
 0x26f   : > { %v9536_v58 = vpop.permute.xlu1 %2815  ;;  %v9538_v43 = vpop.permute.xlu0 %2811 }
 0x270   : > { %13535 = vst [vmem:[#allocation233_spill] sm:$0xff] %v9536_v58  ;;  %13536 = vst [vmem:[#allocation234_spill] sm:$0xff] %v9538_v43  ;;  %v1505_v60 = vmul.f32 %v1489_v14, %v8554_v34 }
 0x271   : > { %3166 = vbcast.lane.b32.xlu1 %v3160_v29, 264  ;;  %3162 = vbcast.lane.b32.xlu0 %v3160_v29, 256  ;;  %v3193_v29 = vrot.slane %v3119_v5, %v8549_v27 }
 0x273   : > { %v9541_v31 = vpop.permute.xlu1 %2826  ;;  %v9543_v51 = vpop.permute.xlu0 %2822 }
 0x274   : > { %13537 = vst [vmem:[#allocation235_spill] sm:$0xff] %v9541_v31  ;;  %13538 = vst [vmem:[#allocation236_spill] sm:$0xff] %v9543_v51  ;;  %v1412_v51 = vmul.f32 0.125, %v8567_v39 }
 0x275   : > { %3177 = vbcast.lane.b32.xlu1 %v3171_v11, 264  ;;  %3173 = vbcast.lane.b32.xlu0 %v3171_v11, 256  ;;  %v1411_v11 = vmul.f32 0.125, %v8558_v35 }
 0x276   : > { %v1428_v44 = vadd.f32 %v1412_v51, %v8579_v15 }
 0x277   : > { %v9546_v16 = vpop.permute.xlu1 %2837  ;;  %v9548_v58 = vpop.permute.xlu0 %2833  ;;  %v1427_v36 = vadd.f32 %v1411_v11, %v8576_v52 }
 0x278   : > { %13539 = vst [vmem:[#allocation237_spill] sm:$0xff] %v9546_v16  ;;  %13540 = vst [vmem:[#allocation238_spill] sm:$0xff] %v9548_v58 }
 0x279   : > { %3188 = vbcast.lane.b32.xlu1 %v3182_v62, 264  ;;  %3184 = vbcast.lane.b32.xlu0 %v3182_v62, 256  ;;  %v1506_v62 = vmul.f32 %v1490_v0, %v8563_v38  ;;  %8061 = vrcp.f32 %v1427_v36 }
 0x27a   : > { %8063 = vrcp.f32 %v1428_v44 }
 0x27b   : > { %v9551_v43 = vpop.permute.xlu1 %2848  ;;  %v9553_v31 = vpop.permute.xlu0 %2844 }
 0x27c   : > { %13541 = vst [vmem:[#allocation239_spill] sm:$0xff] %v9551_v43  ;;  %13542 = vst [vmem:[#allocation240_spill] sm:$0xff] %v9553_v31  ;;  %v3120_v31 = vcombine.low %v1505_v60, %v1506_v62 }
 0x27d   : > { %3199 = vbcast.lane.b32.xlu1 %v3193_v29, 264  ;;  %3195 = vbcast.lane.b32.xlu0 %v3193_v29, 256 }
 0x27e   : > { %v3226_v14 = vrot.slane %v3120_v31, %v8415_v22  ;;  %v3237_v51 = vrot.slane %v3120_v31, %v8490_v41  ;;  %v3248_v62 = vrot.slane %v3120_v31, %v8506_v54 }
 0x27f   : > { %v9560_v58 = vpop.permute.xlu1 %2859  ;;  %v9562_v7 = vpop.permute.xlu0 %2855 }
 0x280   : > { %13543 = vst [vmem:[#allocation241_spill] sm:$0xff] %v9560_v58  ;;  %13544 = vst [vmem:[#allocation242_spill] sm:$0xff] %v9562_v7 }
 0x281   : > { %3210 = vbcast.lane.b32.xlu1 %v3204_v2, 264  ;;  %3206 = vbcast.lane.b32.xlu0 %v3204_v2, 256 }
 0x283   : > { %v9567_v29 = vpop.permute.xlu1 %2870  ;;  %v9569_v43 = vpop.permute.xlu0 %2866 }
 0x284   : > { %13545 = vst [vmem:[#allocation243_spill] sm:$0xff] %v9567_v29  ;;  %13546 = vst [vmem:[#allocation244_spill] sm:$0xff] %v9569_v43  ;;  %v8062_v60 = vpop.eup %8061 }
 0x285   : > { %3221 = vbcast.lane.b32.xlu1 %v3215_v63, 264  ;;  %3217 = vbcast.lane.b32.xlu0 %v3215_v63, 256  ;;  %v8064_v63 = vpop.eup %8063 }
 0x287   : > { %v9572_v0 = vpop.permute.xlu1 %2881  ;;  %v9574_v11 = vpop.permute.xlu0 %2877 }
 0x288   : > { %13547 = vst [vmem:[#allocation245_spill] sm:$0xff] %v9572_v0  ;;  %13548 = vst [vmem:[#allocation246_spill] sm:$0xff] %v9574_v11  ;;  %v1459_v11 = vmul.f32 %v8062_v60, %v1427_v36  ;;  %v1460_v0 = vmul.f32 %v8064_v63, %v1428_v44 }
 0x289   : > { %3232 = vbcast.lane.b32.xlu1 %v3226_v14, 264  ;;  %3228 = vbcast.lane.b32.xlu0 %v3226_v14, 256  ;;  %v3259_v14 = vrot.slane %v3120_v31, %v8511_v59 }
 0x28a   : > { %v1476_v58 = vsub.f32 2.0, %v1460_v0  ;;  %v3292_v0 = vrot.slane %v3120_v31, %v8572_v45 }
 0x28b   : > { %v9577_v5 = vpop.permute.xlu1 %2892  ;;  %v9579_v2 = vpop.permute.xlu0 %2888 }
 0x28c   : > { %13549 = vst [vmem:[#allocation247_spill] sm:$0xff] %v9577_v5  ;;  %13550 = vst [vmem:[#allocation248_spill] sm:$0xff] %v9579_v2  ;;  %v1475_v2 = vsub.f32 2.0, %v1459_v11  ;;  %v1492_v44 = vmul.f32 %v8064_v63, %v1476_v58  ;;  %v3303_v63 = vrot.slane %v3120_v31, %v8583_v56 }
 0x28d   : > { %3243 = vbcast.lane.b32.xlu1 %v3237_v51, 264  ;;  %3239 = vbcast.lane.b32.xlu0 %v3237_v51, 256  ;;  %v3270_v51 = vrot.slane %v3120_v31, %v8522_v1 }
 0x28e   : > { %v1491_v36 = vmul.f32 %v8062_v60, %v1475_v2 }
 0x28f   : > { %v9582_v43 = vpop.permute.xlu1 %2903  ;;  %v9584_v29 = vpop.permute.xlu0 %2899 }
 0x290   : > { %13551 = vst [vmem:[#allocation249_spill] sm:$0xff] %v9582_v43  ;;  %13552 = vst [vmem:[#allocation250_spill] sm:$0xff] %v9584_v29  ;;  %v1507_v11 = vmul.f32 %v1491_v36, %v8633_v21 }
 0x291   : > { %3254 = vbcast.lane.b32.xlu1 %v3248_v62, 264  ;;  %3250 = vbcast.lane.b32.xlu0 %v3248_v62, 256  ;;  %v3281_v62 = vrot.slane %v3120_v31, %v8549_v27 }
 0x293   : > { %v9587_v7 = vpop.permute.xlu1 %2914  ;;  %v9589_v5 = vpop.permute.xlu0 %2910 }
 0x294   : > { %13553 = vst [vmem:[#allocation251_spill] sm:$0xff] %v9587_v7  ;;  %13554 = vst [vmem:[#allocation252_spill] sm:$0xff] %v9589_v5  ;;  %v1414_v5 = vmul.f32 0.125, %v8644_v3 }
 0x295   : > { %3265 = vbcast.lane.b32.xlu1 %v3259_v14, 264  ;;  %3261 = vbcast.lane.b32.xlu0 %v3259_v14, 256  ;;  %v1413_v14 = vmul.f32 0.125, %v8636_v24 }
 0x296   : > { %v1430_v60 = vadd.f32 %v1414_v5, %v13421_v55  ;;  %v13576_v55 = vld [vmem:[#allocation15_spill] sm:$0xff] }
 0x297   : > { %v9592_v16 = vpop.permute.xlu1 %2925  ;;  %v9594_v43 = vpop.permute.xlu0 %2921  ;;  %v1429_v58 = vadd.f32 %v1413_v14, %v13420_v61  ;;  %v1416_v61 = vmul.f32 0.125, %v13576_v55 }
 0x298   : > { %13555 = vst [vmem:[#allocation253_spill] sm:$0xff] %v9592_v16  ;;  %13556 = vst [vmem:[#allocation254_spill] sm:$0xff] %v9594_v43 }
 0x299   : > { %3276 = vbcast.lane.b32.xlu1 %v3270_v51, 264  ;;  %3272 = vbcast.lane.b32.xlu0 %v3270_v51, 256  ;;  %v1508_v51 = vmul.f32 %v1492_v44, %v8641_v18  ;;  %8065 = vrcp.f32 %v1429_v58 }
 0x29a   : > { %8067 = vrcp.f32 %v1430_v60 }
 0x29b   : > { %v9597_v29 = vpop.permute.xlu1 %2936  ;;  %v9599_v7 = vpop.permute.xlu0 %2932 }
 0x29c   : > { %13557 = vst [vmem:[#allocation255_spill] sm:$0xff] %v9597_v29  ;;  %13558 = vst [vmem:[#allocation256_spill] sm:$0xff] %v9599_v7  ;;  %v3121_v7 = vcombine.low %v1507_v11, %v1508_v51 }
 0x29d   : > { %3287 = vbcast.lane.b32.xlu1 %v3281_v62, 264  ;;  %3283 = vbcast.lane.b32.xlu0 %v3281_v62, 256 }
 0x29e   : > { %v3314_v36 = vrot.slane %v3121_v7, %v8415_v22  ;;  %v3325_v5 = vrot.slane %v3121_v7, %v8490_v41  ;;  %v3336_v51 = vrot.slane %v3121_v7, %v8506_v54 }
 0x29f   : > { %v9606_v43 = vpop.permute.xlu1 %2947  ;;  %v9608_v2 = vpop.permute.xlu0 %2943 }
 0x2a0   : > { %13559 = vst [vmem:[#allocation257_spill] sm:$0xff] %v9606_v43  ;;  %13560 = vst [vmem:[#allocation258_spill] sm:$0xff] %v9608_v2 }
 0x2a1   : > { %3298 = vbcast.lane.b32.xlu1 %v3292_v0, 264  ;;  %3294 = vbcast.lane.b32.xlu0 %v3292_v0, 256 }
 0x2a3   : > { %v9613_v62 = vpop.permute.xlu1 %2958  ;;  %v9615_v29 = vpop.permute.xlu0 %2954 }
 0x2a4   : > { %13561 = vst [vmem:[#allocation259_spill] sm:$0xff] %v9613_v62  ;;  %13562 = vst [vmem:[#allocation260_spill] sm:$0xff] %v9615_v29  ;;  %v8066_v11 = vpop.eup %8065 }
 0x2a5   : > { %3309 = vbcast.lane.b32.xlu1 %v3303_v63, 264  ;;  %3305 = vbcast.lane.b32.xlu0 %v3303_v63, 256  ;;  %v8068_v63 = vpop.eup %8067 }
 0x2a7   : > { %v9618_v44 = vpop.permute.xlu1 %2969  ;;  %v9620_v14 = vpop.permute.xlu0 %2965 }
 0x2a8   : > { %13563 = vst [vmem:[#allocation261_spill] sm:$0xff] %v9618_v44  ;;  %13564 = vst [vmem:[#allocation262_spill] sm:$0xff] %v9620_v14  ;;  %v1461_v14 = vmul.f32 %v8066_v11, %v1429_v58  ;;  %v1462_v44 = vmul.f32 %v8068_v63, %v1430_v60 }
 0x2a9   : > { %3320 = vbcast.lane.b32.xlu1 %v3314_v36, 264  ;;  %3316 = vbcast.lane.b32.xlu0 %v3314_v36, 256  ;;  %v3347_v36 = vrot.slane %v3121_v7, %v8511_v59 }
 0x2aa   : > { %v1478_v62 = vsub.f32 2.0, %v1462_v44  ;;  %v3380_v44 = vrot.slane %v3121_v7, %v8572_v45 }
 0x2ab   : > { %v9623_v31 = vpop.permute.xlu1 %2980  ;;  %v9625_v0 = vpop.permute.xlu0 %2976 }
 0x2ac   : > { %13565 = vst [vmem:[#allocation263_spill] sm:$0xff] %v9623_v31  ;;  %13566 = vst [vmem:[#allocation264_spill] sm:$0xff] %v9625_v0  ;;  %v1477_v0 = vsub.f32 2.0, %v1461_v14  ;;  %v1494_v60 = vmul.f32 %v8068_v63, %v1478_v62  ;;  %v13577_v14 = vld [vmem:[#allocation12_spill] sm:$0xff]  ;;  %v13582_v63 = vld [vmem:[#allocation17_spill] sm:$0xff] }
 0x2ad   : > { %3331 = vbcast.lane.b32.xlu1 %v3325_v5, 264  ;;  %3327 = vbcast.lane.b32.xlu0 %v3325_v5, 256  ;;  %v3358_v5 = vrot.slane %v3121_v7, %v8522_v1  ;;  %v13581_v62 = vld [vmem:[#allocation16_spill] sm:$0xff] }
 0x2ae   : > { %v1493_v58 = vmul.f32 %v8066_v11, %v1477_v0 }
 0x2af   : > { %v9628_v29 = vpop.permute.xlu1 %2991  ;;  %v9630_v2 = vpop.permute.xlu0 %2987 }
 0x2b0   : > { %13567 = vst [vmem:[#allocation265_spill] sm:$0xff] %v9628_v29  ;;  %13568 = vst [vmem:[#allocation266_spill] sm:$0xff] %v9630_v2 }
 0x2b1   : > { %3342 = vbcast.lane.b32.xlu1 %v3336_v51, 264  ;;  %3338 = vbcast.lane.b32.xlu0 %v3336_v51, 256  ;;  %v3369_v51 = vrot.slane %v3121_v7, %v8549_v27 }
 0x2b3   : > { %v9633_v43 = vpop.permute.xlu1 %3002  ;;  %v9635_v31 = vpop.permute.xlu0 %2998 }
 0x2b4   : > { %13569 = vst [vmem:[#allocation267_spill] sm:$0xff] %v9633_v43  ;;  %13570 = vst [vmem:[#allocation268_spill] sm:$0xff] %v9635_v31  ;;  %v13575_v31 = vld [vmem:[#allocation13_spill] sm:$0xff] }
 0x2b5   : > { %3353 = vbcast.lane.b32.xlu1 %v3347_v36, 264  ;;  %3349 = vbcast.lane.b32.xlu0 %v3347_v36, 256  ;;  %v1415_v36 = vmul.f32 0.125, %v13575_v31 }
 0x2b7   : > { %v9638_v16 = vpop.permute.xlu1 %3013  ;;  %v9640_v29 = vpop.permute.xlu0 %3009  ;;  %v1431_v11 = vadd.f32 %v1415_v36, %v13581_v62  ;;  %v13598_v62 = vld [vmem:[#allocation21_spill] sm:$0xff] }
 0x2b8   : > { %13571 = vst [vmem:[#allocation269_spill] sm:$0xff] %v9638_v16  ;;  %13572 = vst [vmem:[#allocation270_spill] sm:$0xff] %v9640_v29  ;;  %v1509_v29 = vmul.f32 %v1493_v58, %v13577_v14  ;;  %v13578_v16 = vld [vmem:[#allocation14_spill] sm:$0xff] }
 0x2b9   : > { %3364 = vbcast.lane.b32.xlu1 %v3358_v5, 264  ;;  %3360 = vbcast.lane.b32.xlu0 %v3358_v5, 256  ;;  %v1510_v5 = vmul.f32 %v1494_v60, %v13578_v16  ;;  %8069 = vrcp.f32 %v1431_v11  ;;  %v1418_v16 = vmul.f32 0.125, %v13598_v62 }
 0x2bb   : > { %v9643_v2 = vpop.permute.xlu1 %3024  ;;  %v9645_v43 = vpop.permute.xlu0 %3020  ;;  %v3122_v55 = vcombine.low %v1509_v29, %v1510_v5 }
 0x2bc   : > { %13573 = vst [vmem:[#allocation271_spill] sm:$0xff] %v9643_v2  ;;  %13574 = vst [vmem:[#allocation272_spill] sm:$0xff] %v9645_v43  ;;  %v1432_v43 = vadd.f32 %v1416_v61, %v13582_v63  ;;  %v3391_v2 = vrot.slane %v3121_v7, %v8583_v56 }
 0x2bd   : > { %3375 = vbcast.lane.b32.xlu1 %v3369_v51, 264  ;;  %3371 = vbcast.lane.b32.xlu0 %v3369_v51, 256  ;;  %v3402_v58 = vrot.slane %v3122_v55, %v8415_v22  ;;  %v3413_v61 = vrot.slane %v3122_v55, %v8490_v41  ;;  %v3424_v5 = vrot.slane %v3122_v55, %v8506_v54 }
 0x2be   : > { %8071 = vrcp.f32 %v1432_v43 }
 0x2bf   : > { %v9652_v18 = vpop.permute.xlu1 %3035  ;;  %v9654_v0 = vpop.permute.xlu0 %3031 }
 0x2c0   : > { %13579 = vst [vmem:[#allocation12_spill] sm:$0xff] %v9652_v18  ;;  %13580 = vst [vmem:[#allocation273_spill] sm:$0xff] %v9654_v0 }
 0x2c1   : > { %3386 = vbcast.lane.b32.xlu1 %v3380_v44, 264  ;;  %3382 = vbcast.lane.b32.xlu0 %v3380_v44, 256 }
 0x2c3   : > { %v9659_v51 = vpop.permute.xlu1 %3046  ;;  %v9661_v31 = vpop.permute.xlu0 %3042 }
 0x2c4   : > { %13583 = vst [vmem:[#allocation274_spill] sm:$0xff] %v9659_v51  ;;  %13584 = vst [vmem:[#allocation275_spill] sm:$0xff] %v9661_v31  ;;  %v8070_v44 = vpop.eup %8069 }
 0x2c5   : > { %3397 = vbcast.lane.b32.xlu1 %v3391_v2, 264  ;;  %3393 = vbcast.lane.b32.xlu0 %v3391_v2, 256 }
 0x2c7   : > { %v9664_v60 = vpop.permute.xlu1 %3057  ;;  %v9666_v36 = vpop.permute.xlu0 %3053 }
 0x2c8   : > { %13585 = vst [vmem:[#allocation276_spill] sm:$0xff] %v9664_v60  ;;  %13586 = vst [vmem:[#allocation277_spill] sm:$0xff] %v9666_v36  ;;  %v8072_v2 = vpop.eup %8071  ;;  %v1463_v36 = vmul.f32 %v8070_v44, %v1431_v11 }
 0x2c9   : > { %3408 = vbcast.lane.b32.xlu1 %v3402_v58, 264  ;;  %3404 = vbcast.lane.b32.xlu0 %v3402_v58, 256  ;;  %v3435_v58 = vrot.slane %v3122_v55, %v8511_v59  ;;  %v1464_v60 = vmul.f32 %v8072_v2, %v1432_v43 }
 0x2cb   : > { %v9669_v7 = vpop.permute.xlu1 %3068  ;;  %v9671_v29 = vpop.permute.xlu0 %3064  ;;  %v1480_v51 = vsub.f32 2.0, %v1464_v60  ;;  %v3468_v60 = vrot.slane %v3122_v55, %v8572_v45 }
 0x2cc   : > { %13587 = vst [vmem:[#allocation278_spill] sm:$0xff] %v9669_v7  ;;  %13588 = vst [vmem:[#allocation279_spill] sm:$0xff] %v9671_v29  ;;  %v1479_v29 = vsub.f32 2.0, %v1463_v36 }
 0x2cd   : > { %3419 = vbcast.lane.b32.xlu1 %v3413_v61, 264  ;;  %3415 = vbcast.lane.b32.xlu0 %v3413_v61, 256  ;;  %v3446_v61 = vrot.slane %v3122_v55, %v8522_v1  ;;  %v1496_v43 = vmul.f32 %v8072_v2, %v1480_v51 }
 0x2ce   : > { %v1495_v11 = vmul.f32 %v8070_v44, %v1479_v29  ;;  %v13601_v44 = vld [vmem:[#allocation25_spill] sm:$0xff] }
 0x2cf   : > { %v9674_v31 = vpop.permute.xlu1 %3079  ;;  %v9676_v0 = vpop.permute.xlu0 %3075  ;;  %v1434_v2 = vadd.f32 %v1418_v16, %v13601_v44 }
 0x2d0   : > { %13589 = vst [vmem:[#allocation280_spill] sm:$0xff] %v9674_v31  ;;  %13590 = vst [vmem:[#allocation281_spill] sm:$0xff] %v9676_v0  ;;  %v1511_v36 = vmul.f32 %v1495_v11, %v13459_v23 }
 0x2d1   : > { %3430 = vbcast.lane.b32.xlu1 %v3424_v5, 264  ;;  %3426 = vbcast.lane.b32.xlu0 %v3424_v5, 256  ;;  %v3457_v5 = vrot.slane %v3122_v55, %v8549_v27 }
 0x2d3   : > { %v9679_v18 = vpop.permute.xlu1 %3090  ;;  %v9681_v7 = vpop.permute.xlu0 %3086 }
 0x2d4   : > { %13591 = vst [vmem:[#allocation282_spill] sm:$0xff] %v9679_v18  ;;  %13592 = vst [vmem:[#allocation283_spill] sm:$0xff] %v9681_v7  ;;  %v13597_v7 = vld [vmem:[#allocation19_spill] sm:$0xff] }
 0x2d5   : > { %3441 = vbcast.lane.b32.xlu1 %v3435_v58, 264  ;;  %3437 = vbcast.lane.b32.xlu0 %v3435_v58, 256  ;;  %v1417_v58 = vmul.f32 0.125, %v13597_v7 }
 0x2d7   : > { %v9684_v63 = vpop.permute.xlu1 %3101  ;;  %v9686_v31 = vpop.permute.xlu0 %3097  ;;  %v1433_v51 = vadd.f32 %v1417_v58, %v13463_v9 }
 0x2d8   : > { %13593 = vst [vmem:[#allocation284_spill] sm:$0xff] %v9684_v63  ;;  %13594 = vst [vmem:[#allocation285_spill] sm:$0xff] %v9686_v31  ;;  %v3479_v63 = vrot.slane %v3122_v55, %v8583_v56 }
 0x2d9   : > { %3452 = vbcast.lane.b32.xlu1 %v3446_v61, 264  ;;  %3448 = vbcast.lane.b32.xlu0 %v3446_v61, 256  ;;  %v1512_v61 = vmul.f32 %v1496_v43, %v13460_v6  ;;  %8073 = vrcp.f32 %v1433_v51 }
 0x2da   : > { %8075 = vrcp.f32 %v1434_v2 }
 0x2db   : > { %v9689_v0 = vpop.permute.xlu1 %3144  ;;  %v9691_v18 = vpop.permute.xlu0 %3140 }
 0x2dc   : > { %13595 = vst [vmem:[#allocation286_spill] sm:$0xff] %v9689_v0  ;;  %13596 = vst [vmem:[#allocation287_spill] sm:$0xff] %v9691_v18  ;;  %v3123_v18 = vcombine.low %v1511_v36, %v1512_v61 }
 0x2dd   : > { %3463 = vbcast.lane.b32.xlu1 %v3457_v5, 264  ;;  %3459 = vbcast.lane.b32.xlu0 %v3457_v5, 256 }
 0x2de   : > { %v3490_v11 = vrot.slane %v3123_v18, %v8415_v22  ;;  %v3501_v16 = vrot.slane %v3123_v18, %v8490_v41  ;;  %v3512_v61 = vrot.slane %v3123_v18, %v8506_v54 }
 0x2df   : > { %v9698_v31 = vpop.permute.xlu1 %3155  ;;  %v9700_v29 = vpop.permute.xlu0 %3151 }
 0x2e0   : > { %13599 = vst [vmem:[#allocation19_spill] sm:$0xff] %v9698_v31  ;;  %13600 = vst [vmem:[#allocation21_spill] sm:$0xff] %v9700_v29 }
 0x2e1   : > { %3474 = vbcast.lane.b32.xlu1 %v3468_v60, 264  ;;  %3470 = vbcast.lane.b32.xlu0 %v3468_v60, 256 }
 0x2e3   : > { %v9705_v5 = vpop.permute.xlu1 %3166  ;;  %v9707_v0 = vpop.permute.xlu0 %3162 }
 0x2e4   : > { %13602 = vst [vmem:[#allocation288_spill] sm:$0xff] %v9705_v5  ;;  %13603 = vst [vmem:[#allocation289_spill] sm:$0xff] %v9707_v0  ;;  %v8074_v36 = vpop.eup %8073 }
 0x2e5   : > { %3485 = vbcast.lane.b32.xlu1 %v3479_v63, 264  ;;  %3481 = vbcast.lane.b32.xlu0 %v3479_v63, 256  ;;  %v8076_v63 = vpop.eup %8075 }
 0x2e7   : > { %v9710_v43 = vpop.permute.xlu1 %3177  ;;  %v9712_v58 = vpop.permute.xlu0 %3173 }
 0x2e8   : > { %13604 = vst [vmem:[#allocation290_spill] sm:$0xff] %v9710_v43  ;;  %13605 = vst [vmem:[#allocation291_spill] sm:$0xff] %v9712_v58  ;;  %v1465_v58 = vmul.f32 %v8074_v36, %v1433_v51  ;;  %v1466_v43 = vmul.f32 %v8076_v63, %v1434_v2 }
 0x2e9   : > { %3496 = vbcast.lane.b32.xlu1 %v3490_v11, 264  ;;  %3492 = vbcast.lane.b32.xlu0 %v3490_v11, 256  ;;  %v3523_v11 = vrot.slane %v3123_v18, %v8511_v59 }
 0x2ea   : > { %v1482_v5 = vsub.f32 2.0, %v1466_v43  ;;  %v3556_v43 = vrot.slane %v3123_v18, %v8572_v45 }
 0x2eb   : > { %v9715_v55 = vpop.permute.xlu1 %3188  ;;  %v9717_v60 = vpop.permute.xlu0 %3184 }
 0x2ec   : > { %13606 = vst [vmem:[#allocation292_spill] sm:$0xff] %v9715_v55  ;;  %13607 = vst [vmem:[#allocation293_spill] sm:$0xff] %v9717_v60  ;;  %v1481_v60 = vsub.f32 2.0, %v1465_v58  ;;  %v1498_v2 = vmul.f32 %v8076_v63, %v1482_v5  ;;  %v3567_v63 = vrot.slane %v3123_v18, %v8583_v56 }
 0x2ed   : > { %3507 = vbcast.lane.b32.xlu1 %v3501_v16, 264  ;;  %3503 = vbcast.lane.b32.xlu0 %v3501_v16, 256  ;;  %v3534_v16 = vrot.slane %v3123_v18, %v8522_v1 }
 0x2ee   : > { %v1497_v51 = vmul.f32 %v8074_v36, %v1481_v60 }
 0x2ef   : > { %v9720_v29 = vpop.permute.xlu1 %3199  ;;  %v9722_v31 = vpop.permute.xlu0 %3195 }
 0x2f0   : > { %13608 = vst [vmem:[#allocation294_spill] sm:$0xff] %v9720_v29  ;;  %13609 = vst [vmem:[#allocation295_spill] sm:$0xff] %v9722_v31  ;;  %v1513_v58 = vmul.f32 %v1497_v51, %v8908_v49 }
 0x2f1   : > { %3518 = vbcast.lane.b32.xlu1 %v3512_v61, 264  ;;  %3514 = vbcast.lane.b32.xlu0 %v3512_v61, 256  ;;  %v3545_v61 = vrot.slane %v3123_v18, %v8549_v27 }
 0x2f3   : > { %v9725_v0 = vpop.permute.xlu1 %3210  ;;  %v9727_v55 = vpop.permute.xlu0 %3206 }
 0x2f4   : > { %13610 = vst [vmem:[#allocation296_spill] sm:$0xff] %v9725_v0  ;;  %13611 = vst [vmem:[#allocation297_spill] sm:$0xff] %v9727_v55  ;;  %v1420_v55 = vmul.f32 0.125, %v8921_v26 }
 0x2f5   : > { %3529 = vbcast.lane.b32.xlu1 %v3523_v11, 264  ;;  %3525 = vbcast.lane.b32.xlu0 %v3523_v11, 256  ;;  %v1419_v11 = vmul.f32 0.125, %v8912_v17 }
 0x2f6   : > { %v1436_v36 = vadd.f32 %v1420_v55, %v8934_v12 }
 0x2f7   : > { %v9730_v44 = vpop.permute.xlu1 %3221  ;;  %v9732_v29 = vpop.permute.xlu0 %3217  ;;  %v1435_v5 = vadd.f32 %v1419_v11, %v8931_v10 }
 0x2f8   : > { %13612 = vst [vmem:[#allocation298_spill] sm:$0xff] %v9732_v29 }
 0x2f9   : > { %3540 = vbcast.lane.b32.xlu1 %v3534_v16, 264  ;;  %3536 = vbcast.lane.b32.xlu0 %v3534_v16, 256  ;;  %v1514_v16 = vmul.f32 %v1498_v2, %v8917_v47  ;;  %8077 = vrcp.f32 %v1435_v5 }
 0x2fa   : > { %8079 = vrcp.f32 %v1436_v36 }
 0x2fb   : > { %v9735_v31 = vpop.permute.xlu1 %3232  ;;  %v9737_v0 = vpop.permute.xlu0 %3228 }
 0x2fc   : > { %13613 = vst [vmem:[#allocation299_spill] sm:$0xff] %v9735_v31  ;;  %13614 = vst [vmem:[#allocation300_spill] sm:$0xff] %v9737_v0  ;;  %v3124_v0 = vcombine.low %v1513_v58, %v1514_v16 }
 0x2fd   : > { %3551 = vbcast.lane.b32.xlu1 %v3545_v61, 264  ;;  %3547 = vbcast.lane.b32.xlu0 %v3545_v61, 256 }
 0x2fe   : > { %v3578_v51 = vrot.slane %v3124_v0, %v8415_v22  ;;  %v3589_v55 = vrot.slane %v3124_v0, %v8490_v41  ;;  %v3600_v16 = vrot.slane %v3124_v0, %v8506_v54 }
 0x2ff   : > { %v9744_v29 = vpop.permute.xlu1 %3243  ;;  %v9746_v60 = vpop.permute.xlu0 %3239 }
 0x300   : > { %13615 = vst [vmem:[#allocation301_spill] sm:$0xff] %v9744_v29  ;;  %13616 = vst [vmem:[#allocation302_spill] sm:$0xff] %v9746_v60 }
 0x301   : > { %3562 = vbcast.lane.b32.xlu1 %v3556_v43, 264  ;;  %3558 = vbcast.lane.b32.xlu0 %v3556_v43, 256 }
 0x303   : > { %v9751_v61 = vpop.permute.xlu1 %3254  ;;  %v9753_v31 = vpop.permute.xlu0 %3250 }
 0x304   : > { %13617 = vst [vmem:[#allocation303_spill] sm:$0xff] %v9753_v31  ;;  %v8078_v58 = vpop.eup %8077 }
 0x305   : > { %3573 = vbcast.lane.b32.xlu1 %v3567_v63, 264  ;;  %3569 = vbcast.lane.b32.xlu0 %v3567_v63, 256  ;;  %v8080_v63 = vpop.eup %8079 }
 0x307   : > { %v9756_v2 = vpop.permute.xlu1 %3265  ;;  %v9758_v11 = vpop.permute.xlu0 %3261 }
 0x308   : > { %13618 = vst [vmem:[#allocation304_spill] sm:$0xff] %v9756_v2  ;;  %13619 = vst [vmem:[#allocation305_spill] sm:$0xff] %v9758_v11  ;;  %v1467_v11 = vmul.f32 %v8078_v58, %v1435_v5  ;;  %v1468_v2 = vmul.f32 %v8080_v63, %v1436_v36 }
 0x309   : > { %3584 = vbcast.lane.b32.xlu1 %v3578_v51, 264  ;;  %3580 = vbcast.lane.b32.xlu0 %v3578_v51, 256  ;;  %v3611_v51 = vrot.slane %v3124_v0, %v8511_v59 }
 0x30a   : > { %v1484_v49 = vsub.f32 2.0, %v1468_v2  ;;  %v3644_v2 = vrot.slane %v3124_v0, %v8572_v45 }
 0x30b   : > { %v9761_v18 = vpop.permute.xlu1 %3276  ;;  %v9763_v43 = vpop.permute.xlu0 %3272 }
 0x30c   : > { %13620 = vst [vmem:[#allocation306_spill] sm:$0xff] %v9761_v18  ;;  %13621 = vst [vmem:[#allocation307_spill] sm:$0xff] %v9763_v43  ;;  %v1483_v43 = vsub.f32 2.0, %v1467_v11  ;;  %v1500_v36 = vmul.f32 %v8080_v63, %v1484_v49  ;;  %v3655_v63 = vrot.slane %v3124_v0, %v8583_v56 }
 0x30d   : > { %3595 = vbcast.lane.b32.xlu1 %v3589_v55, 264  ;;  %3591 = vbcast.lane.b32.xlu0 %v3589_v55, 256  ;;  %v3622_v55 = vrot.slane %v3124_v0, %v8522_v1 }
 0x30e   : > { %v1499_v5 = vmul.f32 %v8078_v58, %v1483_v43 }
 0x30f   : > { %v9766_v60 = vpop.permute.xlu1 %3287  ;;  %v9768_v29 = vpop.permute.xlu0 %3283 }
 0x310   : > { %13622 = vst [vmem:[#allocation308_spill] sm:$0xff] %v9766_v60  ;;  %13623 = vst [vmem:[#allocation309_spill] sm:$0xff] %v9768_v29  ;;  %v1515_v11 = vmul.f32 %v1499_v5, %v9013_v20  ;;  %v13801_v20 = vld [vmem:[#allocation294_spill] sm:$0xff] }
 0x311   : > { %3606 = vbcast.lane.b32.xlu1 %v3600_v16, 264  ;;  %3602 = vbcast.lane.b32.xlu0 %v3600_v16, 256  ;;  %v3633_v16 = vrot.slane %v3124_v0, %v8549_v27 }
 0x313   : > { %v9771_v47 = vpop.permute.xlu1 %3298  ;;  %v9773_v18 = vpop.permute.xlu0 %3294 }
 0x314   : > { %13624 = vst [vmem:[#allocation310_spill] sm:$0xff] %v9771_v47  ;;  %13625 = vst [vmem:[#allocation311_spill] sm:$0xff] %v9773_v18  ;;  %v1422_v18 = vmul.f32 0.125, %v9024_v42 }
 0x315   : > { %3617 = vbcast.lane.b32.xlu1 %v3611_v51, 264  ;;  %3613 = vbcast.lane.b32.xlu0 %v3611_v51, 256  ;;  %v1421_v51 = vmul.f32 0.125, %v9016_v13 }
 0x316   : > { %v1438_v58 = vadd.f32 %v1422_v18, %v9036_v53 }
 0x317   : > { %v9776_v31 = vpop.permute.xlu1 %3309  ;;  %v9778_v60 = vpop.permute.xlu0 %3305  ;;  %v1437_v49 = vadd.f32 %v1421_v51, %v9033_v37  ;;  %v13797_v37 = vld [vmem:[#allocation51_spill] sm:$0xff] }
 0x318   : > { %13626 = vst [vmem:[#allocation312_spill] sm:$0xff] %v9776_v31  ;;  %13627 = vst [vmem:[#allocation313_spill] sm:$0xff] %v9778_v60 }
 0x319   : > { %3628 = vbcast.lane.b32.xlu1 %v3622_v55, 264  ;;  %3624 = vbcast.lane.b32.xlu0 %v3622_v55, 256  ;;  %v1516_v55 = vmul.f32 %v1500_v36, %v9021_v32  ;;  %8081 = vrcp.f32 %v1437_v49 }
 0x31a   : > { %8083 = vrcp.f32 %v1438_v58 }
 0x31b   : > { %v9781_v29 = vpop.permute.xlu1 %3320  ;;  %v9783_v47 = vpop.permute.xlu0 %3316  ;;  %v3125_v42 = vcombine.low %v1515_v11, %v1516_v55 }
 0x31c   : > { %13628 = vst [vmem:[#allocation314_spill] sm:$0xff] %v9781_v29  ;;  %13629 = vst [vmem:[#allocation315_spill] sm:$0xff] %v9783_v47  ;;  %v13803_v29 = vld [vmem:[#allocation296_spill] sm:$0xff] }
 0x31d   : > { %3639 = vbcast.lane.b32.xlu1 %v3633_v16, 264  ;;  %3635 = vbcast.lane.b32.xlu0 %v3633_v16, 256  ;;  %v3666_v5 = vrot.slane %v3125_v42, %v8415_v22  ;;  %v3677_v18 = vrot.slane %v3125_v42, %v8490_v41  ;;  %v3688_v55 = vrot.slane %v3125_v42, %v8506_v54 }
 0x31f   : > { %v9790_v60 = vpop.permute.xlu1 %3331  ;;  %v9792_v43 = vpop.permute.xlu0 %3327 }
 0x320   : > { %13630 = vst [vmem:[#allocation316_spill] sm:$0xff] %v9790_v60  ;;  %13631 = vst [vmem:[#allocation317_spill] sm:$0xff] %v9792_v43 }
 0x321   : > { %3650 = vbcast.lane.b32.xlu1 %v3644_v2, 264  ;;  %3646 = vbcast.lane.b32.xlu0 %v3644_v2, 256 }
 0x323   : > { %v9797_v16 = vpop.permute.xlu1 %3342  ;;  %v9799_v47 = vpop.permute.xlu0 %3338 }
 0x324   : > { %13632 = vst [vmem:[#allocation318_spill] sm:$0xff] %v9797_v16  ;;  %13633 = vst [vmem:[#allocation319_spill] sm:$0xff] %v9799_v47  ;;  %v8082_v11 = vpop.eup %8081 }
 0x325   : > { %3661 = vbcast.lane.b32.xlu1 %v3655_v63, 264  ;;  %3657 = vbcast.lane.b32.xlu0 %v3655_v63, 256  ;;  %v8084_v63 = vpop.eup %8083 }
 0x327   : > { %v9802_v36 = vpop.permute.xlu1 %3353  ;;  %v9804_v51 = vpop.permute.xlu0 %3349 }
 0x328   : > { %13634 = vst [vmem:[#allocation320_spill] sm:$0xff] %v9802_v36  ;;  %13635 = vst [vmem:[#allocation321_spill] sm:$0xff] %v9804_v51  ;;  %v1469_v51 = vmul.f32 %v8082_v11, %v1437_v49  ;;  %v1470_v36 = vmul.f32 %v8084_v63, %v1438_v58 }
 0x329   : > { %3672 = vbcast.lane.b32.xlu1 %v3666_v5, 264  ;;  %3668 = vbcast.lane.b32.xlu0 %v3666_v5, 256  ;;  %v3699_v5 = vrot.slane %v3125_v42, %v8511_v59 }
 0x32a   : > { %v1486_v47 = vsub.f32 2.0, %v1470_v36  ;;  %v3732_v36 = vrot.slane %v3125_v42, %v8572_v45 }
 0x32b   : > { %v9807_v0 = vpop.permute.xlu1 %3364  ;;  %v9809_v2 = vpop.permute.xlu0 %3360 }
 0x32c   : > { %13636 = vst [vmem:[#allocation322_spill] sm:$0xff] %v9807_v0  ;;  %13637 = vst [vmem:[#allocation323_spill] sm:$0xff] %v9809_v2  ;;  %v1485_v2 = vsub.f32 2.0, %v1469_v51  ;;  %v1502_v58 = vmul.f32 %v8084_v63, %v1486_v47 }
 0x32d   : > { %3683 = vbcast.lane.b32.xlu1 %v3677_v18, 264  ;;  %3679 = vbcast.lane.b32.xlu0 %v3677_v18, 256  ;;  %v3710_v18 = vrot.slane %v3125_v42, %v8522_v1 }
 0x32e   : > { %v1501_v49 = vmul.f32 %v8082_v11, %v1485_v2 }
 0x32f   : > { %v9812_v43 = vpop.permute.xlu1 %3375  ;;  %v9814_v60 = vpop.permute.xlu0 %3371 }
 0x330   : > { %13638 = vst [vmem:[#allocation324_spill] sm:$0xff] %v9812_v43  ;;  %13639 = vst [vmem:[#allocation325_spill] sm:$0xff] %v9814_v60  ;;  %v1517_v51 = vmul.f32 %v1501_v49, %v9086_v46  ;;  %v13790_v46 = vld [vmem:[#allocation181_spill] sm:$0xff] }
 0x331   : > { %3694 = vbcast.lane.b32.xlu1 %v3688_v55, 264  ;;  %3690 = vbcast.lane.b32.xlu0 %v3688_v55, 256  ;;  %v3721_v55 = vrot.slane %v3125_v42, %v8549_v27 }
 0x333   : > { %v9817_v53 = vpop.permute.xlu1 %3386  ;;  %v9819_v0 = vpop.permute.xlu0 %3382 }
 0x334   : > { %13640 = vst [vmem:[#allocation326_spill] sm:$0xff] %v9817_v53  ;;  %13641 = vst [vmem:[#allocation327_spill] sm:$0xff] %v9819_v0  ;;  %v1520_v0 = vmul.f32 0.375, %v8435_v40 }
 0x335   : > { %3705 = vbcast.lane.b32.xlu1 %v3699_v5, 264  ;;  %3701 = vbcast.lane.b32.xlu0 %v3699_v5, 256  ;;  %v1519_v5 = vmul.f32 0.375, %v8426_v33  ;;  %v3743_v33 = vrot.slane %v3125_v42, %v8583_v56 }
 0x336   : > { %v1536_v11 = vadd.f32 %v1520_v0, %v8443_v50 }
 0x337   : > { %v9822_v16 = vpop.permute.xlu1 %3397  ;;  %v9824_v43 = vpop.permute.xlu0 %3393  ;;  %v1535_v47 = vadd.f32 %v1519_v5, %v8441_v48 }
 0x338   : > { %13642 = vst [vmem:[#allocation328_spill] sm:$0xff] %v9822_v16  ;;  %13643 = vst [vmem:[#allocation329_spill] sm:$0xff] %v9824_v43  ;;  %v13795_v16 = vld [vmem:[#allocation50_spill] sm:$0xff] }
 0x339   : > { %3716 = vbcast.lane.b32.xlu1 %v3710_v18, 264  ;;  %3712 = vbcast.lane.b32.xlu0 %v3710_v18, 256  ;;  %v1518_v18 = vmul.f32 %v1502_v58, %v9089_v57  ;;  %8085 = vrcp.f32 %v1535_v47  ;;  %v13789_v57 = vld [vmem:[#allocation47_spill] sm:$0xff] }
 0x33a   : > { %8087 = vrcp.f32 %v1536_v11 }
 0x33b   : > { %v9827_v60 = vpop.permute.xlu1 %3408  ;;  %v9829_v53 = vpop.permute.xlu0 %3404  ;;  %v3126_v40 = vcombine.low %v1517_v51, %v1518_v18 }
 0x33c   : > { %13644 = vst [vmem:[#allocation330_spill] sm:$0xff] %v9827_v60  ;;  %13645 = vst [vmem:[#allocation331_spill] sm:$0xff] %v9829_v53  ;;  %v13791_v53 = vld [vmem:[#allocation48_spill] sm:$0xff]  ;;  %v13793_v60 = vld [vmem:[#allocation49_spill] sm:$0xff] }
 0x33d   : > { %3727 = vbcast.lane.b32.xlu1 %v3721_v55, 264  ;;  %3723 = vbcast.lane.b32.xlu0 %v3721_v55, 256  ;;  %v3754_v49 = vrot.slane %v3126_v40, %v8415_v22  ;;  %v3765_v50 = vrot.slane %v3126_v40, %v8490_v41 }
 0x33f   : > { %v9836_v43 = vpop.permute.xlu1 %3419  ;;  %v9838_v2 = vpop.permute.xlu0 %3415 }
 0x340   : > { %13646 = vst [vmem:[#allocation332_spill] sm:$0xff] %v9836_v43  ;;  %13647 = vst [vmem:[#allocation333_spill] sm:$0xff] %v9838_v2 }
 0x341   : > { %3738 = vbcast.lane.b32.xlu1 %v3732_v36, 264  ;;  %3734 = vbcast.lane.b32.xlu0 %v3732_v36, 256  ;;  %v3776_v36 = vrot.slane %v3126_v40, %v8506_v54 }
 0x343   : > { %v9843_v63 = vpop.permute.xlu1 %3430  ;;  %v9845_v55 = vpop.permute.xlu0 %3426 }
 0x344   : > { %13648 = vst [vmem:[#allocation334_spill] sm:$0xff] %v9843_v63  ;;  %13649 = vst [vmem:[#allocation335_spill] sm:$0xff] %v9845_v55  ;;  %v8086_v5 = vpop.eup %8085  ;;  %v13788_v63 = vld [vmem:[#allocation180_spill] sm:$0xff] }
 0x345   : > { %3749 = vbcast.lane.b32.xlu1 %v3743_v33, 264  ;;  %3745 = vbcast.lane.b32.xlu0 %v3743_v33, 256  ;;  %v8088_v51 = vpop.eup %8087 }
 0x347   : > { %v9848_v58 = vpop.permute.xlu1 %3441  ;;  %v9850_v48 = vpop.permute.xlu0 %3437 }
 0x348   : > { %13650 = vst [vmem:[#allocation336_spill] sm:$0xff] %v9848_v58  ;;  %13651 = vst [vmem:[#allocation337_spill] sm:$0xff] %v9850_v48  ;;  %v1567_v48 = vmul.f32 %v8086_v5, %v1535_v47  ;;  %v1568_v58 = vmul.f32 %v8088_v51, %v1536_v11 }
 0x349   : > { %3760 = vbcast.lane.b32.xlu1 %v3754_v49, 264  ;;  %3756 = vbcast.lane.b32.xlu0 %v3754_v49, 256  ;;  %v3787_v49 = vrot.slane %v3126_v40, %v8511_v59 }
 0x34a   : > { %v1584_v43 = vsub.f32 2.0, %v1568_v58  ;;  %v3820_v58 = vrot.slane %v3126_v40, %v8572_v45 }
 0x34b   : > { %v9853_v42 = vpop.permute.xlu1 %3452  ;;  %v9855_v0 = vpop.permute.xlu0 %3448 }
 0x34c   : > { %13652 = vst [vmem:[#allocation338_spill] sm:$0xff] %v9853_v42  ;;  %13653 = vst [vmem:[#allocation339_spill] sm:$0xff] %v9855_v0  ;;  %v1583_v0 = vsub.f32 2.0, %v1567_v48  ;;  %v1600_v11 = vmul.f32 %v8088_v51, %v1584_v43 }
 0x34d   : > { %3771 = vbcast.lane.b32.xlu1 %v3765_v50, 264  ;;  %3767 = vbcast.lane.b32.xlu0 %v3765_v50, 256  ;;  %v3798_v50 = vrot.slane %v3126_v40, %v8522_v1 }
 0x34e   : > { %v1599_v47 = vmul.f32 %v8086_v5, %v1583_v0 }
 0x34f   : > { %v9858_v18 = vpop.permute.xlu1 %3463  ;;  %v9860_v33 = vpop.permute.xlu0 %3459 }
 0x350   : > { %13654 = vst [vmem:[#allocation340_spill] sm:$0xff] %v9858_v18  ;;  %13655 = vst [vmem:[#allocation341_spill] sm:$0xff] %v9860_v33  ;;  %v1615_v48 = vmul.f32 %v1599_v47, %v8478_v28 }
 0x351   : > { %3782 = vbcast.lane.b32.xlu1 %v3776_v36, 264  ;;  %3778 = vbcast.lane.b32.xlu0 %v3776_v36, 256  ;;  %v3809_v36 = vrot.slane %v3126_v40, %v8549_v27 }
 0x353   : > { %v9863_v2 = vpop.permute.xlu1 %3474  ;;  %v9865_v42 = vpop.permute.xlu0 %3470 }
 0x354   : > { %13656 = vst [vmem:[#allocation342_spill] sm:$0xff] %v9863_v2  ;;  %13657 = vst [vmem:[#allocation343_spill] sm:$0xff] %v9865_v42  ;;  %v1522_v42 = vmul.f32 0.375, %v8461_v8 }
 0x355   : > { %3793 = vbcast.lane.b32.xlu1 %v3787_v49, 264  ;;  %3789 = vbcast.lane.b32.xlu0 %v3787_v49, 256  ;;  %v1521_v49 = vmul.f32 0.375, %v8457_v4  ;;  %v3831_v4 = vrot.slane %v3126_v40, %v8583_v56 }
 0x356   : > { %v1538_v5 = vadd.f32 %v1522_v42, %v8473_v25 }
 0x357   : > { %v9868_v55 = vpop.permute.xlu1 %3485  ;;  %v9870_v18 = vpop.permute.xlu0 %3481  ;;  %v1537_v43 = vadd.f32 %v1521_v49, %v8470_v19 }
 0x358   : > { %13658 = vst [vmem:[#allocation344_spill] sm:$0xff] %v9868_v55  ;;  %13659 = vst [vmem:[#allocation345_spill] sm:$0xff] %v9870_v18  ;;  %v13787_v55 = vld [vmem:[#allocation46_spill] sm:$0xff] }
 0x359   : > { %3804 = vbcast.lane.b32.xlu1 %v3798_v50, 264  ;;  %3800 = vbcast.lane.b32.xlu0 %v3798_v50, 256  ;;  %v1616_v50 = vmul.f32 %v1600_v11, %v8482_v30  ;;  %8089 = vrcp.f32 %v1537_v43 }
 0x35a   : > { %8091 = vrcp.f32 %v1538_v5 }
 0x35b   : > { %v9873_v33 = vpop.permute.xlu1 %3496  ;;  %v9875_v2 = vpop.permute.xlu0 %3492  ;;  %v3855_v8 = vcombine.low %v1615_v48, %v1616_v50 }
 0x35c   : > { %13660 = vst [vmem:[#allocation346_spill] sm:$0xff] %v9873_v33  ;;  %13661 = vst [vmem:[#allocation347_spill] sm:$0xff] %v9875_v2  ;;  %v13784_v2 = vld [vmem:[#allocation178_spill] sm:$0xff]  ;;  %v13785_v33 = vld [vmem:[#allocation45_spill] sm:$0xff] }
 0x35d   : > { %3815 = vbcast.lane.b32.xlu1 %v3809_v36, 264  ;;  %3811 = vbcast.lane.b32.xlu0 %v3809_v36, 256  ;;  %v3874_v28 = vrot.slane %v3855_v8, %v8415_v22  ;;  %v3885_v25 = vrot.slane %v3855_v8, %v8490_v41  ;;  %v3896_v11 = vrot.slane %v3855_v8, %v8506_v54 }
 0x35e   : > { %v3907_v50 = vrot.slane %v3855_v8, %v8511_v59 }
 0x35f   : > { %v9882_v18 = vpop.permute.xlu1 %3507  ;;  %v9884_v0 = vpop.permute.xlu0 %3503 }
 0x360   : > { %13662 = vst [vmem:[#allocation348_spill] sm:$0xff] %v9882_v18  ;;  %13663 = vst [vmem:[#allocation349_spill] sm:$0xff] %v9884_v0  ;;  %v13767_v0 = vld [vmem:[#allocation291_spill] sm:$0xff] }
 0x361   : > { %3826 = vbcast.lane.b32.xlu1 %v3820_v58, 264  ;;  %3822 = vbcast.lane.b32.xlu0 %v3820_v58, 256 }
 0x363   : > { %v9889_v51 = vpop.permute.xlu1 %3518  ;;  %v9891_v36 = vpop.permute.xlu0 %3514 }
 0x364   : > { %13664 = vst [vmem:[#allocation350_spill] sm:$0xff] %v9889_v51  ;;  %13665 = vst [vmem:[#allocation351_spill] sm:$0xff] %v9891_v36  ;;  %v8090_v47 = vpop.eup %8089 }
 0x365   : > { %3837 = vbcast.lane.b32.xlu1 %v3831_v4, 264  ;;  %3833 = vbcast.lane.b32.xlu0 %v3831_v4, 256  ;;  %v8092_v49 = vpop.eup %8091  ;;  %v1569_v4 = vmul.f32 %v8090_v47, %v1537_v43 }
 0x367   : > { %v9894_v30 = vpop.permute.xlu1 %3529  ;;  %v9896_v19 = vpop.permute.xlu0 %3525 }
 0x368   : > { %13666 = vst [vmem:[#allocation352_spill] sm:$0xff] %v9894_v30  ;;  %13667 = vst [vmem:[#allocation353_spill] sm:$0xff] %v9896_v19 }
 0x369   : > { %3880 = vbcast.lane.b32.xlu1 %v3874_v28, 264  ;;  %3876 = vbcast.lane.b32.xlu0 %v3874_v28, 256  ;;  %v1570_v28 = vmul.f32 %v8092_v49, %v1538_v5 }
 0x36b   : > { %v9899_v40 = vpop.permute.xlu1 %3540  ;;  %v9901_v42 = vpop.permute.xlu0 %3536  ;;  %v1586_v30 = vsub.f32 2.0, %v1570_v28 }
 0x36c   : > { %13668 = vst [vmem:[#allocation354_spill] sm:$0xff] %v9899_v40  ;;  %13669 = vst [vmem:[#allocation355_spill] sm:$0xff] %v9901_v42  ;;  %v1585_v42 = vsub.f32 2.0, %v1569_v4  ;;  %v3940_v4 = vrot.slane %v3855_v8, %v8572_v45 }
 0x36d   : > { %3891 = vbcast.lane.b32.xlu1 %v3885_v25, 264  ;;  %3887 = vbcast.lane.b32.xlu0 %v3885_v25, 256  ;;  %v3918_v25 = vrot.slane %v3855_v8, %v8522_v1  ;;  %v1602_v5 = vmul.f32 %v8092_v49, %v1586_v30 }
 0x36e   : > { %v1601_v43 = vmul.f32 %v8090_v47, %v1585_v42 }
 0x36f   : > { %v9904_v58 = vpop.permute.xlu1 %3551  ;;  %v9906_v48 = vpop.permute.xlu0 %3547 }
 0x370   : > { %13670 = vst [vmem:[#allocation356_spill] sm:$0xff] %v9904_v58  ;;  %13671 = vst [vmem:[#allocation357_spill] sm:$0xff] %v9906_v48  ;;  %v1617_v28 = vmul.f32 %v1601_v43, %v8554_v34 }
 0x371   : > { %3902 = vbcast.lane.b32.xlu1 %v3896_v11, 264  ;;  %3898 = vbcast.lane.b32.xlu0 %v3896_v11, 256  ;;  %v3929_v11 = vrot.slane %v3855_v8, %v8549_v27 }
 0x373   : > { %v9909_v19 = vpop.permute.xlu1 %3562  ;;  %v9911_v40 = vpop.permute.xlu0 %3558 }
 0x374   : > { %13672 = vst [vmem:[#allocation358_spill] sm:$0xff] %v9909_v19  ;;  %13673 = vst [vmem:[#allocation359_spill] sm:$0xff] %v9911_v40  ;;  %v1524_v40 = vmul.f32 0.375, %v8567_v39 }
 0x375   : > { %3913 = vbcast.lane.b32.xlu1 %v3907_v50, 264  ;;  %3909 = vbcast.lane.b32.xlu0 %v3907_v50, 256  ;;  %v1523_v50 = vmul.f32 0.375, %v8558_v35  ;;  %v3951_v35 = vrot.slane %v3855_v8, %v8583_v56 }
 0x376   : > { %v1540_v47 = vadd.f32 %v1524_v40, %v8579_v15 }
 0x377   : > { %v9914_v36 = vpop.permute.xlu1 %3573  ;;  %v9916_v58 = vpop.permute.xlu0 %3569  ;;  %v1539_v30 = vadd.f32 %v1523_v50, %v8576_v52 }
 0x378   : > { %13674 = vst [vmem:[#allocation360_spill] sm:$0xff] %v9914_v36  ;;  %13675 = vst [vmem:[#allocation361_spill] sm:$0xff] %v9916_v58 }
 0x379   : > { %3924 = vbcast.lane.b32.xlu1 %v3918_v25, 264  ;;  %3920 = vbcast.lane.b32.xlu0 %v3918_v25, 256  ;;  %v1618_v25 = vmul.f32 %v1602_v5, %v8563_v38  ;;  %8093 = vrcp.f32 %v1539_v30 }
 0x37a   : > { %8095 = vrcp.f32 %v1540_v47 }
 0x37b   : > { %v9919_v48 = vpop.permute.xlu1 %3584  ;;  %v9921_v19 = vpop.permute.xlu0 %3580  ;;  %v3856_v39 = vcombine.low %v1617_v28, %v1618_v25 }
 0x37c   : > { %13676 = vst [vmem:[#allocation362_spill] sm:$0xff] %v9919_v48  ;;  %13677 = vst [vmem:[#allocation363_spill] sm:$0xff] %v9921_v19  ;;  %v13752_v48 = vld [vmem:[#allocation288_spill] sm:$0xff] }
 0x37d   : > { %3935 = vbcast.lane.b32.xlu1 %v3929_v11, 264  ;;  %3931 = vbcast.lane.b32.xlu0 %v3929_v11, 256  ;;  %v3962_v34 = vrot.slane %v3856_v39, %v8415_v22  ;;  %v3973_v15 = vrot.slane %v3856_v39, %v8490_v41  ;;  %v3984_v5 = vrot.slane %v3856_v39, %v8506_v54 }
 0x37e   : > { %v3995_v25 = vrot.slane %v3856_v39, %v8511_v59 }
 0x37f   : > { %v9928_v58 = vpop.permute.xlu1 %3595  ;;  %v9930_v42 = vpop.permute.xlu0 %3591 }
 0x380   : > { %13678 = vst [vmem:[#allocation364_spill] sm:$0xff] %v9928_v58  ;;  %13679 = vst [vmem:[#allocation365_spill] sm:$0xff] %v9930_v42 }
 0x381   : > { %3946 = vbcast.lane.b32.xlu1 %v3940_v4, 264  ;;  %3942 = vbcast.lane.b32.xlu0 %v3940_v4, 256 }
 0x383   : > { %v9935_v49 = vpop.permute.xlu1 %3606  ;;  %v9937_v11 = vpop.permute.xlu0 %3602 }
 0x384   : > { %13680 = vst [vmem:[#allocation366_spill] sm:$0xff] %v9935_v49  ;;  %13681 = vst [vmem:[#allocation367_spill] sm:$0xff] %v9937_v11  ;;  %v8094_v43 = vpop.eup %8093  ;;  %v13749_v11 = vld [vmem:[#allocation31_spill] sm:$0xff] }
 0x385   : > { %3957 = vbcast.lane.b32.xlu1 %v3951_v35, 264  ;;  %3953 = vbcast.lane.b32.xlu0 %v3951_v35, 256  ;;  %v8096_v50 = vpop.eup %8095  ;;  %v1571_v35 = vmul.f32 %v8094_v43, %v1539_v30  ;;  %v13751_v49 = vld [vmem:[#allocation287_spill] sm:$0xff] }
 0x387   : > { %v9940_v38 = vpop.permute.xlu1 %3617  ;;  %v9942_v52 = vpop.permute.xlu0 %3613 }
 0x388   : > { %13682 = vst [vmem:[#allocation368_spill] sm:$0xff] %v9940_v38  ;;  %13683 = vst [vmem:[#allocation369_spill] sm:$0xff] %v9942_v52 }
 0x389   : > { %3968 = vbcast.lane.b32.xlu1 %v3962_v34, 264  ;;  %3964 = vbcast.lane.b32.xlu0 %v3962_v34, 256  ;;  %v1572_v34 = vmul.f32 %v8096_v50, %v1540_v47 }
 0x38b   : > { %v9945_v8 = vpop.permute.xlu1 %3628  ;;  %v9947_v40 = vpop.permute.xlu0 %3624  ;;  %v1588_v38 = vsub.f32 2.0, %v1572_v34 }
 0x38c   : > { %13684 = vst [vmem:[#allocation370_spill] sm:$0xff] %v9945_v8  ;;  %13685 = vst [vmem:[#allocation371_spill] sm:$0xff] %v9947_v40  ;;  %v1587_v40 = vsub.f32 2.0, %v1571_v35  ;;  %v4028_v35 = vrot.slane %v3856_v39, %v8572_v45 }
 0x38d   : > { %3979 = vbcast.lane.b32.xlu1 %v3973_v15, 264  ;;  %3975 = vbcast.lane.b32.xlu0 %v3973_v15, 256  ;;  %v4006_v15 = vrot.slane %v3856_v39, %v8522_v1  ;;  %v1604_v47 = vmul.f32 %v8096_v50, %v1588_v38  ;;  %v13697_v38 = vld [vmem:[#allocation10_spill] sm:$0xff]  ;;  %v13698_v50 = vld [vmem:[#allocation11_spill] sm:$0xff] }
 0x38e   : > { %v1603_v30 = vmul.f32 %v8094_v43, %v1587_v40 }
 0x38f   : > { %v9950_v4 = vpop.permute.xlu1 %3639  ;;  %v9952_v28 = vpop.permute.xlu0 %3635 }
 0x390   : > { %13686 = vst [vmem:[#allocation372_spill] sm:$0xff] %v9950_v4  ;;  %13687 = vst [vmem:[#allocation373_spill] sm:$0xff] %v9952_v28  ;;  %v1619_v34 = vmul.f32 %v1603_v30, %v8633_v21 }
 0x391   : > { %3990 = vbcast.lane.b32.xlu1 %v3984_v5, 264  ;;  %3986 = vbcast.lane.b32.xlu0 %v3984_v5, 256  ;;  %v4017_v5 = vrot.slane %v3856_v39, %v8549_v27 }
 0x393   : > { %v9955_v52 = vpop.permute.xlu1 %3650  ;;  %v9957_v8 = vpop.permute.xlu0 %3646 }
 0x394   : > { %13688 = vst [vmem:[#allocation374_spill] sm:$0xff] %v9955_v52  ;;  %13689 = vst [vmem:[#allocation375_spill] sm:$0xff] %v9957_v8  ;;  %v1526_v8 = vmul.f32 0.375, %v8644_v3 }
 0x395   : > { %4001 = vbcast.lane.b32.xlu1 %v3995_v25, 264  ;;  %3997 = vbcast.lane.b32.xlu0 %v3995_v25, 256  ;;  %v1525_v25 = vmul.f32 0.375, %v8636_v24  ;;  %v4039_v24 = vrot.slane %v3856_v39, %v8583_v56 }
 0x397   : > { %v9960_v42 = vpop.permute.xlu1 %3661  ;;  %v9962_v4 = vpop.permute.xlu0 %3657  ;;  %v1541_v43 = vadd.f32 %v1525_v25, %v13697_v38 }
 0x398   : > { %13690 = vst [vmem:[#allocation376_spill] sm:$0xff] %v9960_v42  ;;  %13691 = vst [vmem:[#allocation377_spill] sm:$0xff] %v9962_v4  ;;  %v13694_v4 = vld [vmem:[#allocation9_spill] sm:$0xff] }
 0x399   : > { %4012 = vbcast.lane.b32.xlu1 %v4006_v15, 264  ;;  %4008 = vbcast.lane.b32.xlu0 %v4006_v15, 256  ;;  %v1620_v15 = vmul.f32 %v1604_v47, %v13694_v4  ;;  %8097 = vrcp.f32 %v1541_v43 }
 0x39b   : > { %v9965_v28 = vpop.permute.xlu1 %3672  ;;  %v9967_v52 = vpop.permute.xlu0 %3668  ;;  %v3857_v3 = vcombine.low %v1619_v34, %v1620_v15 }
 0x39c   : > { %13692 = vst [vmem:[#allocation378_spill] sm:$0xff] %v9965_v28  ;;  %13693 = vst [vmem:[#allocation379_spill] sm:$0xff] %v9967_v52  ;;  %v1542_v52 = vadd.f32 %v1526_v8, %v13698_v50 }
 0x39d   : > { %4023 = vbcast.lane.b32.xlu1 %v4017_v5, 264  ;;  %4019 = vbcast.lane.b32.xlu0 %v4017_v5, 256  ;;  %v4050_v21 = vrot.slane %v3857_v3, %v8415_v22  ;;  %v4061_v8 = vrot.slane %v3857_v3, %v8490_v41  ;;  %v4083_v50 = vrot.slane %v3857_v3, %v8511_v59 }
 0x39e   : > { %8099 = vrcp.f32 %v1542_v52 }
 0x39f   : > { %v9974_v42 = vpop.permute.xlu1 %3683  ;;  %v9976_v40 = vpop.permute.xlu0 %3679 }
 0x3a0   : > { %13695 = vst [vmem:[#allocation9_spill] sm:$0xff] %v9974_v42  ;;  %13696 = vst [vmem:[#allocation380_spill] sm:$0xff] %v9976_v40 }
 0x3a1   : > { %4034 = vbcast.lane.b32.xlu1 %v4028_v35, 264  ;;  %4030 = vbcast.lane.b32.xlu0 %v4028_v35, 256  ;;  %v4072_v35 = vrot.slane %v3857_v3, %v8506_v54 }
 0x3a3   : > { %v9981_v5 = vpop.permute.xlu1 %3694  ;;  %v9983_v28 = vpop.permute.xlu0 %3690 }
 0x3a4   : > { %13699 = vst [vmem:[#allocation10_spill] sm:$0xff] %v9981_v5  ;;  %13700 = vst [vmem:[#allocation11_spill] sm:$0xff] %v9983_v28  ;;  %v8098_v25 = vpop.eup %8097 }
 0x3a5   : > { %4045 = vbcast.lane.b32.xlu1 %v4039_v24, 264  ;;  %4041 = vbcast.lane.b32.xlu0 %v4039_v24, 256  ;;  %v1573_v24 = vmul.f32 %v8098_v25, %v1541_v43 }
 0x3a7   : > { %v9986_v4 = vpop.permute.xlu1 %3705  ;;  %v9988_v30 = vpop.permute.xlu0 %3701 }
 0x3a8   : > { %13701 = vst [vmem:[#allocation381_spill] sm:$0xff] %v9986_v4  ;;  %13702 = vst [vmem:[#allocation382_spill] sm:$0xff] %v9988_v30  ;;  %v8100_v34 = vpop.eup %8099  ;;  %v13714_v4 = vld [vmem:[#allocation15_spill] sm:$0xff] }
 0x3a9   : > { %4056 = vbcast.lane.b32.xlu1 %v4050_v21, 264  ;;  %4052 = vbcast.lane.b32.xlu0 %v4050_v21, 256  ;;  %v1574_v21 = vmul.f32 %v8100_v34, %v1542_v52  ;;  %v1528_v42 = vmul.f32 0.375, %v13714_v4  ;;  %v4127_v4 = vrot.slane %v3857_v3, %v8583_v56 }
 0x3ab   : > { %v9991_v39 = vpop.permute.xlu1 %3716  ;;  %v9993_v47 = vpop.permute.xlu0 %3712  ;;  %v1590_v40 = vsub.f32 2.0, %v1574_v21 }
 0x3ac   : > { %13703 = vst [vmem:[#allocation383_spill] sm:$0xff] %v9991_v39  ;;  %13704 = vst [vmem:[#allocation384_spill] sm:$0xff] %v9993_v47  ;;  %v1589_v47 = vsub.f32 2.0, %v1573_v24  ;;  %v4116_v24 = vrot.slane %v3857_v3, %v8572_v45 }
 0x3ad   : > { %4067 = vbcast.lane.b32.xlu1 %v4061_v8, 264  ;;  %4063 = vbcast.lane.b32.xlu0 %v4061_v8, 256  ;;  %v4094_v8 = vrot.slane %v3857_v3, %v8522_v1  ;;  %v1606_v52 = vmul.f32 %v8100_v34, %v1590_v40  ;;  %v13718_v40 = vld [vmem:[#allocation16_spill] sm:$0xff]  ;;  %v13719_v34 = vld [vmem:[#allocation17_spill] sm:$0xff] }
 0x3ae   : > { %v1605_v43 = vmul.f32 %v8098_v25, %v1589_v47 }
 0x3af   : > { %v9996_v15 = vpop.permute.xlu1 %3727  ;;  %v9998_v38 = vpop.permute.xlu0 %3723 }
 0x3b0   : > { %13705 = vst [vmem:[#allocation385_spill] sm:$0xff] %v9996_v15  ;;  %13706 = vst [vmem:[#allocation386_spill] sm:$0xff] %v9998_v38  ;;  %v1621_v21 = vmul.f32 %v1605_v43, %v13577_v14 }
 0x3b1   : > { %4078 = vbcast.lane.b32.xlu1 %v4072_v35, 264  ;;  %4074 = vbcast.lane.b32.xlu0 %v4072_v35, 256  ;;  %v4105_v35 = vrot.slane %v3857_v3, %v8549_v27 }
 0x3b3   : > { %v10001_v28 = vpop.permute.xlu1 %3738  ;;  %v10003_v39 = vpop.permute.xlu0 %3734 }
 0x3b4   : > { %13707 = vst [vmem:[#allocation387_spill] sm:$0xff] %v10001_v28  ;;  %13708 = vst [vmem:[#allocation388_spill] sm:$0xff] %v10003_v39  ;;  %v13713_v39 = vld [vmem:[#allocation13_spill] sm:$0xff] }
 0x3b5   : > { %4089 = vbcast.lane.b32.xlu1 %v4083_v50, 264  ;;  %4085 = vbcast.lane.b32.xlu0 %v4083_v50, 256  ;;  %v1527_v50 = vmul.f32 0.375, %v13713_v39 }
 0x3b7   : > { %v10006_v30 = vpop.permute.xlu1 %3749  ;;  %v10008_v15 = vpop.permute.xlu0 %3745  ;;  %v1543_v25 = vadd.f32 %v1527_v50, %v13718_v40 }
 0x3b8   : > { %13709 = vst [vmem:[#allocation389_spill] sm:$0xff] %v10006_v30  ;;  %13710 = vst [vmem:[#allocation390_spill] sm:$0xff] %v10008_v15  ;;  %v13715_v15 = vld [vmem:[#allocation14_spill] sm:$0xff] }
 0x3b9   : > { %4100 = vbcast.lane.b32.xlu1 %v4094_v8, 264  ;;  %4096 = vbcast.lane.b32.xlu0 %v4094_v8, 256  ;;  %v1622_v8 = vmul.f32 %v1606_v52, %v13715_v15  ;;  %8101 = vrcp.f32 %v1543_v25 }
 0x3bb   : > { %v10011_v38 = vpop.permute.xlu1 %3760  ;;  %v10013_v28 = vpop.permute.xlu0 %3756  ;;  %v10027_v39 = vcombine.low %v1621_v21, %v1622_v8 }
 0x3bc   : > { %13711 = vst [vmem:[#allocation391_spill] sm:$0xff] %v10011_v38  ;;  %13712 = vst [vmem:[#allocation392_spill] sm:$0xff] %v10013_v28  ;;  %v1544_v28 = vadd.f32 %v1528_v42, %v13719_v34 }
 0x3bd   : > { %4111 = vbcast.lane.b32.xlu1 %v4105_v35, 264  ;;  %4107 = vbcast.lane.b32.xlu0 %v4105_v35, 256  ;;  %v4138_v14 = vrot.slane %v10027_v39, %v8415_v22  ;;  %v4149_v3 = vrot.slane %v10027_v39, %v8490_v41  ;;  %v4171_v34 = vrot.slane %v10027_v39, %v8511_v59 }
 0x3be   : > { %8103 = vrcp.f32 %v1544_v28 }
 0x3bf   : > { %v10020_v30 = vpop.permute.xlu1 %3771  ;;  %v10022_v47 = vpop.permute.xlu0 %3767 }
 0x3c0   : > { %13716 = vst [vmem:[#allocation13_spill] sm:$0xff] %v10020_v30  ;;  %13717 = vst [vmem:[#allocation15_spill] sm:$0xff] %v10022_v47  ;;  %v8237_v47 = vmov 1983009808  }
 0x3c1   : > { %4122 = vbcast.lane.b32.xlu1 %v4116_v24, 264  ;;  %4118 = vbcast.lane.b32.xlu0 %v4116_v24, 256  ;;  %v4160_v24 = vrot.slane %v10027_v39, %v8506_v54 }
 0x3c3   : > { %v10029_v35 = vpop.permute.xlu1 %3782  ;;  %v10031_v38 = vpop.permute.xlu0 %3778 }
 0x3c4   : > { %13720 = vst [vmem:[#allocation14_spill] sm:$0xff] %v10029_v35  ;;  %13721 = vst [vmem:[#allocation16_spill] sm:$0xff] %v10031_v38  ;;  %v8102_v50 = vpop.eup %8101 }
 0x3c5   : > { %4133 = vbcast.lane.b32.xlu1 %v4127_v4, 264  ;;  %4129 = vbcast.lane.b32.xlu0 %v4127_v4, 256  ;;  %v1575_v4 = vmul.f32 %v8102_v50, %v1543_v25  ;;  %v4193_v25 = vrot.slane %v10027_v39, %v8549_v27 }
 0x3c7   : > { %v10035_v15 = vpop.permute.xlu1 %3793  ;;  %v10037_v42 = vpop.permute.xlu0 %3789  ;;  %v1591_v38 = vsub.f32 2.0, %v1575_v4  ;;  %v1530_v4 = vmul.f32 0.375, %v13598_v62  ;;  %v13733_v62 = vld [vmem:[#allocation8_spill] sm:$0xff] }
 0x3c8   : > { %13722 = vst [vmem:[#allocation17_spill] sm:$0xff] %v10035_v15  ;;  %13723 = vst [vmem:[#allocation393_spill] sm:$0xff] %v10037_v42  ;;  %v8104_v21 = vpop.eup %8103  ;;  %v8238_v42 = vmov 1934713408  }
 0x3c9   : > { %4144 = vbcast.lane.b32.xlu1 %v4138_v14, 264  ;;  %4140 = vbcast.lane.b32.xlu0 %v4138_v14, 256  ;;  %v1576_v14 = vmul.f32 %v8104_v21, %v1544_v28  ;;  %v1529_v28 = vmul.f32 0.375, %v13597_v7 }
 0x3cb   : > { %v10041_v43 = vpop.permute.xlu1 %3804  ;;  %v10043_v52 = vpop.permute.xlu0 %3800 }
 0x3cc   : > { %13724 = vst [vmem:[#allocation394_spill] sm:$0xff] %v10041_v43  ;;  %13725 = vst [vmem:[#allocation395_spill] sm:$0xff] %v10043_v52 }
 0x3cd   : > { %4155 = vbcast.lane.b32.xlu1 %v4149_v3, 264  ;;  %4151 = vbcast.lane.b32.xlu0 %v4149_v3, 256  ;;  %v4182_v3 = vrot.slane %v10027_v39, %v8522_v1 }
 0x3cf   : > { %v10047_v8 = vpop.permute.xlu1 %3815  ;;  %v10049_v40 = vpop.permute.xlu0 %3811 }
 0x3d0   : > { %13726 = vst [vmem:[#allocation396_spill] sm:$0xff] %v10047_v8  ;;  %13727 = vst [vmem:[#allocation397_spill] sm:$0xff] %v10049_v40  ;;  %v1592_v8 = vsub.f32 2.0, %v1576_v14  ;;  %v4965_v40 = vunpack.c.l.s4 %v8237_v47 }
 0x3d1   : > { %4166 = vbcast.lane.b32.xlu1 %v4160_v24, 264  ;;  %4162 = vbcast.lane.b32.xlu0 %v4160_v24, 256  ;;  %v5029_v24 = vunpack.c.l.s4 %v8238_v42  ;;  %v4204_v42 = vrot.slane %v10027_v39, %v8572_v45 }
 0x3d2   : > { %v4966_v14 = vunpack.c.0.s8 %v4965_v40 }
 0x3d3   : > { %v10053_v43 = vpop.permute.xlu1 %3826  ;;  %v10055_v52 = vpop.permute.xlu0 %3822 }
 0x3d4   : > { %13728 = vst [vmem:[#allocation398_spill] sm:$0xff] %v10053_v43  ;;  %13729 = vst [vmem:[#allocation399_spill] sm:$0xff] %v10055_v52  ;;  %v1608_v52 = vmul.f32 %v8104_v21, %v1592_v8  ;;  %v5030_v43 = vunpack.c.0.s8 %v5029_v24  ;;  %v10078_v8 = vsub.s32 %v4966_v14, %v13733_v62  ;;  %v13735_v24 = vld [vmem:[#allocation27_spill] sm:$0xff]  ;;  %v13741_v14 = vld [vmem:[#allocation22_spill] sm:$0xff] }
 0x3d5   : > { %4177 = vbcast.lane.b32.xlu1 %v4171_v34, 264  ;;  %4173 = vbcast.lane.b32.xlu0 %v4171_v34, 256  ;;  %v1607_v34 = vmul.f32 %v8102_v50, %v1591_v38  ;;  %v13732_v50 = vld [vmem:[#allocation25_spill] sm:$0xff] }
 0x3d6   : > { %v1624_v38 = vmul.f32 %v1608_v52, %v13460_v6  ;;  %v10075_v21 = vadd.f32 %v1530_v4, %v13732_v50  ;;  %v10081_v40 = vsub.s32 %v5030_v43, %v13733_v62  ;;  %v13738_v6 = vld [vmem:[#allocation18_spill] sm:$0xff]  ;;  %v13740_v50 = vld [vmem:[#allocation20_spill] sm:$0xff]  ;;  %v4215_v43 = vrot.slane %v10027_v39, %v8583_v56 }
 0x3d7   : > { %v10059_v15 = vpop.permute.xlu1 %3837  ;;  %v10061_v30 = vpop.permute.xlu0 %3833  ;;  %v1623_v7 = vmul.f32 %v1607_v34, %v13459_v23  ;;  %v13739_v52 = vld [vmem:[#allocation26_spill] sm:$0xff]  ;;  %v4578_v5 = vsel %vm4575_vm0, %v13741_v14, %v13740_v50  ;;  %v13742_v62 = vld [vmem:[#allocation24_spill] sm:$0xff]  ;;  %v13746_v50 = vld [vmem:[#allocation165_spill] sm:$0xff] }
 0x3d8   : > { %13730 = vst [vmem:[#allocation400_spill] sm:$0xff] %v10059_v15  ;;  %13731 = vst [vmem:[#allocation401_spill] sm:$0xff] %v10061_v30  ;;  %v10070_v30 = vadd.f32 %v1529_v28, %v13463_v9  ;;  %v13736_v28 = vld [vmem:[#allocation163_spill] sm:$0xff]  ;;  %v4579_v4 = vsel %vm4575_vm0, %v13739_v52, %v13738_v6  ;;  %v13745_v6 = vld [vmem:[#allocation29_spill] sm:$0xff] }
 0x3d9   : > { %4188 = vbcast.lane.b32.xlu1 %v4182_v3, 264  ;;  %4184 = vbcast.lane.b32.xlu0 %v4182_v3, 256  ;;  %v13734_v3 = vld [vmem:[#allocation162_spill] sm:$0xff]  ;;  %v13737_v15 = vld [vmem:[#allocation23_spill] sm:$0xff] }
 0x3da   : > { %v4577_v9 = vsel %vm4575_vm0, %v13735_v24, %v13734_v3  ;;  %8105 = vrcp.f32 %v10070_v30  ;;  %v13743_v3 = vld [vmem:[#allocation28_spill] sm:$0xff]  ;;  %v13747_v14 = vld [vmem:[#allocation30_spill] sm:$0xff] }
 0x3db   : > { %v3881_v47 = vpop.permute.xlu1 %3880  ;;  %v3877_v35 = vpop.permute.xlu0 %3876  ;;  %8107 = vrcp.f32 %v10075_v21  ;;  %v4581_v24 = vsel %vm4575_vm0, %v13743_v3, %v13742_v62  ;;  %v4583_v58 = vsel %vm4575_vm0, %v13747_v14, %v13746_v50  ;;  %v13753_v3 = vld [vmem:[#allocation289_spill] sm:$0xff] }
 0x3dc   : > { %v4710_v62 = vsel %vm4704_vm1, %v4581_v24, %v13752_v48 }
 0x3dd   : > { %4199 = vbcast.lane.b32.xlu1 %v4193_v25, 264  ;;  %4195 = vbcast.lane.b32.xlu0 %v4193_v25, 256  ;;  %v4576_v25 = vsel %vm4575_vm0, %v13737_v15, %v13736_v28  ;;  %v10098_v15 = vcombine.low %v1623_v7, %v1624_v38  ;;  %v13744_v28 = vld [vmem:[#allocation164_spill] sm:$0xff]  ;;  %v13750_v7 = vld [vmem:[#allocation286_spill] sm:$0xff] }
 0x3de   : > { %v4580_v52 = vsel %vm4575_vm0, %v13745_v6, %v13744_v28  ;;  %v4706_v38 = vsel %vm4704_vm1, %v4577_v9, %v13750_v7  ;;  %v4705_v19 = vsel %vm4704_vm1, %v4576_v25, %v13751_v49  ;;  %v13757_v49 = vld [vmem:[#allocation32_spill] sm:$0xff]  ;;  %v13760_v7 = vld [vmem:[#allocation169_spill] sm:$0xff] }
 0x3df   : > { %v3892_v23 = vpop.permute.xlu1 %3891  ;;  %v3888_v34 = vpop.permute.xlu0 %3887  ;;  %v4709_v28 = vsel %vm4704_vm1, %v4580_v52, %v13753_v3  ;;  %v10122_v50 = vsel %vm4833_vm2, %v4706_v38, %v3881_v47  ;;  %v4834_v14 = vsel %vm4833_vm2, %v4705_v19, %v3877_v35  ;;  %v4226_v47 = vrot.slane %v10098_v15, %v8415_v22  ;;  %v13758_v52 = vld [vmem:[#allocation168_spill] sm:$0xff]  ;;  %v13759_v19 = vld [vmem:[#allocation33_spill] sm:$0xff]  ;;  %v13761_v38 = vld [vmem:[#allocation34_spill] sm:$0xff] }
 0x3e0   : > { %13754 = vst [vmem:[#allocation25_spill] sm:$0xff] %v10122_v50  ;;  %v4584_v35 = vsel %vm4575_vm0, %v13759_v19, %v13758_v52  ;;  %v13763_v3 = vld [vmem:[#allocation35_spill] sm:$0xff] }
 0x3e1   : > { %4210 = vbcast.lane.b32.xlu1 %v4204_v42, 264  ;;  %4206 = vbcast.lane.b32.xlu0 %v4204_v42, 256  ;;  %v13748_v42 = vld [vmem:[#allocation166_spill] sm:$0xff] }
 0x3e2   : > { %v4582_v39 = vsel %vm4575_vm0, %v13749_v11, %v13748_v42  ;;  %v13756_v42 = vld [vmem:[#allocation167_spill] sm:$0xff] }
 0x3e3   : > { %v3903_v6 = vpop.permute.xlu1 %3902  ;;  %v3899_v36 = vpop.permute.xlu0 %3898  ;;  %v10132_v25 = vsel %vm4575_vm0, %v13757_v49, %v13756_v42  ;;  %v13765_v49 = vld [vmem:[#allocation21_spill] sm:$0xff]  ;;  %v4711_v52 = vsel %vm4704_vm1, %v4582_v39, %v13767_v0  ;;  %v4237_v0 = vrot.slane %v10098_v15, %v8490_v41  ;;  %v13770_v39 = vld [vmem:[#allocation171_spill] sm:$0xff] }
 0x3e4   : > { %v10126_v11 = vsel %vm4833_vm2, %v4710_v62, %v3903_v6  ;;  %v4838_v9 = vsel %vm4833_vm2, %v4709_v28, %v3899_v36  ;;  %v4587_v36 = vsel %vm4575_vm0, %v13761_v38, %v13760_v7  ;;  %v13762_v62 = vld [vmem:[#allocation170_spill] sm:$0xff]  ;;  %v13764_v6 = vld [vmem:[#allocation19_spill] sm:$0xff] }
 0x3e5   : > { %13755 = vst [vmem:[#allocation8_spill] sm:$0xff] %v10126_v11  ;;  %v6051_v48 = vcombine.high %v10122_v50, %v10126_v11  ;;  %v4963_v24 = vcombine.high %v4834_v14, %v4838_v9  ;;  %4221 = vbcast.lane.b32.xlu1 %v4215_v43, 264  ;;  %v4586_v28 = vsel %vm4575_vm0, %v13763_v3, %v13762_v62  ;;  %v13766_v11 = vld [vmem:[#allocation290_spill] sm:$0xff] }
 0x3e6   : > { %v4708_v42 = vsel %vm4704_vm1, %v4579_v4, %v13764_v6  ;;  %4217 = vbcast.lane.b32.xlu0 %v4215_v43, 256  ;;  %v4707_v50 = vsel %vm4704_vm1, %v4578_v5, %v13765_v49  ;;  %v4712_v51 = vsel %vm4704_vm1, %v4583_v58, %v13766_v11  ;;  %v4962_v3 = vcombine.low %v4834_v14, %v4838_v9  ;;  %v13771_v6 = vld [vmem:[#allocation36_spill] sm:$0xff]  ;;  %v13774_v9 = vld [vmem:[#allocation173_spill] sm:$0xff] }
 0x3e7   : > { %v10156_v19 = vsel %vm4833_vm2, %v4708_v42, %v3892_v23  ;;  %v3914_v7 = vpop.permute.xlu1 %3913  ;;  %v3910_v38 = vpop.permute.xlu0 %3909  ;;  %v4836_v62 = vsel %vm4833_vm2, %v4707_v50, %v3888_v34  ;;  %v4589_v34 = vsel %vm4575_vm0, %v13771_v6, %v13770_v39  ;;  %v13772_v50 = vld [vmem:[#allocation172_spill] sm:$0xff]  ;;  %v13775_v42 = vld [vmem:[#allocation38_spill] sm:$0xff] }
 0x3e8   : > { %13768 = vst [vmem:[#allocation162_spill] sm:$0xff] %v10156_v19  ;;  %v10160_v4 = vsel %vm4833_vm2, %v4712_v51, %v3914_v7  ;;  %v4840_v43 = vsel %vm4833_vm2, %v4711_v52, %v3910_v38  ;;  %v10167_v23 = vpop.eup %8105  ;;  %v13773_v51 = vld [vmem:[#allocation37_spill] sm:$0xff]  ;;  %v4591_v49 = vsel %vm4575_vm0, %v13775_v42, %v13774_v9  ;;  %v13776_v52 = vld [vmem:[#allocation174_spill] sm:$0xff]  ;;  %v13777_v7 = vld [vmem:[#allocation39_spill] sm:$0xff] }
 0x3e9   : > { %13769 = vst [vmem:[#allocation27_spill] sm:$0xff] %v10160_v4  ;;  %v6067_v5 = vcombine.high %v10156_v19, %v10160_v4  ;;  %v4978_v58 = vcombine.low %v4836_v62, %v4840_v43  ;;  %v4979_v11 = vcombine.high %v4836_v62, %v4840_v43  ;;  %4232 = vbcast.lane.b32.xlu1 %v4226_v47, 264  ;;  %v8108_v62 = vpop.eup %8107  ;;  %v13778_v9 = vld [vmem:[#allocation175_spill] sm:$0xff]  ;;  %v13779_v42 = vld [vmem:[#allocation42_spill] sm:$0xff] }
 0x3ea   : > { %v4588_v14 = vsel %vm4575_vm0, %v13773_v51, %v13772_v50  ;;  %v4590_v38 = vsel %vm4575_vm0, %v13777_v7, %v13776_v52  ;;  %4228 = vbcast.lane.b32.xlu0 %v4226_v47, 256  ;;  %v10182_v43 = vrot.slane %v6051_v48, %v10078_v8  ;;  %v4593_v52 = vsel %vm4575_vm0, %v13779_v42, %v13778_v9  ;;  %v13780_v47 = vld [vmem:[#allocation176_spill] sm:$0xff]  ;;  %v13781_v7 = vld [vmem:[#allocation43_spill] sm:$0xff] }
 0x3eb   : > { %v10185_v19 = vrot.slane %v6067_v5, %v10078_v8  ;;  %v10188_v39 = vrot.slane %v4978_v58, %v10078_v8  ;;  %v10191_v6 = vrot.slane %v4979_v11, %v10078_v8  ;;  %v3925_v50 = vpop.permute.xlu1 %3924  ;;  %v3921_v51 = vpop.permute.xlu0 %3920  ;;  %v4592_v48 = vsel %vm4575_vm0, %v13781_v7, %v13780_v47  ;;  %v13782_v11 = vld [vmem:[#allocation177_spill] sm:$0xff]  ;;  %v13783_v58 = vld [vmem:[#allocation44_spill] sm:$0xff] }
 0x3ec   : > { %v10200_v4 = vrot.slane %v4962_v3, %v10078_v8  ;;  %v10203_v5 = vrot.slane %v4963_v24, %v10078_v8  ;;  %v4248_v9 = vrot.slane %v10098_v15, %v8506_v54  ;;  %v1577_v42 = vmul.f32 %v10167_v23, %v10070_v30  ;;  %v13786_v3 = vld [vmem:[#allocation179_spill] sm:$0xff] }
 0x3ed   : > { %4243 = vbcast.lane.b32.xlu1 %v4237_v0, 264  ;;  %v1578_v7 = vmul.f32 %v8108_v62, %v10075_v21  ;;  %v10223_v18 = vsel %vm4575_vm0, %v13783_v58, %v13782_v11  ;;  %v10228_v30 = vsel %vm4575_vm0, %v13785_v33, %v13784_v2  ;;  %v4597_v24 = vsel %vm4575_vm0, %v13787_v55, %v13786_v3  ;;  %v13792_v11 = vld [vmem:[#allocation182_spill] sm:$0xff]  ;;  %v13794_v33 = vld [vmem:[#allocation183_spill] sm:$0xff]  ;;  %v13796_v3 = vld [vmem:[#allocation184_spill] sm:$0xff] }
 0x3ee   : > { %4239 = vbcast.lane.b32.xlu0 %v4237_v0, 256  ;;  %v4596_v0 = vsel %vm4575_vm0, %v13789_v57, %v13788_v63  ;;  %v10239_v58 = vsel %vm4575_vm0, %v13791_v53, %v13790_v46  ;;  %v10244_v2 = vsel %vm4575_vm0, %v13793_v60, %v13792_v11  ;;  %v10249_v55 = vsel %vm4575_vm0, %v13795_v16, %v13794_v33  ;;  %v13799_v63 = vld [vmem:[#allocation292_spill] sm:$0xff]  ;;  %v13800_v46 = vld [vmem:[#allocation293_spill] sm:$0xff]  ;;  %v13802_v11 = vld [vmem:[#allocation295_spill] sm:$0xff] }
 0x3ef   : > { %v3936_v47 = vpop.permute.xlu1 %3935  ;;  %v3932_v21 = vpop.permute.xlu0 %3931  ;;  %v10254_v57 = vsel %vm4575_vm0, %v13797_v37, %v13796_v3  ;;  %v4714_v53 = vsel %vm4704_vm1, %v10132_v25, %v13799_v63  ;;  %v4713_v32 = vsel %vm4704_vm1, %v4584_v35, %v13800_v46  ;;  %v4716_v60 = vsel %vm4704_vm1, %v4587_v36, %v13801_v20  ;;  %v13804_v25 = vld [vmem:[#allocation297_spill] sm:$0xff]  ;;  %v13805_v20 = vld [vmem:[#allocation298_spill] sm:$0xff] }
 0x3f0   : > { %13798 = vst [vmem:[#allocation163_spill] sm:$0xff] %v10254_v57  ;;  %v4259_v16 = vrot.slane %v10098_v15, %v8511_v59  ;;  %v4715_v33 = vsel %vm4704_vm1, %v4586_v28, %v13802_v11  ;;  %v4718_v37 = vsel %vm4704_vm1, %v4589_v34, %v13803_v29  ;;  %v1593_v3 = vsub.f32 2.0, %v1577_v42 }
 0x3f1   : > { %4254 = vbcast.lane.b32.xlu1 %v4248_v9, 264  ;;  %v1594_v13 = vsub.f32 2.0, %v1578_v7  ;;  %v4717_v63 = vsel %vm4704_vm1, %v4588_v14, %v13804_v25  ;;  %v4720_v35 = vsel %vm4704_vm1, %v4591_v49, %v9730_v44  ;;  %v4719_v36 = vsel %vm4704_vm1, %v4590_v38, %v13805_v20 }
 0x3f2   : > { %4250 = vbcast.lane.b32.xlu0 %v4248_v9, 256  ;;  %v1531_v57 = vmul.f32 0.375, %v8912_v17  ;;  %v10277_v28 = vsel %vm4833_vm2, %v4714_v53, %v3925_v50  ;;  %v4842_v29 = vsel %vm4833_vm2, %v4713_v32, %v3921_v51  ;;  %v4270_v38 = vrot.slane %v10098_v15, %v8522_v1  ;;  %v13808_v9 = vld [vmem:[#allocation299_spill] sm:$0xff]  ;;  %v13809_v32 = vld [vmem:[#allocation300_spill] sm:$0xff] }
 0x3f3   : > { %v3947_v46 = vpop.permute.xlu1 %3946  ;;  %v3943_v31 = vpop.permute.xlu0 %3942  ;;  %13806 = vst [vmem:[#allocation23_spill] sm:$0xff] %v10277_v28  ;;  %v1532_v17 = vmul.f32 0.375, %v8921_v26  ;;  %v10291_v50 = vsel %vm4704_vm1, %v4593_v52, %v13808_v9  ;;  %v10295_v51 = vsel %vm4704_vm1, %v4592_v48, %v13809_v32  ;;  %v1610_v42 = vmul.f32 %v8108_v62, %v1594_v13 }
 0x3f4   : > { %v10281_v34 = vsel %vm4833_vm2, %v4718_v37, %v3947_v46  ;;  %v4846_v14 = vsel %vm4833_vm2, %v4717_v63, %v3943_v31  ;;  %v1609_v31 = vmul.f32 %v10167_v23, %v1593_v3  ;;  %v10300_v7 = vsel %vm4704_vm1, %v4597_v24, %v9751_v61  ;;  %v13814_v3 = vld [vmem:[#allocation41_spill] sm:$0xff] }
 0x3f5   : > { %13807 = vst [vmem:[#allocation18_spill] sm:$0xff] %v10281_v34  ;;  %v6083_v44 = vcombine.high %v10277_v28, %v10281_v34  ;;  %v4995_v49 = vcombine.high %v4842_v29, %v4846_v14  ;;  %4265 = vbcast.lane.b32.xlu1 %v4259_v16, 264  ;;  %v10303_v53 = vsel %vm4833_vm2, %v4716_v60, %v3936_v47  ;;  %v13812_v60 = vld [vmem:[#allocation303_spill] sm:$0xff] }
 0x3f6   : > { %4261 = vbcast.lane.b32.xlu0 %v4259_v16, 256  ;;  %13810 = vst [vmem:[#allocation26_spill] sm:$0xff] %v10303_v53  ;;  %v4281_v52 = vrot.slane %v10098_v15, %v8549_v27  ;;  %v10308_v37 = vadd.f32 %v1531_v57, %v8931_v10  ;;  %v4844_v48 = vsel %vm4833_vm2, %v4715_v33, %v3932_v21  ;;  %v13813_v57 = vld [vmem:[#allocation40_spill] sm:$0xff]  ;;  %v13870_v34 = vld [vmem:[#allocation311_spill] sm:$0xff] }
 0x3f7   : > { %v3958_v26 = vpop.permute.xlu1 %3957  ;;  %v3954_v11 = vpop.permute.xlu0 %3953  ;;  %v4994_v16 = vcombine.low %v4842_v29, %v4846_v14  ;;  %v10318_v47 = vadd.f32 %v1532_v17, %v8934_v12  ;;  %v4725_v10 = vsel %vm4704_vm1, %v4596_v0, %v13812_v60  ;;  %v5026_v21 = vcombine.low %v10200_v4, %v10188_v39 }
 0x3f8   : > { %v10312_v13 = vsel %vm4833_vm2, %v4720_v35, %v3958_v26  ;;  %v4848_v61 = vsel %vm4833_vm2, %v4719_v36, %v3954_v11  ;;  %v1625_v33 = vmul.f32 %v1609_v31, %v13813_v57  ;;  %v1626_v25 = vmul.f32 %v1610_v42, %v13814_v3 }
 0x3f9   : > { %13811 = vst [vmem:[#allocation20_spill] sm:$0xff] %v10312_v13  ;;  %v6099_v23 = vcombine.high %v10303_v53, %v10312_v13  ;;  %v5010_v62 = vcombine.low %v4844_v48, %v4848_v61  ;;  %v5011_v24 = vcombine.high %v4844_v48, %v4848_v61  ;;  %4276 = vbcast.lane.b32.xlu1 %v4270_v38, 264  ;;  %8109 = vrcp.f32 %v10308_v37 }
 0x3fa   : > { %4272 = vbcast.lane.b32.xlu0 %v4270_v38, 256  ;;  %v6097_v63 = vrot.slane %v6083_v44, %v10078_v8  ;;  %v5002_v0 = vrot.slane %v4994_v16, %v10078_v8  ;;  %v5009_v29 = vrot.slane %v4995_v49, %v10078_v8  ;;  %v4292_v14 = vrot.slane %v10098_v15, %v8572_v45 }
 0x3fb   : > { %v6113_v35 = vrot.slane %v6099_v23, %v10078_v8  ;;  %v5018_v20 = vrot.slane %v5010_v62, %v10078_v8  ;;  %v5025_v12 = vrot.slane %v5011_v24, %v10078_v8  ;;  %v3969_v36 = vpop.permute.xlu1 %3968  ;;  %v3965_v46 = vpop.permute.xlu0 %3964  ;;  %v4303_v44 = vrot.slane %v10098_v15, %v8583_v56 }
 0x3fc   : > { %8111 = vrcp.f32 %v10318_v47  ;;  %v13815_v49 = vcombine.low %v10182_v43, %v10185_v19  ;;  %v10345_v11 = vrot.slane %v5026_v21, %v10081_v40  ;;  %v13818_v15 = vcombine.high %v10200_v4, %v10188_v39 }
 0x3fd   : > { %v6162_v38 = vcombine.low %v6097_v63, %v6113_v35  ;;  %v6163_v17 = vcombine.high %v6097_v63, %v6113_v35  ;;  %4287 = vbcast.lane.b32.xlu1 %v4281_v52, 264  ;;  %v5058_v9 = vcombine.low %v5002_v0, %v5018_v20  ;;  %v5059_v32 = vcombine.high %v5002_v0, %v5018_v20  ;;  %v13845_v35 = vld [vmem:[#allocation56_spill] sm:$0xff]  ;;  %v13848_v0 = vld [vmem:[#allocation191_spill] sm:$0xff] }
 0x3fe   : > { %v5074_v31 = vcombine.low %v5009_v29, %v5025_v12  ;;  %v5075_v42 = vcombine.high %v5009_v29, %v5025_v12  ;;  %4283 = vbcast.lane.b32.xlu0 %v4281_v52, 256  ;;  %v10342_v26 = vrot.slane %v13815_v49, %v10081_v40  ;;  %13817 = vst [vmem:[#allocation24_spill] sm:$0xff] %v10345_v11  ;;  %v13849_v12 = vld [vmem:[#allocation62_spill] sm:$0xff]  ;;  %v13850_v63 = vld [vmem:[#allocation192_spill] sm:$0xff] }
 0x3ff   : > { %v10351_v48 = vrot.slane %v13818_v15, %v10081_v40  ;;  %v3980_v16 = vpop.permute.xlu1 %3979  ;;  %v3976_v61 = vpop.permute.xlu0 %3975  ;;  %v10353_v23 = vcombine.low %v1625_v33, %v1626_v25  ;;  %v10356_v52 = vrot.slane %v5058_v9, %v10081_v40  ;;  %v10359_v62 = vrot.slane %v5059_v32, %v10081_v40  ;;  %v13830_v32 = vld [vmem:[#allocation301_spill] sm:$0xff]  ;;  %v13831_v15 = vld [vmem:[#allocation302_spill] sm:$0xff] }
 0x400   : > { %13816 = vst [vmem:[#allocation22_spill] sm:$0xff] %v10342_v26  ;;  %v10362_v24 = vrot.slane %v5074_v31, %v10081_v40  ;;  %v10365_v60 = vrot.slane %v5075_v42, %v10081_v40  ;;  %v13821_v4 = vcombine.high %v10182_v43, %v10185_v19  ;;  %v13823_v21 = vcombine.low %v10203_v5, %v10191_v6  ;;  %v13851_v43 = vld [vmem:[#allocation63_spill] sm:$0xff] }
 0x401   : > { %13819 = vst [vmem:[#allocation28_spill] sm:$0xff] %v10356_v52  ;;  %v13824_v33 = vcombine.high %v10203_v5, %v10191_v6  ;;  %v10386_v25 = vrot.slane %v6162_v38, %v10081_v40  ;;  %4298 = vbcast.lane.b32.xlu1 %v4292_v14, 264  ;;  %v10389_v19 = vrot.slane %v6163_v17, %v10081_v40  ;;  %v13856_v26 = vld [vmem:[#allocation195_spill] sm:$0xff] }
 0x402   : > { %13820 = vst [vmem:[#allocation164_spill] sm:$0xff] %v10365_v60  ;;  %v10371_v39 = vrot.slane %v13821_v4, %v10081_v40  ;;  %v10377_v57 = vrot.slane %v13823_v21, %v10081_v40  ;;  %4294 = vbcast.lane.b32.xlu0 %v4292_v14, 256  ;;  %v10407_v14 = vsel %vm4833_vm2, %v10291_v50, %v3969_v36  ;;  %v13832_v21 = vld [vmem:[#allocation304_spill] sm:$0xff] }
 0x403   : > { %v10383_v3 = vrot.slane %v13824_v33, %v10081_v40  ;;  %13826 = vst [vmem:[#allocation30_spill] sm:$0xff] %v10386_v25  ;;  %13827 = vst [vmem:[#allocation166_spill] sm:$0xff] %v10389_v19  ;;  %v3991_v6 = vpop.permute.xlu1 %3990  ;;  %v3987_v5 = vpop.permute.xlu0 %3986  ;;  %v4850_v38 = vsel %vm4833_vm2, %v10295_v51, %v3965_v46  ;;  %v4724_v31 = vsel %vm4704_vm1, %v10223_v18, %v13830_v32  ;;  %v13833_v33 = vld [vmem:[#allocation305_spill] sm:$0xff]  ;;  %v13854_v25 = vld [vmem:[#allocation194_spill] sm:$0xff] }
 0x404   : > { %13822 = vst [vmem:[#allocation29_spill] sm:$0xff] %v10371_v39  ;;  %13828 = vst [vmem:[#allocation31_spill] sm:$0xff] %v10407_v14  ;;  %v10413_v17 = vsel %vm4833_vm2, %v10300_v7, %v3991_v6  ;;  %v4854_v9 = vsel %vm4833_vm2, %v4725_v10, %v3987_v5  ;;  %v4314_v50 = vrot.slane %v10353_v23, %v8415_v22  ;;  %v10423_v36 = vpop.eup %8109  ;;  %v13853_v39 = vld [vmem:[#allocation66_spill] sm:$0xff] }
 0x405   : > { %13825 = vst [vmem:[#allocation165_spill] sm:$0xff] %v10383_v3  ;;  %13829 = vst [vmem:[#allocation286_spill] sm:$0xff] %v10413_v17  ;;  %v6187_v42 = vcombine.high %v10407_v14, %v10413_v17  ;;  %v5099_v49 = vcombine.high %v4850_v38, %v4854_v9  ;;  %4309 = vbcast.lane.b32.xlu1 %v4303_v44, 264  ;;  %v4723_v4 = vsel %vm4704_vm1, %v10228_v30, %v13831_v15  ;;  %v13858_v14 = vld [vmem:[#allocation196_spill] sm:$0xff] }
 0x406   : > { %4305 = vbcast.lane.b32.xlu0 %v4303_v44, 256  ;;  %v10433_v46 = vpop.eup %8111  ;;  %v4728_v44 = vsel %vm4704_vm1, %v10239_v58, %v13832_v21  ;;  %v4727_v6 = vsel %vm4704_vm1, %v10244_v2, %v13833_v33  ;;  %v10445_v5 = vsel %vm4833_vm2, %v4724_v31, %v3980_v16  ;;  %v4852_v10 = vsel %vm4833_vm2, %v4723_v4, %v3976_v61  ;;  %v13836_v16 = vld [vmem:[#allocation185_spill] sm:$0xff]  ;;  %v13837_v31 = vld [vmem:[#allocation52_spill] sm:$0xff]  ;;  %v13838_v61 = vld [vmem:[#allocation186_spill] sm:$0xff] }
 0x407   : > { %13834 = vst [vmem:[#allocation287_spill] sm:$0xff] %v10445_v5  ;;  %v4002_v32 = vpop.permute.xlu1 %4001  ;;  %v3998_v18 = vpop.permute.xlu0 %3997  ;;  %v5098_v7 = vcombine.low %v4850_v38, %v4854_v9  ;;  %v4325_v2 = vrot.slane %v10353_v23, %v8490_v41  ;;  %v4603_v33 = vsel %vm4575_vm0, %v13837_v31, %v13836_v16  ;;  %v13839_v38 = vld [vmem:[#allocation53_spill] sm:$0xff]  ;;  %v1580_v4 = vmul.f32 %v10433_v46, %v10318_v47  ;;  %v13840_v16 = vld [vmem:[#allocation187_spill] sm:$0xff]  ;;  %v13841_v31 = vld [vmem:[#allocation54_spill] sm:$0xff] }
 0x408   : > { %v10449_v51 = vsel %vm4833_vm2, %v4728_v44, %v4002_v32  ;;  %v4856_v30 = vsel %vm4833_vm2, %v4727_v6, %v3998_v18  ;;  %v4602_v9 = vsel %vm4575_vm0, %v13839_v38, %v13838_v61  ;;  %v1579_v18 = vmul.f32 %v10423_v36, %v10308_v37  ;;  %v13842_v61 = vld [vmem:[#allocation188_spill] sm:$0xff]  ;;  %v13843_v47 = vld [vmem:[#allocation55_spill] sm:$0xff] }
 0x409   : > { %13835 = vst [vmem:[#allocation288_spill] sm:$0xff] %v10449_v51  ;;  %v6203_v58 = vcombine.high %v10445_v5, %v10449_v51  ;;  %v5114_v15 = vcombine.low %v4852_v10, %v4856_v30  ;;  %v5115_v21 = vcombine.high %v4852_v10, %v4856_v30  ;;  %4320 = vbcast.lane.b32.xlu1 %v4314_v50, 264  ;;  %v1596_v19 = vsub.f32 2.0, %v1580_v4  ;;  %v13861_v4 = vld [vmem:[#allocation70_spill] sm:$0xff]  ;;  %v13867_v51 = vld [vmem:[#allocation308_spill] sm:$0xff] }
 0x40a   : > { %4316 = vbcast.lane.b32.xlu0 %v4314_v50, 256  ;;  %v10467_v10 = vrot.slane %v6187_v42, %v10078_v8  ;;  %v4605_v37 = vsel %vm4575_vm0, %v13841_v31, %v13840_v16  ;;  %v4604_v42 = vsel %vm4575_vm0, %v13843_v47, %v13842_v61  ;;  %v10485_v38 = vrot.slane %v5098_v7, %v10078_v8  ;;  %v13846_v61 = vld [vmem:[#allocation190_spill] sm:$0xff]  ;;  %v13847_v7 = vld [vmem:[#allocation57_spill] sm:$0xff] }
 0x40b   : > { %v10470_v44 = vrot.slane %v6203_v58, %v10078_v8  ;;  %v10473_v6 = vrot.slane %v5114_v15, %v10078_v8  ;;  %v10476_v32 = vrot.slane %v5115_v21, %v10078_v8  ;;  %v4013_v30 = vpop.permute.xlu1 %4012  ;;  %v4009_v50 = vpop.permute.xlu0 %4008  ;;  %v10488_v58 = vrot.slane %v5099_v49, %v10078_v8  ;;  %v13844_v15 = vld [vmem:[#allocation189_spill] sm:$0xff] }
 0x40c   : > { %v4607_v21 = vsel %vm4575_vm0, %v13845_v35, %v13844_v15  ;;  %v4336_v31 = vrot.slane %v10353_v23, %v8506_v54  ;;  %v4606_v47 = vsel %vm4575_vm0, %v13847_v7, %v13846_v61  ;;  %v4609_v20 = vsel %vm4575_vm0, %v13849_v12, %v13848_v0  ;;  %v13852_v49 = vld [vmem:[#allocation193_spill] sm:$0xff]  ;;  %v13855_v15 = vld [vmem:[#allocation67_spill] sm:$0xff]  ;;  %v13857_v12 = vld [vmem:[#allocation68_spill] sm:$0xff] }
 0x40d   : > { %4331 = vbcast.lane.b32.xlu1 %v4325_v2, 264  ;;  %v4608_v16 = vsel %vm4575_vm0, %v13851_v43, %v13850_v63  ;;  %v1595_v7 = vsub.f32 2.0, %v1579_v18  ;;  %v10517_v35 = vsel %vm4575_vm0, %v13853_v39, %v13852_v49  ;;  %v4613_v0 = vsel %vm4575_vm0, %v13857_v12, %v13856_v26  ;;  %v13859_v43 = vld [vmem:[#allocation69_spill] sm:$0xff]  ;;  %v13862_v39 = vld [vmem:[#allocation198_spill] sm:$0xff]  ;;  %v13863_v49 = vld [vmem:[#allocation71_spill] sm:$0xff] }
 0x40e   : > { %4327 = vbcast.lane.b32.xlu0 %v4325_v2, 256  ;;  %v10522_v2 = vsel %vm4575_vm0, %v13855_v15, %v13854_v25  ;;  %v4612_v63 = vsel %vm4575_vm0, %v13859_v43, %v13858_v14  ;;  %v13860_v18 = vld [vmem:[#allocation197_spill] sm:$0xff]  ;;  %v10538_v5 = vsel %vm4575_vm0, %v13863_v49, %v13862_v39  ;;  %v13864_v25 = vld [vmem:[#allocation306_spill] sm:$0xff]  ;;  %v4347_v26 = vrot.slane %v10353_v23, %v8511_v59  ;;  %v13865_v12 = vld [vmem:[#allocation307_spill] sm:$0xff] }
 0x40f   : > { %v4024_v29 = vpop.permute.xlu1 %4023  ;;  %v4020_v61 = vpop.permute.xlu0 %4019  ;;  %v10533_v17 = vsel %vm4575_vm0, %v13861_v4, %v13860_v18  ;;  %v4730_v15 = vsel %vm4704_vm1, %v10249_v55, %v13864_v25  ;;  %v13866_v14 = vld [vmem:[#allocation163_spill] sm:$0xff]  ;;  %v4732_v18 = vsel %vm4704_vm1, %v4603_v33, %v13867_v51  ;;  %v13868_v4 = vld [vmem:[#allocation309_spill] sm:$0xff]  ;;  %v13869_v39 = vld [vmem:[#allocation310_spill] sm:$0xff]  ;;  %v4733_v55 = vsel %vm4704_vm1, %v4604_v42, %v13870_v34 }
 0x410   : > { %v4729_v43 = vsel %vm4704_vm1, %v13866_v14, %v13865_v12  ;;  %v4731_v28 = vsel %vm4704_vm1, %v4602_v9, %v13868_v4  ;;  %v4734_v49 = vsel %vm4704_vm1, %v4605_v37, %v13869_v39  ;;  %v13871_v25 = vld [vmem:[#allocation312_spill] sm:$0xff]  ;;  %v1611_v12 = vmul.f32 %v10423_v36, %v1595_v7  ;;  %v13878_v7 = vld [vmem:[#allocation61_spill] sm:$0xff] }
 0x411   : > { %4342 = vbcast.lane.b32.xlu1 %v4336_v31, 264  ;;  %v4736_v53 = vsel %vm4704_vm1, %v4607_v21, %v13871_v25  ;;  %v1612_v14 = vmul.f32 %v10433_v46, %v1596_v19  ;;  %v10561_v51 = vsel %vm4833_vm2, %v4730_v15, %v4013_v30  ;;  %v4858_v33 = vsel %vm4833_vm2, %v4729_v43, %v4009_v50  ;;  %v13874_v21 = vld [vmem:[#allocation59_spill] sm:$0xff]  ;;  %v13875_v46 = vld [vmem:[#allocation313_spill] sm:$0xff]  ;;  %v13881_v25 = vld [vmem:[#allocation60_spill] sm:$0xff] }
 0x412   : > { %4338 = vbcast.lane.b32.xlu0 %v4336_v31, 256  ;;  %13872 = vst [vmem:[#allocation289_spill] sm:$0xff] %v10561_v51  ;;  %v4358_v36 = vrot.slane %v10353_v23, %v8522_v1  ;;  %v1533_v19 = vmul.f32 0.375, %v13874_v21  ;;  %v4735_v30 = vsel %vm4704_vm1, %v4606_v47, %v13875_v46  ;;  %v13876_v31 = vld [vmem:[#allocation314_spill] sm:$0xff]  ;;  %v1534_v15 = vmul.f32 0.375, %v13878_v7 }
 0x413   : > { %v4035_v13 = vpop.permute.xlu1 %4034  ;;  %v4031_v60 = vpop.permute.xlu0 %4030  ;;  %v10577_v50 = vsel %vm4704_vm1, %v4609_v20, %v13876_v31  ;;  %v10585_v43 = vsel %vm4833_vm2, %v4732_v18, %v4024_v29  ;;  %v13880_v47 = vld [vmem:[#allocation58_spill] sm:$0xff]  ;;  %v1628_v20 = vmul.f32 %v1612_v14, %v13881_v25  ;;  %v4860_v21 = vsel %vm4833_vm2, %v4731_v28, %v4020_v61  ;;  %v13886_v61 = vld [vmem:[#allocation65_spill] sm:$0xff] }
 0x414   : > { %v10565_v9 = vsel %vm4833_vm2, %v4734_v49, %v4035_v13  ;;  %v4862_v37 = vsel %vm4833_vm2, %v4733_v55, %v4031_v60  ;;  %v13877_v13 = vld [vmem:[#allocation315_spill] sm:$0xff]  ;;  %13879 = vst [vmem:[#allocation32_spill] sm:$0xff] %v10585_v43  ;;  %v4369_v49 = vrot.slane %v10353_v23, %v8549_v27  ;;  %v1627_v55 = vmul.f32 %v1611_v12, %v13880_v47  ;;  %v13884_v12 = vld [vmem:[#allocation318_spill] sm:$0xff] }
 0x415   : > { %13873 = vst [vmem:[#allocation167_spill] sm:$0xff] %v10565_v9  ;;  %v6219_v34 = vcombine.high %v10561_v51, %v10565_v9  ;;  %v5131_v42 = vcombine.high %v4858_v33, %v4862_v37  ;;  %4353 = vbcast.lane.b32.xlu1 %v4347_v26, 264  ;;  %v10581_v60 = vsel %vm4704_vm1, %v4608_v16, %v13877_v13  ;;  %v13883_v13 = vld [vmem:[#allocation64_spill] sm:$0xff]  ;;  %v13885_v47 = vld [vmem:[#allocation319_spill] sm:$0xff]  ;;  %v13924_v51 = vld [vmem:[#allocation205_spill] sm:$0xff] }
 0x416   : > { %4349 = vbcast.lane.b32.xlu0 %v4347_v26, 256  ;;  %v5130_v46 = vcombine.low %v4858_v33, %v4862_v37  ;;  %v10599_v7 = vadd.f32 %v1533_v19, %v13883_v13  ;;  %v4742_v14 = vsel %vm4704_vm1, %v4613_v0, %v13884_v12  ;;  %v4741_v28 = vsel %vm4704_vm1, %v4612_v63, %v13885_v47 }
 0x417   : > { %v4046_v4 = vpop.permute.xlu1 %4045  ;;  %v4042_v39 = vpop.permute.xlu0 %4041  ;;  %v10608_v33 = vadd.f32 %v1534_v15, %v13886_v61  ;;  %v6233_v37 = vrot.slane %v6219_v34, %v10078_v8  ;;  %v5145_v63 = vrot.slane %v5131_v42, %v10078_v8  ;;  %v4391_v15 = vrot.slane %v10353_v23, %v8583_v56 }
 0x418   : > { %v10593_v16 = vsel %vm4833_vm2, %v4736_v53, %v4046_v4  ;;  %v4864_v26 = vsel %vm4833_vm2, %v4735_v30, %v4042_v39  ;;  %v5162_v53 = vcombine.low %v10485_v38, %v10473_v6  ;;  %v5138_v25 = vrot.slane %v5130_v46, %v10078_v8 }
 0x419   : > { %13882 = vst [vmem:[#allocation168_spill] sm:$0xff] %v10593_v16  ;;  %v6235_v29 = vcombine.high %v10585_v43, %v10593_v16  ;;  %v5146_v18 = vcombine.low %v4860_v21, %v4864_v26  ;;  %v5147_v31 = vcombine.high %v4860_v21, %v4864_v26  ;;  %4364 = vbcast.lane.b32.xlu1 %v4358_v36, 264  ;;  %8113 = vrcp.f32 %v10599_v7  ;;  %v13926_v43 = vld [vmem:[#allocation206_spill] sm:$0xff]  ;;  %v13928_v16 = vld [vmem:[#allocation207_spill] sm:$0xff] }
 0x41a   : > { %4360 = vbcast.lane.b32.xlu0 %v4358_v36, 256  ;;  %v4380_v36 = vrot.slane %v10353_v23, %v8572_v45  ;;  %v10620_v26 = vcombine.low %v1627_v55, %v1628_v20  ;;  %v13887_v42 = vcombine.low %v10467_v10, %v10470_v44  ;;  %v10630_v23 = vrot.slane %v5162_v53, %v10081_v40 }
 0x41b   : > { %v6249_v30 = vrot.slane %v6235_v29, %v10078_v8  ;;  %v5154_v19 = vrot.slane %v5146_v18, %v10078_v8  ;;  %v5161_v4 = vrot.slane %v5147_v31, %v10078_v8  ;;  %v4057_v39 = vpop.permute.xlu1 %4056  ;;  %v4053_v0 = vpop.permute.xlu0 %4052  ;;  %v13890_v55 = vcombine.high %v10485_v38, %v10473_v6 }
 0x41c   : > { %v10627_v46 = vrot.slane %v13887_v42, %v10081_v40  ;;  %13889 = vst [vmem:[#allocation169_spill] sm:$0xff] %v10630_v23  ;;  %8115 = vrcp.f32 %v10608_v33  ;;  %v13896_v6 = vcombine.high %v10467_v10, %v10470_v44  ;;  %v4866_v42 = vsel %vm4833_vm2, %v10581_v60, %v4053_v0  ;;  %v13907_v0 = vld [vmem:[#allocation317_spill] sm:$0xff] }
 0x41d   : > { %v6298_v21 = vcombine.low %v6233_v37, %v6249_v30  ;;  %v6299_v34 = vcombine.high %v6233_v37, %v6249_v30  ;;  %4375 = vbcast.lane.b32.xlu1 %v4369_v49, 264  ;;  %v5194_v29 = vcombine.low %v5138_v25, %v5154_v19  ;;  %v5195_v18 = vcombine.high %v5138_v25, %v5154_v19 }
 0x41e   : > { %v5210_v31 = vcombine.low %v5145_v63, %v5161_v4  ;;  %v5211_v13 = vcombine.high %v5145_v63, %v5161_v4  ;;  %4371 = vbcast.lane.b32.xlu0 %v4369_v49, 256  ;;  %13888 = vst [vmem:[#allocation33_spill] sm:$0xff] %v10627_v46  ;;  %v10636_v20 = vrot.slane %v13890_v55, %v10081_v40 }
 0x41f   : > { %v4068_v12 = vpop.permute.xlu1 %4067  ;;  %v4064_v47 = vpop.permute.xlu0 %4063  ;;  %v10640_v49 = vrot.slane %v5194_v29, %v10081_v40  ;;  %v10643_v61 = vrot.slane %v5195_v18, %v10081_v40  ;;  %v10655_v38 = vrot.slane %v13896_v6, %v10081_v40  ;;  %v13898_v30 = vcombine.low %v10488_v58, %v10476_v32  ;;  %v13917_v18 = vld [vmem:[#allocation74_spill] sm:$0xff] }
 0x420   : > { %13891 = vst [vmem:[#allocation34_spill] sm:$0xff] %v10636_v20  ;;  %v10646_v37 = vrot.slane %v5210_v31, %v10081_v40  ;;  %v10649_v53 = vrot.slane %v5211_v13, %v10081_v40  ;;  %v13900_v4 = vcombine.high %v10488_v58, %v10476_v32  ;;  %v10670_v63 = vrot.slane %v6298_v21, %v10081_v40 }
 0x421   : > { %13892 = vst [vmem:[#allocation170_spill] sm:$0xff] %v10640_v49  ;;  %13893 = vst [vmem:[#allocation35_spill] sm:$0xff] %v10643_v61  ;;  %v10661_v19 = vrot.slane %v13898_v30, %v10081_v40  ;;  %4386 = vbcast.lane.b32.xlu1 %v4380_v36, 264  ;;  %v10673_v10 = vrot.slane %v6299_v34, %v10081_v40  ;;  %v10691_v13 = vsel %vm4833_vm2, %v10577_v50, %v4057_v39  ;;  %v13906_v30 = vld [vmem:[#allocation316_spill] sm:$0xff]  ;;  %v13945_v61 = vld [vmem:[#allocation327_spill] sm:$0xff] }
 0x422   : > { %13894 = vst [vmem:[#allocation19_spill] sm:$0xff] %v10646_v37  ;;  %13895 = vst [vmem:[#allocation21_spill] sm:$0xff] %v10649_v53  ;;  %v10667_v25 = vrot.slane %v13900_v4, %v10081_v40  ;;  %4382 = vbcast.lane.b32.xlu0 %v4380_v36, 256  ;;  %v4740_v4 = vsel %vm4704_vm1, %v10517_v35, %v13906_v30  ;;  %v4402_v50 = vrot.slane %v10620_v26, %v8415_v22  ;;  %v13909_v30 = vld [vmem:[#allocation321_spill] sm:$0xff]  ;;  %v13930_v53 = vld [vmem:[#allocation208_spill] sm:$0xff] }
 0x423   : > { %13897 = vst [vmem:[#allocation290_spill] sm:$0xff] %v10655_v38  ;;  %13899 = vst [vmem:[#allocation291_spill] sm:$0xff] %v10661_v19  ;;  %v4079_v32 = vpop.permute.xlu1 %4078  ;;  %v4075_v58 = vpop.permute.xlu0 %4074  ;;  %v10726_v60 = vsel %vm4833_vm2, %v4740_v4, %v4068_v12  ;;  %v4413_v12 = vrot.slane %v10620_v26, %v8490_v41  ;;  %v13944_v19 = vld [vmem:[#allocation326_spill] sm:$0xff] }
 0x424   : > { %13901 = vst [vmem:[#allocation171_spill] sm:$0xff] %v10667_v25  ;;  %13902 = vst [vmem:[#allocation36_spill] sm:$0xff] %v10670_v63  ;;  %v10696_v55 = vsel %vm4833_vm2, %v4742_v14, %v4079_v32  ;;  %v4870_v6 = vsel %vm4833_vm2, %v4741_v28, %v4075_v58  ;;  %v10714_v39 = vpop.eup %8113  ;;  %v4739_v32 = vsel %vm4704_vm1, %v10522_v2, %v13907_v0  ;;  %v13908_v58 = vld [vmem:[#allocation320_spill] sm:$0xff]  ;;  %v13923_v63 = vld [vmem:[#allocation77_spill] sm:$0xff] }
 0x425   : > { %13903 = vst [vmem:[#allocation172_spill] sm:$0xff] %v10673_v10  ;;  %13904 = vst [vmem:[#allocation37_spill] sm:$0xff] %v10691_v13  ;;  %v6323_v44 = vcombine.high %v10691_v13, %v10696_v55  ;;  %v5235_v34 = vcombine.high %v4866_v42, %v4870_v6  ;;  %4397 = vbcast.lane.b32.xlu1 %v4391_v15, 264  ;;  %v4743_v14 = vsel %vm4704_vm1, %v10538_v5, %v13909_v30  ;;  %v13920_v10 = vld [vmem:[#allocation203_spill] sm:$0xff]  ;;  %v13932_v25 = vld [vmem:[#allocation209_spill] sm:$0xff] }
 0x426   : > { %13905 = vst [vmem:[#allocation173_spill] sm:$0xff] %v10696_v55  ;;  %4393 = vbcast.lane.b32.xlu0 %v4391_v15, 256  ;;  %v4744_v15 = vsel %vm4704_vm1, %v10533_v17, %v13908_v58  ;;  %13910 = vst [vmem:[#allocation38_spill] sm:$0xff] %v10726_v60  ;;  %v4868_v35 = vsel %vm4833_vm2, %v4739_v32, %v4064_v47  ;;  %v5234_v31 = vcombine.low %v4866_v42, %v4870_v6  ;;  %v10733_v0 = vpop.eup %8115  ;;  %v13934_v13 = vld [vmem:[#allocation210_spill] sm:$0xff]  ;;  %v13935_v55 = vld [vmem:[#allocation85_spill] sm:$0xff] }
 0x427   : > { %v4090_v28 = vpop.permute.xlu1 %4089  ;;  %v4086_v36 = vpop.permute.xlu0 %4085  ;;  %v10740_v47 = vrot.slane %v6323_v44, %v10078_v8 }
 0x428   : > { %v10730_v21 = vsel %vm4833_vm2, %v4744_v15, %v4090_v28  ;;  %v4872_v2 = vsel %vm4833_vm2, %v4743_v14, %v4086_v36  ;;  %v13912_v28 = vld [vmem:[#allocation199_spill] sm:$0xff]  ;;  %v13914_v15 = vld [vmem:[#allocation200_spill] sm:$0xff]  ;;  %v10758_v30 = vrot.slane %v5234_v31, %v10078_v8 }
 0x429   : > { %13911 = vst [vmem:[#allocation174_spill] sm:$0xff] %v10730_v21  ;;  %v6339_v17 = vcombine.high %v10726_v60, %v10730_v21  ;;  %v5250_v58 = vcombine.low %v4868_v35, %v4872_v2  ;;  %v5251_v5 = vcombine.high %v4868_v35, %v4872_v2  ;;  %4408 = vbcast.lane.b32.xlu1 %v4402_v50, 264  ;;  %v13913_v35 = vld [vmem:[#allocation72_spill] sm:$0xff]  ;;  %v13940_v60 = vld [vmem:[#allocation213_spill] sm:$0xff]  ;;  %v13942_v21 = vld [vmem:[#allocation322_spill] sm:$0xff] }
 0x42a   : > { %4404 = vbcast.lane.b32.xlu0 %v4402_v50, 256  ;;  %v4617_v32 = vsel %vm4575_vm0, %v13913_v35, %v13912_v28  ;;  %v13915_v50 = vld [vmem:[#allocation73_spill] sm:$0xff]  ;;  %v10761_v2 = vrot.slane %v5235_v34, %v10078_v8  ;;  %v1581_v28 = vmul.f32 %v10714_v39, %v10599_v7  ;;  %v13921_v31 = vld [vmem:[#allocation76_spill] sm:$0xff] }
 0x42b   : > { %v10743_v42 = vrot.slane %v6339_v17, %v10078_v8  ;;  %v10746_v36 = vrot.slane %v5250_v58, %v10078_v8  ;;  %v10749_v6 = vrot.slane %v5251_v5, %v10078_v8  ;;  %v4101_v4 = vpop.permute.xlu1 %4100  ;;  %v4097_v14 = vpop.permute.xlu0 %4096  ;;  %v4616_v44 = vsel %vm4575_vm0, %v13915_v50, %v13914_v15  ;;  %v13916_v50 = vld [vmem:[#allocation201_spill] sm:$0xff]  ;;  %v13918_v58 = vld [vmem:[#allocation202_spill] sm:$0xff]  ;;  %v13919_v17 = vld [vmem:[#allocation75_spill] sm:$0xff] }
 0x42c   : > { %v4424_v5 = vrot.slane %v10620_v26, %v8506_v54  ;;  %v1582_v15 = vmul.f32 %v10733_v0, %v10608_v33  ;;  %v4619_v29 = vsel %vm4575_vm0, %v13917_v18, %v13916_v50  ;;  %v4618_v7 = vsel %vm4575_vm0, %v13919_v17, %v13918_v58  ;;  %v13922_v34 = vld [vmem:[#allocation204_spill] sm:$0xff]  ;;  %v13925_v33 = vld [vmem:[#allocation78_spill] sm:$0xff]  ;;  %v13927_v18 = vld [vmem:[#allocation79_spill] sm:$0xff] }
 0x42d   : > { %4419 = vbcast.lane.b32.xlu1 %v4413_v12, 264  ;;  %v4621_v38 = vsel %vm4575_vm0, %v13921_v31, %v13920_v10  ;;  %v4620_v35 = vsel %vm4575_vm0, %v13923_v63, %v13922_v34  ;;  %v4623_v9 = vsel %vm4575_vm0, %v13925_v33, %v13924_v51  ;;  %v4622_v50 = vsel %vm4575_vm0, %v13927_v18, %v13926_v43  ;;  %v13929_v17 = vld [vmem:[#allocation82_spill] sm:$0xff]  ;;  %v13931_v10 = vld [vmem:[#allocation83_spill] sm:$0xff]  ;;  %v13933_v63 = vld [vmem:[#allocation84_spill] sm:$0xff] }
 0x42e   : > { %4415 = vbcast.lane.b32.xlu0 %v4413_v12, 256  ;;  %v4625_v58 = vsel %vm4575_vm0, %v13929_v17, %v13928_v16  ;;  %v4624_v31 = vsel %vm4575_vm0, %v13931_v10, %v13930_v53  ;;  %v10806_v34 = vsel %vm4575_vm0, %v13933_v63, %v13932_v25  ;;  %v10811_v51 = vsel %vm4575_vm0, %v13935_v55, %v13934_v13  ;;  %v13936_v33 = vld [vmem:[#allocation211_spill] sm:$0xff]  ;;  %v13937_v43 = vld [vmem:[#allocation86_spill] sm:$0xff]  ;;  %v13938_v17 = vld [vmem:[#allocation212_spill] sm:$0xff] }
 0x42f   : > { %v4112_v12 = vpop.permute.xlu1 %4111  ;;  %v4108_v46 = vpop.permute.xlu0 %4107  ;;  %v4629_v18 = vsel %vm4575_vm0, %v13937_v43, %v13936_v33  ;;  %v4435_v16 = vrot.slane %v10620_v26, %v8511_v59  ;;  %v13939_v53 = vld [vmem:[#allocation87_spill] sm:$0xff]  ;;  %v13941_v25 = vld [vmem:[#allocation88_spill] sm:$0xff]  ;;  %v1597_v13 = vsub.f32 2.0, %v1581_v28  ;;  %v1598_v55 = vsub.f32 2.0, %v1582_v15 }
 0x430   : > { %v4628_v10 = vsel %vm4575_vm0, %v13939_v53, %v13938_v17  ;;  %v10824_v63 = vsel %vm4575_vm0, %v13941_v25, %v13940_v60  ;;  %v4746_v37 = vsel %vm4704_vm1, %v4617_v32, %v13942_v21  ;;  %v13943_v33 = vld [vmem:[#allocation323_spill] sm:$0xff]  ;;  %v4750_v3 = vsel %vm4704_vm1, %v4621_v38, %v13944_v19  ;;  %v13948_v32 = vld [vmem:[#allocation214_spill] sm:$0xff]  ;;  %v13950_v19 = vld [vmem:[#allocation324_spill] sm:$0xff] }
 0x431   : > { %4430 = vbcast.lane.b32.xlu1 %v4424_v5, 264  ;;  %v4745_v43 = vsel %vm4704_vm1, %v4616_v44, %v13943_v33  ;;  %v4749_v17 = vsel %vm4704_vm1, %v4620_v35, %v13945_v61  ;;  %v10835_v60 = vsel %vm4833_vm2, %v4746_v37, %v4101_v4  ;;  %v13949_v44 = vld [vmem:[#allocation89_spill] sm:$0xff]  ;;  %v4446_v37 = vrot.slane %v10620_v26, %v8522_v1  ;;  %v13952_v25 = vld [vmem:[#allocation328_spill] sm:$0xff] }
 0x432   : > { %4426 = vbcast.lane.b32.xlu0 %v4424_v5, 256  ;;  %13946 = vst [vmem:[#allocation39_spill] sm:$0xff] %v10835_v60  ;;  %v4874_v5 = vsel %vm4833_vm2, %v4745_v43, %v4097_v14  ;;  %v10845_v15 = vsel %vm4575_vm0, %v13949_v44, %v13948_v32  ;;  %v4748_v4 = vsel %vm4704_vm1, %v4619_v29, %v13950_v19  ;;  %v13953_v43 = vld [vmem:[#allocation329_spill] sm:$0xff] }
 0x433   : > { %v4123_v53 = vpop.permute.xlu1 %4122  ;;  %v4119_v20 = vpop.permute.xlu0 %4118  ;;  %v1614_v35 = vmul.f32 %v10733_v0, %v1598_v55  ;;  %v4752_v33 = vsel %vm4704_vm1, %v4623_v9, %v13952_v25  ;;  %v10866_v29 = vsel %vm4833_vm2, %v4748_v4, %v4112_v12  ;;  %v4457_v12 = vrot.slane %v10620_v26, %v8549_v27  ;;  %v13959_v4 = vld [vmem:[#allocation81_spill] sm:$0xff] }
 0x434   : > { %v10839_v28 = vsel %vm4833_vm2, %v4750_v3, %v4123_v53  ;;  %v4878_v21 = vsel %vm4833_vm2, %v4749_v17, %v4119_v20  ;;  %v13951_v3 = vld [vmem:[#allocation325_spill] sm:$0xff]  ;;  %v1613_v20 = vmul.f32 %v10714_v39, %v1597_v13  ;;  %v4751_v17 = vsel %vm4704_vm1, %v4622_v50, %v13953_v43  ;;  %v13954_v53 = vld [vmem:[#allocation330_spill] sm:$0xff]  ;;  %13955 = vst [vmem:[#allocation42_spill] sm:$0xff] %v10866_v29 }
 0x435   : > { %13947 = vst [vmem:[#allocation175_spill] sm:$0xff] %v10839_v28  ;;  %v6355_v61 = vcombine.high %v10835_v60, %v10839_v28  ;;  %v5267_v38 = vcombine.high %v4874_v5, %v4878_v21  ;;  %4441 = vbcast.lane.b32.xlu1 %v4435_v16, 264  ;;  %v4747_v14 = vsel %vm4704_vm1, %v4618_v7, %v13951_v3  ;;  %v14255_v28 = vld [vmem:[#allocation280_spill] sm:$0xff] }
 0x436   : > { %4437 = vbcast.lane.b32.xlu0 %v4435_v16, 256  ;;  %v10863_v32 = vsel %vm4704_vm1, %v4625_v58, %v13954_v53  ;;  %v4876_v16 = vsel %vm4833_vm2, %v4747_v14, %v4108_v46  ;;  %v5266_v39 = vcombine.low %v4874_v5, %v4878_v21  ;;  %v13957_v58 = vld [vmem:[#allocation331_spill] sm:$0xff]  ;;  %v5298_v46 = vcombine.low %v10758_v30, %v10746_v36  ;;  %v13958_v5 = vld [vmem:[#allocation80_spill] sm:$0xff] }
 0x437   : > { %v4134_v44 = vpop.permute.xlu1 %4133  ;;  %v4130_v7 = vpop.permute.xlu0 %4129  ;;  %v4753_v19 = vsel %vm4704_vm1, %v4624_v31, %v13957_v58  ;;  %v1629_v21 = vmul.f32 %v1613_v20, %v13958_v5  ;;  %v1630_v3 = vmul.f32 %v1614_v35, %v13959_v4  ;;  %v6369_v14 = vrot.slane %v6355_v61, %v10078_v8 }
 0x438   : > { %v10870_v0 = vsel %vm4833_vm2, %v4752_v33, %v4134_v44  ;;  %v4880_v9 = vsel %vm4833_vm2, %v4751_v17, %v4130_v7  ;;  %v13960_v44 = vld [vmem:[#allocation334_spill] sm:$0xff]  ;;  %v13961_v7 = vld [vmem:[#allocation335_spill] sm:$0xff]  ;;  %v5274_v20 = vrot.slane %v5266_v39, %v10078_v8  ;;  %v5281_v35 = vrot.slane %v5267_v38, %v10078_v8 }
 0x439   : > { %13956 = vst [vmem:[#allocation176_spill] sm:$0xff] %v10870_v0  ;;  %v6371_v50 = vcombine.high %v10866_v29, %v10870_v0  ;;  %v5282_v13 = vcombine.low %v4876_v16, %v4880_v9  ;;  %v5283_v55 = vcombine.high %v4876_v16, %v4880_v9  ;;  %4452 = vbcast.lane.b32.xlu1 %v4446_v37, 264  ;;  %v14256_v29 = vld [vmem:[#allocation156_spill] sm:$0xff]  ;;  %v14262_v0 = vld [vmem:[#allocation158_spill] sm:$0xff] }
 0x43a   : > { %4448 = vbcast.lane.b32.xlu0 %v4446_v37, 256  ;;  %v4758_v31 = vsel %vm4704_vm1, %v4629_v18, %v13960_v44  ;;  %v4757_v37 = vsel %vm4704_vm1, %v4628_v10, %v13961_v7  ;;  %v4468_v9 = vrot.slane %v10620_v26, %v8572_v45  ;;  %v13962_v10 = vcombine.low %v10740_v47, %v10743_v42 }
 0x43b   : > { %v6385_v25 = vrot.slane %v6371_v50, %v10078_v8  ;;  %v5290_v33 = vrot.slane %v5282_v13, %v10078_v8  ;;  %v5297_v43 = vrot.slane %v5283_v55, %v10078_v8  ;;  %v4145_v17 = vpop.permute.xlu1 %4144  ;;  %v4141_v53 = vpop.permute.xlu0 %4140  ;;  %v4479_v50 = vrot.slane %v10620_v26, %v8583_v56 }
 0x43c   : > { %v10901_v39 = vrot.slane %v13962_v10, %v10081_v40  ;;  %v10904_v38 = vrot.slane %v5298_v46, %v10081_v40  ;;  %v13965_v5 = vcombine.high %v10758_v30, %v10746_v36  ;;  %v13967_v36 = vcombine.high %v10740_v47, %v10743_v42  ;;  %v13988_v42 = vld [vmem:[#allocation93_spill] sm:$0xff] }
 0x43d   : > { %v6434_v16 = vcombine.low %v6369_v14, %v6385_v25  ;;  %v6435_v61 = vcombine.high %v6369_v14, %v6385_v25  ;;  %4463 = vbcast.lane.b32.xlu1 %v4457_v12, 264  ;;  %v5330_v13 = vcombine.low %v5274_v20, %v5290_v33  ;;  %v5331_v55 = vcombine.high %v5274_v20, %v5290_v33 }
 0x43e   : > { %v5346_v58 = vcombine.low %v5281_v35, %v5297_v43  ;;  %v5347_v18 = vcombine.high %v5281_v35, %v5297_v43  ;;  %4459 = vbcast.lane.b32.xlu0 %v4457_v12, 256  ;;  %13963 = vst [vmem:[#allocation43_spill] sm:$0xff] %v10901_v39  ;;  %13964 = vst [vmem:[#allocation177_spill] sm:$0xff] %v10904_v38  ;;  %v10910_v4 = vrot.slane %v13965_v5, %v10081_v40  ;;  %v13987_v35 = vld [vmem:[#allocation218_spill] sm:$0xff] }
 0x43f   : > { %v4156_v26 = vpop.permute.xlu1 %4155  ;;  %v4152_v14 = vpop.permute.xlu0 %4151  ;;  %v10912_v25 = vcombine.low %v1629_v21, %v1630_v3  ;;  %v10915_v12 = vrot.slane %v5330_v13, %v10081_v40  ;;  %v10918_v33 = vrot.slane %v5331_v55, %v10081_v40  ;;  %v10930_v30 = vrot.slane %v13967_v36, %v10081_v40  ;;  %v13975_v36 = vld [vmem:[#allocation332_spill] sm:$0xff] }
 0x440   : > { %v10921_v43 = vrot.slane %v5346_v58, %v10081_v40  ;;  %v10924_v46 = vrot.slane %v5347_v18, %v10081_v40  ;;  %v13969_v21 = vcombine.low %v10761_v2, %v10749_v6  ;;  %v13970_v44 = vcombine.high %v10761_v2, %v10749_v6  ;;  %v13986_v55 = vld [vmem:[#allocation92_spill] sm:$0xff] }
 0x441   : > { %13966 = vst [vmem:[#allocation44_spill] sm:$0xff] %v10915_v12  ;;  %13968 = vst [vmem:[#allocation178_spill] sm:$0xff] %v10930_v30  ;;  %v10945_v20 = vrot.slane %v6434_v16, %v10081_v40  ;;  %4474 = vbcast.lane.b32.xlu1 %v4468_v9, 264  ;;  %v10948_v47 = vrot.slane %v6435_v61, %v10081_v40  ;;  %v10966_v58 = vsel %vm4833_vm2, %v10863_v32, %v4145_v17  ;;  %v13985_v61 = vld [vmem:[#allocation217_spill] sm:$0xff]  ;;  %v13998_v30 = vld [vmem:[#allocation98_spill] sm:$0xff] }
 0x442   : > { %v10936_v3 = vrot.slane %v13969_v21, %v10081_v40  ;;  %v10942_v7 = vrot.slane %v13970_v44, %v10081_v40  ;;  %4470 = vbcast.lane.b32.xlu0 %v4468_v9, 256  ;;  %13973 = vst [vmem:[#allocation46_spill] sm:$0xff] %v10966_v58  ;;  %v4882_v18 = vsel %vm4833_vm2, %v4753_v19, %v4141_v53 }
 0x443   : > { %13971 = vst [vmem:[#allocation45_spill] sm:$0xff] %v10945_v20  ;;  %13972 = vst [vmem:[#allocation179_spill] sm:$0xff] %v10948_v47  ;;  %v4167_v6 = vpop.permute.xlu1 %4166  ;;  %v4163_v2 = vpop.permute.xlu0 %4162  ;;  %v4756_v21 = vsel %vm4704_vm1, %v10806_v34, %v13975_v36  ;;  %v4490_v32 = vrot.slane %v10912_v25, %v8415_v22  ;;  %v4635_v16 = vsel %vm4575_vm0, %v13986_v55, %v13985_v61  ;;  %v13995_v61 = vld [vmem:[#allocation222_spill] sm:$0xff]  ;;  %v13996_v47 = vld [vmem:[#allocation97_spill] sm:$0xff] }
 0x444   : > { %v10970_v10 = vsel %vm4833_vm2, %v4758_v31, %v4167_v6  ;;  %v4886_v5 = vsel %vm4833_vm2, %v4757_v37, %v4163_v2  ;;  %v13976_v31 = vld [vmem:[#allocation333_spill] sm:$0xff]  ;;  %v13977_v6 = vld [vmem:[#allocation336_spill] sm:$0xff]  ;;  %v10998_v36 = vsel %vm4833_vm2, %v4756_v21, %v4156_v26  ;;  %v14000_v20 = vld [vmem:[#allocation339_spill] sm:$0xff] }
 0x445   : > { %13974 = vst [vmem:[#allocation180_spill] sm:$0xff] %v10970_v10  ;;  %v6459_v44 = vcombine.high %v10966_v58, %v10970_v10  ;;  %v5371_v13 = vcombine.high %v4882_v18, %v4886_v5  ;;  %4485 = vbcast.lane.b32.xlu1 %v4479_v50, 264  ;;  %v4755_v37 = vsel %vm4704_vm1, %v10811_v51, %v13976_v31  ;;  %13979 = vst [vmem:[#allocation47_spill] sm:$0xff] %v10998_v36  ;;  %v14002_v58 = vld [vmem:[#allocation343_spill] sm:$0xff] }
 0x446   : > { %4481 = vbcast.lane.b32.xlu0 %v4479_v50, 256  ;;  %v4760_v22 = vsel %vm4704_vm1, %v10824_v63, %v13977_v6  ;;  %v13978_v50 = vld [vmem:[#allocation337_spill] sm:$0xff]  ;;  %v4884_v19 = vsel %vm4833_vm2, %v4755_v37, %v4152_v14  ;;  %v5370_v34 = vcombine.low %v4882_v18, %v4886_v5  ;;  %v13994_v37 = vld [vmem:[#allocation96_spill] sm:$0xff] }
 0x447   : > { %v4759_v2 = vsel %vm4704_vm1, %v10845_v15, %v13978_v50  ;;  %v4178_v17 = vpop.permute.xlu1 %4177  ;;  %v4174_v53 = vpop.permute.xlu0 %4173  ;;  %v4501_v15 = vrot.slane %v10912_v25, %v8490_v41  ;;  %v11010_v26 = vrot.slane %v6459_v44, %v10078_v8  ;;  %v11025_v41 = vrot.slane %v5371_v13, %v10078_v8  ;;  %v13989_v44 = vld [vmem:[#allocation219_spill] sm:$0xff] }
 0x448   : > { %v11002_v9 = vsel %vm4833_vm2, %v4760_v22, %v4178_v17  ;;  %v4888_v51 = vsel %vm4833_vm2, %v4759_v2, %v4174_v53  ;;  %v4512_v53 = vrot.slane %v10912_v25, %v8506_v54  ;;  %v13981_v2 = vld [vmem:[#allocation215_spill] sm:$0xff] }
 0x449   : > { %13980 = vst [vmem:[#allocation181_spill] sm:$0xff] %v11002_v9  ;;  %v6475_v63 = vcombine.high %v10998_v36, %v11002_v9  ;;  %v5386_v31 = vcombine.low %v4884_v19, %v4888_v51  ;;  %v5387_v6 = vcombine.high %v4884_v19, %v4888_v51  ;;  %4496 = vbcast.lane.b32.xlu1 %v4490_v32, 264  ;;  %v13982_v51 = vld [vmem:[#allocation90_spill] sm:$0xff]  ;;  %v14020_v36 = vld [vmem:[#allocation345_spill] sm:$0xff] }
 0x44a   : > { %4492 = vbcast.lane.b32.xlu0 %v4490_v32, 256  ;;  %v11022_v19 = vrot.slane %v5370_v34, %v10078_v8  ;;  %v4634_v32 = vsel %vm4575_vm0, %v13988_v42, %v13987_v35  ;;  %v13992_v34 = vld [vmem:[#allocation95_spill] sm:$0xff]  ;;  %v4638_v42 = vsel %vm4575_vm0, %v13996_v47, %v13995_v61  ;;  %v14005_v61 = vld [vmem:[#allocation224_spill] sm:$0xff]  ;;  %v14029_v9 = vld [vmem:[#allocation350_spill] sm:$0xff] }
 0x44b   : > { %v11013_v14 = vrot.slane %v6475_v63, %v10078_v8  ;;  %v11016_v18 = vrot.slane %v5386_v31, %v10078_v8  ;;  %v11019_v5 = vrot.slane %v5387_v6, %v10078_v8  ;;  %v4189_v21 = vpop.permute.xlu1 %4188  ;;  %v4185_v17 = vpop.permute.xlu0 %4184  ;;  %v4633_v63 = vsel %vm4575_vm0, %v13982_v51, %v13981_v2  ;;  %v13983_v31 = vld [vmem:[#allocation216_spill] sm:$0xff]  ;;  %v13984_v6 = vld [vmem:[#allocation91_spill] sm:$0xff] }
 0x44c   : > { %v4632_v54 = vsel %vm4575_vm0, %v13984_v6, %v13983_v31  ;;  %v4523_v2 = vrot.slane %v10912_v25, %v8511_v59  ;;  %v13991_v51 = vld [vmem:[#allocation220_spill] sm:$0xff]  ;;  %v13993_v6 = vld [vmem:[#allocation221_spill] sm:$0xff]  ;;  %v13997_v35 = vld [vmem:[#allocation223_spill] sm:$0xff] }
 0x44d   : > { %4507 = vbcast.lane.b32.xlu1 %v4501_v15, 264  ;;  %v4636_v31 = vsel %vm4575_vm0, %v13992_v34, %v13991_v51  ;;  %v4639_v55 = vsel %vm4575_vm0, %v13994_v37, %v13993_v6  ;;  %v4761_v39 = vsel %vm4704_vm1, %v4632_v54, %v14000_v20  ;;  %v14001_v34 = vld [vmem:[#allocation342_spill] sm:$0xff]  ;;  %v14006_v20 = vld [vmem:[#allocation99_spill] sm:$0xff] }
 0x44e   : > { %4503 = vbcast.lane.b32.xlu0 %v4501_v15, 256  ;;  %v13990_v15 = vld [vmem:[#allocation94_spill] sm:$0xff]  ;;  %v4765_v37 = vsel %vm4704_vm1, %v4636_v31, %v14002_v58  ;;  %v4640_v54 = vsel %vm4575_vm0, %v14006_v20, %v14005_v61  ;;  %v14007_v31 = vld [vmem:[#allocation225_spill] sm:$0xff] }
 0x44f   : > { %v4200_v22 = vpop.permute.xlu1 %4199  ;;  %v4196_v50 = vpop.permute.xlu0 %4195  ;;  %v4637_v13 = vsel %vm4575_vm0, %v13990_v15, %v13989_v44  ;;  %v4641_v44 = vsel %vm4575_vm0, %v13998_v30, %v13997_v35  ;;  %v13999_v15 = vld [vmem:[#allocation338_spill] sm:$0xff]  ;;  %v4890_v30 = vsel %vm4833_vm2, %v4761_v39, %v4185_v17  ;;  %v14008_v35 = vld [vmem:[#allocation100_spill] sm:$0xff]  ;;  %v14015_v20 = vld [vmem:[#allocation229_spill] sm:$0xff] }
 0x450   : > { %v4762_v59 = vsel %vm4704_vm1, %v4633_v63, %v13999_v15  ;;  %v4766_v51 = vsel %vm4704_vm1, %v4637_v13, %v14001_v34  ;;  %v4643_v39 = vsel %vm4575_vm0, %v14008_v35, %v14007_v31  ;;  %v14009_v17 = vld [vmem:[#allocation226_spill] sm:$0xff]  ;;  %v14010_v15 = vld [vmem:[#allocation101_spill] sm:$0xff]  ;;  %v14017_v31 = vld [vmem:[#allocation340_spill] sm:$0xff] }
 0x451   : > { %4518 = vbcast.lane.b32.xlu1 %v4512_v53, 264  ;;  %v11077_v47 = vsel %vm4833_vm2, %v4762_v59, %v4189_v21  ;;  %v4534_v21 = vrot.slane %v10912_v25, %v8522_v1  ;;  %v14011_v59 = vld [vmem:[#allocation227_spill] sm:$0xff]  ;;  %v14012_v34 = vld [vmem:[#allocation102_spill] sm:$0xff]  ;;  %v14016_v1 = vld [vmem:[#allocation104_spill] sm:$0xff]  ;;  %v4764_v35 = vsel %vm4704_vm1, %v4635_v16, %v14017_v31 }
 0x452   : > { %4514 = vbcast.lane.b32.xlu0 %v4512_v53, 256  ;;  %14003 = vst [vmem:[#allocation48_spill] sm:$0xff] %v11077_v47 }
 0x453   : > { %v4211_v6 = vpop.permute.xlu1 %4210  ;;  %v4207_v10 = vpop.permute.xlu0 %4206 }
 0x454   : > { %v11081_v53 = vsel %vm4833_vm2, %v4766_v51, %v4211_v6  ;;  %v4894_v63 = vsel %vm4833_vm2, %v4765_v37, %v4207_v10  ;;  %v4642_v10 = vsel %vm4575_vm0, %v14010_v15, %v14009_v17  ;;  %v4645_v51 = vsel %vm4575_vm0, %v14012_v34, %v14011_v59  ;;  %v14013_v37 = vld [vmem:[#allocation228_spill] sm:$0xff]  ;;  %v14014_v6 = vld [vmem:[#allocation103_spill] sm:$0xff] }
 0x455   : > { %14004 = vst [vmem:[#allocation182_spill] sm:$0xff] %v11081_v53  ;;  %v6491_v13 = vcombine.high %v11077_v47, %v11081_v53  ;;  %v5403_v58 = vcombine.high %v4890_v30, %v4894_v63  ;;  %4529 = vbcast.lane.b32.xlu1 %v4523_v2, 264  ;;  %v11103_v61 = vsel %vm4575_vm0, %v14014_v6, %v14013_v37  ;;  %v14018_v53 = vld [vmem:[#allocation341_spill] sm:$0xff]  ;;  %v14019_v15 = vld [vmem:[#allocation344_spill] sm:$0xff] }
 0x456   : > { %4525 = vbcast.lane.b32.xlu0 %v4523_v2, 256  ;;  %v11108_v47 = vsel %vm4575_vm0, %v14016_v1, %v14015_v20  ;;  %v4763_v17 = vsel %vm4704_vm1, %v4634_v32, %v14018_v53  ;;  %v4768_v59 = vsel %vm4704_vm1, %v4639_v55, %v14019_v15  ;;  %v4767_v37 = vsel %vm4704_vm1, %v4638_v42, %v14020_v36  ;;  %v14023_v36 = vld [vmem:[#allocation230_spill] sm:$0xff]  ;;  %v14024_v42 = vld [vmem:[#allocation105_spill] sm:$0xff] }
 0x457   : > { %v4222_v34 = vpop.permute.xlu1 %4221  ;;  %v11119_v2 = vsel %vm4833_vm2, %v4764_v35, %v4200_v22  ;;  %v5402_v6 = vcombine.low %v4890_v30, %v4894_v63  ;;  %v4892_v16 = vsel %vm4833_vm2, %v4763_v17, %v4196_v50  ;;  %v4545_v55 = vrot.slane %v10912_v25, %v8549_v27  ;;  %v14025_v30 = vld [vmem:[#allocation346_spill] sm:$0xff]  ;;  %v14026_v50 = vld [vmem:[#allocation347_spill] sm:$0xff] }
 0x458   : > { %14021 = vst [vmem:[#allocation49_spill] sm:$0xff] %v11119_v2  ;;  %v11122_v20 = vsel %vm4833_vm2, %v4768_v59, %v4222_v34  ;;  %v4218_v1 = vpop.permute.xlu0 %4217  ;;  %v11133_v22 = vsel %vm4575_vm0, %v14024_v42, %v14023_v36  ;;  %v4770_v63 = vsel %vm4704_vm1, %v4641_v44, %v14025_v30  ;;  %v4769_v17 = vsel %vm4704_vm1, %v4640_v54, %v14026_v50 }
 0x459   : > { %14022 = vst [vmem:[#allocation183_spill] sm:$0xff] %v11122_v20  ;;  %v6507_v32 = vcombine.high %v11119_v2, %v11122_v20  ;;  %v4896_v53 = vsel %vm4833_vm2, %v4767_v37, %v4218_v1  ;;  %4540 = vbcast.lane.b32.xlu1 %v4534_v21, 264  ;;  %v5434_v15 = vcombine.low %v11022_v19, %v11016_v18 }
 0x45a   : > { %v5418_v31 = vcombine.low %v4892_v16, %v4896_v53  ;;  %v5419_v35 = vcombine.high %v4892_v16, %v4896_v53  ;;  %4536 = vbcast.lane.b32.xlu0 %v4534_v21, 256  ;;  %v6505_v59 = vrot.slane %v6491_v13, %v10078_v8  ;;  %v5410_v37 = vrot.slane %v5402_v6, %v10078_v8  ;;  %v14027_v53 = vld [vmem:[#allocation348_spill] sm:$0xff] }
 0x45b   : > { %v6521_v27 = vrot.slane %v6507_v32, %v10078_v8  ;;  %v4233_v34 = vpop.permute.xlu1 %4232  ;;  %v5417_v1 = vrot.slane %v5403_v58, %v10078_v8  ;;  %v4772_v54 = vsel %vm4704_vm1, %v4643_v39, %v14027_v53  ;;  %v4556_v13 = vrot.slane %v10912_v25, %v8572_v45  ;;  %v14028_v58 = vld [vmem:[#allocation349_spill] sm:$0xff] }
 0x45c   : > { %v5426_v44 = vrot.slane %v5418_v31, %v10078_v8  ;;  %v5433_v16 = vrot.slane %v5419_v35, %v10078_v8  ;;  %v4229_v21 = vpop.permute.xlu0 %4228  ;;  %v4771_v31 = vsel %vm4704_vm1, %v4642_v10, %v14028_v58  ;;  %v4774_v35 = vsel %vm4704_vm1, %v4645_v51, %v14029_v9 }
 0x45d   : > { %v6570_v36 = vcombine.low %v6505_v59, %v6521_v27  ;;  %v6571_v42 = vcombine.high %v6505_v59, %v6521_v27  ;;  %4551 = vbcast.lane.b32.xlu1 %v4545_v55, 264  ;;  %v11156_v2 = vrot.slane %v5434_v15, %v10081_v40  ;;  %v14031_v39 = vcombine.high %v11022_v19, %v11016_v18 }
 0x45e   : > { %v5466_v32 = vcombine.low %v5410_v37, %v5426_v44  ;;  %v5467_v30 = vcombine.high %v5410_v37, %v5426_v44  ;;  %v5482_v50 = vcombine.low %v5417_v1, %v5433_v16  ;;  %v5483_v6 = vcombine.high %v5417_v1, %v5433_v16  ;;  %4547 = vbcast.lane.b32.xlu0 %v4545_v55, 256 }
 0x45f   : > { %14030 = vst [vmem:[#allocation50_spill] sm:$0xff] %v11156_v2  ;;  %v11162_v59 = vrot.slane %v14031_v39, %v10081_v40  ;;  %v4244_v45 = vpop.permute.xlu1 %4243  ;;  %v14035_v18 = vcombine.low %v11025_v41, %v11019_v5  ;;  %v14036_v15 = vcombine.high %v11025_v41, %v11019_v5  ;;  %v11189_v1 = vrot.slane %v6570_v36, %v10081_v40  ;;  %v14055_v36 = vld [vmem:[#allocation233_spill] sm:$0xff]  ;;  %v14056_v5 = vld [vmem:[#allocation108_spill] sm:$0xff] }
 0x460   : > { %v11165_v27 = vrot.slane %v5466_v32, %v10081_v40  ;;  %v11168_v55 = vrot.slane %v5467_v30, %v10081_v40  ;;  %v11171_v10 = vrot.slane %v5482_v50, %v10081_v40  ;;  %v11174_v9 = vrot.slane %v5483_v6, %v10081_v40  ;;  %v4240_v51 = vpop.permute.xlu0 %4239 }
 0x461   : > { %v11180_v19 = vrot.slane %v14035_v18, %v10081_v40  ;;  %v11186_v37 = vrot.slane %v14036_v15, %v10081_v40  ;;  %14038 = vst [vmem:[#allocation294_spill] sm:$0xff] %v11189_v1  ;;  %4562 = vbcast.lane.b32.xlu1 %v4556_v13, 264  ;;  %v4567_v44 = vrot.slane %v10912_v25, %v8583_v56  ;;  %v14053_v25 = vld [vmem:[#allocation232_spill] sm:$0xff]  ;;  %v14054_v56 = vld [vmem:[#allocation107_spill] sm:$0xff] }
 0x462   : > { %14032 = vst [vmem:[#allocation184_spill] sm:$0xff] %v11165_v27  ;;  %14033 = vst [vmem:[#allocation51_spill] sm:$0xff] %v11171_v10  ;;  %v11194_v16 = vrot.slane %v6571_v42, %v10081_v40  ;;  %4558 = vbcast.lane.b32.xlu0 %v4556_v13, 256  ;;  %v14040_v13 = vld [vmem:[#allocation351_spill] sm:$0xff]  ;;  %v14041_v50 = vcombine.low %v11010_v26, %v11013_v14  ;;  %v11220_v58 = vsel %vm4833_vm2, %v4770_v63, %v4233_v34  ;;  %v14047_v63 = vld [vmem:[#allocation352_spill] sm:$0xff] }
 0x463   : > { %14034 = vst [vmem:[#allocation292_spill] sm:$0xff] %v11174_v9  ;;  %14037 = vst [vmem:[#allocation293_spill] sm:$0xff] %v11186_v37  ;;  %v4255_v41 = vpop.permute.xlu1 %4254  ;;  %v4773_v30 = vsel %vm4704_vm1, %v11103_v61, %v14040_v13  ;;  %v14045_v15 = vcombine.high %v11010_v26, %v11013_v14  ;;  %v4898_v61 = vsel %vm4833_vm2, %v4769_v17, %v4229_v21  ;;  %v14048_v14 = vld [vmem:[#allocation353_spill] sm:$0xff]  ;;  %v14269_v10 = vld [vmem:[#allocation398_spill] sm:$0xff] }
 0x464   : > { %14039 = vst [vmem:[#allocation295_spill] sm:$0xff] %v11194_v16  ;;  %v11217_v6 = vrot.slane %v14041_v50, %v10081_v40  ;;  %14043 = vst [vmem:[#allocation297_spill] sm:$0xff] %v11220_v58  ;;  %v11223_v39 = vsel %vm4833_vm2, %v4774_v35, %v4255_v41  ;;  %v4251_v18 = vpop.permute.xlu0 %4250  ;;  %v4776_v34 = vsel %vm4704_vm1, %v11108_v47, %v14047_v63  ;;  %v14052_v47 = vld [vmem:[#allocation106_spill] sm:$0xff]  ;;  %v14061_v16 = vld [vmem:[#allocation236_spill] sm:$0xff] }
 0x465   : > { %14044 = vst [vmem:[#allocation298_spill] sm:$0xff] %v11223_v39  ;;  %v11229_v53 = vrot.slane %v14045_v15, %v10081_v40  ;;  %v6595_v13 = vcombine.high %v11220_v58, %v11223_v39  ;;  %v4902_v50 = vsel %vm4833_vm2, %v4773_v30, %v4251_v18  ;;  %4573 = vbcast.lane.b32.xlu1 %v4567_v44, 264 }
 0x466   : > { %14042 = vst [vmem:[#allocation296_spill] sm:$0xff] %v11217_v6  ;;  %v5507_v35 = vcombine.high %v4898_v61, %v4902_v50  ;;  %4569 = vbcast.lane.b32.xlu0 %v4567_v44, 256  ;;  %v4775_v17 = vsel %vm4704_vm1, %v11133_v22, %v14048_v14  ;;  %v5227_v30 = vcombine.high %v10630_v23, %v10640_v49  ;;  %v14079_v49 = vld [vmem:[#allocation356_spill] sm:$0xff] }
 0x467   : > { %14046 = vst [vmem:[#allocation299_spill] sm:$0xff] %v11229_v53  ;;  %v4266_v21 = vpop.permute.xlu1 %4265  ;;  %v11252_v44 = vsel %vm4833_vm2, %v4772_v54, %v4244_v45  ;;  %v5506_v15 = vcombine.low %v4898_v61, %v4902_v50  ;;  %v5091_v22 = vcombine.high %v10345_v11, %v10356_v52  ;;  %v4900_v14 = vsel %vm4833_vm2, %v4771_v31, %v4240_v51  ;;  %v14062_v53 = vld [vmem:[#allocation111_spill] sm:$0xff] }
 0x468   : > { %14049 = vst [vmem:[#allocation300_spill] sm:$0xff] %v11252_v44  ;;  %v11255_v63 = vsel %vm4833_vm2, %v4776_v34, %v4266_v21  ;;  %v4262_v26 = vpop.permute.xlu0 %4261  ;;  %v11266_v61 = vrot.slane %v6595_v13, %v10078_v8  ;;  %v5363_v31 = vcombine.high %v10904_v38, %v10915_v12  ;;  %v5499_v51 = vcombine.high %v11156_v2, %v11165_v27  ;;  %v14066_v27 = vld [vmem:[#allocation359_spill] sm:$0xff]  ;;  %v14085_v38 = vld [vmem:[#allocation242_spill] sm:$0xff] }
 0x469   : > { %14050 = vst [vmem:[#allocation303_spill] sm:$0xff] %v11255_v63  ;;  %v6611_v41 = vcombine.high %v11252_v44, %v11255_v63  ;;  %v4904_v18 = vsel %vm4833_vm2, %v4775_v17, %v4262_v26  ;;  %7148 = vrot.lane.b32.xlu1 %v5227_v30, %s8239_s18  ;;  %v11276_v26 = vrot.slane %v5506_v15, %v10078_v8  ;;  %v14058_v30 = vld [vmem:[#allocation110_spill] sm:$0xff]  ;;  %v14199_v63 = vld [vmem:[#allocation380_spill] sm:$0xff] }
 0x46a   : > { %v5522_v54 = vcombine.low %v4900_v14, %v4904_v18  ;;  %v5523_v45 = vcombine.high %v4900_v14, %v4904_v18  ;;  %7146 = vrot.lane.b32.xlu0 %v5091_v22, %s8239_s18  ;;  %v11279_v17 = vrot.slane %v5507_v35, %v10078_v8  ;;  %v4651_v32 = vsel %vm4575_vm0, %v14056_v5, %v14055_v36  ;;  %v14057_v18 = vld [vmem:[#allocation235_spill] sm:$0xff]  ;;  %v14059_v35 = vld [vmem:[#allocation234_spill] sm:$0xff] }
 0x46b   : > { %v11269_v50 = vrot.slane %v6611_v41, %v10078_v8  ;;  %v4277_v34 = vpop.permute.xlu1 %4276  ;;  %v4653_v22 = vsel %vm4575_vm0, %v14058_v30, %v14057_v18  ;;  %v14065_v5 = vld [vmem:[#allocation355_spill] sm:$0xff] }
 0x46c   : > { %v11282_v21 = vrot.slane %v5522_v54, %v10078_v8  ;;  %v11285_v13 = vrot.slane %v5523_v45, %v10078_v8  ;;  %v4273_v41 = vpop.permute.xlu0 %4272  ;;  %v14051_v45 = vld [vmem:[#allocation231_spill] sm:$0xff] }
 0x46d   : > { %7152 = vrot.lane.b32.xlu1 %v5499_v51, %s8239_s18  ;;  %v4649_v42 = vsel %vm4575_vm0, %v14052_v47, %v14051_v45  ;;  %v4648_v51 = vsel %vm4575_vm0, %v14054_v56, %v14053_v25  ;;  %v4652_v47 = vsel %vm4575_vm0, %v14062_v53, %v14061_v16  ;;  %v14063_v45 = vld [vmem:[#allocation354_spill] sm:$0xff]  ;;  %v14069_v53 = vld [vmem:[#allocation237_spill] sm:$0xff] }
 0x46e   : > { %7150 = vrot.lane.b32.xlu0 %v5363_v31, %s8239_s18  ;;  %v14060_v31 = vld [vmem:[#allocation109_spill] sm:$0xff]  ;;  %v4778_v1 = vsel %vm4704_vm1, %v4649_v42, %v14063_v45  ;;  %v14064_v56 = vld [vmem:[#allocation358_spill] sm:$0xff]  ;;  %v4777_v36 = vsel %vm4704_vm1, %v4648_v51, %v14065_v5  ;;  %v4781_v30 = vsel %vm4704_vm1, %v4652_v47, %v14066_v27  ;;  %v14076_v5 = vld [vmem:[#allocation115_spill] sm:$0xff] }
 0x46f   : > { %v4288_v14 = vpop.permute.xlu1 %4287  ;;  %v4650_v15 = vsel %vm4575_vm0, %v14060_v31, %v14059_v35  ;;  %v4782_v25 = vsel %vm4704_vm1, %v4653_v22, %v14064_v56  ;;  %v11326_v18 = vsel %vm4833_vm2, %v4778_v1, %v4277_v34  ;;  %v14070_v31 = vld [vmem:[#allocation112_spill] sm:$0xff]  ;;  %v4906_v22 = vsel %vm4833_vm2, %v4777_v36, %v4273_v41  ;;  %v14071_v56 = vld [vmem:[#allocation238_spill] sm:$0xff]  ;;  %v14072_v27 = vld [vmem:[#allocation113_spill] sm:$0xff] }
 0x470   : > { %v4284_v54 = vpop.permute.xlu0 %4283  ;;  %14067 = vst [vmem:[#allocation40_spill] sm:$0xff] %v11326_v18  ;;  %v4655_v42 = vsel %vm4575_vm0, %v14070_v31, %v14069_v53  ;;  %v4654_v1 = vsel %vm4575_vm0, %v14072_v27, %v14071_v56  ;;  %v14073_v34 = vld [vmem:[#allocation239_spill] sm:$0xff]  ;;  %v14074_v47 = vld [vmem:[#allocation114_spill] sm:$0xff]  ;;  %v14077_v31 = vld [vmem:[#allocation241_spill] sm:$0xff] }
 0x471   : > { %v14078_v41 = vld [vmem:[#allocation116_spill] sm:$0xff] }
 0x472   : > { %v11350_v36 = vsel %vm4575_vm0, %v14078_v41, %v14077_v31  ;;  %v14081_v27 = vld [vmem:[#allocation360_spill] sm:$0xff] }
 0x473   : > { %v4299_v6 = vpop.permute.xlu1 %4298  ;;  %v4784_v23 = vsel %vm4704_vm1, %v4655_v42, %v14081_v27 }
 0x474   : > { %v11329_v35 = vsel %vm4833_vm2, %v4782_v25, %v4299_v6  ;;  %v4295_v16 = vpop.permute.xlu0 %4294  ;;  %v4657_v6 = vsel %vm4575_vm0, %v14074_v47, %v14073_v34  ;;  %v14075_v25 = vld [vmem:[#allocation240_spill] sm:$0xff]  ;;  %v14082_v47 = vld [vmem:[#allocation361_spill] sm:$0xff] }
 0x475   : > { %14068 = vst [vmem:[#allocation41_spill] sm:$0xff] %v11329_v35  ;;  %v6627_v45 = vcombine.high %v11326_v18, %v11329_v35  ;;  %v4910_v51 = vsel %vm4833_vm2, %v4781_v30, %v4295_v16  ;;  %v4656_v2 = vsel %vm4575_vm0, %v14076_v5, %v14075_v25  ;;  %v4780_v30 = vsel %vm4704_vm1, %v4651_v32, %v14079_v49  ;;  %v14080_v16 = vld [vmem:[#allocation357_spill] sm:$0xff]  ;;  %v14195_v35 = vld [vmem:[#allocation142_spill] sm:$0xff] }
 0x476   : > { %v5539_v53 = vcombine.high %v4906_v22, %v4910_v51  ;;  %v4779_v56 = vsel %vm4704_vm1, %v4650_v15, %v14080_v16  ;;  %v4783_v12 = vsel %vm4704_vm1, %v4654_v1, %v14082_v47  ;;  %v11361_v25 = vsel %vm4833_vm2, %v4780_v30, %v4288_v14  ;;  %v14086_v49 = vld [vmem:[#allocation117_spill] sm:$0xff]  ;;  %v14087_v16 = vld [vmem:[#allocation243_spill] sm:$0xff]  ;;  %v14088_v14 = vld [vmem:[#allocation118_spill] sm:$0xff] }
 0x477   : > { %v4310_v34 = vpop.permute.xlu1 %4309  ;;  %14083 = vst [vmem:[#allocation301_spill] sm:$0xff] %v11361_v25  ;;  %v5538_v5 = vcombine.low %v4906_v22, %v4910_v51  ;;  %v11369_v32 = vsel %vm4575_vm0, %v14086_v49, %v14085_v38  ;;  %v4908_v15 = vsel %vm4833_vm2, %v4779_v56, %v4284_v54  ;;  %v4661_v22 = vsel %vm4575_vm0, %v14088_v14, %v14087_v16  ;;  %v14089_v51 = vld [vmem:[#allocation244_spill] sm:$0xff]  ;;  %v14091_v47 = vld [vmem:[#allocation245_spill] sm:$0xff] }
 0x478   : > { %v11364_v31 = vsel %vm4833_vm2, %v4784_v23, %v4310_v34  ;;  %v4306_v41 = vpop.permute.xlu0 %4305  ;;  %v14090_v23 = vld [vmem:[#allocation119_spill] sm:$0xff]  ;;  %v14092_v38 = vld [vmem:[#allocation120_spill] sm:$0xff]  ;;  %v5570_v54 = vcombine.low %v11276_v26, %v11282_v21  ;;  %v6641_v56 = vrot.slane %v6627_v45, %v10078_v8  ;;  %v5553_v14 = vrot.slane %v5539_v53, %v10078_v8  ;;  %v14193_v18 = vld [vmem:[#allocation141_spill] sm:$0xff] }
 0x479   : > { %14084 = vst [vmem:[#allocation302_spill] sm:$0xff] %v11364_v31  ;;  %v6643_v42 = vcombine.high %v11361_v25, %v11364_v31  ;;  %v4912_v1 = vsel %vm4833_vm2, %v4783_v12, %v4306_v41  ;;  %v4660_v30 = vsel %vm4575_vm0, %v14090_v23, %v14089_v51  ;;  %v4663_v49 = vsel %vm4575_vm0, %v14092_v38, %v14091_v47  ;;  %v14093_v23 = vld [vmem:[#allocation362_spill] sm:$0xff]  ;;  %v14094_v38 = vld [vmem:[#allocation363_spill] sm:$0xff] }
 0x47a   : > { %v5554_v27 = vcombine.low %v4908_v15, %v4912_v1  ;;  %v5555_v34 = vcombine.high %v4908_v15, %v4912_v1  ;;  %v5546_v16 = vrot.slane %v5538_v5, %v10078_v8  ;;  %v4786_v47 = vsel %vm4704_vm1, %v4657_v6, %v14093_v23  ;;  %v14095_v5 = vld [vmem:[#allocation366_spill] sm:$0xff] }
 0x47b   : > { %v6657_v12 = vrot.slane %v6643_v42, %v10078_v8  ;;  %v4321_v41 = vpop.permute.xlu1 %4320  ;;  %v4785_v52 = vsel %vm4704_vm1, %v4656_v2, %v14094_v38  ;;  %v4790_v53 = vsel %vm4704_vm1, %v4661_v22, %v14095_v5  ;;  %v14098_v2 = vcombine.low %v11279_v17, %v11285_v13  ;;  %v14226_v31 = vld [vmem:[#allocation14_spill] sm:$0xff] }
 0x47c   : > { %v5562_v51 = vrot.slane %v5554_v27, %v10078_v8  ;;  %v5569_v15 = vrot.slane %v5555_v34, %v10078_v8  ;;  %v4317_v1 = vpop.permute.xlu0 %4316  ;;  %v11399_v27 = vrot.slane %v5570_v54, %v10081_v40  ;;  %v14097_v34 = vcombine.high %v11276_v26, %v11282_v21 }
 0x47d   : > { %v6706_v11 = vcombine.low %v6641_v56, %v6657_v12  ;;  %v6707_v45 = vcombine.high %v6641_v56, %v6657_v12  ;;  %v11411_v56 = vrot.slane %v14098_v2, %v10081_v40  ;;  %v14107_v2 = vld [vmem:[#allocation367_spill] sm:$0xff] }
 0x47e   : > { %v5602_v20 = vcombine.low %v5546_v16, %v5562_v51  ;;  %v5603_v42 = vcombine.high %v5546_v16, %v5562_v51  ;;  %v5618_v9 = vcombine.low %v5553_v14, %v5569_v15  ;;  %v5619_v37 = vcombine.high %v5553_v14, %v5569_v15  ;;  %14096 = vst [vmem:[#allocation304_spill] sm:$0xff] %v11399_v27 }
 0x47f   : > { %v11405_v6 = vrot.slane %v14097_v34, %v10081_v40  ;;  %v4332_v12 = vpop.permute.xlu1 %4331  ;;  %v14101_v14 = vcombine.low %v11266_v61, %v11269_v50  ;;  %v11438_v23 = vrot.slane %v6706_v11, %v10081_v40  ;;  %v11468_v11 = vsel %vm4833_vm2, %v4786_v47, %v4321_v41 }
 0x480   : > { %v11414_v16 = vrot.slane %v5602_v20, %v10081_v40  ;;  %v11417_v22 = vrot.slane %v5603_v42, %v10081_v40  ;;  %v11420_v54 = vrot.slane %v5618_v9, %v10081_v40  ;;  %v11423_v26 = vrot.slane %v5619_v37, %v10081_v40  ;;  %v4328_v21 = vpop.permute.xlu0 %4327  ;;  %14110 = vst [vmem:[#allocation188_spill] sm:$0xff] %v11468_v11 }
 0x481   : > { %v11429_v51 = vrot.slane %v14101_v14, %v10081_v40  ;;  %v14103_v20 = vcombine.high %v11279_v17, %v11285_v13  ;;  %14105 = vst [vmem:[#allocation53_spill] sm:$0xff] %v11438_v23  ;;  %v11441_v9 = vrot.slane %v6707_v45, %v10081_v40  ;;  %v4789_v14 = vsel %vm4704_vm1, %v4660_v30, %v14107_v2  ;;  %v14126_v23 = vld [vmem:[#allocation252_spill] sm:$0xff] }
 0x482   : > { %14099 = vst [vmem:[#allocation305_spill] sm:$0xff] %v11414_v16  ;;  %14100 = vst [vmem:[#allocation185_spill] sm:$0xff] %v11423_v26  ;;  %v5635_v37 = vcombine.high %v11399_v27, %v11414_v16  ;;  %v4914_v34 = vsel %vm4833_vm2, %v4785_v52, %v4317_v1  ;;  %v14114_v52 = vld [vmem:[#allocation364_spill] sm:$0xff]  ;;  %v14128_v27 = vld [vmem:[#allocation370_spill] sm:$0xff] }
 0x483   : > { %14102 = vst [vmem:[#allocation52_spill] sm:$0xff] %v11429_v51  ;;  %v11435_v15 = vrot.slane %v14103_v20, %v10081_v40  ;;  %14106 = vst [vmem:[#allocation187_spill] sm:$0xff] %v11441_v9  ;;  %v4343_v13 = vpop.permute.xlu1 %4342  ;;  %v14108_v20 = vcombine.high %v11266_v61, %v11269_v50  ;;  %v14112_v50 = vld [vmem:[#allocation246_spill] sm:$0xff]  ;;  %v4788_v1 = vsel %vm4704_vm1, %v11350_v36, %v14114_v52  ;;  %v14127_v51 = vld [vmem:[#allocation127_spill] sm:$0xff] }
 0x484   : > { %v11471_v45 = vsel %vm4833_vm2, %v4790_v53, %v4343_v13  ;;  %7154 = vrot.lane.b32.xlu0 %v5635_v37, %s8239_s18  ;;  %v4339_v5 = vpop.permute.xlu0 %4338  ;;  %v14115_v13 = vld [vmem:[#allocation365_spill] sm:$0xff]  ;;  %v11500_v37 = vsel %vm4833_vm2, %v4788_v1, %v4332_v12  ;;  %v4668_v16 = vsel %vm4575_vm0, %v14127_v51, %v14126_v23 }
 0x485   : > { %14104 = vst [vmem:[#allocation186_spill] sm:$0xff] %v11435_v15  ;;  %v11465_v17 = vrot.slane %v14108_v20, %v10081_v40  ;;  %14111 = vst [vmem:[#allocation55_spill] sm:$0xff] %v11471_v45  ;;  %v6731_v30 = vcombine.high %v11468_v11, %v11471_v45  ;;  %v4918_v2 = vsel %vm4833_vm2, %v4789_v14, %v4339_v5  ;;  %v14113_v20 = vld [vmem:[#allocation121_spill] sm:$0xff]  ;;  %v14116_v14 = vld [vmem:[#allocation368_spill] sm:$0xff] }
 0x486   : > { %v4662_v41 = vsel %vm4575_vm0, %v14113_v20, %v14112_v50  ;;  %v5643_v47 = vcombine.high %v4914_v34, %v4918_v2  ;;  %v4787_v5 = vsel %vm4704_vm1, %v11369_v32, %v14115_v13  ;;  %v4792_v61 = vsel %vm4704_vm1, %v4663_v49, %v14116_v14  ;;  %v14117_v20 = vld [vmem:[#allocation369_spill] sm:$0xff]  ;;  %14118 = vst [vmem:[#allocation189_spill] sm:$0xff] %v11500_v37  ;;  %v14129_v11 = vld [vmem:[#allocation374_spill] sm:$0xff]  ;;  %v14267_v15 = vld [vmem:[#allocation16_spill] sm:$0xff] }
 0x487   : > { %14109 = vst [vmem:[#allocation54_spill] sm:$0xff] %v11465_v17  ;;  %v4354_v42 = vpop.permute.xlu1 %4353  ;;  %v4791_v53 = vsel %vm4704_vm1, %v4662_v41, %v14117_v20  ;;  %v5642_v38 = vcombine.low %v4914_v34, %v4918_v2  ;;  %v4916_v32 = vsel %vm4833_vm2, %v4787_v5, %v4328_v21  ;;  %v11510_v9 = vrot.slane %v6731_v30, %v10078_v8  ;;  %v14125_v30 = vld [vmem:[#allocation123_spill] sm:$0xff] }
 0x488   : > { %v11503_v36 = vsel %vm4833_vm2, %v4792_v61, %v4354_v42  ;;  %v4350_v52 = vpop.permute.xlu0 %4349  ;;  %v11519_v2 = vrot.slane %v5643_v47, %v10078_v8 }
 0x489   : > { %14119 = vst [vmem:[#allocation56_spill] sm:$0xff] %v11503_v36  ;;  %v6747_v49 = vcombine.high %v11500_v37, %v11503_v36  ;;  %v4920_v13 = vsel %vm4833_vm2, %v4791_v53, %v4350_v52  ;;  %v11516_v42 = vrot.slane %v5642_v38, %v10078_v8  ;;  %v14121_v52 = vld [vmem:[#allocation122_spill] sm:$0xff]  ;;  %v14124_v53 = vld [vmem:[#allocation248_spill] sm:$0xff]  ;;  %v14131_v36 = vld [vmem:[#allocation375_spill] sm:$0xff] }
 0x48a   : > { %v5658_v14 = vcombine.low %v4916_v32, %v4920_v13  ;;  %v5659_v50 = vcombine.high %v4916_v32, %v4920_v13  ;;  %v14123_v13 = vld [vmem:[#allocation126_spill] sm:$0xff]  ;;  %v4664_v17 = vsel %vm4575_vm0, %v14125_v30, %v14124_v53  ;;  %v14134_v53 = vld [vmem:[#allocation249_spill] sm:$0xff] }
 0x48b   : > { %v11513_v12 = vrot.slane %v6747_v49, %v10078_v8  ;;  %v4365_v34 = vpop.permute.xlu1 %4364  ;;  %v14122_v49 = vld [vmem:[#allocation251_spill] sm:$0xff] }
 0x48c   : > { %v11522_v21 = vrot.slane %v5658_v14, %v10078_v8  ;;  %v11525_v61 = vrot.slane %v5659_v50, %v10078_v8  ;;  %v4361_v41 = vpop.permute.xlu0 %4360  ;;  %v14120_v50 = vld [vmem:[#allocation247_spill] sm:$0xff]  ;;  %v4669_v14 = vsel %vm4575_vm0, %v14123_v13, %v14122_v49  ;;  %v4797_v49 = vsel %vm4704_vm1, %v4668_v16, %v14131_v36  ;;  %v14137_v16 = vld [vmem:[#allocation125_spill] sm:$0xff] }
 0x48d   : > { %v4665_v32 = vsel %vm4575_vm0, %v14121_v52, %v14120_v50  ;;  %v4798_v45 = vsel %vm4704_vm1, %v4669_v14, %v14129_v11  ;;  %v14130_v50 = vld [vmem:[#allocation371_spill] sm:$0xff]  ;;  %v14136_v14 = vld [vmem:[#allocation250_spill] sm:$0xff] }
 0x48e   : > { %v5707_v38 = vcombine.high %v11516_v42, %v11522_v21  ;;  %v5722_v47 = vcombine.low %v11519_v2, %v11525_v61  ;;  %v4794_v1 = vsel %vm4704_vm1, %v4665_v32, %v14128_v27  ;;  %v4793_v52 = vsel %vm4704_vm1, %v4664_v17, %v14130_v50  ;;  %v14135_v32 = vld [vmem:[#allocation124_spill] sm:$0xff]  ;;  %v14140_v50 = vld [vmem:[#allocation254_spill] sm:$0xff] }
 0x48f   : > { %v4376_v5 = vpop.permute.xlu1 %4375  ;;  %v11558_v13 = vsel %vm4833_vm2, %v4794_v1, %v4365_v34  ;;  %v4922_v23 = vsel %vm4833_vm2, %v4793_v52, %v4361_v41  ;;  %v4667_v17 = vsel %vm4575_vm0, %v14135_v32, %v14134_v53  ;;  %v4666_v36 = vsel %vm4575_vm0, %v14137_v16, %v14136_v14  ;;  %v14138_v34 = vld [vmem:[#allocation253_spill] sm:$0xff]  ;;  %v14139_v1 = vld [vmem:[#allocation128_spill] sm:$0xff] }
 0x490   : > { %v4372_v20 = vpop.permute.xlu0 %4371  ;;  %14132 = vst [vmem:[#allocation190_spill] sm:$0xff] %v11558_v13  ;;  %v14141_v41 = vld [vmem:[#allocation129_spill] sm:$0xff]  ;;  %v14144_v53 = vld [vmem:[#allocation376_spill] sm:$0xff] }
 0x491   : > { %v4670_v52 = vsel %vm4575_vm0, %v14141_v41, %v14140_v50  ;;  %v14145_v14 = vld [vmem:[#allocation377_spill] sm:$0xff] }
 0x492   : > { %v4799_v16 = vsel %vm4704_vm1, %v4670_v52, %v14145_v14 }
 0x493   : > { %v4387_v37 = vpop.permute.xlu1 %4386 }
 0x494   : > { %v11561_v30 = vsel %vm4833_vm2, %v4798_v45, %v4387_v37  ;;  %v4383_v51 = vpop.permute.xlu0 %4382  ;;  %v4671_v45 = vsel %vm4575_vm0, %v14139_v1, %v14138_v34 }
 0x495   : > { %14133 = vst [vmem:[#allocation57_spill] sm:$0xff] %v11561_v30  ;;  %v6763_v27 = vcombine.high %v11558_v13, %v11561_v30  ;;  %v4926_v11 = vsel %vm4833_vm2, %v4797_v49, %v4383_v51  ;;  %v14142_v13 = vld [vmem:[#allocation372_spill] sm:$0xff]  ;;  %v14143_v51 = vld [vmem:[#allocation373_spill] sm:$0xff]  ;;  %v4800_v32 = vsel %vm4704_vm1, %v4671_v45, %v14144_v53  ;;  %v14149_v53 = vld [vmem:[#allocation130_spill] sm:$0xff] }
 0x496   : > { %v5675_v37 = vcombine.high %v4922_v23, %v4926_v11  ;;  %v4796_v49 = vsel %vm4704_vm1, %v4667_v17, %v14142_v13  ;;  %v4795_v30 = vsel %vm4704_vm1, %v4666_v36, %v14143_v51  ;;  %v5674_v1 = vcombine.low %v4922_v23, %v4926_v11  ;;  %v14148_v51 = vld [vmem:[#allocation255_spill] sm:$0xff] }
 0x497   : > { %v4398_v58 = vpop.permute.xlu1 %4397  ;;  %v11588_v34 = vsel %vm4833_vm2, %v4796_v49, %v4376_v5  ;;  %v4924_v13 = vsel %vm4833_vm2, %v4795_v30, %v4372_v20  ;;  %v4673_v52 = vsel %vm4575_vm0, %v14149_v53, %v14148_v51  ;;  %v5706_v5 = vcombine.low %v11516_v42, %v11522_v21  ;;  %v14152_v42 = vld [vmem:[#allocation378_spill] sm:$0xff] }
 0x498   : > { %14146 = vst [vmem:[#allocation191_spill] sm:$0xff] %v11588_v34  ;;  %v11591_v39 = vsel %vm4833_vm2, %v4800_v32, %v4398_v58  ;;  %v4394_v50 = vpop.permute.xlu0 %4393  ;;  %v6777_v58 = vrot.slane %v6763_v27, %v10078_v8  ;;  %v5682_v20 = vrot.slane %v5674_v1, %v10078_v8  ;;  %v5689_v30 = vrot.slane %v5675_v37, %v10078_v8  ;;  %v14153_v37 = vld [vmem:[#allocation10_spill] sm:$0xff] }
 0x499   : > { %14147 = vst [vmem:[#allocation62_spill] sm:$0xff] %v11591_v39  ;;  %v6779_v17 = vcombine.high %v11588_v34, %v11591_v39  ;;  %v4928_v36 = vsel %vm4833_vm2, %v4799_v16, %v4394_v50  ;;  %v14150_v16 = vld [vmem:[#allocation259_spill] sm:$0xff]  ;;  %v14151_v50 = vld [vmem:[#allocation134_spill] sm:$0xff]  ;;  %v4802_v21 = vsel %vm4704_vm1, %v4673_v52, %v14152_v42  ;;  %v11621_v34 = vrot.slane %v5707_v38, %v10081_v40 }
 0x49a   : > { %v5690_v45 = vcombine.low %v4924_v13, %v4928_v36  ;;  %v5691_v41 = vcombine.high %v4924_v13, %v4928_v36  ;;  %v4677_v13 = vsel %vm4575_vm0, %v14151_v50, %v14150_v16  ;;  %v11624_v16 = vrot.slane %v5722_v47, %v10081_v40  ;;  %v14184_v39 = vld [vmem:[#allocation135_spill] sm:$0xff] }
 0x49b   : > { %v6793_v23 = vrot.slane %v6779_v17, %v10078_v8  ;;  %v4409_v11 = vpop.permute.xlu1 %4408  ;;  %v14159_v38 = vcombine.low %v11510_v9, %v11513_v12 }
 0x49c   : > { %v5698_v49 = vrot.slane %v5690_v45, %v10078_v8  ;;  %v5705_v32 = vrot.slane %v5691_v41, %v10078_v8  ;;  %v11608_v14 = vpop.permute.xlu0 %4404  ;;  %v4806_v45 = vsel %vm4704_vm1, %v4677_v13, %v14153_v37  ;;  %v11618_v41 = vrot.slane %v5706_v5, %v10081_v40  ;;  %14155 = vst [vmem:[#allocation63_spill] sm:$0xff] %v11624_v16 }
 0x49d   : > { %v6842_v27 = vcombine.low %v6777_v58, %v6793_v23  ;;  %v6843_v17 = vcombine.high %v6777_v58, %v6793_v23  ;;  %v11642_v47 = vrot.slane %v14159_v38, %v10081_v40  ;;  %v14165_v37 = vcombine.high %v11510_v9, %v11513_v12  ;;  %v14171_v12 = vld [vmem:[#allocation261_spill] sm:$0xff] }
 0x49e   : > { %v5738_v36 = vcombine.low %v5682_v20, %v5698_v49  ;;  %v5739_v51 = vcombine.high %v5682_v20, %v5698_v49  ;;  %v5754_v1 = vcombine.low %v5689_v30, %v5705_v32  ;;  %v5755_v53 = vcombine.high %v5689_v30, %v5705_v32  ;;  %14154 = vst [vmem:[#allocation192_spill] sm:$0xff] %v11618_v41 }
 0x49f   : > { %v4420_v50 = vpop.permute.xlu1 %4419  ;;  %14160 = vst [vmem:[#allocation67_spill] sm:$0xff] %v11642_v47  ;;  %v14161_v30 = vcombine.high %v11519_v2, %v11525_v61  ;;  %v11651_v32 = vrot.slane %v6842_v27, %v10081_v40  ;;  %v11654_v13 = vrot.slane %v6843_v17, %v10081_v40  ;;  %v11676_v38 = vrot.slane %v14165_v37, %v10081_v40  ;;  %v14169_v2 = vld [vmem:[#allocation257_spill] sm:$0xff]  ;;  %v14172_v37 = vld [vmem:[#allocation136_spill] sm:$0xff] }
 0x4a0   : > { %v11627_v52 = vrot.slane %v5738_v36, %v10081_v40  ;;  %v11630_v58 = vrot.slane %v5739_v51, %v10081_v40  ;;  %v11633_v23 = vrot.slane %v5754_v1, %v10081_v40  ;;  %v11636_v20 = vrot.slane %v5755_v53, %v10081_v40  ;;  %v4416_v5 = vpop.permute.xlu0 %4415  ;;  %v14170_v51 = vld [vmem:[#allocation132_spill] sm:$0xff]  ;;  %v14174_v36 = vld [vmem:[#allocation381_spill] sm:$0xff] }
 0x4a1   : > { %v11648_v49 = vrot.slane %v14161_v30, %v10081_v40  ;;  %14163 = vst [vmem:[#allocation68_spill] sm:$0xff] %v11651_v32  ;;  %14164 = vst [vmem:[#allocation196_spill] sm:$0xff] %v11654_v13  ;;  %v11679_v30 = vsel %vm4833_vm2, %v4802_v21, %v4409_v11  ;;  %v4675_v9 = vsel %vm4575_vm0, %v14170_v51, %v14169_v2  ;;  %v14179_v51 = vld [vmem:[#allocation258_spill] sm:$0xff]  ;;  %v14180_v13 = vld [vmem:[#allocation133_spill] sm:$0xff] }
 0x4a2   : > { %14156 = vst [vmem:[#allocation193_spill] sm:$0xff] %v11627_v52  ;;  %14157 = vst [vmem:[#allocation66_spill] sm:$0xff] %v11633_v23  ;;  %v5771_v42 = vcombine.high %v11618_v41, %v11627_v52  ;;  %v4679_v11 = vsel %vm4575_vm0, %v14172_v37, %v14171_v12  ;;  %v14182_v32 = vld [vmem:[#allocation137_spill] sm:$0xff]  ;;  %v14183_v41 = vld [vmem:[#allocation260_spill] sm:$0xff] }
 0x4a3   : > { %14158 = vst [vmem:[#allocation194_spill] sm:$0xff] %v11636_v20  ;;  %14162 = vst [vmem:[#allocation195_spill] sm:$0xff] %v11648_v49  ;;  %v4431_v61 = vpop.permute.xlu1 %4430  ;;  %v4808_v53 = vsel %vm4704_vm1, %v4679_v11, %v14174_v36  ;;  %v14185_v20 = vld [vmem:[#allocation263_spill] sm:$0xff]  ;;  %v14186_v49 = vld [vmem:[#allocation138_spill] sm:$0xff] }
 0x4a4   : > { %14166 = vst [vmem:[#allocation69_spill] sm:$0xff] %v11676_v38  ;;  %14167 = vst [vmem:[#allocation197_spill] sm:$0xff] %v11679_v30  ;;  %v11682_v27 = vsel %vm4833_vm2, %v4806_v45, %v4431_v61  ;;  %7156 = vrot.lane.b32.xlu1 %v5771_v42, %s8239_s18  ;;  %v4427_v17 = vpop.permute.xlu0 %4426  ;;  %v14173_v42 = vld [vmem:[#allocation9_spill] sm:$0xff]  ;;  %v14181_v38 = vld [vmem:[#allocation262_spill] sm:$0xff] }
 0x4a5   : > { %14168 = vst [vmem:[#allocation70_spill] sm:$0xff] %v11682_v27  ;;  %v6867_v1 = vcombine.high %v11679_v30, %v11682_v27  ;;  %v4804_v61 = vsel %vm4704_vm1, %v4675_v9, %v14173_v42  ;;  %v4676_v42 = vsel %vm4575_vm0, %v14184_v39, %v14183_v41  ;;  %v14187_v30 = vld [vmem:[#allocation264_spill] sm:$0xff]  ;;  %v14188_v27 = vld [vmem:[#allocation139_spill] sm:$0xff] }
 0x4a6   : > { %v11706_v2 = vsel %vm4833_vm2, %v4804_v61, %v4420_v50  ;;  %v4681_v50 = vsel %vm4575_vm0, %v14186_v49, %v14185_v20  ;;  %v14194_v41 = vld [vmem:[#allocation267_spill] sm:$0xff] }
 0x4a7   : > { %v4442_v52 = vpop.permute.xlu1 %4441  ;;  %14175 = vst [vmem:[#allocation198_spill] sm:$0xff] %v11706_v2  ;;  %v11714_v21 = vrot.slane %v6867_v1, %v10078_v8  ;;  %v4674_v1 = vsel %vm4575_vm0, %v14180_v13, %v14179_v51  ;;  %v4685_v20 = vsel %vm4575_vm0, %v14195_v35, %v14194_v41  ;;  %v14202_v35 = vld [vmem:[#allocation387_spill] sm:$0xff] }
 0x4a8   : > { %v11709_v12 = vsel %vm4833_vm2, %v4808_v53, %v4442_v52  ;;  %v4438_v37 = vpop.permute.xlu0 %4437  ;;  %v14177_v52 = vld [vmem:[#allocation256_spill] sm:$0xff]  ;;  %v14178_v53 = vld [vmem:[#allocation131_spill] sm:$0xff] }
 0x4a9   : > { %14176 = vst [vmem:[#allocation71_spill] sm:$0xff] %v11709_v12  ;;  %v6883_v45 = vcombine.high %v11706_v2, %v11709_v12  ;;  %v4672_v61 = vsel %vm4575_vm0, %v14178_v53, %v14177_v52  ;;  %v4680_v52 = vsel %vm4575_vm0, %v14188_v27, %v14187_v30  ;;  %v14189_v53 = vld [vmem:[#allocation382_spill] sm:$0xff]  ;;  %v14190_v2 = vld [vmem:[#allocation265_spill] sm:$0xff]  ;;  %v14191_v12 = vld [vmem:[#allocation140_spill] sm:$0xff] }
 0x4aa   : > { %v14196_v27 = vld [vmem:[#allocation268_spill] sm:$0xff]  ;;  %v14197_v30 = vld [vmem:[#allocation143_spill] sm:$0xff] }
 0x4ab   : > { %v11717_v9 = vrot.slane %v6883_v45, %v10078_v8  ;;  %v4453_v36 = vpop.permute.xlu1 %4452  ;;  %v4678_v45 = vsel %vm4575_vm0, %v14182_v32, %v14181_v38  ;;  %v4683_v32 = vsel %vm4575_vm0, %v14191_v12, %v14190_v2  ;;  %v14192_v38 = vld [vmem:[#allocation266_spill] sm:$0xff]  ;;  %v4803_v2 = vsel %vm4704_vm1, %v4674_v1, %v14199_v63  ;;  %v14200_v12 = vld [vmem:[#allocation11_spill] sm:$0xff] }
 0x4ac   : > { %v4449_v11 = vpop.permute.xlu0 %4448  ;;  %v4807_v13 = vsel %vm4704_vm1, %v4678_v45, %v14189_v53  ;;  %v4682_v39 = vsel %vm4575_vm0, %v14193_v18, %v14192_v38  ;;  %v4684_v45 = vsel %vm4575_vm0, %v14197_v30, %v14196_v27  ;;  %v14198_v53 = vld [vmem:[#allocation379_spill] sm:$0xff]  ;;  %v4805_v18 = vsel %vm4704_vm1, %v4676_v42, %v14200_v12 }
 0x4ad   : > { %v11753_v49 = vsel %vm4833_vm2, %v4807_v13, %v4438_v37  ;;  %v4801_v44 = vsel %vm4704_vm1, %v4672_v61, %v14198_v53  ;;  %v14201_v38 = vld [vmem:[#allocation383_spill] sm:$0xff]  ;;  %v4814_v37 = vsel %vm4704_vm1, %v4685_v20, %v14202_v35  ;;  %v11769_v13 = vsel %vm4833_vm2, %v4803_v2, %v4416_v5  ;;  %v14203_v61 = vld [vmem:[#allocation388_spill] sm:$0xff]  ;;  %v14206_v20 = vld [vmem:[#allocation269_spill] sm:$0xff] }
 0x4ae   : > { %v4810_v25 = vsel %vm4704_vm1, %v4681_v50, %v14201_v38  ;;  %v11772_v41 = vsel %vm4833_vm2, %v4805_v18, %v4427_v17  ;;  %v4813_v30 = vsel %vm4704_vm1, %v4684_v45, %v14203_v61  ;;  %v5794_v63 = vcombine.low %v11769_v13, %v11753_v49  ;;  %v14207_v5 = vld [vmem:[#allocation144_spill] sm:$0xff]  ;;  %v14211_v35 = vld [vmem:[#allocation385_spill] sm:$0xff]  ;;  %v14264_v23 = vld [vmem:[#allocation159_spill] sm:$0xff] }
 0x4af   : > { %v4464_v47 = vpop.permute.xlu1 %4463  ;;  %v11779_v42 = vsel %vm4833_vm2, %v4810_v25, %v4453_v36  ;;  %v4687_v53 = vsel %vm4575_vm0, %v14207_v5, %v14206_v20  ;;  %v11789_v17 = vsel %vm4833_vm2, %v4801_v44, %v11608_v14  ;;  %v14208_v25 = vld [vmem:[#allocation270_spill] sm:$0xff]  ;;  %v14209_v36 = vld [vmem:[#allocation145_spill] sm:$0xff]  ;;  %v14210_v18 = vld [vmem:[#allocation384_spill] sm:$0xff] }
 0x4b0   : > { %v4460_v51 = vpop.permute.xlu0 %4459  ;;  %14204 = vst [vmem:[#allocation306_spill] sm:$0xff] %v11779_v42  ;;  %v4686_v12 = vsel %vm4575_vm0, %v14209_v36, %v14208_v25  ;;  %v4809_v38 = vsel %vm4704_vm1, %v4680_v52, %v14210_v18  ;;  %v5778_v44 = vcombine.low %v11789_v17, %v11772_v41  ;;  %v14212_v14 = vld [vmem:[#allocation386_spill] sm:$0xff]  ;;  %v14213_v61 = vld [vmem:[#allocation389_spill] sm:$0xff]  ;;  %v11815_v52 = vrot.slane %v5794_v63, %v10078_v8 }
 0x4b1   : > { %v11812_v5 = vsel %vm4833_vm2, %v4809_v38, %v4449_v11 }
 0x4b2   : > { %v11834_v63 = vrot.slane %v5778_v44, %v10078_v8 }
 0x4b3   : > { %v4475_v27 = vpop.permute.xlu1 %4474 }
 0x4b4   : > { %v11782_v50 = vsel %vm4833_vm2, %v4814_v37, %v4475_v27  ;;  %v4471_v1 = vpop.permute.xlu0 %4470  ;;  %v4812_v37 = vsel %vm4704_vm1, %v4683_v32, %v14211_v35  ;;  %v4811_v27 = vsel %vm4704_vm1, %v4682_v39, %v14212_v14 }
 0x4b5   : > { %14205 = vst [vmem:[#allocation307_spill] sm:$0xff] %v11782_v50  ;;  %v6899_v45 = vcombine.high %v11779_v42, %v11782_v50  ;;  %v11794_v2 = vsel %vm4833_vm2, %v4813_v30, %v4471_v1  ;;  %v4816_v30 = vsel %vm4704_vm1, %v4687_v53, %v14213_v61  ;;  %v14214_v1 = vld [vmem:[#allocation390_spill] sm:$0xff]  ;;  %v11818_v32 = vsel %vm4833_vm2, %v4812_v37, %v4464_v47 }
 0x4b6   : > { %v4815_v20 = vsel %vm4704_vm1, %v4686_v12, %v14214_v1  ;;  %14215 = vst [vmem:[#allocation163_spill] sm:$0xff] %v11818_v32  ;;  %v5810_v36 = vcombine.low %v11812_v5, %v11794_v2  ;;  %v11826_v18 = vsel %vm4833_vm2, %v4811_v27, %v4460_v51  ;;  %v5842_v51 = vcombine.low %v11834_v63, %v11815_v52  ;;  %v14221_v42 = vld [vmem:[#allocation146_spill] sm:$0xff] }
 0x4b7   : > { %v4486_v25 = vpop.permute.xlu1 %4485  ;;  %v6913_v38 = vrot.slane %v6899_v45, %v10078_v8  ;;  %v14222_v50 = vld [vmem:[#allocation274_spill] sm:$0xff] }
 0x4b8   : > { %v11823_v39 = vsel %vm4833_vm2, %v4816_v30, %v4486_v25  ;;  %v4482_v53 = vpop.permute.xlu0 %4481  ;;  %v5818_v14 = vrot.slane %v5810_v36, %v10078_v8  ;;  %v11847_v25 = vrot.slane %v5842_v51, %v10081_v40  ;;  %v14220_v36 = vld [vmem:[#allocation271_spill] sm:$0xff] }
 0x4b9   : > { %14216 = vst [vmem:[#allocation308_spill] sm:$0xff] %v11823_v39  ;;  %v6915_v11 = vcombine.high %v11818_v32, %v11823_v39  ;;  %v11831_v12 = vsel %vm4833_vm2, %v4815_v20, %v4482_v53  ;;  %v14223_v32 = vld [vmem:[#allocation150_spill] sm:$0xff] }
 0x4ba   : > { %v5826_v47 = vcombine.low %v11826_v18, %v11831_v12  ;;  %14217 = vst [vmem:[#allocation309_spill] sm:$0xff] %v11847_v25 }
 0x4bb   : > { %v6929_v35 = vrot.slane %v6915_v11, %v10078_v8  ;;  %v4497_v37 = vpop.permute.xlu1 %4496 }
 0x4bc   : > { %v5834_v27 = vrot.slane %v5826_v47, %v10078_v8  ;;  %v11844_v61 = vpop.permute.xlu0 %4492  ;;  %v4689_v47 = vsel %vm4575_vm0, %v14221_v42, %v14220_v36  ;;  %v14227_v42 = vcombine.low %v11714_v21, %v11717_v9 }
 0x4bd   : > { %v6978_v30 = vcombine.low %v6913_v38, %v6929_v35  ;;  %v6979_v44 = vcombine.high %v6913_v38, %v6929_v35  ;;  %v4693_v38 = vsel %vm4575_vm0, %v14223_v32, %v14222_v50  ;;  %v14229_v32 = vcombine.high %v11714_v21, %v11717_v9  ;;  %v14233_v50 = vld [vmem:[#allocation12_spill] sm:$0xff] }
 0x4be   : > { %v5874_v1 = vcombine.low %v5818_v14, %v5834_v27  ;;  %v11876_v36 = vrot.slane %v14227_v42, %v10081_v40  ;;  %v14235_v9 = vld [vmem:[#allocation276_spill] sm:$0xff] }
 0x4bf   : > { %v4508_v20 = vpop.permute.xlu1 %4507  ;;  %v11855_v11 = vrot.slane %v6978_v30, %v10081_v40  ;;  %v11864_v35 = vrot.slane %v6979_v44, %v10081_v40  ;;  %v4822_v30 = vsel %vm4704_vm1, %v4693_v38, %v14226_v31  ;;  %v11884_v44 = vrot.slane %v14229_v32, %v10081_v40  ;;  %v14236_v32 = vld [vmem:[#allocation152_spill] sm:$0xff] }
 0x4c0   : > { %v11850_v45 = vrot.slane %v5874_v1, %v10081_v40  ;;  %v11852_v53 = vpop.permute.xlu0 %4503  ;;  %v14225_v1 = vld [vmem:[#allocation391_spill] sm:$0xff]  ;;  %14228 = vst [vmem:[#allocation59_spill] sm:$0xff] %v11876_v36 }
 0x4c1   : > { %14219 = vst [vmem:[#allocation311_spill] sm:$0xff] %v11855_v11  ;;  %14224 = vst [vmem:[#allocation312_spill] sm:$0xff] %v11864_v35  ;;  %v4818_v39 = vsel %vm4704_vm1, %v4689_v47, %v14225_v1  ;;  %v14247_v35 = vld [vmem:[#allocation275_spill] sm:$0xff]  ;;  %v14249_v11 = vld [vmem:[#allocation277_spill] sm:$0xff] }
 0x4c2   : > { %14218 = vst [vmem:[#allocation310_spill] sm:$0xff] %v11850_v45  ;;  %v5907_v51 = vcombine.high %v11847_v25, %v11850_v45  ;;  %14230 = vst [vmem:[#allocation313_spill] sm:$0xff] %v11884_v44  ;;  %v11887_v47 = vsel %vm4833_vm2, %v4818_v39, %v4497_v37  ;;  %v14234_v45 = vld [vmem:[#allocation148_spill] sm:$0xff]  ;;  %v4695_v39 = vsel %vm4575_vm0, %v14236_v32, %v14235_v9  ;;  %v14238_v25 = vld [vmem:[#allocation17_spill] sm:$0xff] }
 0x4c3   : > { %v4519_v60 = vpop.permute.xlu1 %4518  ;;  %14231 = vst [vmem:[#allocation314_spill] sm:$0xff] %v11887_v47  ;;  %v4691_v21 = vsel %vm4575_vm0, %v14234_v45, %v14233_v50  ;;  %v4824_v42 = vsel %vm4704_vm1, %v4695_v39, %v14238_v25  ;;  %v14241_v32 = vcombine.low %v10351_v48, %v10359_v62  ;;  %v5875_v39 = vcombine.high %v5818_v14, %v5834_v27  ;;  %v14243_v27 = vld [vmem:[#allocation272_spill] sm:$0xff]  ;;  %v14250_v45 = vld [vmem:[#allocation153_spill] sm:$0xff]  ;;  %v14251_v14 = vld [vmem:[#allocation278_spill] sm:$0xff] }
 0x4c4   : > { %v11890_v31 = vsel %vm4833_vm2, %v4822_v30, %v4519_v60  ;;  %7158 = vrot.lane.b32.xlu0 %v5907_v51, %s8239_s18  ;;  %v4515_v38 = vpop.permute.xlu0 %4514  ;;  %v14237_v51 = vld [vmem:[#allocation13_spill] sm:$0xff]  ;;  %v4694_v36 = vsel %vm4575_vm0, %v14250_v45, %v14249_v11  ;;  %v14258_v11 = vcombine.low %v11405_v6, %v11417_v22 }
 0x4c5   : > { %14232 = vst [vmem:[#allocation315_spill] sm:$0xff] %v11890_v31  ;;  %v7003_v1 = vcombine.high %v11887_v47, %v11890_v31  ;;  %v4820_v30 = vsel %vm4704_vm1, %v4691_v21, %v14237_v51  ;;  %v11945_v37 = vrot.slane %v5875_v39, %v10081_v40  ;;  %v14252_v31 = vld [vmem:[#allocation154_spill] sm:$0xff]  ;;  %v14254_v39 = vld [vmem:[#allocation155_spill] sm:$0xff]  ;;  %v14259_v45 = vld [vmem:[#allocation281_spill] sm:$0xff] }
 0x4c6   : > { %v11914_v50 = vsel %vm4833_vm2, %v4820_v30, %v4508_v20 }
 0x4c7   : > { %v4530_v47 = vpop.permute.xlu1 %4529  ;;  %14239 = vst [vmem:[#allocation61_spill] sm:$0xff] %v11914_v50  ;;  %v11926_v51 = vrot.slane %v7003_v1, %v10078_v8  ;;  %v14244_v1 = vld [vmem:[#allocation147_spill] sm:$0xff] }
 0x4c8   : > { %v11917_v9 = vsel %vm4833_vm2, %v4824_v42, %v4530_v47  ;;  %7178 = vrot.lane.b32.xlu0 %v14241_v32, %s8240_s27  ;;  %v4526_v21 = vpop.permute.xlu0 %4525  ;;  %v5843_v47 = vcombine.high %v11834_v63, %v11815_v52  ;;  %v14242_v42 = vcombine.low %v10910_v4, %v10918_v33  ;;  %v14245_v52 = vld [vmem:[#allocation273_spill] sm:$0xff] }
 0x4c9   : > { %14240 = vst [vmem:[#allocation58_spill] sm:$0xff] %v11917_v9  ;;  %v7019_v25 = vcombine.high %v11914_v50, %v11917_v9  ;;  %v14246_v63 = vld [vmem:[#allocation149_spill] sm:$0xff]  ;;  %v4697_v50 = vsel %vm4575_vm0, %v14252_v31, %v14251_v14 }
 0x4ca   : > { %v4690_v60 = vsel %vm4575_vm0, %v14246_v63, %v14245_v52  ;;  %v4699_v52 = vsel %vm4575_vm0, %v14256_v29, %v14255_v28  ;;  %v14257_v63 = vld [vmem:[#allocation393_spill] sm:$0xff]  ;;  %v14263_v29 = vld [vmem:[#allocation283_spill] sm:$0xff] }
 0x4cb   : > { %v11929_v20 = vrot.slane %v7019_v25, %v10078_v8  ;;  %v4541_v30 = vpop.permute.xlu1 %4540  ;;  %v4688_v25 = vsel %vm4575_vm0, %v14244_v1, %v14243_v27  ;;  %v14253_v1 = vld [vmem:[#allocation279_spill] sm:$0xff]  ;;  %v14260_v14 = vld [vmem:[#allocation157_spill] sm:$0xff] }
 0x4cc   : > { %7182 = vrot.lane.b32.xlu0 %v14242_v42, %s8240_s27  ;;  %v4537_v32 = vpop.permute.xlu0 %4536  ;;  %v14248_v42 = vld [vmem:[#allocation151_spill] sm:$0xff]  ;;  %v4696_v9 = vsel %vm4575_vm0, %v14254_v39, %v14253_v1  ;;  %v4698_v1 = vsel %vm4575_vm0, %v14260_v14, %v14259_v45  ;;  %v14261_v39 = vld [vmem:[#allocation282_spill] sm:$0xff] }
 0x4cd   : > { %v4692_v44 = vsel %vm4575_vm0, %v14248_v42, %v14247_v35  ;;  %v4823_v35 = vsel %vm4704_vm1, %v4694_v36, %v14257_v63  ;;  %v11968_v42 = vrot.slane %v5843_v47, %v10081_v40  ;;  %v4701_v28 = vsel %vm4575_vm0, %v14262_v0, %v14261_v39  ;;  %v14265_v63 = vld [vmem:[#allocation392_spill] sm:$0xff]  ;;  %v14268_v0 = vld [vmem:[#allocation394_spill] sm:$0xff] }
 0x4ce   : > { %v4700_v36 = vsel %vm4575_vm0, %v14264_v23, %v14263_v29  ;;  %v11984_v47 = vsel %vm4833_vm2, %v4823_v35, %v4526_v21  ;;  %v4817_v16 = vsel %vm4704_vm1, %v4688_v25, %v14265_v63  ;;  %v4821_v45 = vsel %vm4704_vm1, %v4692_v44, %v14267_v15  ;;  %v14270_v35 = vld [vmem:[#allocation399_spill] sm:$0xff]  ;;  %v14273_v63 = vld [vmem:[#allocation285_spill] sm:$0xff] }
 0x4cf   : > { %v4552_v27 = vpop.permute.xlu1 %4551  ;;  %v5908_v14 = vcombine.low %v11968_v42, %v11945_v37  ;;  %v4826_v39 = vsel %vm4704_vm1, %v4697_v50, %v14268_v0  ;;  %v4830_v23 = vsel %vm4704_vm1, %v4701_v28, %v14269_v10  ;;  %v12003_v25 = vsel %vm4833_vm2, %v4821_v45, %v4515_v38 }
 0x4d0   : > { %7186 = vrot.lane.b32.xlu0 %v14258_v11, %s8240_s27  ;;  %v4548_v31 = vpop.permute.xlu0 %4547  ;;  %v14266_v11 = vld [vmem:[#allocation15_spill] sm:$0xff]  ;;  %v4829_v15 = vsel %vm4704_vm1, %v4700_v36, %v14270_v35  ;;  %v12010_v29 = vsel %vm4833_vm2, %v4826_v39, %v4541_v30  ;;  %v12021_v28 = vsel %vm4833_vm2, %v4817_v16, %v11844_v61  ;;  %v14276_v39 = vld [vmem:[#allocation396_spill] sm:$0xff]  ;;  %v14277_v61 = vld [vmem:[#allocation397_spill] sm:$0xff] }
 0x4d1   : > { %v4819_v26 = vsel %vm4704_vm1, %v4690_v60, %v14266_v11  ;;  %v14274_v11 = vld [vmem:[#allocation161_spill] sm:$0xff]  ;;  %v5914_v16 = vcombine.low %v12021_v28, %v12003_v25  ;;  %v14278_v35 = vld [vmem:[#allocation400_spill] sm:$0xff] }
 0x4d2   : > { %v12000_v21 = vsel %vm4833_vm2, %v4819_v26, %v11852_v53  ;;  %v14271_v26 = vld [vmem:[#allocation284_spill] sm:$0xff]  ;;  %v4702_v45 = vsel %vm4575_vm0, %v14274_v11, %v14273_v63 }
 0x4d3   : > { %v4563_v60 = vpop.permute.xlu1 %4562  ;;  %v5930_v44 = vcombine.low %v12000_v21, %v11984_v47  ;;  %v14272_v53 = vld [vmem:[#allocation160_spill] sm:$0xff] }
 0x4d4   : > { %v12013_v50 = vsel %vm4833_vm2, %v4830_v23, %v4563_v60  ;;  %7190 = vrot.lane.b32.xlu0 %v5908_v14, %s8240_s27  ;;  %v4559_v10 = vpop.permute.xlu0 %4558  ;;  %v4703_v38 = vsel %vm4575_vm0, %v14272_v53, %v14271_v26  ;;  %v14275_v14 = vld [vmem:[#allocation395_spill] sm:$0xff]  ;;  %v4828_v23 = vsel %vm4704_vm1, %v4699_v52, %v14276_v39  ;;  %v4827_v60 = vsel %vm4704_vm1, %v4698_v1, %v14277_v61 }
 0x4d5   : > { %v7035_v36 = vcombine.high %v12010_v29, %v12013_v50  ;;  %v12026_v30 = vsel %vm4833_vm2, %v4829_v15, %v4559_v10  ;;  %v4825_v0 = vsel %vm4704_vm1, %v4696_v9, %v14275_v14  ;;  %v4832_v15 = vsel %vm4704_vm1, %v4703_v38, %v14278_v35  ;;  %v14279_v10 = vld [vmem:[#allocation401_spill] sm:$0xff] }
 0x4d6   : > { %v4831_v26 = vsel %vm4704_vm1, %v4702_v45, %v14279_v10  ;;  %v12044_v53 = vsel %vm4833_vm2, %v4825_v0, %v4537_v32  ;;  %v5938_v9 = vrot.slane %v5930_v44, %v10078_v8  ;;  %v12048_v52 = vsel %vm4833_vm2, %v4828_v23, %v4552_v27 }
 0x4d7   : > { %v4574_v63 = vpop.permute.xlu1 %4573  ;;  %v5946_v11 = vcombine.low %v12044_v53, %v12026_v30  ;;  %v14280_v38 = vcombine.high %v10351_v48, %v10359_v62  ;;  %v12060_v45 = vsel %vm4833_vm2, %v4827_v60, %v4548_v31  ;;  %v5922_v14 = vrot.slane %v5914_v16, %v10078_v8 }
 0x4d8   : > { %v12053_v1 = vsel %vm4833_vm2, %v4832_v15, %v4574_v63  ;;  %v4570_v32 = vpop.permute.xlu0 %4569  ;;  %v7049_v39 = vrot.slane %v7035_v36, %v10078_v8  ;;  %v14281_v61 = vcombine.high %v10910_v4, %v10918_v33  ;;  %v14282_v10 = vcombine.high %v11405_v6, %v11417_v22 }
 0x4d9   : > { %7210 = vrot.lane.b32.xlu0 %v14280_v38, %s8241_s29  ;;  %v7051_v27 = vcombine.high %v12048_v52, %v12053_v1  ;;  %v12065_v44 = vsel %vm4833_vm2, %v4831_v26, %v4570_v32  ;;  %v5978_v62 = vcombine.low %v5922_v14, %v5938_v9  ;;  %v5954_v23 = vrot.slane %v5946_v11, %v10078_v8 }
 0x4da   : > { %v5962_v0 = vcombine.low %v12060_v45, %v12065_v44  ;;  %v5827_v33 = vcombine.high %v11826_v18, %v11831_v12  ;;  %v5909_v63 = vcombine.high %v11968_v42, %v11945_v37  ;;  %v14283_v6 = vcombine.low %v11926_v51, %v11929_v20  ;;  %v14395_v18 = vld [vmem:[#allocation24_spill] sm:$0xff] }
 0x4db   : > { %v7065_v48 = vrot.slane %v7051_v27, %v10078_v8  ;;  %v12079_v15 = vrot.slane %v5978_v62, %v10081_v40  ;;  %v14284_v38 = vcombine.high %v11926_v51, %v11929_v20  ;;  %v5795_v12 = vcombine.high %v11769_v13, %v11753_v49 }
 0x4dc   : > { %v5970_v31 = vrot.slane %v5962_v0, %v10078_v8  ;;  %v12104_v22 = vrot.slane %v14283_v6, %v10081_v40  ;;  %v5811_v37 = vcombine.high %v11812_v5, %v11794_v2  ;;  %v5779_v49 = vcombine.high %v11789_v17, %v11772_v41 }
 0x4dd   : > { %7214 = vrot.lane.b32.xlu0 %v14281_v61, %s8241_s29  ;;  %v7114_v60 = vcombine.low %v7049_v39, %v7065_v48  ;;  %v7115_v35 = vcombine.high %v7049_v39, %v7065_v48  ;;  %v12110_v32 = vrot.slane %v14284_v38, %v10081_v40  ;;  %v5841_v13 = vrot.slane %v5827_v33, %v10078_v8  ;;  %v14286_v39 = vld [vmem:[#allocation34_spill] sm:$0xff]  ;;  %v14287_v48 = vld [vmem:[#allocation35_spill] sm:$0xff] }
 0x4de   : > { %v6010_v16 = vcombine.low %v5954_v23, %v5970_v31  ;;  %v5809_v2 = vrot.slane %v5795_v12, %v10078_v8  ;;  %v5825_v5 = vrot.slane %v5811_v37, %v10078_v8  ;;  %v14285_v0 = vcombine.low %v10377_v57, %v10362_v24 }
 0x4df   : > { %v12089_v26 = vrot.slane %v7114_v60, %v10081_v40  ;;  %v12092_v4 = vrot.slane %v7115_v35, %v10081_v40  ;;  %v14288_v62 = vcombine.low %v14286_v39, %v14287_v48  ;;  %v5793_v61 = vrot.slane %v5779_v49, %v10078_v8 }
 0x4e0   : > { %v12082_v36 = vrot.slane %v6010_v16, %v10081_v40  ;;  %v5890_v41 = vcombine.low %v5825_v5, %v5841_v13  ;;  %v6011_v17 = vcombine.high %v5954_v23, %v5970_v31  ;;  %v5979_v35 = vcombine.high %v5922_v14, %v5938_v9 }
 0x4e1   : > { %7218 = vrot.lane.b32.xlu0 %v14282_v10, %s8241_s29  ;;  %v5858_v60 = vcombine.low %v5793_v61, %v5809_v2  ;;  %v14289_v16 = vcombine.low %v10936_v3, %v10921_v43  ;;  %v14290_v10 = vcombine.low %v11162_v59, %v11168_v55  ;;  %v14291_v9 = vcombine.low %v11411_v56, %v11420_v54 }
 0x4e2   : > { %v6043_v11 = vcombine.high %v12079_v15, %v12082_v36  ;;  %v5898_v33 = vrot.slane %v5890_v41, %v10081_v40  ;;  %v5993_v23 = vrot.slane %v5979_v35, %v10081_v40  ;;  %v14292_v14 = vcombine.low %v11621_v34, %v11630_v58 }
 0x4e3   : > { %v14293_v38 = vcombine.high %v10377_v57, %v10362_v24  ;;  %v14294_v12 = vcombine.high %v14286_v39, %v14287_v48  ;;  %v14295_v37 = vcombine.high %v10936_v3, %v10921_v43  ;;  %v14296_v49 = vcombine.high %v11162_v59, %v11168_v55 }
 0x4e4   : > { %7160 = vrot.lane.b32.xlu1 %v6043_v11, %s8239_s18  ;;  %v5866_v11 = vrot.slane %v5858_v60, %v10081_v40  ;;  %v14297_v24 = vcombine.high %v11411_v56, %v11420_v54  ;;  %v14298_v57 = vcombine.high %v11621_v34, %v11630_v58  ;;  %v5931_v39 = vcombine.high %v12000_v21, %v11984_v47  ;;  %v14299_v58 = vld [vmem:[#allocation165_spill] sm:$0xff]  ;;  %v14300_v47 = vld [vmem:[#allocation164_spill] sm:$0xff] }
 0x4e5   : > { %7222 = vrot.lane.b32.xlu0 %v5909_v63, %s8241_s29  ;;  %v6025_v63 = vrot.slane %v6011_v17, %v10081_v40  ;;  %v5947_v59 = vcombine.high %v12044_v53, %v12026_v30  ;;  %v5915_v55 = vcombine.high %v12021_v28, %v12003_v25  ;;  %v14301_v21 = vcombine.low %v14299_v58, %v14300_v47  ;;  %v14302_v30 = vld [vmem:[#allocation291_spill] sm:$0xff] }
 0x4e6   : > { %v5910_v31 = vcombine.low %v5866_v11, %v5898_v33  ;;  %v5911_v43 = vcombine.high %v5866_v11, %v5898_v33  ;;  %v12202_v54 = vrot.slane %v5931_v39, %v10078_v8  ;;  %v14303_v53 = vld [vmem:[#allocation19_spill] sm:$0xff]  ;;  %v5891_v25 = vcombine.high %v5825_v5, %v5841_v13  ;;  %v14323_v39 = vld [vmem:[#allocation25_spill] sm:$0xff] }
 0x4e7   : > { %v6044_v6 = vcombine.low %v5993_v23, %v6025_v63  ;;  %v6045_v3 = vcombine.high %v5993_v23, %v6025_v63  ;;  %v12205_v34 = vrot.slane %v5947_v59, %v10078_v8  ;;  %v12216_v28 = vrot.slane %v5915_v55, %v10078_v8  ;;  %v14306_v17 = vld [vmem:[#allocation51_spill] sm:$0xff]  ;;  %v14312_v63 = vld [vmem:[#allocation66_spill] sm:$0xff] }
 0x4e8   : > { %7180 = vrot.lane.b32.xlu1 %v14288_v62, %s8240_s27  ;;  %v5859_v48 = vcombine.high %v5793_v61, %v5809_v2  ;;  %v14305_v41 = vcombine.low %v10942_v7, %v10924_v46  ;;  %v14307_v60 = vcombine.low %v11180_v19, %v14306_v17  ;;  %v5905_v13 = vrot.slane %v5891_v25, %v10081_v40  ;;  %v14308_v61 = vld [vmem:[#allocation186_spill] sm:$0xff]  ;;  %v14311_v33 = vld [vmem:[#allocation63_spill] sm:$0xff] }
 0x4e9   : > { %7242 = vrot.lane.b32.xlu0 %v14285_v0, %s8242_s30  ;;  %v5963_v0 = vcombine.high %v12060_v45, %v12065_v44  ;;  %v14304_v45 = vcombine.low %v14302_v30, %v14303_v53  ;;  %v5994_v62 = vcombine.low %v12216_v28, %v12202_v54  ;;  %v14313_v11 = vcombine.low %v14311_v33, %v14312_v63 }
 0x4ea   : > { %v5873_v35 = vrot.slane %v5859_v48, %v10081_v40  ;;  %v14327_v48 = vld [vmem:[#allocation38_spill] sm:$0xff]  ;;  %vm7735_vm0 = vcmask 457728   ;;  %vm7744_vm1 = vcmask 490496   ;;  %vm7753_vm2 = vcmask 523264  }
 0x4eb   : > { %v12199_v56 = vrot.slane %v5963_v0, %v10078_v8  ;;  %v6002_v2 = vrot.slane %v5994_v62, %v10081_v40  ;;  %v14320_v0 = vcombine.high %v14299_v58, %v14300_v47  ;;  %v14326_v47 = vld [vmem:[#allocation174_spill] sm:$0xff] }
 0x4ec   : > { %7184 = vrot.lane.b32.xlu1 %v14290_v10, %s8240_s27  ;;  %v5912_v23 = vcombine.low %v5873_v35, %v5905_v13  ;;  %v6338_v62 = vcombine.low %v14327_v48, %v14326_v47  ;;  %v14343_v47 = vld [vmem:[#allocation297_spill] sm:$0xff] }
 0x4ed   : > { %7246 = vrot.lane.b32.xlu0 %v14289_v16, %s8242_s30  ;;  %v6026_v44 = vcombine.low %v12205_v34, %v12199_v56  ;;  %v14309_v16 = vld [vmem:[#allocation185_spill] sm:$0xff] }
 0x4ee   : > { %v14310_v10 = vcombine.low %v14308_v61, %v14309_v16 }
 0x4ef   : > { %v6034_v5 = vrot.slane %v6026_v44, %v10081_v40 }
 0x4f0   : > { %7188 = vrot.lane.b32.xlu1 %v14292_v14, %s8240_s27  ;;  %v14314_v14 = vld [vmem:[#allocation20_spill] sm:$0xff] }
 0x4f1   : > { %7250 = vrot.lane.b32.xlu0 %v14291_v9, %s8242_s30  ;;  %v6046_v9 = vcombine.low %v6002_v2, %v6034_v5 }
 0x4f4   : > { %7192 = vrot.lane.b32.xlu1 %v6044_v6, %s8240_s27 }
 0x4f5   : > { %7254 = vrot.lane.b32.xlu0 %v5910_v31, %s8242_s30  ;;  %v14315_v31 = vld [vmem:[#allocation26_spill] sm:$0xff] }
 0x4f6   : > { %v6098_v6 = vcombine.low %v14315_v31, %v14314_v14  ;;  %v14333_v14 = vld [vmem:[#allocation37_spill] sm:$0xff] }
 0x4f8   : > { %7212 = vrot.lane.b32.xlu1 %v14294_v12, %s8241_s29  ;;  %v14317_v12 = vld [vmem:[#allocation162_spill] sm:$0xff]  ;;  %v12261_v55 = vrot.slane %v6098_v6, %v10078_v8 }
 0x4f9   : > { %7274 = vrot.lane.b32.xlu0 %v14293_v38, %s8243_s2  ;;  %v14316_v38 = vld [vmem:[#allocation27_spill] sm:$0xff] }
 0x4fc   : > { %7216 = vrot.lane.b32.xlu1 %v14296_v49, %s8241_s29  ;;  %v14318_v49 = vld [vmem:[#allocation18_spill] sm:$0xff] }
 0x4fd   : > { %7278 = vrot.lane.b32.xlu0 %v14295_v37, %s8243_s2  ;;  %v6066_v37 = vcombine.low %v14317_v12, %v14316_v38  ;;  %v14334_v38 = vld [vmem:[#allocation302_spill] sm:$0xff] }
 0x4ff   : > { %v12266_v44 = vrot.slane %v6066_v37, %v10078_v8  ;;  %v14336_v37 = vld [vmem:[#allocation303_spill] sm:$0xff] }
 0x500   : > { %7220 = vrot.lane.b32.xlu1 %v14298_v57, %s8241_s29 }
 0x501   : > { %7282 = vrot.lane.b32.xlu0 %v14297_v24, %s8243_s2  ;;  %v14319_v24 = vld [vmem:[#allocation23_spill] sm:$0xff] }
 0x502   : > { %v6082_v57 = vcombine.low %v14319_v24, %v14318_v49  ;;  %v14337_v49 = vld [vmem:[#allocation300_spill] sm:$0xff] }
 0x503   : > { %v6610_v24 = vcombine.low %v14337_v49, %v14336_v37 }
 0x504   : > { %7224 = vrot.lane.b32.xlu1 %v6045_v3, %s8241_s29  ;;  %v14322_v3 = vld [vmem:[#allocation8_spill] sm:$0xff]  ;;  %v12269_v58 = vrot.slane %v6082_v57, %v10078_v8  ;;  %v14338_v57 = vld [vmem:[#allocation41_spill] sm:$0xff] }
 0x505   : > { %7286 = vrot.lane.b32.xlu0 %v5911_v43, %s8243_s2  ;;  %v14321_v43 = vcombine.high %v14302_v30, %v14303_v53  ;;  %v6050_v59 = vcombine.low %v14323_v39, %v14322_v3  ;;  %v14328_v30 = vld [vmem:[#allocation175_spill] sm:$0xff]  ;;  %v14340_v3 = vcombine.high %v14308_v61, %v14309_v16  ;;  %v14341_v39 = vcombine.high %v14311_v33, %v14312_v63  ;;  %v14344_v61 = vld [vmem:[#allocation308_spill] sm:$0xff] }
 0x506   : > { %v14329_v53 = vld [vmem:[#allocation39_spill] sm:$0xff]  ;;  %v6047_v33 = vcombine.high %v6002_v2, %v6034_v5  ;;  %v6147_v20 = vcombine.high %v12269_v58, %v12261_v55 }
 0x507   : > { %v14345_v16 = vld [vmem:[#allocation163_spill] sm:$0xff] }
 0x508   : > { %7244 = vrot.lane.b32.xlu1 %v14304_v45, %s8242_s30  ;;  %v14325_v45 = vld [vmem:[#allocation42_spill] sm:$0xff] }
 0x509   : > { %7306 = vrot.lane.b32.xlu0 %v14301_v21, %s8244_s5  ;;  %v14324_v21 = vld [vmem:[#allocation176_spill] sm:$0xff] }
 0x50a   : > { %v6370_v25 = vcombine.low %v14325_v45, %v14324_v21 }
 0x50c   : > { %7248 = vrot.lane.b32.xlu1 %v14307_v60, %s8242_s30  ;;  %v14330_v60 = vcombine.high %v10942_v7, %v10924_v46  ;;  %v12291_v6 = vrot.slane %v6370_v25, %v10078_v8  ;;  %v14335_v46 = vld [vmem:[#allocation301_spill] sm:$0xff]  ;;  %v14342_v25 = vld [vmem:[#allocation298_spill] sm:$0xff] }
 0x50d   : > { %7310 = vrot.lane.b32.xlu0 %v14305_v41, %s8244_s5  ;;  %v6354_v41 = vcombine.low %v14329_v53, %v14328_v30  ;;  %v6642_v7 = vcombine.low %v14335_v46, %v14334_v38  ;;  %v6594_v48 = vcombine.low %v14343_v47, %v14342_v25  ;;  %v6914_v30 = vcombine.low %v14345_v16, %v14344_v61  ;;  %v14349_v38 = vld [vmem:[#allocation306_spill] sm:$0xff] }
 0x50e   : > { %v5913_v53 = vcombine.high %v5873_v35, %v5905_v13 }
 0x50f   : > { %v12345_v35 = vrot.slane %v6594_v48, %v10078_v8  ;;  %v12352_v49 = vrot.slane %v6914_v30, %v10078_v8  ;;  %v6027_v30 = vcombine.high %v12205_v34, %v12199_v56 }
 0x510   : > { %7252 = vrot.lane.b32.xlu1 %v14313_v11, %s8242_s30  ;;  %v12284_v11 = vrot.slane %v6050_v59, %v10078_v8 }
 0x511   : > { %7314 = vrot.lane.b32.xlu0 %v14310_v10, %s8244_s5  ;;  %v14331_v10 = vcombine.high %v11180_v19, %v14306_v17  ;;  %v12298_v19 = vrot.slane %v6338_v62, %v10078_v8  ;;  %v12301_v17 = vrot.slane %v6354_v41, %v10078_v8  ;;  %v12324_v62 = vrot.slane %v6642_v7, %v10078_v8  ;;  %v14350_v7 = vld [vmem:[#allocation70_spill] sm:$0xff] }
 0x512   : > { %v6114_v12 = vcombine.low %v12284_v11, %v12266_v44  ;;  %v12392_v56 = vrot.slane %v6027_v30, %v10081_v40  ;;  %v14364_v30 = vld [vmem:[#allocation289_spill] sm:$0xff] }
 0x513   : > { %v6418_v45 = vcombine.low %v12301_v17, %v12291_v6 }
 0x514   : > { %7256 = vrot.lane.b32.xlu1 %v6046_v9, %s8242_s30  ;;  %v14332_v9 = vld [vmem:[#allocation173_spill] sm:$0xff]  ;;  %v6122_v63 = vrot.slane %v6114_v12, %v10081_v40  ;;  %s13025_s30 = scalar_lea.hbm %s13079_s1, %s7895_s4 }
 0x515   : > { %7318 = vrot.lane.b32.xlu0 %v5912_v23, %s8244_s5  ;;  %v6146_v23 = vcombine.low %v12269_v58, %v12261_v55  ;;  %v6322_v31 = vcombine.low %v14333_v14, %v14332_v9  ;;  %v14347_v9 = vld [vmem:[#allocation198_spill] sm:$0xff]  ;;  %v6426_v13 = vrot.slane %v6418_v45, %v10081_v40  ;;  %v14351_v12 = vld [vmem:[#allocation197_spill] sm:$0xff]  ;;  %v6115_v55 = vcombine.high %v12284_v11, %v12266_v44 }
 0x516   : > { %v6866_v37 = vcombine.low %v14351_v12, %v14350_v7  ;;  %v14353_v45 = vld [vmem:[#allocation21_spill] sm:$0xff] }
 0x517   : > { %v6154_v59 = vrot.slane %v6146_v23, %v10081_v40  ;;  %v12317_v21 = vrot.slane %v6322_v31, %v10078_v8  ;;  %v14346_v23 = vld [vmem:[#allocation71_spill] sm:$0xff] }
 0x518   : > { %7276 = vrot.lane.b32.xlu1 %v14321_v43, %s8243_s2  ;;  %v6882_v14 = vcombine.low %v14347_v9, %v14346_v23  ;;  %v14348_v31 = vld [vmem:[#allocation307_spill] sm:$0xff]  ;;  %v12372_v61 = vrot.slane %v6866_v37, %v10078_v8  ;;  %v14355_v23 = vld [vmem:[#allocation293_spill] sm:$0xff]  ;;  %v14356_v9 = vld [vmem:[#allocation292_spill] sm:$0xff] }
 0x519   : > { %7338 = vrot.lane.b32.xlu0 %v14320_v0, %s8245_s12  ;;  %v14339_v0 = vld [vmem:[#allocation40_spill] sm:$0xff]  ;;  %v6386_v41 = vcombine.low %v12317_v21, %v12298_v19  ;;  %v6898_v46 = vcombine.low %v14349_v38, %v14348_v31  ;;  %v6178_v5 = vcombine.low %v6122_v63, %v6154_v59  ;;  %v14376_v11 = vcombine.high %v14355_v23, %v14356_v9 }
 0x51a   : > { %v6626_v43 = vcombine.low %v14339_v0, %v14338_v57  ;;  %v12358_v0 = vrot.slane %v6882_v14, %v10078_v8  ;;  %v14357_v14 = vcombine.low %v14355_v23, %v14356_v9 }
 0x51c   : > { %7280 = vrot.lane.b32.xlu1 %v14331_v10, %s8243_s2  ;;  %v12335_v10 = vrot.slane %v6626_v43, %v10078_v8  ;;  %v12361_v43 = vrot.slane %v6898_v46, %v10078_v8 }
 0x51d   : > { %7342 = vrot.lane.b32.xlu0 %v14330_v60, %s8245_s12  ;;  %v12332_v60 = vrot.slane %v6610_v24, %v10078_v8  ;;  %v6394_v24 = vrot.slane %v6386_v41, %v10081_v40  ;;  %v5995_v41 = vcombine.high %v12216_v28, %v12202_v54  ;;  %v14358_v28 = vld [vmem:[#allocation195_spill] sm:$0xff] }
 0x51e   : > { %v6690_v2 = vcombine.low %v12335_v10, %v12324_v62  ;;  %v6962_v16 = vcombine.low %v12361_v43, %v12352_v49 }
 0x51f   : > { %v6658_v57 = vcombine.low %v12345_v35, %v12332_v60  ;;  %v6450_v47 = vcombine.low %v6394_v24, %v6426_v13  ;;  %v12400_v54 = vrot.slane %v5995_v41, %v10081_v40 }
 0x520   : > { %7284 = vrot.lane.b32.xlu1 %v14341_v39, %s8243_s2  ;;  %v14352_v39 = vld [vmem:[#allocation171_spill] sm:$0xff]  ;;  %v6698_v48 = vrot.slane %v6690_v2, %v10081_v40  ;;  %v12389_v31 = vrot.slane %v6962_v16, %v10081_v40 }
 0x521   : > { %7346 = vrot.lane.b32.xlu0 %v14340_v3, %s8245_s12  ;;  %v12363_v3 = vpop.permute.xlu0 %7146  ;;  %v14354_v25 = vcombine.low %v14352_v39, %v14353_v45  ;;  %v6048_v37 = vcombine.low %v12400_v54, %v12392_v56  ;;  %v14363_v16 = vld [vmem:[#allocation167_spill] sm:$0xff] }
 0x524   : > { %7288 = vrot.lane.b32.xlu1 %v6047_v33, %s8243_s2  ;;  %v6930_v33 = vcombine.low %v12372_v61, %v12358_v0  ;;  %s8147_s2 = scalar_lea.vmem %s13018_s28, 1024 }
 0x525   : > { %7350 = vrot.lane.b32.xlu0 %v5913_v53, %s8245_s12  ;;  %v6666_v53 = vrot.slane %v6658_v57, %v10081_v40  ;;  %v12394_v34 = vpop.permute.xlu0 %7150  ;;  %v14361_v57 = vld [vmem:[#allocation168_spill] sm:$0xff]  ;;  %p8148_p8 = scmp.ne.s32.totalorder %s13018_s28, %s8147_s2 }
 0x526   : > { %v12397_v46 = vrot.slane %v6930_v33, %v10081_v40  ;;  %v6218_v33 = vcombine.low %v14364_v30, %v14363_v16  ;;  %v6451_v30 = vcombine.high %v6394_v24, %v6426_v13  ;;  %v14377_v13 = vld [vmem:[#allocation180_spill] sm:$0xff]  ;;  %v14378_v24 = vld [vmem:[#allocation46_spill] sm:$0xff] }
 0x527   : > { %v6722_v38 = vcombine.low %v6666_v53, %v6698_v48  ;;  %p8149_p11 = pnand %p8148_p8, %p14474_p9 }
 0x528   : > { %7308 = vrot.lane.b32.xlu1 %v14354_v25, %s8244_s5  ;;  %v6994_v12 = vcombine.low %v12397_v46, %v12389_v31  ;;  %v14362_v25 = vld [vmem:[#allocation32_spill] sm:$0xff]  ;;  %v12440_v58 = vrot.slane %v6218_v33, %v10078_v8  ;;  %v6458_v33 = vcombine.low %v14378_v24, %v14377_v13  ;;  %v14383_v13 = vld [vmem:[#allocation57_spill] sm:$0xff]  ;;  %v14384_v24 = vld [vmem:[#allocation190_spill] sm:$0xff] }
 0x529   : > { %7370 = vrot.lane.b32.xlu0 %v6178_v5, %s8246_s13  ;;  %v14359_v5 = vld [vmem:[#allocation194_spill] sm:$0xff]  ;;  %v12407_v7 = vpop.permute.xlu0 %7154  ;;  %p8150_p0 = pneg %p8149_p11 }
 0x52a   : > { %v14360_v2 = vcombine.low %v14358_v28, %v14359_v5 }
 0x52c   : > { %7312 = vrot.lane.b32.xlu1 %v14357_v14, %s8244_s5  ;;  %v6179_v14 = vcombine.high %v6122_v63, %v6154_v59  ;;  %v14370_v63 = vld [vmem:[#allocation183_spill] sm:$0xff] }
 0x52d   : > { %7374 = vrot.lane.b32.xlu0 %v6450_v47, %s8246_s13  ;;  %v6234_v47 = vcombine.low %v14362_v25, %v14361_v57  ;;  %v14369_v57 = vld [vmem:[#allocation31_spill] sm:$0xff]  ;;  %v14371_v25 = vld [vmem:[#allocation49_spill] sm:$0xff] }
 0x52e   : > { %v6506_v16 = vcombine.low %v14371_v25, %v14370_v63  ;;  %v14379_v25 = vld [vmem:[#allocation62_spill] sm:$0xff] }
 0x52f   : > { %v12426_v51 = vrot.slane %v6234_v47, %v10078_v8 }
 0x530   : > { %7316 = vrot.lane.b32.xlu1 %v14360_v2, %s8244_s5  ;;  %v14366_v2 = vld [vmem:[#allocation287_spill] sm:$0xff]  ;;  %v12467_v63 = vrot.slane %v6506_v16, %v10078_v8  ;;  %v14381_v16 = vld [vmem:[#allocation56_spill] sm:$0xff] }
 0x531   : > { %7378 = vrot.lane.b32.xlu0 %v6722_v38, %s8246_s13  ;;  %v14365_v38 = vld [vmem:[#allocation288_spill] sm:$0xff]  ;;  %v6282_v44 = vcombine.low %v12440_v58, %v12426_v51 }
 0x532   : > { %v6202_v27 = vcombine.low %v14366_v2, %v14365_v38  ;;  %v14374_v2 = vld [vmem:[#allocation182_spill] sm:$0xff] }
 0x534   : > { %7320 = vrot.lane.b32.xlu1 %v6048_v37, %s8244_s5  ;;  %v14368_v37 = vld [vmem:[#allocation286_spill] sm:$0xff]  ;;  %s8254_s5 = smov [#allocation5]  }
 0x535   : > { %7382 = vrot.lane.b32.xlu0 %v6994_v12, %s8246_s13  ;;  %v14367_v12 = vcombine.high %v14352_v39, %v14353_v45  ;;  %v6186_v59 = vcombine.low %v14369_v57, %v14368_v37  ;;  %v14372_v39 = vld [vmem:[#allocation181_spill] sm:$0xff]  ;;  %v14373_v45 = vld [vmem:[#allocation47_spill] sm:$0xff]  ;;  %v12452_v57 = vrot.slane %v6147_v20, %v10081_v40  ;;  %v12470_v20 = vrot.slane %v6115_v55, %v10081_v40 }
 0x536   : > { %v12419_v41 = vpop.permute.xlu0 %7158  ;;  %v6474_v38 = vcombine.low %v14373_v45, %v14372_v39  ;;  %v14380_v39 = vld [vmem:[#allocation191_spill] sm:$0xff]  ;;  %v12487_v55 = vrot.slane %v6282_v44, %v10081_v40 }
 0x537   : > { %v6181_v42 = vcombine.high %v12470_v20, %v12452_v57 }
 0x538   : > { %7340 = vrot.lane.b32.xlu1 %v14367_v12, %s8245_s12  ;;  %v14375_v12 = vld [vmem:[#allocation48_spill] sm:$0xff]  ;;  %v12479_v9 = vrot.slane %v6474_v38, %v10078_v8  ;;  %v6419_v38 = vcombine.high %v12301_v17, %v12291_v6  ;;  %v6995_v6 = vcombine.high %v12397_v46, %v12389_v31  ;;  %v6049_v17 = vcombine.high %v12400_v54, %v12392_v56  ;;  %v14389_v31 = vld [vmem:[#allocation61_spill] sm:$0xff] }
 0x539   : > { %7402 = vrot.lane.b32.xlu0 %v6179_v14, %s8247_s15  ;;  %v12445_v14 = vrot.slane %v6202_v27, %v10078_v8  ;;  %v6490_v37 = vcombine.low %v14375_v12, %v14374_v2  ;;  %v12462_v27 = vrot.slane %v6186_v59, %v10078_v8  ;;  %v6723_v2 = vcombine.high %v6666_v53, %v6698_v48  ;;  %v14382_v12 = vld [vmem:[#allocation189_spill] sm:$0xff] }
 0x53a   : > { %v12442_v47 = vpop.permute.xlu0 %7178  ;;  %v14385_v48 = vcombine.high %v14358_v28, %v14359_v5  ;;  %v6180_v53 = vcombine.low %v12470_v20, %v12452_v57  ;;  %v7050_v28 = vcombine.low %v12048_v52, %v12053_v1  ;;  %v14388_v1 = vld [vmem:[#allocation58_spill] sm:$0xff]  ;;  %v7034_v56 = vcombine.low %v12010_v29, %v12013_v50  ;;  %v14390_v50 = vld [vmem:[#allocation315_spill] sm:$0xff] }
 0x53b   : > { %v6250_v23 = vcombine.low %v12462_v27, %v12445_v14  ;;  %v12482_v59 = vrot.slane %v6490_v37, %v10078_v8  ;;  %v12501_v37 = vrot.slane %v6458_v33, %v10078_v8  ;;  %v7018_v46 = vcombine.low %v14389_v31, %v14388_v1 }
 0x53c   : > { %7344 = vrot.lane.b32.xlu1 %v14376_v11, %s8245_s12  ;;  %v6746_v11 = vcombine.low %v14382_v12, %v14381_v16  ;;  %v14387_v16 = vld [vmem:[#allocation188_spill] sm:$0xff]  ;;  %v6691_v54 = vcombine.high %v12335_v10, %v12324_v62  ;;  %v6659_v10 = vcombine.high %v12345_v35, %v12332_v60 }
 0x53d   : > { %7406 = vrot.lane.b32.xlu0 %v6451_v30, %s8247_s15  ;;  %v6778_v30 = vcombine.low %v14380_v39, %v14379_v25  ;;  %v6762_v25 = vcombine.low %v14384_v24, %v14383_v13  ;;  %v6554_v44 = vcombine.low %v12482_v59, %v12467_v63  ;;  %v14386_v39 = vld [vmem:[#allocation55_spill] sm:$0xff]  ;;  %v12519_v33 = vrot.slane %v6250_v23, %v10081_v40 }
 0x53e   : > { %v12474_v45 = vpop.permute.xlu0 %7182  ;;  %v6387_v13 = vcombine.high %v12317_v21, %v12298_v19  ;;  %v12526_v24 = vrot.slane %v6746_v11, %v10078_v8  ;;  %v12538_v19 = vrot.slane %v6419_v38, %v10081_v40  ;;  %v12555_v38 = vrot.slane %v7050_v28, %v10078_v8  ;;  %v12573_v28 = vpop.permute.xlu1 %7148 }
 0x53f   : > { %v12508_v12 = vrot.slane %v6778_v30, %v10078_v8  ;;  %v6522_v30 = vcombine.low %v12501_v37, %v12479_v9  ;;  %v12529_v52 = vrot.slane %v6762_v25, %v10078_v8  ;;  %v12541_v21 = vrot.slane %v6554_v44, %v10081_v40  ;;  %v14391_v25 = vld [vmem:[#allocation314_spill] sm:$0xff] }
 0x540   : > { %7348 = vrot.lane.b32.xlu1 %v14385_v48, %s8245_s12  ;;  %v6314_v23 = vcombine.low %v12519_v33, %v12487_v55  ;;  %v7002_v48 = vcombine.low %v14391_v25, %v14390_v50 }
 0x541   : > { %7410 = vrot.lane.b32.xlu0 %v6723_v2, %s8247_s15  ;;  %v6730_v2 = vcombine.low %v14387_v16, %v14386_v39  ;;  %v6826_v29 = vcombine.low %v12529_v52, %v12508_v12  ;;  %v12558_v39 = vrot.slane %v6387_v13, %v10081_v40  ;;  %v12561_v62 = vrot.slane %v6522_v30, %v10081_v40 }
 0x542   : > { %v12512_v5 = vpop.permute.xlu0 %7186  ;;  %v6963_v30 = vcombine.high %v12361_v43, %v12352_v49  ;;  %v12590_v1 = vrot.slane %v7002_v48, %v10078_v8  ;;  %v12608_v43 = vpop.permute.xlu1 %7152 }
 0x543   : > { %v12548_v11 = vrot.slane %v6730_v2, %v10078_v8  ;;  %v12568_v2 = vrot.slane %v7018_v46, %v10078_v8  ;;  %v6452_v60 = vcombine.low %v12558_v39, %v12538_v19  ;;  %v6586_v35 = vcombine.low %v12561_v62, %v12541_v21 }
 0x544   : > { %7352 = vrot.lane.b32.xlu1 %v6049_v17, %s8245_s12  ;;  %v12578_v17 = vrot.slane %v6691_v54, %v10081_v40  ;;  %v12585_v13 = vrot.slane %v6826_v29, %v10081_v40  ;;  %v6673_v46 = vrot.slane %v6659_v10, %v10081_v40  ;;  %v6931_v54 = vcombine.high %v12372_v61, %v12358_v0  ;;  %s8151_s12 = sshll.u32 %s8254_s5, 4  ;;  %s8152_s12 = int_to_ptr.vmem [resolvable:$false] %s8151_s12 }
 0x545   : > { %7414 = vrot.lane.b32.xlu0 %v6995_v6, %s8247_s15  ;;  %v6794_v16 = vcombine.low %v12548_v11, %v12526_v24  ;;  %v12571_v6 = vrot.slane %v7034_v56, %v10078_v8  ;;  %v12603_v8 = vrot.slane %v6963_v30, %v10081_v40  ;;  %v14393_v30 = vld [vmem:[#allocation310_spill] sm:$0xff]  ;;  %p8154_p6 = scmp.lt.s32.totalorder %s13018_s28, %s8152_s12 }
 0x546   : > { %v7191_v44 = vpop.permute.xlu0 %7190  ;;  %v6724_v50 = vcombine.low %v6673_v46, %v12578_v17  ;;  %v6945_v61 = vrot.slane %v6931_v54, %v10081_v40  ;;  %v12616_v48 = vpop.permute.xlu1 %7156 }
 0x547   : > { %v6802_v56 = vrot.slane %v6794_v16, %v10081_v40 }
 0x548   : > { %7372 = vrot.lane.b32.xlu1 %v6314_v23, %s8246_s13  ;;  %v7066_v23 = vcombine.low %v12590_v1, %v12568_v2  ;;  %v6996_v16 = vcombine.low %v6945_v61, %v12603_v8 }
 0x549   : > { %7434 = vrot.lane.b32.xlu0 %v6180_v53, %s8248_s16  ;;  %v7098_v53 = vcombine.low %v12571_v6, %v12555_v38  ;;  %v6858_v0 = vcombine.low %v6802_v56, %v12585_v13 }
 0x54a   : > { %v7074_v25 = vrot.slane %v7066_v23, %v10081_v40 }
 0x54b   : > { %v7211_v31 = vpop.permute.xlu0 %7210  ;;  %v12606_v49 = vrot.slane %v7098_v53, %v10081_v40 }
 0x54c   : > { %7376 = vrot.lane.b32.xlu1 %v6586_v35, %s8246_s13  ;;  %v14392_v35 = vld [vmem:[#allocation309_spill] sm:$0xff] }
 0x54d   : > { %7438 = vrot.lane.b32.xlu0 %v6452_v60, %s8248_s16  ;;  %v7130_v60 = vcombine.low %v7074_v25, %v12606_v49  ;;  %v14394_v53 = vcombine.low %v14392_v35, %v14393_v30  ;;  %v14396_v35 = vld [vmem:[#allocation28_spill] sm:$0xff] }
 0x54e   : > { %v14397_v30 = vcombine.low %v14395_v18, %v14396_v35  ;;  %v6587_v18 = vcombine.high %v12561_v62, %v12541_v21  ;;  %v14401_v35 = vld [vmem:[#allocation304_spill] sm:$0xff] }
 0x54f   : > { %v7215_v29 = vpop.permute.xlu0 %7214  ;;  %v7625_v54 = vsel %vm7618_vm3, %v14394_v53, %v12419_v41  ;;  %v14399_v53 = vld [vmem:[#allocation44_spill] sm:$0xff] }
 0x550   : > { %7380 = vrot.lane.b32.xlu1 %v6858_v0, %s8246_s13  ;;  %v7634_v23 = vsel %vm7627_vm4, %v7625_v54, %v7191_v44  ;;  %v7619_v41 = vsel %vm7618_vm3, %v14397_v30, %v12363_v3  ;;  %v6453_v44 = vcombine.high %v12558_v39, %v12538_v19 }
 0x551   : > { %7442 = vrot.lane.b32.xlu0 %v6724_v50, %s8248_s16  ;;  %v7628_v57 = vsel %vm7627_vm4, %v7619_v41, %v12442_v47  ;;  %v6283_v47 = vcombine.high %v12440_v58, %v12426_v51  ;;  %v14402_v51 = vld [vmem:[#allocation305_spill] sm:$0xff] }
 0x552   : > { %v7637_v20 = vsel %vm7636_vm5, %v7628_v57, %v7211_v31  ;;  %v6725_v31 = vcombine.high %v6673_v46, %v12578_v17  ;;  %v14403_v58 = vcombine.low %v14401_v35, %v14402_v51  ;;  %v6523_v57 = vcombine.high %v12501_v37, %v12479_v9  ;;  %v14404_v9 = vld [vmem:[#allocation22_spill] sm:$0xff]  ;;  %v14413_v35 = vld [vmem:[#allocation59_spill] sm:$0xff] }
 0x553   : > { %v7219_v10 = vpop.permute.xlu0 %7218  ;;  %v14405_v37 = vld [vmem:[#allocation30_spill] sm:$0xff]  ;;  %v14414_v51 = vld [vmem:[#allocation311_spill] sm:$0xff] }
 0x554   : > { %7384 = vrot.lane.b32.xlu1 %v7130_v60, %s8246_s13  ;;  %s8153_s13 = scalar_lea.vmem %s8152_s12, 2048 }
 0x555   : > { %7446 = vrot.lane.b32.xlu0 %v6996_v16, %s8248_s16  ;;  %v6315_v16 = vcombine.high %v12519_v33, %v12487_v55  ;;  %p8155_p13 = scmp.lt.s32.totalorder %s8153_s13, %s8147_s2 }
 0x556   : > { %v12628_v50 = vpop.permute.xlu1 %7160 }
 0x557   : > { %v7223_v0 = vpop.permute.xlu0 %7222  ;;  %p8156_p2 = por %p8155_p13, %p8154_p6 }
 0x558   : > { %v7643_v60 = vsel %vm7636_vm5, %v7634_v23, %v7223_v0  ;;  %7404 = vrot.lane.b32.xlu1 %v6315_v16, %s8247_s15  ;;  %v6859_v0 = vcombine.high %v6802_v56, %v12585_v13  ;;  %v6251_v16 = vcombine.high %v12462_v27, %v12445_v14  ;;  %v6555_v13 = vcombine.high %v12482_v59, %v12467_v63 }
 0x559   : > { %7466 = vrot.lane.b32.xlu0 %v6181_v42, %s8249_s17  ;;  %v14398_v42 = vld [vmem:[#allocation177_spill] sm:$0xff]  ;;  %v6997_v56 = vcombine.high %v6945_v61, %v12603_v8  ;;  %v6827_v59 = vcombine.high %v12529_v52, %v12508_v12  ;;  %v7099_v52 = vcombine.high %v12571_v6, %v12555_v38  ;;  %p8157_p5 = pnand %p8156_p2, %p8150_p0 }
 0x55a   : > { %v12645_v55 = vpop.permute.xlu1 %7180  ;;  %v14400_v54 = vcombine.low %v14398_v42, %v14399_v53  ;;  %v6265_v41 = vrot.slane %v6251_v16, %v10081_v40  ;;  %v6569_v63 = vrot.slane %v6555_v13, %v10081_v40  ;;  %v14407_v42 = vld [vmem:[#allocation43_spill] sm:$0xff]  ;;  %v14408_v53 = vld [vmem:[#allocation45_spill] sm:$0xff] }
 0x55b   : > { %v7243_v33 = vpop.permute.xlu0 %7242  ;;  %v6841_v12 = vrot.slane %v6827_v59, %v10081_v40 }
 0x55c   : > { %v7646_v3 = vsel %vm7645_vm6, %v7637_v20, %v7243_v33  ;;  %v7621_v23 = vsel %vm7618_vm3, %v14400_v54, %v12394_v34  ;;  %7408 = vrot.lane.b32.xlu1 %v6587_v18, %s8247_s15  ;;  %v14406_v20 = vcombine.low %v14404_v9, %v14405_v37  ;;  %v14409_v54 = vcombine.low %v14407_v42, %v14408_v53 }
 0x55d   : > { %7470 = vrot.lane.b32.xlu0 %v6453_v44, %s8249_s17  ;;  %v7630_v19 = vsel %vm7627_vm4, %v7621_v23, %v12474_v45  ;;  %v7623_v45 = vsel %vm7618_vm3, %v14403_v58, %v12407_v7  ;;  %v7131_v7 = vcombine.high %v7074_v25, %v12606_v49  ;;  %v6537_v25 = vrot.slane %v6523_v57, %v10081_v40 }
 0x55e   : > { %v7639_v21 = vsel %vm7636_vm5, %v7630_v19, %v7215_v29  ;;  %v12664_v39 = vpop.permute.xlu1 %7184  ;;  %v6297_v29 = vrot.slane %v6283_v47, %v10081_v40  ;;  %v7632_v17 = vsel %vm7627_vm4, %v7623_v45, %v12512_v5  ;;  %v7113_v23 = vrot.slane %v7099_v52, %v10081_v40 }
 0x55f   : > { %v7247_v62 = vpop.permute.xlu0 %7246  ;;  %v7641_v14 = vsel %vm7636_vm5, %v7632_v17, %v7219_v10  ;;  %v6795_v10 = vcombine.high %v12548_v11, %v12526_v24  ;;  %v6588_v44 = vcombine.low %v6537_v25, %v6569_v63  ;;  %v7067_v11 = vcombine.high %v12590_v1, %v12568_v2 }
 0x560   : > { %v7648_v34 = vsel %vm7645_vm6, %v7639_v21, %v7247_v62  ;;  %7412 = vrot.lane.b32.xlu1 %v6859_v0, %s8247_s15  ;;  %v6316_v61 = vcombine.low %v6265_v41, %v6297_v29  ;;  %v14410_v21 = vld [vmem:[#allocation52_spill] sm:$0xff]  ;;  %v14411_v62 = vld [vmem:[#allocation53_spill] sm:$0xff]  ;;  %v14415_v58 = vcombine.low %v14413_v35, %v14414_v51 }
 0x561   : > { %7474 = vrot.lane.b32.xlu0 %v6725_v31, %s8249_s17  ;;  %v6809_v24 = vrot.slane %v6795_v10, %v10081_v40  ;;  %v14412_v2 = vcombine.low %v14410_v21, %v14411_v62 }
 0x562   : > { %v12684_v27 = vpop.permute.xlu1 %7188 }
 0x563   : > { %v7251_v46 = vpop.permute.xlu0 %7250  ;;  %v6860_v47 = vcombine.low %v6809_v24, %v6841_v12  ;;  %v6861_v52 = vcombine.high %v6809_v24, %v6841_v12 }
 0x564   : > { %v7650_v30 = vsel %vm7645_vm6, %v7641_v14, %v7251_v46  ;;  %7416 = vrot.lane.b32.xlu1 %v7131_v7, %s8247_s15  ;;  %v6317_v14 = vcombine.high %v6265_v41, %v6297_v29  ;;  %v14417_v7 = vld [vmem:[#allocation169_spill] sm:$0xff] }
 0x565   : > { %7478 = vrot.lane.b32.xlu0 %v6997_v56, %s8249_s17 }
 0x566   : > { %v7193_v5 = vpop.permute.xlu1 %7192 }
 0x567   : > { %v7255_v8 = vpop.permute.xlu0 %7254 }
 0x568   : > { %v7652_v49 = vsel %vm7645_vm6, %v7643_v60, %v7255_v8  ;;  %7436 = vrot.lane.b32.xlu1 %v6316_v61, %s8248_s16  ;;  %v14421_v61 = vld [vmem:[#allocation50_spill] sm:$0xff] }
 0x569   : > { %7498 = vrot.lane.b32.xlu0 %v14406_v20, %s8250_s22 }
 0x56a   : > { %v7213_v60 = vpop.permute.xlu1 %7212 }
 0x56b   : > { %v7275_v33 = vpop.permute.xlu0 %7274 }
 0x56c   : > { %v7655_v18 = vsel %vm7654_vm7, %v7646_v3, %v7275_v33  ;;  %7440 = vrot.lane.b32.xlu1 %v6588_v44, %s8248_s16  ;;  %v7081_v3 = vrot.slane %v7067_v11, %v10081_v40  ;;  %v14416_v40 = vcombine.low %v12079_v15, %v12082_v36  ;;  %v14420_v15 = vcombine.high %v14404_v9, %v14405_v37  ;;  %v14426_v44 = vld [vmem:[#allocation193_spill] sm:$0xff] }
 0x56d   : > { %7502 = vrot.lane.b32.xlu0 %v14409_v54, %s8250_s22 }
 0x56e   : > { %v7217_v38 = vpop.permute.xlu1 %7216  ;;  %v7132_v0 = vcombine.low %v7081_v3, %v7113_v23  ;;  %v7133_v54 = vcombine.high %v7081_v3, %v7113_v23  ;;  %v14431_v23 = vld [vmem:[#allocation36_spill] sm:$0xff] }
 0x56f   : > { %v7279_v6 = vpop.permute.xlu0 %7278 }
 0x570   : > { %v7657_v19 = vsel %vm7654_vm7, %v7648_v34, %v7279_v6  ;;  %7444 = vrot.lane.b32.xlu1 %v6860_v47, %s8248_s16  ;;  %v7626_v34 = vsel %vm7618_vm3, %v14416_v40, %v12628_v50  ;;  %v14437_v40 = vld [vmem:[#allocation294_spill] sm:$0xff] }
 0x571   : > { %7506 = vrot.lane.b32.xlu0 %v14412_v2, %s8250_s22  ;;  %v7635_v45 = vsel %vm7627_vm4, %v7626_v34, %v7193_v5  ;;  %v6589_v5 = vcombine.high %v6537_v25, %v6569_v63  ;;  %v14433_v2 = vld [vmem:[#allocation29_spill] sm:$0xff] }
 0x572   : > { %v7221_v1 = vpop.permute.xlu1 %7220 }
 0x573   : > { %v7283_v31 = vpop.permute.xlu0 %7282 }
 0x574   : > { %v7659_v16 = vsel %vm7654_vm7, %v7650_v30, %v7283_v31  ;;  %7448 = vrot.lane.b32.xlu1 %v7132_v0, %s8248_s16  ;;  %v14418_v30 = vld [vmem:[#allocation170_spill] sm:$0xff] }
 0x575   : > { %7510 = vrot.lane.b32.xlu0 %v14415_v58, %s8250_s22  ;;  %v14419_v57 = vcombine.low %v14417_v7, %v14418_v30  ;;  %v14436_v58 = vld [vmem:[#allocation296_spill] sm:$0xff]  ;;  %v14442_v30 = vld [vmem:[#allocation67_spill] sm:$0xff] }
 0x576   : > { %v7225_v17 = vpop.permute.xlu1 %7224  ;;  %v14438_v34 = vcombine.low %v14436_v58, %v14437_v40 }
 0x577   : > { %v7287_v13 = vpop.permute.xlu0 %7286  ;;  %v7644_v46 = vsel %vm7636_vm5, %v7635_v45, %v7225_v17  ;;  %v7620_v59 = vsel %vm7618_vm3, %v14419_v57, %v12573_v28  ;;  %v14439_v45 = vld [vmem:[#allocation178_spill] sm:$0xff]  ;;  %v14440_v17 = vld [vmem:[#allocation179_spill] sm:$0xff]  ;;  %v14443_v57 = vld [vmem:[#allocation68_spill] sm:$0xff] }
 0x578   : > { %v7661_v56 = vsel %vm7654_vm7, %v7652_v49, %v7287_v13  ;;  %7468 = vrot.lane.b32.xlu1 %v6317_v14, %s8249_s17  ;;  %v7629_v36 = vsel %vm7627_vm4, %v7620_v59, %v12645_v55  ;;  %v14422_v49 = vld [vmem:[#allocation184_spill] sm:$0xff]  ;;  %v14424_v55 = vcombine.high %v14407_v42, %v14408_v53  ;;  %v14441_v13 = vcombine.low %v14439_v45, %v14440_v17 }
 0x579   : > { %7530 = vrot.lane.b32.xlu0 %v14420_v15, %s8251_s23  ;;  %v7638_v50 = vsel %vm7636_vm5, %v7629_v36, %v7213_v60  ;;  %v14423_v10 = vcombine.low %v14421_v61, %v14422_v49  ;;  %v14444_v59 = vcombine.low %v14442_v30, %v14443_v57  ;;  %v14445_v15 = vld [vmem:[#allocation54_spill] sm:$0xff]  ;;  %v14446_v36 = vld [vmem:[#allocation187_spill] sm:$0xff]  ;;  %v14449_v61 = vld [vmem:[#allocation313_spill] sm:$0xff] }
 0x57a   : > { %v7245_v29 = vpop.permute.xlu1 %7244  ;;  %v14450_v49 = vld [vmem:[#allocation312_spill] sm:$0xff] }
 0x57b   : > { %v7307_v41 = vpop.permute.xlu0 %7306  ;;  %v7647_v8 = vsel %vm7645_vm6, %v7638_v50, %v7245_v29  ;;  %v7622_v9 = vsel %vm7618_vm3, %v14423_v10, %v12608_v43  ;;  %v14425_v43 = vld [vmem:[#allocation192_spill] sm:$0xff]  ;;  %v14447_v50 = vcombine.low %v14445_v15, %v14446_v36  ;;  %v14451_v10 = vcombine.low %v14449_v61, %v14450_v49 }
 0x57c   : > { %v7664_v28 = vsel %vm7663_vm8, %v7655_v18, %v7307_v41  ;;  %7472 = vrot.lane.b32.xlu1 %v6589_v5, %s8249_s17  ;;  %v7631_v63 = vsel %vm7627_vm4, %v7622_v9, %v12664_v39  ;;  %v14427_v18 = vcombine.low %v14425_v43, %v14426_v44  ;;  %v14428_v39 = vcombine.high %v14410_v21, %v14411_v62  ;;  %v14430_v62 = vld [vmem:[#allocation33_spill] sm:$0xff] }
 0x57d   : > { %7534 = vrot.lane.b32.xlu0 %v14424_v55, %s8251_s23  ;;  %v7640_v25 = vsel %vm7636_vm5, %v7631_v63, %v7217_v38  ;;  %v14432_v3 = vcombine.low %v14430_v62, %v14431_v23  ;;  %v14454_v44 = vcombine.high %v14436_v58, %v14437_v40 }
 0x57e   : > { %v7249_v37 = vpop.permute.xlu1 %7248  ;;  %v7624_v11 = vsel %vm7618_vm3, %v14427_v18, %v12616_v48  ;;  %v14429_v48 = vcombine.high %v14413_v35, %v14414_v51  ;;  %v14455_v18 = vcombine.high %v14439_v45, %v14440_v17  ;;  %v14466_v17 = vld [vmem:[#allocation69_spill] sm:$0xff] }
 0x57f   : > { %v7311_v20 = vpop.permute.xlu0 %7310  ;;  %v7649_v60 = vsel %vm7645_vm6, %v7640_v25, %v7249_v37  ;;  %v7633_v12 = vsel %vm7627_vm4, %v7624_v11, %v12684_v27  ;;  %v14452_v37 = vcombine.high %v14430_v62, %v14431_v23 }
 0x580   : > { %v7666_v33 = vsel %vm7663_vm8, %v7657_v19, %v7311_v20  ;;  %7476 = vrot.lane.b32.xlu1 %v6861_v52, %s8249_s17  ;;  %v7642_v24 = vsel %vm7636_vm5, %v7633_v12, %v7221_v1  ;;  %v14434_v1 = vld [vmem:[#allocation166_spill] sm:$0xff] }
 0x581   : > { %7538 = vrot.lane.b32.xlu0 %v14428_v39, %s8251_s23  ;;  %v14435_v31 = vcombine.low %v14433_v2, %v14434_v1  ;;  %v14453_v20 = vcombine.high %v14433_v2, %v14434_v1  ;;  %v14461_v2 = vld [vmem:[#allocation172_spill] sm:$0xff] }
 0x582   : > { %v7253_v42 = vpop.permute.xlu1 %7252 }
 0x583   : > { %v7315_v53 = vpop.permute.xlu0 %7314  ;;  %v7651_v38 = vsel %vm7645_vm6, %v7642_v24, %v7253_v42  ;;  %v14456_v42 = vcombine.high %v14442_v30, %v14443_v57  ;;  %v14469_v57 = vcombine.low %v12110_v32, %v12092_v4 }
 0x584   : > { %v7668_v6 = vsel %vm7663_vm8, %v7659_v16, %v7315_v53  ;;  %7480 = vrot.lane.b32.xlu1 %v7133_v54, %s8249_s17  ;;  %v14457_v53 = vcombine.high %v14445_v15, %v14446_v36 }
 0x585   : > { %7542 = vrot.lane.b32.xlu0 %v14429_v48, %s8251_s23 }
 0x586   : > { %v7257_v47 = vpop.permute.xlu1 %7256 }
 0x587   : > { %v7319_v19 = vpop.permute.xlu0 %7318  ;;  %v7653_v27 = vsel %vm7645_vm6, %v7644_v46, %v7257_v47  ;;  %v14458_v47 = vcombine.high %v12104_v22, %v12089_v26 }
 0x588   : > { %v7670_v21 = vsel %vm7663_vm8, %v7661_v56, %v7319_v19  ;;  %7500 = vrot.lane.b32.xlu1 %v14432_v3, %s8250_s22  ;;  %v14459_v19 = vcombine.high %v14449_v61, %v14450_v49  ;;  %v14460_v3 = vld [vmem:[#allocation290_spill] sm:$0xff] }
 0x589   : > { %7562 = vrot.lane.b32.xlu0 %v14435_v31, %s8252_s24  ;;  %v14462_v1 = vcombine.low %v14460_v3, %v14461_v2 }
 0x58a   : > { %v7277_v0 = vpop.permute.xlu1 %7276 }
 0x58b   : > { %v7339_v16 = vpop.permute.xlu0 %7338  ;;  %v7656_v35 = vsel %vm7654_vm7, %v7647_v8, %v7277_v0 }
 0x58c   : > { %v7673_v51 = vsel %vm7672_vm9, %v7664_v28, %v7339_v16  ;;  %7504 = vrot.lane.b32.xlu1 %v14438_v34, %s8250_s22  ;;  %v14448_v28 = vcombine.low %v12104_v22, %v12089_v26  ;;  %v14463_v16 = vld [vmem:[#allocation299_spill] sm:$0xff] }
 0x58d   : > { %7566 = vrot.lane.b32.xlu0 %v14441_v13, %s8252_s24  ;;  %v14467_v13 = vld [vmem:[#allocation196_spill] sm:$0xff] }
 0x58e   : > { %v7281_v14 = vpop.permute.xlu1 %7280 }
 0x58f   : > { %v7343_v46 = vpop.permute.xlu0 %7342  ;;  %v7658_v56 = vsel %vm7654_vm7, %v7649_v60, %v7281_v14  ;;  %v14468_v14 = vcombine.low %v14466_v17, %v14467_v13 }
 0x590   : > { %v7675_v7 = vsel %vm7672_vm9, %v7666_v33, %v7343_v46  ;;  %7508 = vrot.lane.b32.xlu1 %v14444_v59, %s8250_s22 }
 0x591   : > { %7570 = vrot.lane.b32.xlu0 %v14447_v50, %s8252_s24 }
 0x592   : > { %v7285_v29 = vpop.permute.xlu1 %7284 }
 0x593   : > { %v7347_v41 = vpop.permute.xlu0 %7346  ;;  %v7660_v5 = vsel %vm7654_vm7, %v7651_v38, %v7285_v29  ;;  %v14470_v29 = vcombine.high %v14460_v3, %v14461_v2 }
 0x594   : > { %v7677_v8 = vsel %vm7672_vm9, %v7668_v6, %v7347_v41  ;;  %7512 = vrot.lane.b32.xlu1 %v14448_v28, %s8250_s22 }
 0x595   : > { %7574 = vrot.lane.b32.xlu0 %v14451_v10, %s8252_s24 }
 0x596   : > { %v7289_v9 = vpop.permute.xlu1 %7288 }
 0x597   : > { %v7351_v55 = vpop.permute.xlu0 %7350  ;;  %v7662_v63 = vsel %vm7654_vm7, %v7653_v27, %v7289_v9 }
 0x598   : > { %v7679_v25 = vsel %vm7672_vm9, %v7670_v21, %v7351_v55  ;;  %7532 = vrot.lane.b32.xlu1 %v14452_v37, %s8251_s23 }
 0x599   : > { %7594 = vrot.lane.b32.xlu0 %v14453_v20, %s8253_s25 }
 0x59a   : > { %v7309_v52 = vpop.permute.xlu1 %7308 }
 0x59b   : > { %v7371_v60 = vpop.permute.xlu0 %7370  ;;  %v7665_v33 = vsel %vm7663_vm8, %v7656_v35, %v7309_v52  ;;  %v14464_v35 = vld [vmem:[#allocation295_spill] sm:$0xff] }
 0x59c   : > { %v7682_v43 = vsel %vm7681_vm10, %v7673_v51, %v7371_v60  ;;  %7536 = vrot.lane.b32.xlu1 %v14454_v44, %s8251_s23  ;;  %v14465_v51 = vcombine.low %v14463_v16, %v14464_v35  ;;  %v14471_v61 = vcombine.high %v14463_v16, %v14464_v35  ;;  %v14473_v60 = vcombine.high %v12110_v32, %v12092_v4 }
 0x59d   : > { %7598 = vrot.lane.b32.xlu0 %v14455_v18, %s8253_s25 }
 0x59e   : > { %v7313_v11 = vpop.permute.xlu1 %7312 }
 0x59f   : > { %v7375_v39 = vpop.permute.xlu0 %7374  ;;  %v7667_v12 = vsel %vm7663_vm8, %v7658_v56, %v7313_v11 }
 0x5a0   : > { %v7684_v24 = vsel %vm7681_vm10, %v7675_v7, %v7375_v39  ;;  %7540 = vrot.lane.b32.xlu1 %v14456_v42, %s8251_s23 }
 0x5a1   : > { %7602 = vrot.lane.b32.xlu0 %v14457_v53, %s8253_s25 }
 0x5a2   : > { %v7317_v54 = vpop.permute.xlu1 %7316 }
 0x5a3   : > { %v7379_v38 = vpop.permute.xlu0 %7378  ;;  %v7669_v6 = vsel %vm7663_vm8, %v7660_v5, %v7317_v54 }
 0x5a4   : > { %v7686_v48 = vsel %vm7681_vm10, %v7677_v8, %v7379_v38  ;;  %7544 = vrot.lane.b32.xlu1 %v14458_v47, %s8251_s23 }
 0x5a5   : > { %7606 = vrot.lane.b32.xlu0 %v14459_v19, %s8253_s25 }
 0x5a6   : > { %v7321_v27 = vpop.permute.xlu1 %7320 }
 0x5a7   : > { %v7383_v21 = vpop.permute.xlu0 %7382  ;;  %v7671_v62 = vsel %vm7663_vm8, %v7662_v63, %v7321_v27  ;;  %v14472_v63 = vcombine.high %v14466_v17, %v14467_v13 }
 0x5a8   : > { %v7688_v23 = vsel %vm7681_vm10, %v7679_v25, %v7383_v21  ;;  %7564 = vrot.lane.b32.xlu1 %v14462_v1, %s8252_s24 }
 0x5aa   : > { %v7341_v31 = vpop.permute.xlu1 %7340 }
 0x5ab   : > { %v7403_v26 = vpop.permute.xlu0 %7402  ;;  %v7674_v22 = vsel %vm7672_vm9, %v7665_v33, %v7341_v31 }
 0x5ac   : > { %v7691_v0 = vsel %vm7690_vm11, %v7682_v43, %v7403_v26  ;;  %7568 = vrot.lane.b32.xlu1 %v14465_v51, %s8252_s24 }
 0x5ae   : > { %v7345_v58 = vpop.permute.xlu1 %7344 }
 0x5af   : > { %v7407_v40 = vpop.permute.xlu0 %7406  ;;  %v7676_v34 = vsel %vm7672_vm9, %v7667_v12, %v7345_v58 }
 0x5b0   : > { %v7693_v45 = vsel %vm7690_vm11, %v7684_v24, %v7407_v40  ;;  %7572 = vrot.lane.b32.xlu1 %v14468_v14, %s8252_s24 }
 0x5b2   : > { %v7349_v46 = vpop.permute.xlu1 %7348 }
 0x5b3   : > { %v7411_v56 = vpop.permute.xlu0 %7410  ;;  %v7678_v7 = vsel %vm7672_vm9, %v7669_v6, %v7349_v46 }
 0x5b4   : > { %v7695_v30 = vsel %vm7690_vm11, %v7686_v48, %v7411_v56  ;;  %7576 = vrot.lane.b32.xlu1 %v14469_v57, %s8252_s24 }
 0x5b6   : > { %v7353_v59 = vpop.permute.xlu1 %7352 }
 0x5b7   : > { %v7415_v15 = vpop.permute.xlu0 %7414  ;;  %v7680_v36 = vsel %vm7672_vm9, %v7671_v62, %v7353_v59 }
 0x5b8   : > { %v7697_v50 = vsel %vm7690_vm11, %v7688_v23, %v7415_v15  ;;  %7596 = vrot.lane.b32.xlu1 %v14470_v29, %s8253_s25 }
 0x5ba   : > { %v7373_v41 = vpop.permute.xlu1 %7372 }
 0x5bb   : > { %v7435_v5 = vpop.permute.xlu0 %7434  ;;  %v7683_v8 = vsel %vm7681_vm10, %v7674_v22, %v7373_v41 }
 0x5bc   : > { %v7700_v28 = vsel %vm7699_vm12, %v7691_v0, %v7435_v5  ;;  %7600 = vrot.lane.b32.xlu1 %v14471_v61, %s8253_s25 }
 0x5be   : > { %v7377_v49 = vpop.permute.xlu1 %7376 }
 0x5bf   : > { %v7439_v10 = vpop.permute.xlu0 %7438  ;;  %v7685_v9 = vsel %vm7681_vm10, %v7676_v34, %v7377_v49 }
 0x5c0   : > { %v12908_v55 = vsel %vm7699_vm12, %v7693_v45, %v7439_v10  ;;  %7604 = vrot.lane.b32.xlu1 %v14472_v63, %s8253_s25 }
 0x5c2   : > { %v7381_v25 = vpop.permute.xlu1 %7380 }
 0x5c3   : > { %v7443_v37 = vpop.permute.xlu0 %7442  ;;  %v7687_v20 = vsel %vm7681_vm10, %v7678_v7, %v7381_v25 }
 0x5c4   : > { %v12916_v52 = vsel %vm7699_vm12, %v7695_v30, %v7443_v37  ;;  %7608 = vrot.lane.b32.xlu1 %v14473_v60, %s8253_s25 }
 0x5c6   : > { %v7385_v33 = vpop.permute.xlu1 %7384 }
 0x5c7   : > { %v7447_v43 = vpop.permute.xlu0 %7446  ;;  %v7689_v44 = vsel %vm7681_vm10, %v7680_v36, %v7385_v33 }
 0x5c8   : > { %v12924_v18 = vsel %vm7699_vm12, %v7697_v50, %v7447_v43 }
 0x5ca   : > { %v7405_v11 = vpop.permute.xlu1 %7404 }
 0x5cb   : > { %v7467_v39 = vpop.permute.xlu0 %7466  ;;  %v7692_v12 = vsel %vm7690_vm11, %v7683_v8, %v7405_v11 }
 0x5cc   : > { %v7709_v59 = vsel %vm7708_vm13, %v7700_v28, %v7467_v39 }
 0x5ce   : > { %v7409_v24 = vpop.permute.xlu1 %7408 }
 0x5cf   : > { %v7471_v42 = vpop.permute.xlu0 %7470  ;;  %v7694_v53 = vsel %vm7690_vm11, %v7685_v9, %v7409_v24 }
 0x5d0   : > { %v7711_v5 = vsel %vm7708_vm13, %v12908_v55, %v7471_v42 }
 0x5d2   : > { %v7413_v54 = vpop.permute.xlu1 %7412 }
 0x5d3   : > { %v7475_v38 = vpop.permute.xlu0 %7474  ;;  %v7696_v4 = vsel %vm7690_vm11, %v7687_v20, %v7413_v54 }
 0x5d4   : > { %v7713_v55 = vsel %vm7708_vm13, %v12916_v52, %v7475_v38 }
 0x5d6   : > { %v7417_v32 = vpop.permute.xlu1 %7416 }
 0x5d7   : > { %v7479_v6 = vpop.permute.xlu0 %7478  ;;  %v7698_v48 = vsel %vm7690_vm11, %v7689_v44, %v7417_v32 }
 0x5d8   : > { %v7715_v43 = vsel %vm7708_vm13, %v12924_v18, %v7479_v6 }
 0x5da   : > { %v7437_v47 = vpop.permute.xlu1 %7436 }
 0x5db   : > { %v7499_v19 = vpop.permute.xlu0 %7498  ;;  %v12931_v27 = vsel %vm7699_vm12, %v7692_v12, %v7437_v47 }
 0x5dc   : > { %v7718_v15 = vsel %vm7717_vm14, %v7709_v59, %v7499_v19 }
 0x5de   : > { %v7441_v21 = vpop.permute.xlu1 %7440 }
 0x5df   : > { %v7503_v62 = vpop.permute.xlu0 %7502  ;;  %v12934_v23 = vsel %vm7699_vm12, %v7694_v53, %v7441_v21 }
 0x5e0   : > { %v7720_v61 = vsel %vm7717_vm14, %v7711_v5, %v7503_v62 }
 0x5e2   : > { %v7445_v3 = vpop.permute.xlu1 %7444 }
 0x5e3   : > { %v7507_v2 = vpop.permute.xlu0 %7506  ;;  %v12937_v1 = vsel %vm7699_vm12, %v7696_v4, %v7445_v3 }
 0x5e4   : > { %v7722_v25 = vsel %vm7717_vm14, %v7713_v55, %v7507_v2 }
 0x5e6   : > { %v7449_v31 = vpop.permute.xlu1 %7448 }
 0x5e7   : > { %v7511_v26 = vpop.permute.xlu0 %7510  ;;  %v12940_v22 = vsel %vm7699_vm12, %v7698_v48, %v7449_v31 }
 0x5e8   : > { %v7724_v52 = vsel %vm7717_vm14, %v7715_v43, %v7511_v26 }
 0x5ea   : > { %v7469_v0 = vpop.permute.xlu1 %7468 }
 0x5eb   : > { %v7531_v16 = vpop.permute.xlu0 %7530  ;;  %v7710_v4 = vsel %vm7708_vm13, %v12931_v27, %v7469_v0 }
 0x5ec   : > { %v7727_v36 = vsel %vm7726_vm15, %v7718_v15, %v7531_v16 }
 0x5ee   : > { %v12942_v35 = vpop.permute.xlu1 %7472 }
 0x5ef   : > { %v7535_v51 = vpop.permute.xlu0 %7534  ;;  %v7712_v19 = vsel %vm7708_vm13, %v12934_v23, %v12942_v35 }
 0x5f0   : > { %v7729_v28 = vsel %vm7726_vm15, %v7720_v61, %v7535_v51 }
 0x5f2   : > { %v12944_v58 = vpop.permute.xlu1 %7476 }
 0x5f3   : > { %v7539_v40 = vpop.permute.xlu0 %7538  ;;  %v7714_v31 = vsel %vm7708_vm13, %v12937_v1, %v12944_v58 }
 0x5f4   : > { %v7731_v37 = vsel %vm7726_vm15, %v7722_v25, %v7539_v40 }
 0x5f6   : > { %v12946_v34 = vpop.permute.xlu1 %7480 }
 0x5f7   : > { %v7543_v45 = vpop.permute.xlu0 %7542  ;;  %v7716_v51 = vsel %vm7708_vm13, %v12940_v22, %v12946_v34 }
 0x5f8   : > { %v7733_v11 = vsel %vm7726_vm15, %v7724_v52, %v7543_v45 }
 0x5fa   : > { %v7501_v17 = vpop.permute.xlu1 %7500 }
 0x5fb   : > { %v7563_v13 = vpop.permute.xlu0 %7562  ;;  %v7719_v32 = vsel %vm7717_vm14, %v7710_v4, %v7501_v17 }
 0x5fc   : > { %v7736_v50 = vsel %vm7735_vm0, %v7727_v36, %v7563_v13 }
 0x5fe   : > { %v7505_v14 = vpop.permute.xlu1 %7504 }
 0x5ff   : > { %v7567_v46 = vpop.permute.xlu0 %7566  ;;  %v7721_v62 = vsel %vm7717_vm14, %v7712_v19, %v7505_v14 }
 0x600   : > { %v7738_v49 = vsel %vm7735_vm0, %v7729_v28, %v7567_v46 }
 0x602   : > { %v7509_v56 = vpop.permute.xlu1 %7508 }
 0x603   : > { %v7571_v7 = vpop.permute.xlu0 %7570  ;;  %v7723_v23 = vsel %vm7717_vm14, %v7714_v31, %v7509_v56 }
 0x604   : > { %v7740_v20 = vsel %vm7735_vm0, %v7731_v37, %v7571_v7 }
 0x606   : > { %v12948_v30 = vpop.permute.xlu1 %7512 }
 0x607   : > { %v7575_v57 = vpop.permute.xlu0 %7574  ;;  %v7725_v58 = vsel %vm7717_vm14, %v7716_v51, %v12948_v30 }
 0x608   : > { %v7742_v39 = vsel %vm7735_vm0, %v7733_v11, %v7575_v57 }
 0x60a   : > { %v7533_v29 = vpop.permute.xlu1 %7532 }
 0x60b   : > { %v7595_v41 = vpop.permute.xlu0 %7594  ;;  %v7728_v6 = vsel %vm7726_vm15, %v7719_v32, %v7533_v29 }
 0x60c   : > { %v7745_v8 = vsel %vm7744_vm1, %v7736_v50, %v7595_v41 }
 0x60d   : > { %7754 = vst.msk [vmem:[%s12960_s3] sm:$0xff] %vm7753_vm2, %v7745_v8 }
 0x60e   : > { %v7537_v10 = vpop.permute.xlu1 %7536 }
 0x60f   : > { %v7599_v9 = vpop.permute.xlu0 %7598  ;;  %v7730_v27 = vsel %vm7726_vm15, %v7721_v62, %v7537_v10 }
 0x610   : > { %v7747_v63 = vsel %vm7744_vm1, %v7738_v49, %v7599_v9 }
 0x611   : > { %7756 = vst.msk [vmem:[%s12960_s3 + $0x10] sm:$0xff] %vm7753_vm2, %v7747_v63 }
 0x612   : > { %v7541_v60 = vpop.permute.xlu1 %7540 }
 0x613   : > { %v7603_v33 = vpop.permute.xlu0 %7602  ;;  %v7732_v0 = vsel %vm7726_vm15, %v7723_v23, %v7541_v60 }
 0x614   : > { %v7749_v44 = vsel %vm7744_vm1, %v7740_v20, %v7603_v33 }
 0x615   : > { %7758 = vst.msk [vmem:[%s12960_s3 + $0x20] sm:$0xff] %vm7753_vm2, %v7749_v44 }
 0x616   : > { %v7545_v12 = vpop.permute.xlu1 %7544 }
 0x617   : > { %v7607_v24 = vpop.permute.xlu0 %7606  ;;  %v7734_v40 = vsel %vm7726_vm15, %v7725_v58, %v7545_v12 }
 0x618   : > { %v7751_v42 = vsel %vm7744_vm1, %v7742_v39, %v7607_v24 }
 0x619   : > { %7760 = vst.msk [vmem:[%s12960_s3 + $0x30] sm:$0xff] %vm7753_vm2, %v7751_v42 }
 0x61a   : > { %v7565_v53 = vpop.permute.xlu1 %7564 }
 0x61b   : > { %v7737_v48 = vsel %vm7735_vm0, %v7728_v6, %v7565_v53 }
 0x61e   : > { %v7569_v54 = vpop.permute.xlu1 %7568 }
 0x61f   : > { %v7739_v3 = vsel %vm7735_vm0, %v7730_v27, %v7569_v54 }
 0x622   : > { %v7573_v18 = vpop.permute.xlu1 %7572 }
 0x623   : > { %v7741_v16 = vsel %vm7735_vm0, %v7732_v0, %v7573_v18 }
 0x626   : > { %v7577_v38 = vpop.permute.xlu1 %7576 }
 0x627   : > { %v7743_v45 = vsel %vm7735_vm0, %v7734_v40, %v7577_v38 }
 0x62a   : > { %v7597_v47 = vpop.permute.xlu1 %7596 }
 0x62b   : > { %v7746_v21 = vsel %vm7744_vm1, %v7737_v48, %v7597_v47 }
 0x62c   : > { %7755 = vst.msk [vmem:[%s12960_s3 + $0x8] sm:$0xff] %vm7753_vm2, %v7746_v21 }
 0x62e   : > { %v7601_v2 = vpop.permute.xlu1 %7600 }
 0x62f   : > { %v7748_v26 = vsel %vm7744_vm1, %v7739_v3, %v7601_v2 }
 0x630   : > { %7757 = vst.msk [vmem:[%s12960_s3 + $0x18] sm:$0xff] %vm7753_vm2, %v7748_v26 }
 0x632   : > { %v7605_v35 = vpop.permute.xlu1 %7604 }
 0x633   : > { %v7750_v1 = vsel %vm7744_vm1, %v7741_v16, %v7605_v35 }
 0x634   : > { %7759 = vst.msk [vmem:[%s12960_s3 + $0x28] sm:$0xff] %vm7753_vm2, %v7750_v1 }
 0x636   : > { %v7609_v17 = vpop.permute.xlu1 %7608 }
 0x637   : > { %v7752_v22 = vsel %vm7744_vm1, %v7743_v45, %v7609_v17 }
 0x638   : > { %7761 = vst.msk [vmem:[%s12960_s3 + $0x38] sm:$0xff] %vm7753_vm2, %v7752_v22 }
 0x639   : > { %8160 = shalt.err (!%p8157_p5)
}
 0x63a   : > { %s8161_s15 = scalar_lea.hbm %s13025_s30, 1024  ;;  %s8165_s22 = scalar_lea.hbm %s13079_s1, 2048 }
 0x63b   : > { %p8162_p4 = scmp.ne.s32.totalorder %s13025_s30, %s8161_s15  ;;  %p8166_p12 = scmp.lt.u32.totalorder %s13025_s30, %s13079_s1 }
 0x63c   : > { %p8167_p1 = scmp.lt.u32.totalorder %s8165_s22, %s8161_s15  ;;  %p8169_p8 = scmp.lt.u32.totalorder %s8161_s15, %s13025_s30 }
 0x63d   : > { %p8163_p7 = pnand %p8162_p4, %p14474_p9 }
 0x63e   : > { %p8168_p3 = por %p8167_p1, %p8166_p12 }
 0x63f   : > { %p8164_p10 = pneg %p8163_p7 }
 0x640   : > { %p8170_p11 = por %p8169_p8, %p8168_p3 }
 0x642   : > { %p8171_p0 = pnand %p8170_p11, %p8164_p10 }
 0x644   : > { %8174 = shalt.err (!%p8171_p0)
}
 0x645   : > { %s8255_s25 = smov 128  }
 0x646   : > { %7898 = dma.vmem_to_hbm [thread:$0]  (%p14474_p9), %s13018_s28, 1024, %s13025_s30, %s7763_s9, %s8255_s25, %s8255_s25, %s8240_s27  }
 0x647 PF: > { %s7793_s3 = sand.u32 1, %s8209_s6   ;;  %p14475_p6 = scmp.ne.s32.totalorder %s13291_s21, 0 }
 0x648   : > { %p14476_p13 = scmp.ge.s32.totalorder %s8229_s11, 2  ;;  %s7794_s4 = scalar_lea.sflag [#allocation4], %s7793_s3 }
 0x64a   : > { %p7905_p2 = pnand %p14476_p13, %p14475_p6 }
 0x64c   : > { %8204 = dma.done.wait (!%p7905_p2), %s7794_s4, 1024  }
 0x64d   : > { %8206 = vsyncadd (!%p7905_p2), %s7794_s4, 4294966272  ;;  %s17_s11 = sadd.s32 1, %s8229_s11   ;;  %s14477_s6 = smov %s8213_s7 }
 0x64e   : > { %p14_p5 = scmp.ge.s32.totalorder %s17_s11, 4   ;;  %s14478_s7 = smov %s8217_s8 }
 0x64f   : > { %s14479_s8 = smov %s8322_s20  ;;  %s14480_s9 = smov %s8225_s10 }
 0x650   : > { %s14481_s10 = smov %s14483_s14  ;;  %16 = sbr.rel (!%p14_p5) target bundleno = 6 (0x6), region = 72 }
 0x657   :  { %7799 = vsyncpa [#allocation3], 1 }
 0x658   :  { %7801 = vsyncpa [#allocation3 + $0x1], 1 }
 0x659   :  { %7802 = vsyncpa [#allocation4], 1 }
 0x65a   :  { %7804 = vsyncpa [#allocation4 + $0x1], 1 }

</bundles_post_ra>
